<compile_context>
chip_gen: v6e
topology: v6e:2x2x1
jax: 0.10.0
libtpu: 0.0.40
codegen_flags: <defaults>
</compile_context>

<pallas_src>
import jax
import jax.numpy as jnp
import numpy as np
from jax.experimental import pallas as pl
from jax.experimental.pallas import tpu as pltpu

EPS = 1e-5  # nn.InstanceNorm2d default eps
LANE = 128


def _mis_ins_resblock_kernel(
    xpad_ref,                      # (nb, H+2, W+2, Cp) reflect-padded, channel-padded input
    zb1_ref, zb2_ref,              # (nb, 1, Cep) precomputed z @ Wa[C:] + b_a (per image)
    w1_ref,                        # (9*Cp, Cp) im2col conv1 weights
    w1ax_ref, w1b_ref, b1b_ref,    # blk1: (Cp, Cep), (Cep, Cp), (1, Cp)
    w2_ref,                        # (9*Cp, Cp) im2col conv2 weights
    w2ax_ref, w2b_ref, b2b_ref,    # blk2
    out_ref,                       # (nb, H*W, Cp)  -- lane-dense output
    pad_scratch,                   # VMEM (nb, H+2, W+2, Cp) scratch for conv2 reflect pad
):
    nb, Hp, Wp, Cp = xpad_ref.shape
    H, W = Hp - 2, Wp - 2
    HW = H * W
    M = nb * HW
    Cep = w1ax_ref.shape[1]

    xpad = xpad_ref[...]

    def im2col(xp):
        # (nb, H+2, W+2, Cp) -> (nb*H*W, 9*Cp): one patch matrix, one MXU push.
        cols = []
        for dy in range(3):
            for dx in range(3):
                cols.append(xp[:, dy:dy + H, dx:dx + W, :].reshape(M, Cp))
        return jnp.concatenate(cols, axis=-1)

    def inorm(y):
        # per-sample instance norm over spatial positions (biased variance).
        y3 = y.reshape(nb, HW, Cp)
        m = jnp.mean(y3, axis=1, keepdims=True)
        v = jnp.mean((y3 - m) ** 2, axis=1, keepdims=True)
        return ((y3 - m) * jax.lax.rsqrt(v + EPS)).reshape(M, Cp)

    def blk(y, wax, zb, wb, bb):
        # conv1x1(cat([y, z])) -> ReLU -> conv1x1 -> ReLU, cat-free:
        #   cat @ Wa == y @ Wa[:C] + (z @ Wa[C:] + b_a)   (second term precomputed)
        h = jnp.dot(y, wax, preferred_element_type=jnp.float32)        # (M, Cep)
        h = jnp.maximum(h.reshape(nb, HW, Cep) + zb, 0.0).reshape(M, Cep)
        o = jnp.dot(h, wb, preferred_element_type=jnp.float32) + bb    # (M, Cp)
        return jnp.maximum(o, 0.0)

    # ---- conv1 + InstanceNorm (conv bias is a no-op before non-affine IN) ----
    o1 = inorm(jnp.dot(im2col(xpad), w1_ref[...],
                       preferred_element_type=jnp.float32))

    # ---- blk1 ----
    o2 = blk(o1, w1ax_ref[...], zb1_ref[...], w1b_ref[...], b1b_ref[...])

    # ---- conv2 + InstanceNorm: reflection-pad o2 into the VMEM scratch ----
    o2_img = o2.reshape(nb, H, W, Cp)
    pad_scratch[:, 1:H + 1, 1:W + 1, :] = o2_img
    # reflect top/bottom rows (interior rows 1 and H-2)
    pad_scratch[:, 0:1, 1:W + 1, :] = o2_img[:, 1:2, :, :]
    pad_scratch[:, H + 1:H + 2, 1:W + 1, :] = o2_img[:, H - 2:H - 1, :, :]
    # reflect left/right columns (includes corners, since rows are already filled)
    pad_scratch[:, :, 0:1, :] = pad_scratch[:, :, 2:3, :]
    pad_scratch[:, :, W + 1:W + 2, :] = pad_scratch[:, :, W - 1:W, :]

    o3 = inorm(jnp.dot(im2col(pad_scratch[...]), w2_ref[...],
                       preferred_element_type=jnp.float32))

    # ---- blk2 ----
    o4 = blk(o3, w2ax_ref[...], zb2_ref[...], w2b_ref[...], b2b_ref[...])

    # ---- residual add (interior of the padded input) ----
    x_flat = xpad[:, 1:H + 1, 1:W + 1, :].reshape(M, Cp)
    out_ref[...] = (o4 + x_flat).reshape(nb, HW, Cp)


def mis_ins_resblock(x_nhwc, z, params, nb=1):
    """x_nhwc: (N, H, W, C) float32; z: (N, dim_extra); returns (N, H, W, C)."""
    N, H, W, C = x_nhwc.shape
    de = z.shape[1]
    Ce = C + de
    Cp = ((C + LANE - 1) // LANE) * LANE      # lane-dense channel padding
    Cep = ((Ce + LANE - 1) // LANE) * LANE
    HW = H * W
    assert N % nb == 0, "nb must divide the batch size"
    f32 = jnp.float32

    x = x_nhwc.astype(f32)
    z = z.astype(f32)

    # channel-pad + spatial reflect-pad the input (cheap XLA work, outside the kernel)
    xcp = jnp.pad(x, ((0, 0), (0, 0), (0, 0), (0, Cp - C)))
    xpad = jnp.pad(xcp, ((0, 0), (1, 1), (1, 1), (0, 0)), mode="reflect")

    def pad_last(a, width):
        return jnp.pad(a, [(0, 0)] * (a.ndim - 1) + [(0, width - a.shape[-1])])

    # 3x3 conv weights -> im2col layout (9*Cp, Cp); conv biases dropped
    # (per-channel constant before non-affine InstanceNorm cancels exactly).
    def prep_w3(w):
        wp = jnp.zeros((3, 3, Cp, Cp), f32).at[:, :, :C, :C].set(w.astype(f32))
        return wp.reshape(9 * Cp, Cp)

    w1 = prep_w3(params["w1"])
    w2 = prep_w3(params["w2"])

    # 1x1-conv blocks: split cat([o, z]) @ Wa == o @ Wa[:C] + (z @ Wa[C:] + b_a);
    # the z part is a per-image constant row -> precompute here.
    def prep_blk(wa, ba, wb, bb):
        wa = wa.astype(f32)
        wax = jnp.zeros((Cp, Cep), f32).at[:C, :Ce].set(wa[:C])
        zb = z @ wa[C:] + ba.astype(f32)[None, :]                 # (N, Ce)
        zb = pad_last(zb, Cep).reshape(N, 1, Cep)
        wbp = jnp.zeros((Cep, Cp), f32).at[:Ce, :C].set(wb.astype(f32))
        bbp = pad_last(bb.astype(f32)[None, :], Cp)               # (1, Cp)
        return wax, zb, wbp, bbp

    w1ax, zb1, w1b, b1b = prep_blk(params["w1a"], params["b1a"],
                                   params["w1b"], params["b1b"])
    w2ax, zb2, w2b, b2b = prep_blk(params["w2a"], params["b2a"],
                                   params["w2b"], params["b2b"])

    def full(shape):
        nd = len(shape)
        return pl.BlockSpec(shape, lambda b, _n=nd: (0,) * _n)

    in_specs = [
        pl.BlockSpec((nb, H + 2, W + 2, Cp), lambda b: (b, 0, 0, 0)),   # xpad
        pl.BlockSpec((nb, 1, Cep), lambda b: (b, 0, 0)),                # zb1
        pl.BlockSpec((nb, 1, Cep), lambda b: (b, 0, 0)),                # zb2
        full((9 * Cp, Cp)),                                             # w1 (im2col)
        full((Cp, Cep)), full((Cep, Cp)), full((1, Cp)),                # blk1
        full((9 * Cp, Cp)),                                             # w2 (im2col)
        full((Cp, Cep)), full((Cep, Cp)), full((1, Cp)),                # blk2
    ]

    out = pl.pallas_call(
        _mis_ins_resblock_kernel,
        out_shape=jax.ShapeDtypeStruct((N, HW, Cp), f32),
        grid_spec=pltpu.PrefetchScalarGridSpec(
            num_scalar_prefetch=0,
            grid=(N // nb,),
            in_specs=in_specs,
            # lane-dense output block: last dim = Cp (multiple of 128)
            out_specs=pl.BlockSpec((nb, HW, Cp), lambda b: (b, 0, 0)),
            scratch_shapes=[pltpu.VMEM((nb, H + 2, W + 2, Cp), f32)],
        ),
        compiler_params=pltpu.CompilerParams(
            # batch elements are independent -> shard across v7x's 2 TensorCores
            dimension_semantics=("parallel",),
            # safe on all gens; raise (and/or lower weight buffering) when scaling
            # to production DRIT sizes (C~256, H=W~64), esp. v7x's 64 MiB VMEM.
            vmem_limit_bytes=32 * 1024 * 1024,
        ),
    )(xpad, zb1, zb2, w1, w1ax, w1b, b1b, w2, w2ax, w2b, b2b)

    # back to NHWC, drop the padded channels (cheap XLA work)
    return out.reshape(N, H, W, Cp)[..., :C]


# ---------------- pure-JAX reference (mirrors the PyTorch forward) -------------
def ref_forward(x_nhwc, z, p):
    def conv3x3(x, w, b):
        xp = jnp.pad(x, ((0, 0), (1, 1), (1, 1), (0, 0)), mode="reflect")
        y = jax.lax.conv_general_dilated(
            xp, w, (1, 1), "VALID",
            dimension_numbers=("NHWC", "HWIO", "NHWC"))
        return y + b[None, None, None, :]

    def inorm(y):
        m = jnp.mean(y, axis=(1, 2), keepdims=True)
        v = jnp.mean((y - m) ** 2, axis=(1, 2), keepdims=True)
        return (y - m) * jax.lax.rsqrt(v + EPS)

    def blk(y, zmap, wa, ba, wb, bb):
        c = jnp.concatenate([y, zmap], axis=-1)
        h = jax.nn.relu(jnp.einsum("nhwc,cd->nhwd", c, wa) + ba)
        return jax.nn.relu(jnp.einsum("nhwc,cd->nhwd", h, wb) + bb)

    N, H, W, C = x_nhwc.shape
    zmap = jnp.broadcast_to(z[:, None, None, :], (N, H, W, z.shape[1]))
    o1 = inorm(conv3x3(x_nhwc, p["w1"], p["b1"]))
    o2 = blk(o1, zmap, p["w1a"], p["b1a"], p["w1b"], p["b1b"])
    o3 = inorm(conv3x3(o2, p["w2"], p["b2"]))
    o4 = blk(o3, zmap, p["w2a"], p["b2a"], p["w2b"], p["b2b"])
    return o4 + x_nhwc


if __name__ == "__main__":
    N, dim, H, W = 2, 4, 16, 16
    dim_extra = 8
    Ce = dim + dim_extra

    key = jax.random.PRNGKey(0)
    keys = jax.random.split(key, 16)
    std = 0.02  # gaussian_weights_init: normal(0.0, 0.02) for conv weights

    params = {
        "w1":  jax.random.normal(keys[0],  (3, 3, dim, dim), jnp.float32) * std,
        "b1":  jax.random.normal(keys[1],  (dim,),           jnp.float32) * std,
        "w2":  jax.random.normal(keys[2],  (3, 3, dim, dim), jnp.float32) * std,
        "b2":  jax.random.normal(keys[3],  (dim,),           jnp.float32) * std,
        "w1a": jax.random.normal(keys[4],  (Ce, Ce),         jnp.float32) * std,
        "b1a": jax.random.normal(keys[5],  (Ce,),            jnp.float32) * std,
        "w1b": jax.random.normal(keys[6],  (Ce, dim),        jnp.float32) * std,
        "b1b": jax.random.normal(keys[7],  (dim,),           jnp.float32) * std,
        "w2a": jax.random.normal(keys[8],  (Ce, Ce),         jnp.float32) * std,
        "b2a": jax.random.normal(keys[9],  (Ce,),            jnp.float32) * std,
        "w2b": jax.random.normal(keys[10], (Ce, dim),        jnp.float32) * std,
        "b2b": jax.random.normal(keys[11], (dim,),           jnp.float32) * std,
    }

    x_nchw = jax.random.normal(keys[14], (N, dim, H, W), jnp.float32)  # PyTorch NCHW
    z = jax.random.normal(keys[15], (N, dim_extra), jnp.float32)

    x_nhwc = jnp.transpose(x_nchw, (0, 2, 3, 1))

    ref = jax.block_until_ready(ref_forward(x_nhwc, z, params))

    # one image per grid step (grid=(2,), "parallel" -> both v7x TCs busy)
    out1 = jax.block_until_ready(mis_ins_resblock(x_nhwc, z, params, nb=1))
    np.testing.assert_allclose(np.asarray(out1), np.asarray(ref),
                               rtol=1e-3, atol=1e-4)

    # batched path: both images stacked along the matmul M dimension in one step
    out2 = jax.block_until_ready(mis_ins_resblock(x_nhwc, z, params, nb=2))
    np.testing.assert_allclose(np.asarray(out2), np.asarray(ref),
                               rtol=1e-3, atol=1e-4)

    print("KERNEL_OK")
</pallas_src>

<mosaic_0001>
module attributes {stable_mosaic.version = 11 : i64} {
  func.func @_mis_ins_resblock_kernel(%arg0: i32, %arg1: memref<1x18x18x128xf32, #tpu.memory_space<vmem>>, %arg2: memref<1x1x128xf32, #tpu.memory_space<vmem>>, %arg3: memref<1x1x128xf32, #tpu.memory_space<vmem>>, %arg4: memref<1152x128xf32, #tpu.memory_space<vmem>>, %arg5: memref<128x128xf32, #tpu.memory_space<vmem>>, %arg6: memref<128x128xf32, #tpu.memory_space<vmem>>, %arg7: memref<1x128xf32, #tpu.memory_space<vmem>>, %arg8: memref<1152x128xf32, #tpu.memory_space<vmem>>, %arg9: memref<128x128xf32, #tpu.memory_space<vmem>>, %arg10: memref<128x128xf32, #tpu.memory_space<vmem>>, %arg11: memref<1x128xf32, #tpu.memory_space<vmem>>, %arg12: memref<1x256x128xf32, #tpu.memory_space<vmem>>, %arg13: memref<1x18x18x128xf32, #tpu.memory_space<vmem>>) attributes {dimension_semantics = [#tpu.dimension_semantics<parallel>], iteration_bounds = array<i64: 2>, scalar_prefetch = 0 : i64, scratch_operands = 1 : i64, tpu.core_type = #tpu.core_type<tc>, window_params = [{transform_indices = @transform_0, window_bounds = array<i64: 1, 18, 18, 128>}, {transform_indices = @transform_1, window_bounds = array<i64: 1, 1, 128>}, {transform_indices = @transform_2, window_bounds = array<i64: 1, 1, 128>}, {pipeline_mode = #tpu.pipeline_mode<synchronous>, transform_indices = @transform_3, window_bounds = array<i64: 1152, 128>}, {pipeline_mode = #tpu.pipeline_mode<synchronous>, transform_indices = @transform_4, window_bounds = array<i64: 128, 128>}, {pipeline_mode = #tpu.pipeline_mode<synchronous>, transform_indices = @transform_5, window_bounds = array<i64: 128, 128>}, {pipeline_mode = #tpu.pipeline_mode<synchronous>, transform_indices = @transform_6, window_bounds = array<i64: 1, 128>}, {pipeline_mode = #tpu.pipeline_mode<synchronous>, transform_indices = @transform_7, window_bounds = array<i64: 1152, 128>}, {pipeline_mode = #tpu.pipeline_mode<synchronous>, transform_indices = @transform_8, window_bounds = array<i64: 128, 128>}, {pipeline_mode = #tpu.pipeline_mode<synchronous>, transform_indices = @transform_9, window_bounds = array<i64: 128, 128>}, {pipeline_mode = #tpu.pipeline_mode<synchronous>, transform_indices = @transform_10, window_bounds = array<i64: 1, 128>}, {transform_indices = @transform_11, window_bounds = array<i64: 1, 256, 128>}]} {
    %c0 = arith.constant 0 : index
    %c0_0 = arith.constant 0 : index
    %c0_1 = arith.constant 0 : index
    %c0_2 = arith.constant 0 : index
    %0 = vector.load %arg1[%c0, %c0_0, %c0_1, %c0_2] : memref<1x18x18x128xf32, #tpu.memory_space<vmem>>, vector<1x18x18x128xf32>
    %1 = vector.extract_strided_slice %0 {offsets = [0, 0, 0, 0], sizes = [1, 16, 16, 128], strides = [1, 1, 1, 1]} : vector<1x18x18x128xf32> to vector<1x16x16x128xf32>
    %2 = vector.shape_cast %1 : vector<1x16x16x128xf32> to vector<256x128xf32>
    %3 = vector.extract_strided_slice %0 {offsets = [0, 0, 1, 0], sizes = [1, 16, 16, 128], strides = [1, 1, 1, 1]} : vector<1x18x18x128xf32> to vector<1x16x16x128xf32>
    %4 = vector.shape_cast %3 : vector<1x16x16x128xf32> to vector<256x128xf32>
    %5 = vector.extract_strided_slice %0 {offsets = [0, 0, 2, 0], sizes = [1, 16, 16, 128], strides = [1, 1, 1, 1]} : vector<1x18x18x128xf32> to vector<1x16x16x128xf32>
    %6 = vector.shape_cast %5 : vector<1x16x16x128xf32> to vector<256x128xf32>
    %7 = vector.extract_strided_slice %0 {offsets = [0, 1, 0, 0], sizes = [1, 16, 16, 128], strides = [1, 1, 1, 1]} : vector<1x18x18x128xf32> to vector<1x16x16x128xf32>
    %8 = vector.shape_cast %7 : vector<1x16x16x128xf32> to vector<256x128xf32>
    %9 = vector.extract_strided_slice %0 {offsets = [0, 1, 1, 0], sizes = [1, 16, 16, 128], strides = [1, 1, 1, 1]} : vector<1x18x18x128xf32> to vector<1x16x16x128xf32>
    %10 = vector.shape_cast %9 : vector<1x16x16x128xf32> to vector<256x128xf32>
    %11 = vector.extract_strided_slice %0 {offsets = [0, 1, 2, 0], sizes = [1, 16, 16, 128], strides = [1, 1, 1, 1]} : vector<1x18x18x128xf32> to vector<1x16x16x128xf32>
    %12 = vector.shape_cast %11 : vector<1x16x16x128xf32> to vector<256x128xf32>
    %13 = vector.extract_strided_slice %0 {offsets = [0, 2, 0, 0], sizes = [1, 16, 16, 128], strides = [1, 1, 1, 1]} : vector<1x18x18x128xf32> to vector<1x16x16x128xf32>
    %14 = vector.shape_cast %13 : vector<1x16x16x128xf32> to vector<256x128xf32>
    %15 = vector.extract_strided_slice %0 {offsets = [0, 2, 1, 0], sizes = [1, 16, 16, 128], strides = [1, 1, 1, 1]} : vector<1x18x18x128xf32> to vector<1x16x16x128xf32>
    %16 = vector.shape_cast %15 : vector<1x16x16x128xf32> to vector<256x128xf32>
    %17 = vector.extract_strided_slice %0 {offsets = [0, 2, 2, 0], sizes = [1, 16, 16, 128], strides = [1, 1, 1, 1]} : vector<1x18x18x128xf32> to vector<1x16x16x128xf32>
    %18 = vector.shape_cast %17 : vector<1x16x16x128xf32> to vector<256x128xf32>
    %19 = tpu.concatenate %2, %4, %6, %8, %10, %12, %14, %16, %18 in 1 : vector<256x128xf32>, vector<256x128xf32>, vector<256x128xf32>, vector<256x128xf32>, vector<256x128xf32>, vector<256x128xf32>, vector<256x128xf32>, vector<256x128xf32>, vector<256x128xf32> -> vector<256x1152xf32>
    %c0_3 = arith.constant 0 : index
    %c0_4 = arith.constant 0 : index
    %20 = vector.load %arg4[%c0_3, %c0_4] : memref<1152x128xf32, #tpu.memory_space<vmem>>, vector<1152x128xf32>
    %cst = arith.constant dense<0.000000e+00> : vector<256x128xf32>
    %21 = tpu.matmul %19, %20, %cst {dimension_numbers = #tpu.dot_dimension_numbers<[1], [0], [0], [1], [0, 0, 1, 1], [], []>} : vector<256x1152xf32>, vector<1152x128xf32>, vector<256x128xf32> -> vector<256x128xf32>
    %22 = vector.shape_cast %21 : vector<256x128xf32> to vector<1x256x128xf32>
    %cst_5 = arith.constant dense<0.000000e+00> : vector<1x128xf32>
    %23 = vector.multi_reduction <add>, %22, %cst_5 [1] : vector<1x256x128xf32> to vector<1x128xf32>
    %24 = vector.shape_cast %23 : vector<1x128xf32> to vector<1x1x128xf32>
    %cst_6 = arith.constant 2.560000e+02 : f32
    %25 = vector.broadcast %cst_6 : f32 to vector<1x1x128xf32>
    %26 = arith.divf %24, %25 : vector<1x1x128xf32>
    %27 = vector.broadcast %26 : vector<1x1x128xf32> to vector<1x256x128xf32>
    %28 = arith.subf %22, %27 : vector<1x256x128xf32>
    %29 = arith.mulf %28, %28 : vector<1x256x128xf32>
    %cst_7 = arith.constant dense<0.000000e+00> : vector<1x128xf32>
    %30 = vector.multi_reduction <add>, %29, %cst_7 [1] : vector<1x256x128xf32> to vector<1x128xf32>
    %31 = vector.shape_cast %30 : vector<1x128xf32> to vector<1x1x128xf32>
    %cst_8 = arith.constant 2.560000e+02 : f32
    %32 = vector.broadcast %cst_8 : f32 to vector<1x1x128xf32>
    %33 = arith.divf %31, %32 : vector<1x1x128xf32>
    %34 = vector.broadcast %26 : vector<1x1x128xf32> to vector<1x256x128xf32>
    %35 = arith.subf %22, %34 : vector<1x256x128xf32>
    %cst_9 = arith.constant 9.99999974E-6 : f32
    %36 = vector.broadcast %cst_9 : f32 to vector<1x1x128xf32>
    %37 = arith.addf %33, %36 : vector<1x1x128xf32>
    %38 = math.rsqrt %37 : vector<1x1x128xf32>
    %39 = vector.broadcast %38 : vector<1x1x128xf32> to vector<1x256x128xf32>
    %40 = arith.mulf %35, %39 : vector<1x256x128xf32>
    %41 = vector.shape_cast %40 : vector<1x256x128xf32> to vector<256x128xf32>
    %c0_10 = arith.constant 0 : index
    %c0_11 = arith.constant 0 : index
    %42 = vector.load %arg5[%c0_10, %c0_11] : memref<128x128xf32, #tpu.memory_space<vmem>>, vector<128x128xf32>
    %c0_12 = arith.constant 0 : index
    %c0_13 = arith.constant 0 : index
    %c0_14 = arith.constant 0 : index
    %43 = vector.load %arg2[%c0_12, %c0_13, %c0_14] : memref<1x1x128xf32, #tpu.memory_space<vmem>>, vector<1x1x128xf32>
    %c0_15 = arith.constant 0 : index
    %c0_16 = arith.constant 0 : index
    %44 = vector.load %arg6[%c0_15, %c0_16] : memref<128x128xf32, #tpu.memory_space<vmem>>, vector<128x128xf32>
    %c0_17 = arith.constant 0 : index
    %c0_18 = arith.constant 0 : index
    %45 = vector.load %arg7[%c0_17, %c0_18] : memref<1x128xf32, #tpu.memory_space<vmem>>, vector<1x128xf32>
    %cst_19 = arith.constant dense<0.000000e+00> : vector<256x128xf32>
    %46 = tpu.matmul %41, %42, %cst_19 {dimension_numbers = #tpu.dot_dimension_numbers<[1], [0], [0], [1], [0, 0, 1, 1], [], []>} : vector<256x128xf32>, vector<128x128xf32>, vector<256x128xf32> -> vector<256x128xf32>
    %47 = vector.shape_cast %46 : vector<256x128xf32> to vector<1x256x128xf32>
    %48 = vector.broadcast %43 : vector<1x1x128xf32> to vector<1x256x128xf32>
    %49 = arith.addf %47, %48 : vector<1x256x128xf32>
    %cst_20 = arith.constant 0.000000e+00 : f32
    %50 = vector.broadcast %cst_20 : f32 to vector<1x256x128xf32>
    %51 = arith.maximumf %49, %50 : vector<1x256x128xf32>
    %52 = vector.shape_cast %51 : vector<1x256x128xf32> to vector<256x128xf32>
    %cst_21 = arith.constant dense<0.000000e+00> : vector<256x128xf32>
    %53 = tpu.matmul %52, %44, %cst_21 {dimension_numbers = #tpu.dot_dimension_numbers<[1], [0], [0], [1], [0, 0, 1, 1], [], []>} : vector<256x128xf32>, vector<128x128xf32>, vector<256x128xf32> -> vector<256x128xf32>
    %54 = vector.broadcast %45 : vector<1x128xf32> to vector<256x128xf32>
    %55 = arith.addf %53, %54 : vector<256x128xf32>
    %cst_22 = arith.constant 0.000000e+00 : f32
    %56 = vector.broadcast %cst_22 : f32 to vector<256x128xf32>
    %57 = arith.maximumf %55, %56 : vector<256x128xf32>
    %58 = vector.shape_cast %57 : vector<256x128xf32> to vector<1x16x16x128xf32>
    %c0_23 = arith.constant 0 : index
    %c1 = arith.constant 1 : index
    %c1_24 = arith.constant 1 : index
    %c0_25 = arith.constant 0 : index
    %59 = vector.load %arg13[%c0_23, %c1, %c1_24, %c0_25] : memref<1x18x18x128xf32, #tpu.memory_space<vmem>>, vector<1x16x16x128xf32>
    tpu.vector_store %arg13[%c0_23, %c1, %c1_24, %c0_25], %58 {strides = array<i32>} : memref<1x18x18x128xf32, #tpu.memory_space<vmem>>, vector<1x16x16x128xf32>,
    %60 = vector.extract_strided_slice %58 {offsets = [0, 1, 0, 0], sizes = [1, 1, 16, 128], strides = [1, 1, 1, 1]} : vector<1x16x16x128xf32> to vector<1x1x16x128xf32>
    %c0_26 = arith.constant 0 : index
    %c0_27 = arith.constant 0 : index
    %c1_28 = arith.constant 1 : index
    %c0_29 = arith.constant 0 : index
    %61 = vector.load %arg13[%c0_26, %c0_27, %c1_28, %c0_29] : memref<1x18x18x128xf32, #tpu.memory_space<vmem>>, vector<1x1x16x128xf32>
    tpu.vector_store %arg13[%c0_26, %c0_27, %c1_28, %c0_29], %60 {strides = array<i32>} : memref<1x18x18x128xf32, #tpu.memory_space<vmem>>, vector<1x1x16x128xf32>,
    %62 = vector.extract_strided_slice %58 {offsets = [0, 14, 0, 0], sizes = [1, 1, 16, 128], strides = [1, 1, 1, 1]} : vector<1x16x16x128xf32> to vector<1x1x16x128xf32>
    %c0_30 = arith.constant 0 : index
    %c17 = arith.constant 17 : index
    %c1_31 = arith.constant 1 : index
    %c0_32 = arith.constant 0 : index
    %63 = vector.load %arg13[%c0_30, %c17, %c1_31, %c0_32] : memref<1x18x18x128xf32, #tpu.memory_space<vmem>>, vector<1x1x16x128xf32>
    tpu.vector_store %arg13[%c0_30, %c17, %c1_31, %c0_32], %62 {strides = array<i32>} : memref<1x18x18x128xf32, #tpu.memory_space<vmem>>, vector<1x1x16x128xf32>,
    %c0_33 = arith.constant 0 : index
    %c0_34 = arith.constant 0 : index
    %c2 = arith.constant 2 : index
    %c0_35 = arith.constant 0 : index
    %64 = vector.load %arg13[%c0_33, %c0_34, %c2, %c0_35] : memref<1x18x18x128xf32, #tpu.memory_space<vmem>>, vector<1x18x1x128xf32>
    %c0_36 = arith.constant 0 : index
    %c0_37 = arith.constant 0 : index
    %c0_38 = arith.constant 0 : index
    %c0_39 = arith.constant 0 : index
    %65 = vector.load %arg13[%c0_36, %c0_37, %c0_38, %c0_39] : memref<1x18x18x128xf32, #tpu.memory_space<vmem>>, vector<1x18x1x128xf32>
    tpu.vector_store %arg13[%c0_36, %c0_37, %c0_38, %c0_39], %64 {strides = array<i32>} : memref<1x18x18x128xf32, #tpu.memory_space<vmem>>, vector<1x18x1x128xf32>,
    %c0_40 = arith.constant 0 : index
    %c0_41 = arith.constant 0 : index
    %c15 = arith.constant 15 : index
    %c0_42 = arith.constant 0 : index
    %66 = vector.load %arg13[%c0_40, %c0_41, %c15, %c0_42] : memref<1x18x18x128xf32, #tpu.memory_space<vmem>>, vector<1x18x1x128xf32>
    %c0_43 = arith.constant 0 : index
    %c0_44 = arith.constant 0 : index
    %c17_45 = arith.constant 17 : index
    %c0_46 = arith.constant 0 : index
    %67 = vector.load %arg13[%c0_43, %c0_44, %c17_45, %c0_46] : memref<1x18x18x128xf32, #tpu.memory_space<vmem>>, vector<1x18x1x128xf32>
    tpu.vector_store %arg13[%c0_43, %c0_44, %c17_45, %c0_46], %66 {strides = array<i32>} : memref<1x18x18x128xf32, #tpu.memory_space<vmem>>, vector<1x18x1x128xf32>,
    %c0_47 = arith.constant 0 : index
    %c0_48 = arith.constant 0 : index
    %c0_49 = arith.constant 0 : index
    %c0_50 = arith.constant 0 : index
    %68 = vector.load %arg13[%c0_47, %c0_48, %c0_49, %c0_50] : memref<1x18x18x128xf32, #tpu.memory_space<vmem>>, vector<1x18x18x128xf32>
    %69 = vector.extract_strided_slice %68 {offsets = [0, 0, 0, 0], sizes = [1, 16, 16, 128], strides = [1, 1, 1, 1]} : vector<1x18x18x128xf32> to vector<1x16x16x128xf32>
    %70 = vector.shape_cast %69 : vector<1x16x16x128xf32> to vector<256x128xf32>
    %71 = vector.extract_strided_slice %68 {offsets = [0, 0, 1, 0], sizes = [1, 16, 16, 128], strides = [1, 1, 1, 1]} : vector<1x18x18x128xf32> to vector<1x16x16x128xf32>
    %72 = vector.shape_cast %71 : vector<1x16x16x128xf32> to vector<256x128xf32>
    %73 = vector.extract_strided_slice %68 {offsets = [0, 0, 2, 0], sizes = [1, 16, 16, 128], strides = [1, 1, 1, 1]} : vector<1x18x18x128xf32> to vector<1x16x16x128xf32>
    %74 = vector.shape_cast %73 : vector<1x16x16x128xf32> to vector<256x128xf32>
    %75 = vector.extract_strided_slice %68 {offsets = [0, 1, 0, 0], sizes = [1, 16, 16, 128], strides = [1, 1, 1, 1]} : vector<1x18x18x128xf32> to vector<1x16x16x128xf32>
    %76 = vector.shape_cast %75 : vector<1x16x16x128xf32> to vector<256x128xf32>
    %77 = vector.extract_strided_slice %68 {offsets = [0, 1, 1, 0], sizes = [1, 16, 16, 128], strides = [1, 1, 1, 1]} : vector<1x18x18x128xf32> to vector<1x16x16x128xf32>
    %78 = vector.shape_cast %77 : vector<1x16x16x128xf32> to vector<256x128xf32>
    %79 = vector.extract_strided_slice %68 {offsets = [0, 1, 2, 0], sizes = [1, 16, 16, 128], strides = [1, 1, 1, 1]} : vector<1x18x18x128xf32> to vector<1x16x16x128xf32>
    %80 = vector.shape_cast %79 : vector<1x16x16x128xf32> to vector<256x128xf32>
    %81 = vector.extract_strided_slice %68 {offsets = [0, 2, 0, 0], sizes = [1, 16, 16, 128], strides = [1, 1, 1, 1]} : vector<1x18x18x128xf32> to vector<1x16x16x128xf32>
    %82 = vector.shape_cast %81 : vector<1x16x16x128xf32> to vector<256x128xf32>
    %83 = vector.extract_strided_slice %68 {offsets = [0, 2, 1, 0], sizes = [1, 16, 16, 128], strides = [1, 1, 1, 1]} : vector<1x18x18x128xf32> to vector<1x16x16x128xf32>
    %84 = vector.shape_cast %83 : vector<1x16x16x128xf32> to vector<256x128xf32>
    %85 = vector.extract_strided_slice %68 {offsets = [0, 2, 2, 0], sizes = [1, 16, 16, 128], strides = [1, 1, 1, 1]} : vector<1x18x18x128xf32> to vector<1x16x16x128xf32>
    %86 = vector.shape_cast %85 : vector<1x16x16x128xf32> to vector<256x128xf32>
    %87 = tpu.concatenate %70, %72, %74, %76, %78, %80, %82, %84, %86 in 1 : vector<256x128xf32>, vector<256x128xf32>, vector<256x128xf32>, vector<256x128xf32>, vector<256x128xf32>, vector<256x128xf32>, vector<256x128xf32>, vector<256x128xf32>, vector<256x128xf32> -> vector<256x1152xf32>
    %c0_51 = arith.constant 0 : index
    %c0_52 = arith.constant 0 : index
    %88 = vector.load %arg8[%c0_51, %c0_52] : memref<1152x128xf32, #tpu.memory_space<vmem>>, vector<1152x128xf32>
    %cst_53 = arith.constant dense<0.000000e+00> : vector<256x128xf32>
    %89 = tpu.matmul %87, %88, %cst_53 {dimension_numbers = #tpu.dot_dimension_numbers<[1], [0], [0], [1], [0, 0, 1, 1], [], []>} : vector<256x1152xf32>, vector<1152x128xf32>, vector<256x128xf32> -> vector<256x128xf32>
    %90 = vector.shape_cast %89 : vector<256x128xf32> to vector<1x256x128xf32>
    %cst_54 = arith.constant dense<0.000000e+00> : vector<1x128xf32>
    %91 = vector.multi_reduction <add>, %90, %cst_54 [1] : vector<1x256x128xf32> to vector<1x128xf32>
    %92 = vector.shape_cast %91 : vector<1x128xf32> to vector<1x1x128xf32>
    %cst_55 = arith.constant 2.560000e+02 : f32
    %93 = vector.broadcast %cst_55 : f32 to vector<1x1x128xf32>
    %94 = arith.divf %92, %93 : vector<1x1x128xf32>
    %95 = vector.broadcast %94 : vector<1x1x128xf32> to vector<1x256x128xf32>
    %96 = arith.subf %90, %95 : vector<1x256x128xf32>
    %97 = arith.mulf %96, %96 : vector<1x256x128xf32>
    %cst_56 = arith.constant dense<0.000000e+00> : vector<1x128xf32>
    %98 = vector.multi_reduction <add>, %97, %cst_56 [1] : vector<1x256x128xf32> to vector<1x128xf32>
    %99 = vector.shape_cast %98 : vector<1x128xf32> to vector<1x1x128xf32>
    %cst_57 = arith.constant 2.560000e+02 : f32
    %100 = vector.broadcast %cst_57 : f32 to vector<1x1x128xf32>
    %101 = arith.divf %99, %100 : vector<1x1x128xf32>
    %102 = vector.broadcast %94 : vector<1x1x128xf32> to vector<1x256x128xf32>
    %103 = arith.subf %90, %102 : vector<1x256x128xf32>
    %cst_58 = arith.constant 9.99999974E-6 : f32
    %104 = vector.broadcast %cst_58 : f32 to vector<1x1x128xf32>
    %105 = arith.addf %101, %104 : vector<1x1x128xf32>
    %106 = math.rsqrt %105 : vector<1x1x128xf32>
    %107 = vector.broadcast %106 : vector<1x1x128xf32> to vector<1x256x128xf32>
    %108 = arith.mulf %103, %107 : vector<1x256x128xf32>
    %109 = vector.shape_cast %108 : vector<1x256x128xf32> to vector<256x128xf32>
    %c0_59 = arith.constant 0 : index
    %c0_60 = arith.constant 0 : index
    %110 = vector.load %arg9[%c0_59, %c0_60] : memref<128x128xf32, #tpu.memory_space<vmem>>, vector<128x128xf32>
    %c0_61 = arith.constant 0 : index
    %c0_62 = arith.constant 0 : index
    %c0_63 = arith.constant 0 : index
    %111 = vector.load %arg3[%c0_61, %c0_62, %c0_63] : memref<1x1x128xf32, #tpu.memory_space<vmem>>, vector<1x1x128xf32>
    %c0_64 = arith.constant 0 : index
    %c0_65 = arith.constant 0 : index
    %112 = vector.load %arg10[%c0_64, %c0_65] : memref<128x128xf32, #tpu.memory_space<vmem>>, vector<128x128xf32>
    %c0_66 = arith.constant 0 : index
    %c0_67 = arith.constant 0 : index
    %113 = vector.load %arg11[%c0_66, %c0_67] : memref<1x128xf32, #tpu.memory_space<vmem>>, vector<1x128xf32>
    %cst_68 = arith.constant dense<0.000000e+00> : vector<256x128xf32>
    %114 = tpu.matmul %109, %110, %cst_68 {dimension_numbers = #tpu.dot_dimension_numbers<[1], [0], [0], [1], [0, 0, 1, 1], [], []>} : vector<256x128xf32>, vector<128x128xf32>, vector<256x128xf32> -> vector<256x128xf32>
    %115 = vector.shape_cast %114 : vector<256x128xf32> to vector<1x256x128xf32>
    %116 = vector.broadcast %111 : vector<1x1x128xf32> to vector<1x256x128xf32>
    %117 = arith.addf %115, %116 : vector<1x256x128xf32>
    %cst_69 = arith.constant 0.000000e+00 : f32
    %118 = vector.broadcast %cst_69 : f32 to vector<1x256x128xf32>
    %119 = arith.maximumf %117, %118 : vector<1x256x128xf32>
    %120 = vector.shape_cast %119 : vector<1x256x128xf32> to vector<256x128xf32>
    %cst_70 = arith.constant dense<0.000000e+00> : vector<256x128xf32>
    %121 = tpu.matmul %120, %112, %cst_70 {dimension_numbers = #tpu.dot_dimension_numbers<[1], [0], [0], [1], [0, 0, 1, 1], [], []>} : vector<256x128xf32>, vector<128x128xf32>, vector<256x128xf32> -> vector<256x128xf32>
    %122 = vector.broadcast %113 : vector<1x128xf32> to vector<256x128xf32>
    %123 = arith.addf %121, %122 : vector<256x128xf32>
    %cst_71 = arith.constant 0.000000e+00 : f32
    %124 = vector.broadcast %cst_71 : f32 to vector<256x128xf32>
    %125 = arith.maximumf %123, %124 : vector<256x128xf32>
    %126 = vector.extract_strided_slice %0 {offsets = [0, 1, 1, 0], sizes = [1, 16, 16, 128], strides = [1, 1, 1, 1]} : vector<1x18x18x128xf32> to vector<1x16x16x128xf32>
    %127 = vector.shape_cast %126 : vector<1x16x16x128xf32> to vector<256x128xf32>
    %128 = arith.addf %125, %127 : vector<256x128xf32>
    %129 = vector.shape_cast %128 : vector<256x128xf32> to vector<1x256x128xf32>
    %c0_72 = arith.constant 0 : index
    %c0_73 = arith.constant 0 : index
    %c0_74 = arith.constant 0 : index
    %130 = vector.load %arg12[%c0_72, %c0_73, %c0_74] : memref<1x256x128xf32, #tpu.memory_space<vmem>>, vector<1x256x128xf32>
    tpu.vector_store %arg12[%c0_72, %c0_73, %c0_74], %129 {strides = array<i32>} : memref<1x256x128xf32, #tpu.memory_space<vmem>>, vector<1x256x128xf32>,
    return
  }
  func.func @transform_0(%arg0: i32) -> (i32, i32, i32, i32) {
    %c0_i32 = arith.constant 0 : i32
    %c0_i32_0 = arith.constant 0 : i32
    %c0_i32_1 = arith.constant 0 : i32
    %c0_i32_2 = arith.constant 0 : i32
    return %arg0, %c0_i32, %c0_i32_0, %c0_i32_1 : i32, i32, i32, i32
  }
  func.func @transform_1(%arg0: i32) -> (i32, i32, i32) {
    %c0_i32 = arith.constant 0 : i32
    %c0_i32_0 = arith.constant 0 : i32
    %c0_i32_1 = arith.constant 0 : i32
    return %arg0, %c0_i32, %c0_i32_0 : i32, i32, i32
  }
  func.func @transform_2(%arg0: i32) -> (i32, i32, i32) {
    %c0_i32 = arith.constant 0 : i32
    %c0_i32_0 = arith.constant 0 : i32
    %c0_i32_1 = arith.constant 0 : i32
    return %arg0, %c0_i32, %c0_i32_0 : i32, i32, i32
  }
  func.func @transform_3(%arg0: i32) -> (i32, i32) {
    %c0_i32 = arith.constant 0 : i32
    %c0_i32_0 = arith.constant 0 : i32
    %c0_i32_1 = arith.constant 0 : i32
    return %c0_i32, %c0_i32_0 : i32, i32
  }
  func.func @transform_4(%arg0: i32) -> (i32, i32) {
    %c0_i32 = arith.constant 0 : i32
    %c0_i32_0 = arith.constant 0 : i32
    %c0_i32_1 = arith.constant 0 : i32
    return %c0_i32, %c0_i32_0 : i32, i32
  }
  func.func @transform_5(%arg0: i32) -> (i32, i32) {
    %c0_i32 = arith.constant 0 : i32
    %c0_i32_0 = arith.constant 0 : i32
    %c0_i32_1 = arith.constant 0 : i32
    return %c0_i32, %c0_i32_0 : i32, i32
  }
  func.func @transform_6(%arg0: i32) -> (i32, i32) {
    %c0_i32 = arith.constant 0 : i32
    %c0_i32_0 = arith.constant 0 : i32
    %c0_i32_1 = arith.constant 0 : i32
    return %c0_i32, %c0_i32_0 : i32, i32
  }
  func.func @transform_7(%arg0: i32) -> (i32, i32) {
    %c0_i32 = arith.constant 0 : i32
    %c0_i32_0 = arith.constant 0 : i32
    %c0_i32_1 = arith.constant 0 : i32
    return %c0_i32, %c0_i32_0 : i32, i32
  }
  func.func @transform_8(%arg0: i32) -> (i32, i32) {
    %c0_i32 = arith.constant 0 : i32
    %c0_i32_0 = arith.constant 0 : i32
    %c0_i32_1 = arith.constant 0 : i32
    return %c0_i32, %c0_i32_0 : i32, i32
  }
  func.func @transform_9(%arg0: i32) -> (i32, i32) {
    %c0_i32 = arith.constant 0 : i32
    %c0_i32_0 = arith.constant 0 : i32
    %c0_i32_1 = arith.constant 0 : i32
    return %c0_i32, %c0_i32_0 : i32, i32
  }
  func.func @transform_10(%arg0: i32) -> (i32, i32) {
    %c0_i32 = arith.constant 0 : i32
    %c0_i32_0 = arith.constant 0 : i32
    %c0_i32_1 = arith.constant 0 : i32
    return %c0_i32, %c0_i32_0 : i32, i32
  }
  func.func @transform_11(%arg0: i32) -> (i32, i32, i32) {
    %c0_i32 = arith.constant 0 : i32
    %c0_i32_0 = arith.constant 0 : i32
    %c0_i32_1 = arith.constant 0 : i32
    return %arg0, %c0_i32, %c0_i32_0 : i32, i32, i32
  }
}

</mosaic_0001>

<bundles_post_ra>
// kernel: tpu_custom_call.1
= control target key start
LH: loop header
LB: loop body
LE: loop exit
PB: predicated region body
PF: predicated region fallthrough
CT: control target
= control target key end

     0   :  { %16 = vsyncpa [#allocation4], 0  ;;  %s10088_s0 = inlined_call_operand.vmem [shape: f32[2,18,18,128], index: 0, kind: input, shape index: {}]   ;;  %s10089_s1 = inlined_call_operand.vmem [shape: f32[2,1,128], index: 1, kind: input, shape index: {}]   ;;  %s10090_s2 = inlined_call_operand.vmem [shape: f32[2,1,128], index: 2, kind: input, shape index: {}]   ;;  %s10091_s3 = inlined_call_operand.vmem [shape: f32[1152,128], index: 3, kind: input, shape index: {}]   ;;  %s10092_s4 = inlined_call_operand.vmem [shape: f32[128,128], index: 4, kind: input, shape index: {}]   ;;  %s10093_s5 = inlined_call_operand.vmem [shape: f32[128,128], index: 5, kind: input, shape index: {}]   ;;  %s10094_s6 = inlined_call_operand.vmem [shape: f32[1,128], index: 6, kind: input, shape index: {}]   ;;  %s10095_s7 = inlined_call_operand.hbm [shape: f32[1152,128], index: 7, kind: input, shape index: {}]   ;;  %s10096_s8 = inlined_call_operand.hbm [shape: f32[128,128], index: 8, kind: input, shape index: {}]   ;;  %s10097_s9 = inlined_call_operand.hbm [shape: f32[128,128], index: 9, kind: input, shape index: {}]   ;;  %s10098_s10 = inlined_call_operand.vmem [shape: f32[1,128], index: 10, kind: input, shape index: {}]   ;;  %s10099_s11 = inlined_call_operand.hbm [shape: f32[2,256,128], index: 11, kind: output, shape index: {}]  }
   0x1   :  { %17 = vsyncpa [#allocation7], 0 }
   0x2   :  { %18 = vsyncpa [#allocation5], 0 }
   0x3   :  { %20 = vsyncpa [#allocation5 + $0x1], 0  ;;  %s6642_s17 = smov 0   ;;  %s6644_s18 = smov 0  }
   0x4   :  { %s6646_s19 = smov 0   ;;  %s6648_s20 = smov 0  }
   0x5 LB: > { %10246 = sst [smem:[#allocation13_spill]] %s6567_s19  ;;  %s6663_s21 = sadd.s32 4294967295, %s6571_s20   ;;  %s6571_s20 = sphi %s6648_s20, %s10450_s20   ;;  %s6567_s19 = sphi %s6646_s19, %s10447_s19   ;;  %s6563_s18 = sphi %s6644_s18, %s10449_s18   ;;  %s6559_s17 = sphi %s6642_s17, %s10448_s17  }
   0x6   : > { %s5549_s22 = sadd.s32 4294967294, %s6571_s20   ;;  %s6667_s23 = sadd.s32 1, %s6571_s20  }
   0x7   : > { %s279_s24 = sadd.s32 1, %s6567_s19  ;;  %s276_s25 = ssub.s32 %s6571_s20, %s6667_s23 }
   0x8   : > { %p289_p0 = scmp.ne.s32.totalorder %s6567_s19, %s6563_s18  ;;  %p277_p1 = scmp.eq.s32.totalorder %s276_s25, 0 }
   0x9   : > { %p290_p2 = scmp.eq.s32.totalorder %s6663_s21, 1  ;;  %p295_p3 = scmp.ne.s32.totalorder %s6563_s18, %s6559_s17 }
   0xa   : > { %p296_p4 = scmp.eq.s32.totalorder %s5549_s22, 1  ;;  %p5550_p7 = scmp.ge.s32.totalorder %s6571_s20, 1 }
   0xb   : > { %s6678_s26 = scalar_select %p277_p1, %s6567_s19, %s279_s24  }
   0xc   : > { %p6680_p5 = por %p290_p2, %p289_p0  ;;  %p6684_p6 = por %p296_p4, %p295_p3 }
   0xd   : > { %10247 = sst [smem:[#allocation14_spill]] %s6678_s26  ;;  %p303_p8 = scmp.lt.s32.totalorder %s6571_s20, 3 }
   0xe   : > { %s10248_s27 = scalar_select %p6680_p5, 1, 0 }
   0xf   : > { %s10249_s28 = scalar_select %p6684_p6, 1, 0 }
  0x10   : > { %p10100_p9 = scmp.eq.s32.totalorder %s6663_s21, 0  ;;  %p6691_p10 = pnand %p5550_p7, %p303_p8 }
  0x11   : > { %s6573_s30 = smov [#allocation6]   ;;  %s6574_s14 = smov [#allocation3]  }
  0x12   : > { %p6354_p11 = pneg %p6691_p10  ;;  %s340_s12 = sshll.u32 %s6573_s30, 4  ;;  %s341_s12 = int_to_ptr.vmem [resolvable:$true] %s340_s12 }
  0x13   : > { %s327_s15 = sshll.u32 %s6574_s14, 4  ;;  %s6575_s16 = smov [#allocation8]   ;;  %s328_s15 = int_to_ptr.vmem [resolvable:$true] %s327_s15 }
  0x14   : > { %p6699_p12 = pnand %p10100_p9, %p6354_p11  ;;  %s353_s22 = sshll.u32 %s6575_s16, 4  ;;  %s354_s22 = int_to_ptr.vmem [resolvable:$true] %s353_s22 }
  0x15   : > { %s6436_s24 = scalar_lea.vmem %s341_s12, 2048  ;;  %p6444_p3 = scmp.lt.s32.totalorder %s341_s12, %s341_s12 }
  0x16   : > { %p6427_p13 = pneg %p6699_p12  ;;  %p6437_p0 = scmp.ne.s32.totalorder %s341_s12, %s6436_s24 }
  0x17   : > { %p6445_p4 = scmp.lt.s32.totalorder %s6436_s24, %s6436_s24 }
  0x18   : > { %p6439_p1 = pnand %p6437_p0, %p6427_p13 }
  0x19   : > { %p6446_p7 = por %p6445_p4, %p6444_p3 }
  0x1a   : > { %p6440_p2 = pneg %p6439_p1 }
  0x1c   : > { %p6447_p8 = pnand %p6446_p7, %p6440_p2 }
  0x1e   : > { %6450 = shalt.err (!%p6447_p8)
}
  0x1f   : > { %s6576_s25 = smov 128   ;;  %s6577_s30 = smov 8  }
  0x20   : > { %6360 = dma.hbm_to_vmem [thread:$0]  (!%p6699_p12), %s10096_s8, 2048, %s341_s12, [#allocation7], %s6576_s25, %s6576_s25, %s6577_s30  }
  0x21   : > { %s6462_s26 = scalar_lea.vmem %s328_s15, 18432  ;;  %p6470_p9 = scmp.lt.s32.totalorder %s328_s15, %s328_s15 }
  0x22   : > { %p6463_p11 = scmp.ne.s32.totalorder %s328_s15, %s6462_s26  ;;  %p6471_p6 = scmp.lt.s32.totalorder %s6462_s26, %s6462_s26 }
  0x24   : > { %p6465_p0 = pnand %p6463_p11, %p6427_p13  ;;  %p6472_p3 = por %p6471_p6, %p6470_p9 }
  0x26   : > { %p6466_p1 = pneg %p6465_p0 }
  0x28   : > { %p6473_p2 = pnand %p6472_p3, %p6466_p1 }
  0x2a   : > { %6476 = shalt.err (!%p6473_p2)
}
  0x2b   : > { %6357 = dma.hbm_to_vmem [thread:$0]  (!%p6699_p12), %s10095_s7, 18432, %s328_s15, [#allocation4], %s6576_s25, %s6576_s25, %s6577_s30  }
  0x2c   : > { %s6488_s12 = scalar_lea.vmem %s354_s22, 2048  ;;  %p6496_p11 = scmp.lt.s32.totalorder %s354_s22, %s354_s22 }
  0x2d   : > { %p6489_p4 = scmp.ne.s32.totalorder %s354_s22, %s6488_s12  ;;  %p6497_p0 = scmp.lt.s32.totalorder %s6488_s12, %s6488_s12 }
  0x2f   : > { %p6491_p7 = pnand %p6489_p4, %p6427_p13  ;;  %p6498_p5 = por %p6497_p0, %p6496_p11 }
  0x31   : > { %p6492_p8 = pneg %p6491_p7 }
  0x33   : > { %p6499_p6 = pnand %p6498_p5, %p6492_p8 }
  0x35   : > { %6502 = shalt.err (!%p6499_p6)
}
  0x36   : > { %6363 = dma.hbm_to_vmem [thread:$0]  (!%p6699_p12), %s10097_s9, 2048, %s354_s22, [#allocation7], %s6576_s25, %s6576_s25, %s6577_s30  }
  0x37   : > { %392 = sbr.rel (%p6691_p10) target bundleno = 2306 (0x902), region = 64 }
  0x3c   : > { %p10252_p9 = scmp.eq.s32.totalorder %s6663_s21, 0 }
  0x3e   : > { %6546 = dma.done.wait (%p10252_p9), [#allocation4], 18432   ;;  %p10253_p13 = pmov %p10252_p9 }
  0x3f   : > { %p10254_p1 = pmov %p10252_p9 }
  0x40   : > { %6548 = vsyncadd (%p10253_p13), [#allocation4], 4294948864 }
  0x41   : > { %6550 = dma.done.wait (%p10254_p1), [#allocation7], 4096   ;;  %p10255_p5 = pmov %p10254_p1 }
  0x42   : > { %v10103_v0 = vmov 0.0   ;;  %v834_v1 = vld [vmem:[%s10091_s3 + $0x78] sm:$0xff]  ;;  %v833_v3 = vld [vmem:[%s10091_s3 + $0x70] sm:$0xff]  ;;  %v832_v5 = vld [vmem:[%s10091_s3 + $0x68] sm:$0xff]  ;;  %p446_p10 = scmp.lt.s32.totalorder %s6663_s21, 1  ;;  %vm559_vm0 = vcmask 1046528  }
  0x43   : > { %6552 = vsyncadd (%p10255_p5), [#allocation7], 4294963200  ;;  %963 = vmatprep.subr.mxu0 %v10103_v0  ;;  %1188 = vmatprep.subr.mxu1 %v10103_v0  ;;  %v866_v2 = vld [vmem:[%s10091_s3 + $0x178] sm:$0xff]  ;;  %v865_v4 = vld [vmem:[%s10091_s3 + $0x170] sm:$0xff]  ;;  %vm672_vm1 = vcmask 1045504   ;;  %s5570_s16 = sshll.u32 %s6663_s21, 12 }
  0x44   : > { %964 = vmatpush1.msra.mxu0 %v834_v1  ;;  %1189 = vmatpush1.msra.mxu1 %v866_v2  ;;  %v864_v6 = vld [vmem:[%s10091_s3 + $0x168] sm:$0xff]  ;;  %v831_v7 = vld [vmem:[%s10091_s3 + $0x60] sm:$0xff]  ;;  %v830_v9 = vld [vmem:[%s10091_s3 + $0x58] sm:$0xff]  ;;  %s6915_s22 = scalar_select %p446_p10, %s6663_s21, 1 }
  0x45   : > { %965 = vmatprep.subr.mxu0 %v10103_v0  ;;  %1190 = vmatprep.subr.mxu1 %v10103_v0  ;;  %v863_v8 = vld [vmem:[%s10091_s3 + $0x160] sm:$0xff]  ;;  %v862_v10 = vld [vmem:[%s10091_s3 + $0x158] sm:$0xff]  ;;  %v829_v11 = vld [vmem:[%s10091_s3 + $0x50] sm:$0xff]  ;;  %p10444_p3 = scmp.ne.s32.totalorder %s10248_s27, 0 }
  0x46   : > { %966 = vmatpush1.msra.mxu0 %v833_v3  ;;  %1191 = vmatpush1.msra.mxu1 %v865_v4  ;;  %v861_v12 = vld [vmem:[%s10091_s3 + $0x150] sm:$0xff]  ;;  %v828_v13 = vld [vmem:[%s10091_s3 + $0x48] sm:$0xff]  ;;  %v827_v15 = vld [vmem:[%s10091_s3 + $0x40] sm:$0xff]  ;;  %s6339_s29 = smul.u32 432, %s6915_s22  ;;  %s456_s14 = scalar_lea.vmem %s10090_s2, %s6915_s22 }
  0x47   : > { %967 = vmatprep.subr.mxu0 %v10103_v0  ;;  %1192 = vmatprep.subr.mxu1 %v10103_v0  ;;  %v860_v14 = vld [vmem:[%s10091_s3 + $0x148] sm:$0xff]  ;;  %v859_v16 = vld [vmem:[%s10091_s3 + $0x140] sm:$0xff]  ;;  %v826_v17 = vld [vmem:[%s10091_s3 + $0x38] sm:$0xff] }
  0x48   : > { %968 = vmatpush1.msra.mxu0 %v832_v5  ;;  %1193 = vmatpush1.msra.mxu1 %v864_v6  ;;  %v858_v18 = vld [vmem:[%s10091_s3 + $0x138] sm:$0xff]  ;;  %v825_v19 = vld [vmem:[%s10091_s3 + $0x30] sm:$0xff]  ;;  %v824_v21 = vld [vmem:[%s10091_s3 + $0x28] sm:$0xff]  ;;  %s6953_s13 = scalar_lea.vmem %s10088_s0, %s6339_s29  ;;  %s10039_s29 = scalar_lea.hbm %s10099_s11, %s5570_s16 }
  0x49   : > { %969 = vmatprep.subr.mxu0 %v10103_v0  ;;  %1194 = vmatprep.subr.mxu1 %v10103_v0  ;;  %v857_v20 = vld [vmem:[%s10091_s3 + $0x130] sm:$0xff]  ;;  %v856_v22 = vld [vmem:[%s10091_s3 + $0x128] sm:$0xff]  ;;  %v823_v23 = vld [vmem:[%s10091_s3 + $0x20] sm:$0xff] }
  0x4a   : > { %970 = vmatpush1.msra.mxu0 %v831_v7  ;;  %1195 = vmatpush1.msra.mxu1 %v863_v8  ;;  %v855_v24 = vld [vmem:[%s10091_s3 + $0x120] sm:$0xff]  ;;  %v822_v25 = vld [vmem:[%s10091_s3 + $0x18] sm:$0xff]  ;;  %v821_v27 = vld [vmem:[%s10091_s3 + $0x10] sm:$0xff] }
  0x4b   : > { %971 = vmatprep.subr.mxu0 %v10103_v0  ;;  %1196 = vmatprep.subr.mxu1 %v10103_v0  ;;  %v854_v26 = vld [vmem:[%s10091_s3 + $0x118] sm:$0xff]  ;;  %v853_v28 = vld [vmem:[%s10091_s3 + $0x110] sm:$0xff]  ;;  %v820_v29 = vld [vmem:[%s10091_s3 + $0x8] sm:$0xff] }
  0x4c   : > { %972 = vmatpush1.msra.mxu0 %v830_v9  ;;  %1197 = vmatpush1.msra.mxu1 %v862_v10  ;;  %v852_v30 = vld [vmem:[%s10091_s3 + $0x108] sm:$0xff]  ;;  %v819_v31 = vld [vmem:[%s10091_s3] sm:$0xff]  ;;  %v850_v33 = vld [vmem:[%s10091_s3 + $0xf8] sm:$0xff] }
  0x4d   : > { %973 = vmatprep.subr.mxu0 %v10103_v0  ;;  %1198 = vmatprep.subr.mxu1 %v10103_v0  ;;  %v851_v32 = vld [vmem:[%s10091_s3 + $0x100] sm:$0xff]  ;;  %v882_v34 = vld [vmem:[%s10091_s3 + $0x1f8] sm:$0xff]  ;;  %v849_v35 = vld [vmem:[%s10091_s3 + $0xf0] sm:$0xff] }
  0x4e   : > { %974 = vmatpush1.msra.mxu0 %v829_v11  ;;  %1199 = vmatpush1.msra.mxu1 %v861_v12  ;;  %v881_v36 = vld [vmem:[%s10091_s3 + $0x1f0] sm:$0xff]  ;;  %v848_v37 = vld [vmem:[%s10091_s3 + $0xe8] sm:$0xff]  ;;  %v847_v39 = vld [vmem:[%s10091_s3 + $0xe0] sm:$0xff] }
  0x4f   : > { %975 = vmatprep.subr.mxu0 %v10103_v0  ;;  %1200 = vmatprep.subr.mxu1 %v10103_v0  ;;  %v880_v38 = vld [vmem:[%s10091_s3 + $0x1e8] sm:$0xff]  ;;  %v879_v40 = vld [vmem:[%s10091_s3 + $0x1e0] sm:$0xff]  ;;  %v846_v41 = vld [vmem:[%s10091_s3 + $0xd8] sm:$0xff] }
  0x50   : > { %976 = vmatpush1.msra.mxu0 %v828_v13  ;;  %1201 = vmatpush1.msra.mxu1 %v860_v14  ;;  %v878_v42 = vld [vmem:[%s10091_s3 + $0x1d8] sm:$0xff]  ;;  %v845_v43 = vld [vmem:[%s10091_s3 + $0xd0] sm:$0xff]  ;;  %v844_v45 = vld [vmem:[%s10091_s3 + $0xc8] sm:$0xff] }
  0x51   : > { %977 = vmatprep.subr.mxu0 %v10103_v0  ;;  %1202 = vmatprep.subr.mxu1 %v10103_v0  ;;  %v877_v44 = vld [vmem:[%s10091_s3 + $0x1d0] sm:$0xff]  ;;  %v876_v46 = vld [vmem:[%s10091_s3 + $0x1c8] sm:$0xff]  ;;  %v843_v47 = vld [vmem:[%s10091_s3 + $0xc0] sm:$0xff] }
  0x52   : > { %978 = vmatpush1.msra.mxu0 %v827_v15  ;;  %1203 = vmatpush1.msra.mxu1 %v859_v16  ;;  %v875_v48 = vld [vmem:[%s10091_s3 + $0x1c0] sm:$0xff]  ;;  %v842_v49 = vld [vmem:[%s10091_s3 + $0xb8] sm:$0xff]  ;;  %v841_v51 = vld [vmem:[%s10091_s3 + $0xb0] sm:$0xff] }
  0x53   : > { %979 = vmatprep.subr.mxu0 %v10103_v0  ;;  %1204 = vmatprep.subr.mxu1 %v10103_v0  ;;  %v874_v50 = vld [vmem:[%s10091_s3 + $0x1b8] sm:$0xff]  ;;  %v873_v52 = vld [vmem:[%s10091_s3 + $0x1b0] sm:$0xff]  ;;  %v840_v53 = vld [vmem:[%s10091_s3 + $0xa8] sm:$0xff] }
  0x54   : > { %980 = vmatpush1.msra.mxu0 %v826_v17  ;;  %1205 = vmatpush1.msra.mxu1 %v858_v18  ;;  %v872_v54 = vld [vmem:[%s10091_s3 + $0x1a8] sm:$0xff]  ;;  %v839_v55 = vld [vmem:[%s10091_s3 + $0xa0] sm:$0xff]  ;;  %v838_v59 = vld [vmem:[%s10091_s3 + $0x98] sm:$0xff] }
  0x55   : > { %981 = vmatprep.subr.mxu0 %v10103_v0  ;;  %1206 = vmatprep.subr.mxu1 %v10103_v0  ;;  %v871_v56 = vld [vmem:[%s10091_s3 + $0x1a0] sm:$0xff]  ;;  %v6973_v58 = vld [vmem:[%s6953_s13 + $0x8] sm:$0xff]  ;;  %v870_v60 = vld [vmem:[%s10091_s3 + $0x198] sm:$0xff] }
  0x56   : > { %982 = vmatpush1.msra.mxu0 %v825_v19  ;;  %1207 = vmatpush1.msra.mxu1 %v857_v20  ;;  %v457_v57 = vld [vmem:[%s6953_s13] sm:$0xff]  ;;  %v561_v62 = vrot.slane %v6973_v58, 1  ;;  %v837_v63 = vld [vmem:[%s10091_s3 + $0x90] sm:$0xff]  ;;  %v836_v3 = vld [vmem:[%s10091_s3 + $0x88] sm:$0xff]  ;;  %v674_v7 = vrot.slane %v6973_v58, 2 }
  0x57   : > { %983 = vmatprep.subr.mxu0 %v10103_v0  ;;  %1208 = vmatprep.subr.mxu1 %v10103_v0  ;;  %v560_v61 = vrot.slane %v457_v57, 1  ;;  %v869_v1 = vld [vmem:[%s10091_s3 + $0x190] sm:$0xff]  ;;  %v868_v4 = vld [vmem:[%s10091_s3 + $0x188] sm:$0xff]  ;;  %v673_v6 = vrot.slane %v457_v57, 2  ;;  %v7004_v8 = vld [vmem:[%s6953_s13 + $0x20] sm:$0xff] }
  0x58   : > { %984 = vmatpush1.msra.mxu0 %v824_v21  ;;  %1209 = vmatpush1.msra.mxu1 %v856_v22  ;;  %v459_v2 = vld [vmem:[%s6953_s13 + $0x10] sm:$0x3]  ;;  %v835_v9 = vld [vmem:[%s10091_s3 + $0x80] sm:$0xff]  ;;  %v460_v12 = vld [vmem:[%s6953_s13 + $0x18] sm:$0xff]  ;;  %v566_v14 = vrot.slane %v7004_v8, 1 }
  0x59   : > { %985 = vmatprep.subr.mxu0 %v10103_v0  ;;  %1210 = vmatprep.subr.mxu1 %v10103_v0  ;;  %v562_v5 = vsel %vm559_vm0, %v560_v61, %v561_v62  ;;  %v563_v10 = vrot.slane %v459_v2, 1  ;;  %v867_v11 = vld [vmem:[%s10091_s3 + $0x180] sm:$0xff]  ;;  %v565_v13 = vrot.slane %v460_v12, 1  ;;  %v675_v15 = vsel %vm672_vm1, %v673_v6, %v674_v7  ;;  %v898_v16 = vld [vmem:[%s10091_s3 + $0x278] sm:$0xff]  ;;  %v462_v18 = vld [vmem:[%s6953_s13 + $0x28] sm:$0x3] }
  0x5a   : > { %986 = vmatpush1.msra.mxu0 %v823_v23  ;;  %1211 = vmatpush1.msra.mxu1 %v855_v24  ;;  %v676_v17 = vrot.slane %v459_v2, 2  ;;  %v897_v20 = vld [vmem:[%s10091_s3 + $0x270] sm:$0xff]  ;;  %v568_v22 = vrot.slane %v462_v18, 1  ;;  %v678_v24 = vrot.slane %v460_v12, 2  ;;  %v7131_v61 = vld [vmem:[%s6953_s13 + $0x60] sm:$0xff] }
  0x5b   : > { %987 = vmatprep.subr.mxu0 %v10103_v0  ;;  %1212 = vmatprep.subr.mxu1 %v10103_v0  ;;  %v564_v19 = vsel %vm559_vm0, %v561_v62, %v563_v10  ;;  %v7029_v21 = vsel %vm559_vm0, %v565_v13, %v566_v14  ;;  %v888_v62 = vld [vmem:[%s10091_s3 + $0x228] sm:$0xff]  ;;  %v471_v6 = vld [vmem:[%s6953_s13 + $0x70] sm:$0x3] }
  0x5c   : > { %988 = vmatpush1.msra.mxu0 %v822_v25  ;;  %1213 = vmatpush1.msra.mxu1 %v854_v26  ;;  %10256 = vst [vmem:[#allocation15_spill] sm:$0xff] %v7029_v21  ;;  %v677_v23 = vsel %vm672_vm1, %v674_v7, %v676_v17  ;;  %v679_v25 = vrot.slane %v7004_v8, 2  ;;  %v7035_v26 = vld [vmem:[%s6953_s13 + $0x38] sm:$0xff]  ;;  %v885_v10 = vld [vmem:[%s10091_s3 + $0x210] sm:$0xff] }
  0x5d   : > { %989 = vmatprep.subr.mxu0 %v10103_v0  ;;  %1214 = vmatprep.subr.mxu1 %v10103_v0  ;;  %v886_v7 = vld [vmem:[%s10091_s3 + $0x218] sm:$0xff] }
  0x5e   : > { %990 = vmatpush1.msra.mxu0 %v821_v27  ;;  %1215 = vmatpush1.msra.mxu1 %v853_v28  ;;  %v7040_v27 = vld [vmem:[%s6953_s13 + $0x30] sm:$0xff]  ;;  %v896_v28 = vld [vmem:[%s10091_s3 + $0x268] sm:$0xff] }
  0x5f   : > { %991 = vmatprep.subr.mxu0 %v10103_v0  ;;  %1216 = vmatprep.subr.mxu1 %v10103_v0 }
  0x60   : > { %992 = vmatpush1.msra.mxu0 %v820_v29  ;;  %1217 = vmatpush1.msra.mxu1 %v852_v30  ;;  %v7048_v29 = vsel %vm559_vm0, %v566_v14, %v568_v22  ;;  %v895_v30 = vld [vmem:[%s10091_s3 + $0x260] sm:$0xff] }
  0x61   : > { %993 = vmatprep.subr.mxu0 %v10103_v0  ;;  %1218 = vmatprep.subr.mxu1 %v10103_v0  ;;  %10257 = vst [vmem:[#allocation16_spill] sm:$0xff] %v7048_v29  ;;  %v7174_v14 = vld [vmem:[%s6953_s13 + $0x80] sm:$0xff] }
  0x62   : > { %994 = vmatpush1.msra.mxu0 %v819_v31  ;;  %1219 = vmatpush1.msra.mxu1 %v851_v32  ;;  %v570_v31 = vrot.slane %v7040_v27, 1  ;;  %v571_v32 = vrot.slane %v7035_v26, 1 }
  0x63   : > { %995 = vmatprep.subr.mxu0 %v10103_v0  ;;  %1220 = vmatprep.subr.mxu1 %v10103_v0 }
  0x64   : > { %996 = vmatpush2.msra.mxu0 %v850_v33  ;;  %1221 = vmatpush2.msra.mxu1 %v882_v34  ;;  %v7057_v33 = vsel %vm672_vm1, %v678_v24, %v679_v25  ;;  %v681_v34 = vrot.slane %v462_v18, 2  ;;  %v474_v24 = vld [vmem:[%s6953_s13 + $0x88] sm:$0x3] }
  0x65   : > { %997 = vmatprep.subr.mxu0 %v10103_v0  ;;  %1222 = vmatprep.subr.mxu1 %v10103_v0 }
  0x66   : > { %998 = vmatpush2.msra.mxu0 %v849_v35  ;;  %1223 = vmatpush2.msra.mxu1 %v881_v36  ;;  %v465_v35 = vld [vmem:[%s6953_s13 + $0x40] sm:$0x3]  ;;  %v894_v36 = vld [vmem:[%s10091_s3 + $0x258] sm:$0xff] }
  0x67   : > { %999 = vmatprep.subr.mxu0 %v10103_v0  ;;  %1224 = vmatprep.subr.mxu1 %v10103_v0 }
  0x68   : > { %1000 = vmatpush2.msra.mxu0 %v848_v37  ;;  %1225 = vmatpush2.msra.mxu1 %v880_v38  ;;  %v7067_v37 = vsel %vm559_vm0, %v570_v31, %v571_v32  ;;  %v573_v38 = vrot.slane %v465_v35, 1 }
  0x69   : > { %1001 = vmatprep.subr.mxu0 %v10103_v0  ;;  %1226 = vmatprep.subr.mxu1 %v10103_v0  ;;  %10258 = vst [vmem:[#allocation17_spill] sm:$0xff] %v7067_v37 }
  0x6a   : > { %1002 = vmatpush2.msra.mxu0 %v847_v39  ;;  %1227 = vmatpush2.msra.mxu1 %v879_v40  ;;  %v893_v39 = vld [vmem:[%s10091_s3 + $0x250] sm:$0xff]  ;;  %v7075_v40 = vsel %vm672_vm1, %v679_v25, %v681_v34  ;;  %v914_v25 = vld [vmem:[%s10091_s3 + $0x2f8] sm:$0xff]  ;;  %v699_v34 = vrot.slane %v7174_v14, 2 }
  0x6b   : > { %1003 = vmatprep.subr.mxu0 %v10103_v0  ;;  %1228 = vmatprep.subr.mxu1 %v10103_v0 }
  0x6c   : > { %1004 = vmatpush2.msra.mxu0 %v846_v41  ;;  %1229 = vmatpush2.msra.mxu1 %v878_v42  ;;  %v683_v41 = vrot.slane %v7040_v27, 2  ;;  %v684_v42 = vrot.slane %v7035_v26, 2 }
  0x6d   : > { %1005 = vmatprep.subr.mxu0 %v10103_v0  ;;  %1230 = vmatprep.subr.mxu1 %v10103_v0 }
  0x6e   : > { %1006 = vmatpush2.msra.mxu0 %v845_v43  ;;  %1231 = vmatpush2.msra.mxu1 %v877_v44  ;;  %v7080_v43 = vld [vmem:[%s6953_s13 + $0x50] sm:$0xff]  ;;  %v7084_v44 = vld [vmem:[%s6953_s13 + $0x48] sm:$0xff] }
  0x6f   : > { %1007 = vmatprep.subr.mxu0 %v10103_v0  ;;  %1232 = vmatprep.subr.mxu1 %v10103_v0 }
  0x70   : > { %1008 = vmatpush2.msra.mxu0 %v844_v45  ;;  %1233 = vmatpush2.msra.mxu1 %v876_v46  ;;  %v892_v45 = vld [vmem:[%s10091_s3 + $0x248] sm:$0xff]  ;;  %v7093_v46 = vsel %vm559_vm0, %v571_v32, %v573_v38  ;;  %v929_v38 = vld [vmem:[%s10091_s3 + $0x370] sm:$0xff] }
  0x71   : > { %1009 = vmatprep.subr.mxu0 %v10103_v0  ;;  %1234 = vmatprep.subr.mxu1 %v10103_v0  ;;  %10259 = vst [vmem:[#allocation18_spill] sm:$0xff] %v7093_v46 }
  0x72   : > { %1010 = vmatpush2.msra.mxu0 %v843_v47  ;;  %1235 = vmatpush2.msra.mxu1 %v875_v48  ;;  %v575_v47 = vrot.slane %v7084_v44, 1  ;;  %v576_v48 = vrot.slane %v7080_v43, 1 }
  0x73   : > { %1011 = vmatprep.subr.mxu0 %v10103_v0  ;;  %1236 = vmatprep.subr.mxu1 %v10103_v0 }
  0x74   : > { %1012 = vmatpush2.msra.mxu0 %v842_v49  ;;  %1237 = vmatpush2.msra.mxu1 %v874_v50  ;;  %v891_v49 = vld [vmem:[%s10091_s3 + $0x240] sm:$0xff]  ;;  %v7103_v50 = vsel %vm672_vm1, %v683_v41, %v684_v42 }
  0x75   : > { %1013 = vmatprep.subr.mxu0 %v10103_v0  ;;  %1238 = vmatprep.subr.mxu1 %v10103_v0 }
  0x76   : > { %1014 = vmatpush2.msra.mxu0 %v841_v51  ;;  %1239 = vmatpush2.msra.mxu1 %v873_v52  ;;  %v686_v51 = vrot.slane %v465_v35, 2  ;;  %v468_v52 = vld [vmem:[%s6953_s13 + $0x58] sm:$0x3] }
  0x77   : > { %1015 = vmatprep.subr.mxu0 %v10103_v0  ;;  %1240 = vmatprep.subr.mxu1 %v10103_v0  ;;  %v7221_v35 = vld [vmem:[%s6953_s13 + $0x98] sm:$0xff] }
  0x78   : > { %1016 = vmatpush2.msra.mxu0 %v840_v53  ;;  %1241 = vmatpush2.msra.mxu1 %v872_v54  ;;  %v890_v53 = vld [vmem:[%s10091_s3 + $0x238] sm:$0xff]  ;;  %v7114_v54 = vsel %vm559_vm0, %v575_v47, %v576_v48 }
  0x79   : > { %1017 = vmatprep.subr.mxu0 %v10103_v0  ;;  %1242 = vmatprep.subr.mxu1 %v10103_v0  ;;  %10260 = vst [vmem:[#allocation19_spill] sm:$0xff] %v7114_v54 }
  0x7a   : > { %1018 = vmatpush2.msra.mxu0 %v839_v55  ;;  %1243 = vmatpush2.msra.mxu1 %v871_v56  ;;  %v578_v55 = vrot.slane %v468_v52, 1  ;;  %v889_v56 = vld [vmem:[%s10091_s3 + $0x230] sm:$0xff] }
  0x7b   : > { %1019 = vmatprep.subr.mxu0 %v10103_v0  ;;  %1244 = vmatprep.subr.mxu1 %v10103_v0 }
  0x7c   : > { %1020 = vmatpush2.msra.mxu0 %v838_v59  ;;  %1245 = vmatpush2.msra.mxu1 %v870_v60  ;;  %v689_v59 = vrot.slane %v7080_v43, 2  ;;  %v7127_v60 = vld [vmem:[%s6953_s13 + $0x68] sm:$0xff] }
  0x7d   : > { %1021 = vmatprep.subr.mxu0 %v10103_v0  ;;  %1246 = vmatprep.subr.mxu1 %v10103_v0  ;;  %v581_v2 = vrot.slane %v7127_v60, 1  ;;  %v694_v13 = vrot.slane %v7127_v60, 2 }
  0x7e   : > { %1022 = vmatpush2.msra.mxu0 %v837_v63  ;;  %1247 = vmatpush2.msra.mxu1 %v869_v1  ;;  %v7140_v63 = vsel %vm559_vm0, %v576_v48, %v578_v55  ;;  %v580_v1 = vrot.slane %v7131_v61, 1  ;;  %v701_v48 = vrot.slane %v474_v24, 2 }
  0x7f   : > { %1023 = vmatprep.subr.mxu0 %v10103_v0  ;;  %1248 = vmatprep.subr.mxu1 %v10103_v0  ;;  %10261 = vst [vmem:[#allocation20_spill] sm:$0xff] %v7140_v63 }
  0x80   : > { %1024 = vmatpush2.msra.mxu0 %v836_v3  ;;  %1249 = vmatpush2.msra.mxu1 %v868_v4  ;;  %v887_v3 = vld [vmem:[%s10091_s3 + $0x220] sm:$0xff]  ;;  %v7260_v55 = vsel %vm672_vm1, %v699_v34, %v701_v48  ;;  %v910_v48 = vld [vmem:[%s10091_s3 + $0x2d8] sm:$0xff] }
  0x81   : > { %1025 = vmatprep.subr.mxu0 %v10103_v0  ;;  %1027 = vmatprep.mubr.f32.mxu0 %v562_v5  ;;  %v691_v5 = vrot.slane %v468_v52, 2 }
  0x82   : > { %1026 = vmatpush2.msra.mxu0 %v835_v9  ;;  %1250 = vmatprep.subr.mxu1 %v10103_v0  ;;  %v583_v9 = vrot.slane %v471_v6, 1 }
  0x83   : > { %1028 = vmatmul.mubr.f32.vlgmr.msra.gmra.mxu0 %v457_v57  ;;  %1251 = vmatpush2.msra.mxu1 %v867_v11  ;;  %v7122_v57 = vsel %vm672_vm1, %v684_v42, %v686_v51  ;;  %v7169_v11 = vsel %vm672_vm1, %v689_v59, %v691_v5  ;;  %v591_v42 = vrot.slane %v7221_v35, 1  ;;  %v928_v51 = vld [vmem:[%s10091_s3 + $0x368] sm:$0xff] }
  0x84   : > { %1252 = vmatprep.mubr.f32.mxu1 %v460_v12  ;;  %1413 = vmatprep.subr.mxu0 %v10103_v0  ;;  %v7187_v17 = vsel %vm559_vm0, %v581_v2, %v583_v9 }
  0x85   : > { %1253 = vmatmul.mubr.f32.vlgmr.msra.gmra.mxu1 %v675_v15  ;;  %1414 = vmatpush1.msra.mxu0 %v898_v16  ;;  %v7178_v15 = vld [vmem:[%s6953_s13 + $0x78] sm:$0xff]  ;;  %v884_v16 = vld [vmem:[%s10091_s3 + $0x208] sm:$0xff]  ;;  %10263 = vst [vmem:[#allocation22_spill] sm:$0xff] %v7187_v17 }
  0x86   : > { %1032 = vmatprep.mubr.f32.mxu0 %v564_v19  ;;  %1257 = vmatprep.mubr.f32.mxu1 %v7004_v8  ;;  %v585_v18 = vrot.slane %v7178_v15, 1  ;;  %v586_v19 = vrot.slane %v7174_v14, 1  ;;  %v698_v32 = vrot.slane %v7178_v15, 2 }
  0x87   : > { %1033 = vmatmul.mubr.f32.gmra.mxu0 %v6973_v58  ;;  %1415 = vmatprep.subr.mxu0 %v10103_v0  ;;  %v688_v58 = vrot.slane %v7084_v44, 2 }
  0x88   : > { %1416 = vmatpush1.msra.mxu0 %v897_v20  ;;  %1037 = vmatprep.mubr.f32.mxu0 %v7029_v21  ;;  %v883_v20 = vld [vmem:[%s10091_s3 + $0x200] sm:$0xff]  ;;  %v7244_v47 = vsel %vm672_vm1, %v698_v32, %v699_v34 }
  0x89   : > { %1258 = vmatmul.mubr.f32.gmra.mxu1 %v677_v23  ;;  %1417 = vmatprep.subr.mxu0 %v10103_v0  ;;  %v7150_v4 = vsel %vm672_vm1, %v688_v58, %v689_v59  ;;  %v696_v23 = vrot.slane %v471_v6, 2  ;;  %v704_v58 = vrot.slane %v7221_v35, 2  ;;  %v7265_v59 = vld [vmem:[%s6953_s13 + $0xb0] sm:$0xff] }
  0x8a   : > { %1262 = vmatprep.mubr.f32.mxu1 %v7040_v27  ;;  %1418 = vmatpush1.msra.mxu0 %v896_v28  ;;  %v588_v28 = vrot.slane %v474_v24, 1  ;;  %v596_v6 = vrot.slane %v7265_v59, 1  ;;  %v709_v24 = vrot.slane %v7265_v59, 2 }
  0x8b   : > { %1038 = vmatmul.mubr.f32.gmra.mxu0 %v460_v12  ;;  %1419 = vmatprep.subr.mxu0 %v10103_v0  ;;  %v693_v12 = vrot.slane %v7131_v61, 2  ;;  %v7216_v31 = vsel %vm672_vm1, %v694_v13, %v696_v23 }
  0x8c   : > { %1042 = vmatprep.mubr.f32.mxu0 %v7048_v29  ;;  %1420 = vmatpush1.msra.mxu0 %v895_v30  ;;  %v930_v30 = vld [vmem:[%s10091_s3 + $0x378] sm:$0xff] }
  0x8d   : > { %1263 = vmatmul.mubr.f32.gmra.mxu1 %v7057_v33  ;;  %1421 = vmatprep.subr.mxu0 %v10103_v0  ;;  %v7197_v22 = vsel %vm672_vm1, %v693_v12, %v694_v13  ;;  %v480_v12 = vld [vmem:[%s6953_s13 + $0xb8] sm:$0x3]  ;;  %v925_v13 = vld [vmem:[%s10091_s3 + $0x350] sm:$0xff] }
  0x8e   : > { %1267 = vmatprep.mubr.f32.mxu1 %v7035_v26  ;;  %1422 = vmatpush1.msra.mxu0 %v894_v36  ;;  %v7225_v36 = vld [vmem:[%s6953_s13 + $0x90] sm:$0xff] }
  0x8f   : > { %1043 = vmatmul.mubr.f32.gmra.mxu0 %v7004_v8  ;;  %1423 = vmatprep.subr.mxu0 %v10103_v0  ;;  %v7161_v8 = vsel %vm559_vm0, %v580_v1, %v581_v2  ;;  %v590_v41 = vrot.slane %v7225_v36, 1  ;;  %v7272_v1 = vld [vmem:[%s6953_s13 + $0xa8] sm:$0xff]  ;;  %v927_v2 = vld [vmem:[%s10091_s3 + $0x360] sm:$0xff] }
  0x90   : > { %1047 = vmatprep.mubr.f32.mxu0 %v7067_v37  ;;  %1424 = vmatpush1.msra.mxu0 %v893_v39  ;;  %10262 = vst [vmem:[#allocation21_spill] sm:$0xff] %v7161_v8  ;;  %v7234_v39 = vsel %vm559_vm0, %v586_v19, %v588_v28  ;;  %v595_v5 = vrot.slane %v7272_v1, 1  ;;  %v708_v23 = vrot.slane %v7272_v1, 2  ;;  %v7320_v28 = vld [vmem:[%s6953_s13 + $0xc0] sm:$0xff] }
  0x91   : > { %1268 = vmatmul.mubr.f32.gmra.mxu1 %v7075_v40  ;;  %1425 = vmatprep.subr.mxu0 %v10103_v0  ;;  %10265 = vst [vmem:[#allocation24_spill] sm:$0xff] %v7234_v39  ;;  %v7255_v52 = vsel %vm559_vm0, %v590_v41, %v591_v42  ;;  %v600_v34 = vrot.slane %v7320_v28, 1 }
  0x92   : > { %1272 = vmatprep.mubr.f32.mxu1 %v7084_v44  ;;  %1426 = vmatpush1.msra.mxu0 %v892_v45  ;;  %v913_v45 = vld [vmem:[%s10091_s3 + $0x2f0] sm:$0xff]  ;;  %10266 = vst [vmem:[#allocation25_spill] sm:$0xff] %v7255_v52  ;;  %v7335_v41 = vsel %vm672_vm1, %v708_v23, %v709_v24 }
  0x93   : > { %1048 = vmatmul.mubr.f32.gmra.mxu0 %v7040_v27  ;;  %1427 = vmatprep.subr.mxu0 %v10103_v0 }
  0x94   : > { %1052 = vmatprep.mubr.f32.mxu0 %v7093_v46  ;;  %1428 = vmatpush1.msra.mxu0 %v891_v49  ;;  %v477_v49 = vld [vmem:[%s6953_s13 + $0xa0] sm:$0x3] }
  0x95   : > { %1273 = vmatmul.mubr.f32.gmra.mxu1 %v7103_v50  ;;  %1429 = vmatprep.subr.mxu0 %v10103_v0 }
  0x96   : > { %1277 = vmatprep.mubr.f32.mxu1 %v7080_v43  ;;  %1430 = vmatpush1.msra.mxu0 %v890_v53  ;;  %v593_v53 = vrot.slane %v477_v49, 1 }
  0x97   : > { %1053 = vmatmul.mubr.f32.gmra.mxu0 %v7035_v26  ;;  %1431 = vmatprep.subr.mxu0 %v10103_v0  ;;  %v7208_v26 = vsel %vm559_vm0, %v585_v18, %v586_v19  ;;  %v598_v18 = vrot.slane %v480_v12, 1  ;;  %v911_v19 = vld [vmem:[%s10091_s3 + $0x2e0] sm:$0xff] }
  0x98   : > { %1057 = vmatprep.mubr.f32.mxu0 %v7114_v54  ;;  %1432 = vmatpush1.msra.mxu0 %v889_v56  ;;  %10264 = vst [vmem:[#allocation23_spill] sm:$0xff] %v7208_v26  ;;  %v703_v56 = vrot.slane %v7225_v36, 2 }
  0x99   : > { %1278 = vmatmul.mubr.f32.gmra.mxu1 %v7122_v57  ;;  %1433 = vmatprep.subr.mxu0 %v10103_v0  ;;  %v7328_v32 = vsel %vm559_vm0, %v596_v6, %v598_v18  ;;  %v909_v18 = vld [vmem:[%s10091_s3 + $0x2d0] sm:$0xff] }
  0x9a   : > { %1282 = vmatprep.mubr.f32.mxu1 %v7131_v61  ;;  %1434 = vmatpush1.msra.mxu0 %v888_v62  ;;  %v912_v62 = vld [vmem:[%s10091_s3 + $0x2e8] sm:$0xff]  ;;  %v7291_v9 = vsel %vm672_vm1, %v703_v56, %v704_v58  ;;  %10269 = vst [vmem:[#allocation28_spill] sm:$0xff] %v7328_v32  ;;  %v922_v56 = vld [vmem:[%s10091_s3 + $0x338] sm:$0xff] }
  0x9b   : > { %1058 = vmatmul.mubr.f32.gmra.mxu0 %v7084_v44  ;;  %1435 = vmatprep.subr.mxu0 %v10103_v0 }
  0x9c   : > { %1062 = vmatprep.mubr.f32.mxu0 %v7140_v63  ;;  %1436 = vmatpush1.msra.mxu0 %v887_v3  ;;  %v7282_v3 = vsel %vm559_vm0, %v591_v42, %v593_v53  ;;  %v711_v42 = vrot.slane %v480_v12, 2 }
  0x9d   : > { %1283 = vmatmul.mubr.f32.gmra.mxu1 %v7150_v4  ;;  %1437 = vmatprep.subr.mxu0 %v10103_v0  ;;  %10267 = vst [vmem:[#allocation26_spill] sm:$0xff] %v7282_v3 }
  0x9e   : > { %1287 = vmatprep.mubr.f32.mxu1 %v7127_v60  ;;  %1438 = vmatpush1.msra.mxu0 %v886_v7  ;;  %v926_v7 = vld [vmem:[%s10091_s3 + $0x358] sm:$0xff] }
  0x9f   : > { %1063 = vmatmul.mubr.f32.gmra.mxu0 %v7080_v43  ;;  %1439 = vmatprep.subr.mxu0 %v10103_v0 }
  0xa0   : > { %1067 = vmatprep.mubr.f32.mxu0 %v7161_v8  ;;  %1440 = vmatpush1.msra.mxu0 %v885_v10  ;;  %v706_v10 = vrot.slane %v477_v49, 2  ;;  %v923_v49 = vld [vmem:[%s10091_s3 + $0x340] sm:$0xff] }
  0xa1   : > { %1288 = vmatmul.mubr.f32.gmra.mxu1 %v7169_v11  ;;  %1441 = vmatprep.subr.mxu0 %v10103_v0 }
  0xa2   : > { %1292 = vmatprep.mubr.f32.mxu1 %v7178_v15  ;;  %1442 = vmatpush1.msra.mxu0 %v884_v16  ;;  %v7302_v16 = vsel %vm559_vm0, %v595_v5, %v596_v6  ;;  %v7362_v5 = vld [vmem:[%s6953_s13 + $0xe0] sm:$0xff]  ;;  %v7366_v6 = vld [vmem:[%s6953_s13 + $0xd8] sm:$0xff] }
  0xa3   : > { %1068 = vmatmul.mubr.f32.gmra.mxu0 %v7131_v61  ;;  %1443 = vmatprep.subr.mxu0 %v10103_v0  ;;  %10268 = vst [vmem:[#allocation27_spill] sm:$0xff] %v7302_v16  ;;  %10271 = vst [vmem:[#allocation30_spill] sm:$0xff] %v7362_v5  ;;  %v605_v12 = vrot.slane %v7366_v6, 1 }
  0xa4   : > { %1072 = vmatprep.mubr.f32.mxu0 %v7187_v17  ;;  %1444 = vmatpush1.msra.mxu0 %v883_v20  ;;  %v7310_v20 = vsel %vm672_vm1, %v704_v58, %v706_v10  ;;  %v7357_v58 = vsel %vm672_vm1, %v709_v24, %v711_v42  ;;  %10272 = vst [vmem:[#allocation31_spill] sm:$0xff] %v7366_v6  ;;  %v486_v24 = vld [vmem:[%s6953_s13 + $0xe8] sm:$0x3] }
  0xa5   : > { %1293 = vmatmul.mubr.f32.gmra.mxu1 %v7197_v22  ;;  %1445 = vmatprep.subr.mxu0 %v10103_v0 }
  0xa6   : > { %1297 = vmatprep.mubr.f32.mxu1 %v7174_v14  ;;  %1446 = vmatpush2.msra.mxu0 %v914_v25  ;;  %v7315_v25 = vld [vmem:[%s6953_s13 + $0xc8] sm:$0xff] }
  0xa7   : > { %1073 = vmatmul.mubr.f32.gmra.mxu0 %v7127_v60  ;;  %1638 = vmatprep.subr.mxu1 %v10103_v0 }
  0xa8   : > { %1077 = vmatprep.mubr.f32.mxu0 %v7208_v26  ;;  %1639 = vmatpush1.msra.mxu1 %v930_v30  ;;  %v924_v30 = vld [vmem:[%s10091_s3 + $0x348] sm:$0xff] }
  0xa9   : > { %1298 = vmatmul.mubr.f32.gmra.mxu1 %v7216_v31  ;;  %1447 = vmatprep.subr.mxu0 %v10103_v0 }
  0xaa   : > { %1302 = vmatprep.mubr.f32.mxu1 %v7225_v36  ;;  %1640 = vmatprep.subr.mxu1 %v10103_v0 }
  0xab   : > { %1078 = vmatmul.mubr.f32.gmra.mxu0 %v7178_v15  ;;  %1641 = vmatpush1.msra.mxu1 %v929_v38  ;;  %v601_v38 = vrot.slane %v7315_v25, 1 }
  0xac   : > { %1082 = vmatprep.mubr.f32.mxu0 %v7234_v39  ;;  %1448 = vmatpush2.msra.mxu0 %v913_v45  ;;  %v483_v45 = vld [vmem:[%s6953_s13 + $0xd0] sm:$0x3] }
  0xad   : > { %1303 = vmatmul.mubr.f32.gmra.mxu1 %v7244_v47  ;;  %1642 = vmatprep.subr.mxu1 %v10103_v0  ;;  %v603_v53 = vrot.slane %v483_v45, 1  ;;  %v716_v23 = vrot.slane %v483_v45, 2  ;;  %v718_v45 = vrot.slane %v7366_v6, 2 }
  0xae   : > { %1307 = vmatprep.mubr.f32.mxu1 %v7221_v35  ;;  %1643 = vmatpush1.msra.mxu1 %v928_v51  ;;  %v7350_v51 = vsel %vm559_vm0, %v600_v34, %v601_v38 }
  0xaf   : > { %1083 = vmatmul.mubr.f32.gmra.mxu0 %v7174_v14  ;;  %1449 = vmatprep.subr.mxu0 %v10103_v0  ;;  %10270 = vst [vmem:[#allocation29_spill] sm:$0xff] %v7350_v51  ;;  %v7375_v10 = vsel %vm559_vm0, %v601_v38, %v603_v53  ;;  %v608_v38 = vrot.slane %v486_v24, 1  ;;  %v908_v53 = vld [vmem:[%s10091_s3 + $0x2c8] sm:$0xff] }
  0xb0   : > { %1087 = vmatprep.mubr.f32.mxu0 %v7255_v52  ;;  %1644 = vmatprep.subr.mxu1 %v10103_v0  ;;  %10273 = vst [vmem:[#allocation32_spill] sm:$0xff] %v7375_v10 }
  0xb1   : > { %1308 = vmatmul.mubr.f32.gmra.mxu1 %v7260_v55  ;;  %1450 = vmatpush2.msra.mxu0 %v912_v62  ;;  %v713_v62 = vrot.slane %v7320_v28, 2 }
  0xb2   : > { %1312 = vmatprep.mubr.f32.mxu1 %v7272_v1  ;;  %1645 = vmatpush1.msra.mxu1 %v927_v2  ;;  %v714_v2 = vrot.slane %v7315_v25, 2 }
  0xb3   : > { %1088 = vmatmul.mubr.f32.gmra.mxu0 %v7225_v36  ;;  %1646 = vmatprep.subr.mxu1 %v10103_v0 }
  0xb4   : > { %1092 = vmatprep.mubr.f32.mxu0 %v7282_v3  ;;  %1647 = vmatpush1.msra.mxu1 %v926_v7  ;;  %v921_v7 = vld [vmem:[%s10091_s3 + $0x330] sm:$0xff]  ;;  %v7401_v42 = vsel %vm672_vm1, %v714_v2, %v716_v23 }
  0xb5   : > { %1313 = vmatmul.mubr.f32.gmra.mxu1 %v7291_v9  ;;  %1451 = vmatprep.subr.mxu0 %v10103_v0  ;;  %10275 = vst [vmem:[#allocation34_spill] sm:$0xff] %v7401_v42 }
  0xb6   : > { %1317 = vmatprep.mubr.f32.mxu1 %v7265_v59  ;;  %1648 = vmatprep.subr.mxu1 %v10103_v0 }
  0xb7   : > { %1093 = vmatmul.mubr.f32.gmra.mxu0 %v7221_v35  ;;  %1649 = vmatpush1.msra.mxu1 %v925_v13  ;;  %v606_v13 = vrot.slane %v7362_v5, 1 }
  0xb8   : > { %1097 = vmatprep.mubr.f32.mxu0 %v7302_v16  ;;  %1452 = vmatpush2.msra.mxu0 %v911_v19  ;;  %v7385_v19 = vsel %vm672_vm1, %v713_v62, %v714_v2  ;;  %v919_v62 = vld [vmem:[%s10091_s3 + $0x320] sm:$0xff] }
  0xb9   : > { %1318 = vmatmul.mubr.f32.gmra.mxu1 %v7310_v20  ;;  %1650 = vmatprep.subr.mxu1 %v10103_v0  ;;  %v7396_v34 = vsel %vm559_vm0, %v605_v12, %v606_v13  ;;  %v7423_v2 = vsel %vm559_vm0, %v606_v13, %v608_v38  ;;  %v10280_v13 = vmov 0.0   ;;  %v917_v38 = vld [vmem:[%s10091_s3 + $0x310] sm:$0xff] }
  0xba   : > { %1322 = vmatprep.mubr.f32.mxu1 %v7320_v28  ;;  %1651 = vmatpush1.msra.mxu1 %v924_v30  ;;  %v920_v30 = vld [vmem:[%s10091_s3 + $0x328] sm:$0xff]  ;;  %10274 = vst [vmem:[#allocation33_spill] sm:$0xff] %v7396_v34  ;;  %10278 = vst [vmem:[#allocation37_spill] sm:$0xff] %v7423_v2 }
  0xbb   : > { %1098 = vmatmul.mubr.f32.gmra.mxu0 %v7272_v1  ;;  %1453 = vmatprep.subr.mxu0 %v10103_v0 }
  0xbc   : > { %1102 = vmatprep.mubr.f32.mxu0 %v7328_v32  ;;  %1652 = vmatprep.subr.mxu1 %v10103_v0 }
  0xbd   : > { %1323 = vmatmul.mubr.f32.gmra.mxu1 %v7335_v41  ;;  %1454 = vmatpush2.msra.mxu0 %v910_v48  ;;  %v719_v48 = vrot.slane %v7362_v5, 2 }
  0xbe   : > { %1327 = vmatprep.mubr.f32.mxu1 %v7315_v25  ;;  %1653 = vmatpush1.msra.mxu1 %v923_v49  ;;  %v7406_v49 = vld [vmem:[%s6953_s13 + $0xf8] sm:$0xff] }
  0xbf   : > { %1103 = vmatmul.mubr.f32.gmra.mxu0 %v7265_v59  ;;  %1654 = vmatprep.subr.mxu1 %v10103_v0  ;;  %10276 = vst [vmem:[#allocation35_spill] sm:$0xff] %v7406_v49  ;;  %v611_v12 = vrot.slane %v7406_v49, 1  ;;  %v7432_v23 = vsel %vm672_vm1, %v718_v45, %v719_v48 }
  0xc0   : > { %1107 = vmatprep.mubr.f32.mxu0 %v7350_v51  ;;  %1655 = vmatpush1.msra.mxu1 %v922_v56  ;;  %v7413_v56 = vld [vmem:[%s6953_s13 + $0xf0] sm:$0xff]  ;;  %10279 = vst [vmem:[#allocation38_spill] sm:$0xff] %v7432_v23 }
  0xc1   : > { %1328 = vmatmul.mubr.f32.gmra.mxu1 %v7357_v58  ;;  %1455 = vmatprep.subr.mxu0 %v10103_v0  ;;  %10277 = vst [vmem:[#allocation36_spill] sm:$0xff] %v7413_v56 }
  0xc2   : > { %1332 = vmatprep.mubr.f32.mxu1 %v7366_v6  ;;  %1656 = vmatprep.subr.mxu1 %v10103_v0 }
  0xc3   : > { %1108 = vmatmul.mubr.f32.gmra.mxu0 %v7320_v28  ;;  %1657 = vmatpush1.msra.mxu1 %v921_v7  ;;  %v610_v7 = vrot.slane %v7413_v56, 1 }
  0xc4   : > { %1112 = vmatprep.mubr.f32.mxu0 %v7375_v10  ;;  %1456 = vmatpush2.msra.mxu0 %v909_v18  ;;  %v918_v18 = vld [vmem:[%s10091_s3 + $0x318] sm:$0xff] }
  0xc5   : > { %1333 = vmatmul.mubr.f32.gmra.mxu1 %v7385_v19  ;;  %1658 = vmatprep.subr.mxu1 %v10103_v0  ;;  %v7443_v45 = vsel %vm559_vm0, %v610_v7, %v611_v12  ;;  %v7461_v7 = vld [vmem:[%s6953_s13 + $0x108] sm:$0xff] }
  0xc6   : > { %1337 = vmatprep.mubr.f32.mxu1 %v7362_v5  ;;  %1659 = vmatpush1.msra.mxu1 %v920_v30  ;;  %v721_v30 = vrot.slane %v486_v24, 2  ;;  %10281 = vst [vmem:[#allocation39_spill] sm:$0xff] %v7443_v45  ;;  %10284 = vst [vmem:[#allocation42_spill] sm:$0xff] %v7461_v7 }
  0xc7   : > { %1113 = vmatmul.mubr.f32.gmra.mxu0 %v7315_v25  ;;  %1457 = vmatprep.subr.mxu0 %v10103_v0 }
  0xc8   : > { %1117 = vmatprep.mubr.f32.mxu0 %v7396_v34  ;;  %1660 = vmatprep.subr.mxu1 %v10103_v0  ;;  %v489_v0 = vld [vmem:[%s6953_s13 + $0x100] sm:$0x3]  ;;  %v492_v34 = vld [vmem:[%s6953_s13 + $0x118] sm:$0x3] }
  0xc9   : > { %1338 = vmatmul.mubr.f32.gmra.mxu1 %v7401_v42  ;;  %1458 = vmatpush2.msra.mxu0 %v908_v53  ;;  %v613_v24 = vrot.slane %v489_v0, 1  ;;  %v907_v53 = vld [vmem:[%s10091_s3 + $0x2c0] sm:$0xff] }
  0xca   : > { %1342 = vmatprep.mubr.f32.mxu1 %v7413_v56  ;;  %1661 = vmatpush1.msra.mxu1 %v919_v62  ;;  %v7451_v62 = vsel %vm672_vm1, %v719_v48, %v721_v30  ;;  %v615_v30 = vrot.slane %v7461_v7, 1 }
  0xcb   : > { %1118 = vmatmul.mubr.f32.gmra.mxu0 %v7366_v6  ;;  %1662 = vmatprep.subr.mxu1 %v10280_v13  ;;  %10282 = vst [vmem:[#allocation40_spill] sm:$0xff] %v7451_v62  ;;  %v916_v6 = vld [vmem:[%s10091_s3 + $0x308] sm:$0xff]  ;;  %v7469_v48 = vsel %vm559_vm0, %v611_v12, %v613_v24  ;;  %v906_v12 = vld [vmem:[%s10091_s3 + $0x2b8] sm:$0xff]  ;;  %v915_v24 = vld [vmem:[%s10091_s3 + $0x300] sm:$0xff] }
  0xcc   : > { %1122 = vmatprep.mubr.f32.mxu0 %v7423_v2  ;;  %1663 = vmatpush1.msra.mxu1 %v918_v18  ;;  %v723_v18 = vrot.slane %v7413_v56, 2  ;;  %v724_v2 = vrot.slane %v7406_v49, 2  ;;  %10285 = vst [vmem:[#allocation43_spill] sm:$0xff] %v7469_v48 }
  0xcd   : > { %1343 = vmatmul.mubr.f32.gmra.mxu1 %v7432_v23  ;;  %1459 = vmatprep.subr.mxu0 %v10280_v13  ;;  %v7456_v23 = vld [vmem:[%s6953_s13 + $0x110] sm:$0xff] }
  0xce   : > { %1347 = vmatprep.mubr.f32.mxu1 %v7406_v49  ;;  %10283 = vst [vmem:[#allocation41_spill] sm:$0xff] %v7456_v23  ;;  %1664 = vmatprep.subr.mxu1 %v10280_v13  ;;  %v616_v42 = vrot.slane %v7456_v23, 1 }
  0xcf   : > { %1123 = vmatmul.mubr.f32.gmra.mxu0 %v7362_v5  ;;  %1665 = vmatpush1.msra.mxu1 %v917_v38  ;;  %v7476_v38 = vsel %vm672_vm1, %v723_v18, %v724_v2  ;;  %v726_v5 = vrot.slane %v489_v0, 2 }
  0xd0   : > { %1127 = vmatprep.mubr.f32.mxu0 %v7443_v45  ;;  %1460 = vmatpush2.msra.mxu0 %v907_v53  ;;  %10286 = vst [vmem:[#allocation44_spill] sm:$0xff] %v7476_v38  ;;  %v7491_v0 = vsel %vm559_vm0, %v615_v30, %v616_v42  ;;  %v946_v53 = vld [vmem:[%s10091_s3 + $0x3f8] sm:$0xff]  ;;  %v7507_v30 = vld [vmem:[%s6953_s13 + $0x120] sm:$0xff] }
  0xd1   : > { %1348 = vmatmul.mubr.f32.gmra.mxu1 %v7451_v62  ;;  %1666 = vmatprep.subr.mxu1 %v10280_v13  ;;  %10287 = vst [vmem:[#allocation45_spill] sm:$0xff] %v7491_v0  ;;  %v7498_v18 = vsel %vm672_vm1, %v724_v2, %v726_v5  ;;  %v7503_v62 = vld [vmem:[%s6953_s13 + $0x128] sm:$0xff]  ;;  %10290 = vst [vmem:[#allocation48_spill] sm:$0xff] %v7507_v30  ;;  %v945_v5 = vld [vmem:[%s10091_s3 + $0x3f0] sm:$0xff] }
  0xd2   : > { %1352 = vmatprep.mubr.f32.mxu1 %v7461_v7  ;;  %1667 = vmatpush1.msra.mxu1 %v916_v6  ;;  %v618_v6 = vrot.slane %v492_v34, 1  ;;  %10288 = vst [vmem:[#allocation46_spill] sm:$0xff] %v7498_v18  ;;  %10289 = vst [vmem:[#allocation47_spill] sm:$0xff] %v7503_v62 }
  0xd3   : > { %1128 = vmatmul.mubr.f32.gmra.mxu0 %v7413_v56  ;;  %1461 = vmatprep.subr.mxu0 %v10280_v13  ;;  %v729_v56 = vrot.slane %v7456_v23, 2 }
  0xd4   : > { %1132 = vmatprep.mubr.f32.mxu0 %v7469_v48  ;;  %1668 = vmatprep.subr.mxu1 %v10280_v13  ;;  %v728_v48 = vrot.slane %v7461_v7, 2  ;;  %v7516_v2 = vsel %vm559_vm0, %v616_v42, %v618_v6  ;;  %v944_v42 = vld [vmem:[%s10091_s3 + $0x3e8] sm:$0xff] }
  0xd5   : > { %1353 = vmatmul.mubr.f32.gmra.mxu1 %v7476_v38  ;;  %1462 = vmatpush2.msra.mxu0 %v906_v12  ;;  %10291 = vst [vmem:[#allocation49_spill] sm:$0xff] %v7516_v2  ;;  %v620_v12 = vrot.slane %v7507_v30, 1  ;;  %v7547_v38 = vld [vmem:[%s6953_s13 + $0x140] sm:$0xff] }
  0xd6   : > { %1357 = vmatprep.mubr.f32.mxu1 %v7456_v23  ;;  %1669 = vmatpush1.msra.mxu1 %v915_v24  ;;  %v621_v24 = vrot.slane %v7503_v62, 1  ;;  %10295 = vst [vmem:[#allocation53_spill] sm:$0xff] %v7547_v38 }
  0xd7   : > { %1133 = vmatmul.mubr.f32.gmra.mxu0 %v7406_v49  ;;  %1670 = vmatprep.subr.mxu1 %v10280_v13  ;;  %v731_v49 = vrot.slane %v492_v34, 2 }
  0xd8   : > { %1137 = vmatprep.mubr.f32.mxu0 %v7491_v0  ;;  %1671 = vmatpush2.msra.mxu1 %v946_v53  ;;  %v905_v0 = vld [vmem:[%s10091_s3 + $0x2b0] sm:$0xff]  ;;  %v7526_v53 = vsel %vm672_vm1, %v728_v48, %v729_v56  ;;  %v7537_v48 = vsel %vm559_vm0, %v620_v12, %v621_v24  ;;  %v7554_v12 = vld [vmem:[%s6953_s13 + $0x138] sm:$0xff] }
  0xd9   : > { %1358 = vmatmul.mubr.f32.gmra.mxu1 %v7498_v18  ;;  %1463 = vmatprep.subr.mxu0 %v10280_v13  ;;  %10292 = vst [vmem:[#allocation50_spill] sm:$0xff] %v7526_v53  ;;  %v495_v18 = vld [vmem:[%s6953_s13 + $0x130] sm:$0x3]  ;;  %10293 = vst [vmem:[#allocation51_spill] sm:$0xff] %v7537_v48  ;;  %v7542_v6 = vsel %vm672_vm1, %v729_v56, %v731_v49  ;;  %v943_v49 = vld [vmem:[%s10091_s3 + $0x3e0] sm:$0xff] }
  0xda   : > { %1362 = vmatprep.mubr.f32.mxu1 %v7507_v30  ;;  %1672 = vmatprep.subr.mxu1 %v10280_v13  ;;  %v623_v34 = vrot.slane %v495_v18, 1  ;;  %10294 = vst [vmem:[#allocation52_spill] sm:$0xff] %v7542_v6  ;;  %10296 = vst [vmem:[#allocation54_spill] sm:$0xff] %v7554_v12 }
  0xdb   : > { %1138 = vmatmul.mubr.f32.gmra.mxu0 %v7461_v7  ;;  %1673 = vmatpush2.msra.mxu1 %v945_v5  ;;  %v733_v5 = vrot.slane %v7507_v30, 2  ;;  %v734_v7 = vrot.slane %v7503_v62, 2 }
  0xdc   : > { %1142 = vmatprep.mubr.f32.mxu0 %v7516_v2  ;;  %1464 = vmatpush2.msra.mxu0 %v905_v0  ;;  %v904_v0 = vld [vmem:[%s10091_s3 + $0x2a8] sm:$0xff]  ;;  %v7564_v56 = vsel %vm559_vm0, %v621_v24, %v623_v34  ;;  %v736_v2 = vrot.slane %v495_v18, 2  ;;  %v941_v24 = vld [vmem:[%s10091_s3 + $0x3d0] sm:$0xff] }
  0xdd   : > { %1363 = vmatmul.mubr.f32.gmra.mxu1 %v7526_v53  ;;  %1674 = vmatprep.subr.mxu1 %v10280_v13  ;;  %10297 = vst [vmem:[#allocation55_spill] sm:$0xff] %v7564_v56  ;;  %v942_v53 = vld [vmem:[%s10091_s3 + $0x3d8] sm:$0xff] }
  0xde   : > { %1367 = vmatprep.mubr.f32.mxu1 %v7503_v62  ;;  %1675 = vmatpush2.msra.mxu1 %v944_v42  ;;  %v625_v42 = vrot.slane %v7554_v12, 1 }
  0xdf   : > { %1143 = vmatmul.mubr.f32.gmra.mxu0 %v7456_v23  ;;  %1465 = vmatprep.subr.mxu0 %v10280_v13  ;;  %v626_v23 = vrot.slane %v7547_v38, 1 }
  0xe0   : > { %1147 = vmatprep.mubr.f32.mxu0 %v7537_v48  ;;  %1676 = vmatprep.subr.mxu1 %v10280_v13  ;;  %v7573_v48 = vsel %vm672_vm1, %v733_v5, %v734_v7  ;;  %v903_v5 = vld [vmem:[%s10091_s3 + $0x2a0] sm:$0xff] }
  0xe1   : > { %1368 = vmatmul.mubr.f32.gmra.mxu1 %v7542_v6  ;;  %1466 = vmatpush2.msra.mxu0 %v904_v0  ;;  %10298 = vst [vmem:[#allocation56_spill] sm:$0xff] %v7573_v48  ;;  %v498_v6 = vld [vmem:[%s6953_s13 + $0x148] sm:$0x3]  ;;  %v7584_v34 = vsel %vm559_vm0, %v625_v42, %v626_v23  ;;  %v738_v0 = vrot.slane %v7554_v12, 2  ;;  %v7602_v42 = vld [vmem:[%s6953_s13 + $0x150] sm:$0xff] }
  0xe2   : > { %1372 = vmatprep.mubr.f32.mxu1 %v7554_v12  ;;  %1677 = vmatpush2.msra.mxu1 %v943_v49  ;;  %10299 = vst [vmem:[#allocation57_spill] sm:$0xff] %v7584_v34  ;;  %v628_v18 = vrot.slane %v498_v6, 1  ;;  %v739_v49 = vrot.slane %v7547_v38, 2  ;;  %10302 = vst [vmem:[#allocation60_spill] sm:$0xff] %v7602_v42 }
  0xe3   : > { %1148 = vmatmul.mubr.f32.gmra.mxu0 %v7507_v30  ;;  %1678 = vmatprep.subr.mxu1 %v10280_v13  ;;  %v741_v30 = vrot.slane %v498_v6, 2 }
  0xe4   : > { %1152 = vmatprep.mubr.f32.mxu0 %v7564_v56  ;;  %1679 = vmatpush2.msra.mxu1 %v942_v53  ;;  %v7592_v53 = vsel %vm672_vm1, %v734_v7, %v736_v2  ;;  %v940_v56 = vld [vmem:[%s10091_s3 + $0x3c8] sm:$0xff]  ;;  %v7610_v7 = vsel %vm559_vm0, %v626_v23, %v628_v18  ;;  %v630_v2 = vrot.slane %v7602_v42, 1  ;;  %v939_v23 = vld [vmem:[%s10091_s3 + $0x3c0] sm:$0xff]  ;;  %v938_v18 = vld [vmem:[%s10091_s3 + $0x3b8] sm:$0xff] }
  0xe5   : > { %1373 = vmatmul.mubr.f32.gmra.mxu1 %v7573_v48  ;;  %1467 = vmatprep.subr.mxu0 %v10280_v13  ;;  %10300 = vst [vmem:[#allocation58_spill] sm:$0xff] %v7592_v53  ;;  %v7597_v48 = vld [vmem:[%s6953_s13 + $0x158] sm:$0xff]  ;;  %10303 = vst [vmem:[#allocation61_spill] sm:$0xff] %v7610_v7 }
  0xe6   : > { %1377 = vmatprep.mubr.f32.mxu1 %v7547_v38  ;;  %10301 = vst [vmem:[#allocation59_spill] sm:$0xff] %v7597_v48  ;;  %1680 = vmatprep.subr.mxu1 %v10280_v13 }
  0xe7   : > { %1153 = vmatmul.mubr.f32.gmra.mxu0 %v7503_v62  ;;  %1681 = vmatpush2.msra.mxu1 %v941_v24  ;;  %v631_v62 = vrot.slane %v7597_v48, 1  ;;  %v7617_v24 = vsel %vm672_vm1, %v738_v0, %v739_v49  ;;  %v7639_v0 = vsel %vm672_vm1, %v739_v49, %v741_v30  ;;  %v937_v30 = vld [vmem:[%s10091_s3 + $0x3b0] sm:$0xff] }
  0xe8   : > { %1157 = vmatprep.mubr.f32.mxu0 %v7584_v34  ;;  %1468 = vmatpush2.msra.mxu0 %v903_v5  ;;  %10304 = vst [vmem:[#allocation62_spill] sm:$0xff] %v7617_v24  ;;  %v902_v5 = vld [vmem:[%s10091_s3 + $0x298] sm:$0xff]  ;;  %10306 = vst [vmem:[#allocation64_spill] sm:$0xff] %v7639_v0 }
  0xe9   : > { %1378 = vmatmul.mubr.f32.gmra.mxu1 %v7592_v53  ;;  %1682 = vmatprep.subr.mxu1 %v10280_v13  ;;  %v501_v53 = vld [vmem:[%s6953_s13 + $0x160] sm:$0x3]  ;;  %v7632_v6 = vsel %vm559_vm0, %v630_v2, %v631_v62  ;;  %v7648_v2 = vld [vmem:[%s6953_s13 + $0x168] sm:$0xff] }
  0xea   : > { %1382 = vmatprep.mubr.f32.mxu1 %v7602_v42  ;;  %1683 = vmatpush2.msra.mxu1 %v940_v56  ;;  %10305 = vst [vmem:[#allocation63_spill] sm:$0xff] %v7632_v6  ;;  %v633_v56 = vrot.slane %v501_v53, 1 }
  0xeb   : > { %1158 = vmatmul.mubr.f32.gmra.mxu0 %v7554_v12  ;;  %1469 = vmatprep.subr.mxu0 %v10280_v13  ;;  %v744_v12 = vrot.slane %v7597_v48, 2 }
  0xec   : > { %1162 = vmatprep.mubr.f32.mxu0 %v7610_v7  ;;  %1684 = vmatprep.subr.mxu1 %v10280_v13  ;;  %v743_v7 = vrot.slane %v7602_v42, 2  ;;  %v7657_v49 = vsel %vm559_vm0, %v631_v62, %v633_v56  ;;  %v504_v62 = vld [vmem:[%s6953_s13 + $0x178] sm:$0x3]  ;;  %v936_v56 = vld [vmem:[%s10091_s3 + $0x3a8] sm:$0xff] }
  0xed   : > { %1383 = vmatmul.mubr.f32.gmra.mxu1 %v7617_v24  ;;  %1470 = vmatpush2.msra.mxu0 %v902_v5  ;;  %v7644_v24 = vld [vmem:[%s6953_s13 + $0x170] sm:$0xff]  ;;  %10307 = vst [vmem:[#allocation65_spill] sm:$0xff] %v7657_v49 }
  0xee   : > { %1387 = vmatprep.mubr.f32.mxu1 %v7597_v48  ;;  %1685 = vmatpush2.msra.mxu1 %v939_v23  ;;  %v901_v5 = vld [vmem:[%s10091_s3 + $0x290] sm:$0xff]  ;;  %v635_v23 = vrot.slane %v7648_v2, 1 }
  0xef   : > { %1163 = vmatmul.mubr.f32.gmra.mxu0 %v7547_v38  ;;  %1686 = vmatprep.subr.mxu1 %v10280_v13  ;;  %v749_v38 = vrot.slane %v7644_v24, 2 }
  0xf0   : > { %1167 = vmatprep.mubr.f32.mxu0 %v7632_v6  ;;  %1687 = vmatpush2.msra.mxu1 %v938_v18  ;;  %v636_v6 = vrot.slane %v7644_v24, 1  ;;  %v7667_v18 = vsel %vm672_vm1, %v743_v7, %v744_v12 }
  0xf1   : > { %1388 = vmatmul.mubr.f32.gmra.mxu1 %v7639_v0  ;;  %1471 = vmatprep.subr.mxu0 %v10280_v13  ;;  %10308 = vst [vmem:[#allocation66_spill] sm:$0xff] %v7667_v18  ;;  %v746_v0 = vrot.slane %v501_v53, 2  ;;  %v638_v53 = vrot.slane %v504_v62, 1 }
  0xf2   : > { %1392 = vmatprep.mubr.f32.mxu1 %v7648_v2  ;;  %1688 = vmatprep.subr.mxu1 %v10280_v13  ;;  %v7679_v7 = vsel %vm559_vm0, %v635_v23, %v636_v6  ;;  %v7692_v23 = vld [vmem:[%s6953_s13 + $0x180] sm:$0xff] }
  0xf3   : > { %1168 = vmatmul.mubr.f32.gmra.mxu0 %v7602_v42  ;;  %1689 = vmatpush2.msra.mxu1 %v937_v30  ;;  %10309 = vst [vmem:[#allocation67_spill] sm:$0xff] %v7679_v7  ;;  %v7683_v42 = vsel %vm672_vm1, %v744_v12, %v746_v0  ;;  %v748_v30 = vrot.slane %v7648_v2, 2  ;;  %v935_v12 = vld [vmem:[%s10091_s3 + $0x3a0] sm:$0xff]  ;;  %v7702_v0 = vsel %vm559_vm0, %v636_v6, %v638_v53  ;;  %v933_v6 = vld [vmem:[%s10091_s3 + $0x390] sm:$0xff] }
  0xf4   : > { %1172 = vmatprep.mubr.f32.mxu0 %v7657_v49  ;;  %1472 = vmatpush2.msra.mxu0 %v901_v5  ;;  %10310 = vst [vmem:[#allocation68_spill] sm:$0xff] %v7683_v42  ;;  %v900_v5 = vld [vmem:[%s10091_s3 + $0x288] sm:$0xff]  ;;  %10311 = vst [vmem:[#allocation69_spill] sm:$0xff] %v7702_v0 }
  0xf5   : > { %1393 = vmatmul.mubr.f32.gmra.mxu1 %v7667_v18  ;;  %1690 = vmatprep.subr.mxu1 %v10280_v13  ;;  %v751_v18 = vrot.slane %v504_v62, 2  ;;  %v899_v62 = vld [vmem:[%s10091_s3 + $0x280] sm:$0xff] }
  0xf6   : > { %1397 = vmatprep.mubr.f32.mxu1 %v7644_v24  ;;  %1691 = vmatpush2.msra.mxu1 %v936_v56  ;;  %v934_v56 = vld [vmem:[%s10091_s3 + $0x398] sm:$0xff] }
  0xf7   : > { %1173 = vmatmul.mubr.f32.gmra.mxu0 %v7597_v48  ;;  %1473 = vmatprep.subr.mxu0 %v10280_v13  ;;  %v7709_v48 = vsel %vm672_vm1, %v748_v30, %v749_v38  ;;  %v7728_v53 = vsel %vm672_vm1, %v749_v38, %v751_v18  ;;  %v932_v30 = vld [vmem:[%s10091_s3 + $0x388] sm:$0xff]  ;;  %v931_v38 = vld [vmem:[%s10091_s3 + $0x380] sm:$0xff]  ;;  %v961_v18 = vld [vmem:[%s10091_s3 + $0x470] sm:$0xff] }
  0xf8   : > { %1177 = vmatprep.mubr.f32.mxu0 %v7679_v7  ;;  %1692 = vmatprep.subr.mxu1 %v10280_v13 }
  0xf9   : > { %1398 = vmatmul.mubr.f32.gmra.mxu1 %v7683_v42  ;;  %1474 = vmatpush2.msra.mxu0 %v900_v5  ;;  %v7714_v42 = vld [vmem:[%s6953_s13 + $0x188] sm:$0xff]  ;;  %v962_v5 = vld [vmem:[%s10091_s3 + $0x478] sm:$0xff] }
  0xfa   : > { %1402 = vmatprep.mubr.f32.mxu1 %v7692_v23  ;;  %1693 = vmatpush2.msra.mxu1 %v935_v12  ;;  %v959_v12 = vld [vmem:[%s10091_s3 + $0x460] sm:$0xff] }
  0xfb   : > { %1178 = vmatmul.mubr.f32.gmra.mxu0 %v7648_v2  ;;  %1694 = vmatprep.subr.mxu1 %v10280_v13 }
  0xfc   : > { %1182 = vmatprep.mubr.f32.mxu0 %v7702_v0  ;;  %1695 = vmatpush2.msra.mxu1 %v934_v56  ;;  %v6419_v56 = vld [vmem:[%s6953_s13 + $0x38] sm:$0xff] }
  0xfd   : > { %1403 = vmatmul.mubr.f32.gmra.mxu1 %v7709_v48  ;;  %1475 = vmatprep.subr.mxu0 %v10280_v13 }
  0xfe   : > { %1407 = vmatprep.mubr.f32.mxu1 %v7714_v42  ;;  %1696 = vmatprep.subr.mxu1 %v10280_v13 }
  0xff   : > { %1183 = vmatmul.mubr.f32.gmra.mxu0 %v7644_v24  ;;  %1697 = vmatpush2.msra.mxu1 %v933_v6  ;;  %v956_v6 = vld [vmem:[%s10091_s3 + $0x448] sm:$0xff] }
 0x100   : > { %1476 = vmatpush2.msra.mxu0 %v899_v62  ;;  %1698 = vmatprep.subr.mxu1 %v10280_v13  ;;  %v955_v62 = vld [vmem:[%s10091_s3 + $0x440] sm:$0xff] }
 0x101   : > { %1408 = vmatmul.mubr.f32.gmra.mxu1 %v7728_v53  ;;  %1477 = vmatprep.mubr.f32.mxu0 %v7057_v33  ;;  %v960_v33 = vld [vmem:[%s10091_s3 + $0x468] sm:$0xff] }
 0x102   : > { %1699 = vmatpush2.msra.mxu1 %v932_v30  ;;  %5859 = vmatprep.subr.mxu0 %v962_v5  ;;  %v953_v30 = vld [vmem:[%s10091_s3 + $0x430] sm:$0xff] }
 0x103   : > { %1478 = vmatmul.mubr.f32.vlgmr.msra.gmra.mxu0 %v7029_v21  ;;  %1700 = vmatprep.subr.mxu1 %v10280_v13 }
 0x104   : > { %1701 = vmatpush2.msra.mxu1 %v931_v38  ;;  %1702 = vmatprep.mubr.f32.mxu1 %v7067_v37  ;;  %v949_v38 = vld [vmem:[%s10091_s3 + $0x410] sm:$0xff] }
 0x105   : > { %5860 = vmatpush3.msra.mxu0 %v962_v5  ;;  %1703 = vmatmul.mubr.f32.vlgmr.msra.gmra.mxu1 %v7040_v27  ;;  %v958_v27 = vld [vmem:[%s10091_s3 + $0x458] sm:$0xff]  ;;  %v951_v5 = vld [vmem:[%s10091_s3 + $0x420] sm:$0xff] }
 0x106   : > { %1482 = vmatprep.mubr.f32.mxu0 %v7075_v40  ;;  %1707 = vmatprep.mubr.f32.mxu1 %v7093_v46  ;;  %v957_v40 = vld [vmem:[%s10091_s3 + $0x450] sm:$0xff] }
 0x107   : > { %1483 = vmatmul.mubr.f32.gmra.mxu0 %v7048_v29  ;;  %5861 = vmatprep.subr.mxu0 %v961_v18 }
 0x108   : > { %1487 = vmatprep.mubr.f32.mxu0 %v7103_v50  ;;  %5862 = vmatpush3.msra.mxu0 %v961_v18  ;;  %v947_v18 = vld [vmem:[%s10091_s3 + $0x400] sm:$0xff] }
 0x109   : > { %1708 = vmatmul.mubr.f32.gmra.mxu1 %v6419_v56  ;;  %5863 = vmatprep.subr.mxu0 %v960_v33  ;;  %v10319_v56 = vld [vmem:[#allocation36_spill] sm:$0xff] }
 0x10a   : > { %1712 = vmatprep.mubr.f32.mxu1 %v7114_v54  ;;  %5864 = vmatpush3.msra.mxu0 %v960_v33 }
 0x10b   : > { %1488 = vmatmul.mubr.f32.gmra.mxu0 %v7067_v37  ;;  %5865 = vmatprep.subr.mxu0 %v959_v12 }
 0x10c   : > { %1492 = vmatprep.mubr.f32.mxu0 %v7122_v57  ;;  %5866 = vmatpush3.msra.mxu0 %v959_v12 }
 0x10d   : > { %1713 = vmatmul.mubr.f32.gmra.mxu1 %v7084_v44  ;;  %5867 = vmatprep.subr.mxu0 %v958_v27  ;;  %v954_v44 = vld [vmem:[%s10091_s3 + $0x438] sm:$0xff] }
 0x10e   : > { %1717 = vmatprep.mubr.f32.mxu1 %v7140_v63  ;;  %5868 = vmatpush3.msra.mxu0 %v958_v27 }
 0x10f   : > { %1493 = vmatmul.mubr.f32.gmra.mxu0 %v7093_v46  ;;  %5869 = vmatprep.subr.mxu0 %v957_v40 }
 0x110   : > { %1497 = vmatprep.mubr.f32.mxu0 %v7150_v4  ;;  %5870 = vmatpush3.msra.mxu0 %v957_v40  ;;  %v10320_v40 = vld [vmem:[#allocation43_spill] sm:$0xff] }
 0x111   : > { %1718 = vmatmul.mubr.f32.gmra.mxu1 %v7080_v43  ;;  %5871 = vmatprep.subr.mxu0 %v956_v6  ;;  %v952_v43 = vld [vmem:[%s10091_s3 + $0x428] sm:$0xff] }
 0x112   : > { %1722 = vmatprep.mubr.f32.mxu1 %v7161_v8  ;;  %5872 = vmatpush3.msra.mxu0 %v956_v6 }
 0x113   : > { %1498 = vmatmul.mubr.f32.gmra.mxu0 %v7114_v54  ;;  %5873 = vmatprep.subr.mxu0 %v955_v62 }
 0x114   : > { %1502 = vmatprep.mubr.f32.mxu0 %v7169_v11  ;;  %5874 = vmatpush3.msra.mxu0 %v955_v62 }
 0x115   : > { %1723 = vmatmul.mubr.f32.gmra.mxu1 %v7131_v61  ;;  %5875 = vmatprep.subr.mxu0 %v954_v44  ;;  %v950_v61 = vld [vmem:[%s10091_s3 + $0x418] sm:$0xff] }
 0x116   : > { %1727 = vmatprep.mubr.f32.mxu1 %v7187_v17  ;;  %5876 = vmatpush3.msra.mxu0 %v954_v44  ;;  %v10321_v44 = vld [vmem:[#allocation44_spill] sm:$0xff] }
 0x117   : > { %1503 = vmatmul.mubr.f32.gmra.mxu0 %v7140_v63  ;;  %5877 = vmatprep.subr.mxu0 %v953_v30 }
 0x118   : > { %1507 = vmatprep.mubr.f32.mxu0 %v7197_v22  ;;  %5878 = vmatpush3.msra.mxu0 %v953_v30 }
 0x119   : > { %1728 = vmatmul.mubr.f32.gmra.mxu1 %v7127_v60  ;;  %5879 = vmatprep.subr.mxu0 %v952_v43  ;;  %v948_v60 = vld [vmem:[%s10091_s3 + $0x408] sm:$0xff] }
 0x11a   : > { %1732 = vmatprep.mubr.f32.mxu1 %v7208_v26  ;;  %5880 = vmatpush3.msra.mxu0 %v952_v43 }
 0x11b   : > { %1508 = vmatmul.mubr.f32.gmra.mxu0 %v7161_v8  ;;  %5881 = vmatprep.subr.mxu0 %v951_v5 }
 0x11c   : > { %1512 = vmatprep.mubr.f32.mxu0 %v7216_v31  ;;  %5882 = vmatpush3.msra.mxu0 %v951_v5  ;;  %v10322_v5 = vld [vmem:[#allocation35_spill] sm:$0xff] }
 0x11d   : > { %1733 = vmatmul.mubr.f32.gmra.mxu1 %v7178_v15  ;;  %5883 = vmatprep.subr.mxu0 %v950_v61  ;;  %v10313_v15 = vld [vmem:[#allocation34_spill] sm:$0xff] }
 0x11e   : > { %1737 = vmatprep.mubr.f32.mxu1 %v7234_v39  ;;  %5884 = vmatpush3.msra.mxu0 %v950_v61 }
 0x11f   : > { %1513 = vmatmul.mubr.f32.gmra.mxu0 %v7187_v17  ;;  %5885 = vmatprep.subr.mxu0 %v949_v38  ;;  %v7929_v17 = vld [vmem:[%s6953_s13 + $0x198] sm:$0xff] }
 0x120   : > { %1517 = vmatprep.mubr.f32.mxu0 %v7244_v47  ;;  %5886 = vmatpush3.msra.mxu0 %v949_v38  ;;  %v10323_v38 = vld [vmem:[#allocation45_spill] sm:$0xff]  ;;  %v805_v37 = vrot.slane %v7929_v17, 1 }
 0x121   : > { %1738 = vmatmul.mubr.f32.gmra.mxu1 %v7174_v14  ;;  %5887 = vmatprep.subr.mxu0 %v948_v60  ;;  %v10312_v14 = vld [vmem:[#allocation33_spill] sm:$0xff] }
 0x122   : > { %1742 = vmatprep.mubr.f32.mxu1 %v7255_v52  ;;  %5888 = vmatpush3.msra.mxu0 %v948_v60 }
 0x123   : > { %1518 = vmatmul.mubr.f32.gmra.mxu0 %v7208_v26  ;;  %5889 = vmatprep.subr.mxu0 %v947_v18  ;;  %v10342_v26 = vld [vmem:[#allocation60_spill] sm:$0xff] }
 0x124   : > { %1522 = vmatprep.mubr.f32.mxu0 %v7260_v55  ;;  %5890 = vmatpush3.msra.mxu0 %v947_v18 }
 0x125   : > { %1743 = vmatmul.mubr.f32.gmra.mxu1 %v7225_v36  ;;  %v10315_v36 = vld [vmem:[#allocation37_spill] sm:$0xff] }
 0x126   : > { %1747 = vmatprep.mubr.f32.mxu1 %v7282_v3 }
 0x127   : > { %1523 = vmatmul.mubr.f32.gmra.mxu0 %v7234_v39 }
 0x128   : > { %1527 = vmatprep.mubr.f32.mxu0 %v7291_v9 }
 0x129   : > { %1748 = vmatmul.mubr.f32.gmra.mxu1 %v7221_v35  ;;  %v10314_v35 = vld [vmem:[#allocation31_spill] sm:$0xff] }
 0x12a   : > { %1752 = vmatprep.mubr.f32.mxu1 %v7302_v16 }
 0x12b   : > { %1528 = vmatmul.mubr.f32.gmra.mxu0 %v7255_v52  ;;  %v10339_v52 = vld [vmem:[#allocation53_spill] sm:$0xff] }
 0x12c   : > { %1532 = vmatprep.mubr.f32.mxu0 %v7310_v20 }
 0x12d   : > { %1753 = vmatmul.mubr.f32.gmra.mxu1 %v7272_v1  ;;  %v10317_v1 = vld [vmem:[#allocation30_spill] sm:$0xff] }
 0x12e   : > { %1757 = vmatprep.mubr.f32.mxu1 %v7328_v32 }
 0x12f   : > { %1533 = vmatmul.mubr.f32.gmra.mxu0 %v7282_v3  ;;  %v10340_v3 = vld [vmem:[#allocation63_spill] sm:$0xff] }
 0x130   : > { %1537 = vmatprep.mubr.f32.mxu0 %v7335_v41 }
 0x131   : > { %1758 = vmatmul.mubr.f32.gmra.mxu1 %v7265_v59  ;;  %v10316_v59 = vld [vmem:[#allocation38_spill] sm:$0xff] }
 0x132   : > { %1762 = vmatprep.mubr.f32.mxu1 %v7350_v51 }
 0x133   : > { %1538 = vmatmul.mubr.f32.gmra.mxu0 %v7302_v16  ;;  %v10336_v16 = vld [vmem:[#allocation54_spill] sm:$0xff] }
 0x134   : > { %1542 = vmatprep.mubr.f32.mxu0 %v7357_v58 }
 0x135   : > { %1763 = vmatmul.mubr.f32.gmra.mxu1 %v7320_v28 }
 0x136   : > { %1767 = vmatprep.mubr.f32.mxu1 %v7375_v10 }
 0x137   : > { %1543 = vmatmul.mubr.f32.gmra.mxu0 %v7328_v32  ;;  %v10337_v32 = vld [vmem:[#allocation61_spill] sm:$0xff] }
 0x138   : > { %1547 = vmatprep.mubr.f32.mxu0 %v7385_v19 }
 0x139   : > { %1768 = vmatmul.mubr.f32.gmra.mxu1 %v7315_v25  ;;  %v10318_v25 = vld [vmem:[#allocation40_spill] sm:$0xff] }
 0x13a   : > { %1772 = vmatprep.mubr.f32.mxu1 %v10312_v14 }
 0x13b   : > { %1548 = vmatmul.mubr.f32.gmra.mxu0 %v7350_v51  ;;  %v10332_v51 = vld [vmem:[#allocation55_spill] sm:$0xff] }
 0x13c   : > { %1552 = vmatprep.mubr.f32.mxu0 %v10313_v15 }
 0x13d   : > { %1773 = vmatmul.mubr.f32.gmra.mxu1 %v10314_v35  ;;  %v10324_v35 = vld [vmem:[#allocation46_spill] sm:$0xff] }
 0x13e   : > { %1777 = vmatprep.mubr.f32.mxu1 %v10315_v36 }
 0x13f   : > { %1553 = vmatmul.mubr.f32.gmra.mxu0 %v7375_v10  ;;  %v10334_v10 = vld [vmem:[#allocation47_spill] sm:$0xff] }
 0x140   : > { %1557 = vmatprep.mubr.f32.mxu0 %v10316_v59 }
 0x141   : > { %1778 = vmatmul.mubr.f32.gmra.mxu1 %v10317_v1 }
 0x142   : > { %1782 = vmatprep.mubr.f32.mxu1 %v7443_v45 }
 0x143   : > { %v1029_v28 = vpop.f32.mrf.mxu0  ;;  %1558 = vmatmul.mubr.f32.gmra.mxu0 %v10312_v14  ;;  %v10329_v14 = vld [vmem:[#allocation51_spill] sm:$0xff] }
 0x144   : > { %1562 = vmatprep.mubr.f32.mxu0 %v10318_v25 }
 0x145   : > { %v1254_v33 = vpop.f32.mrf.mxu1  ;;  %v1031_v12 = vpop.f32.mrf.mxu0  ;;  %1783 = vmatmul.mubr.f32.gmra.mxu1 %v10319_v56  ;;  %v10326_v56 = vld [vmem:[#allocation49_spill] sm:$0xff] }
 0x146   : > { %v7857_v27 = vadd.f32 %v1254_v33, %v1029_v28  ;;  %1787 = vmatprep.mubr.f32.mxu1 %v10320_v40  ;;  %v10325_v33 = vld [vmem:[#allocation42_spill] sm:$0xff] }
 0x147   : > { %v1256_v6 = vpop.f32.mrf.mxu1  ;;  %v1034_v62 = vpop.f32.mrf.mxu0  ;;  %1563 = vmatmul.mubr.f32.gmra.mxu0 %v10315_v36  ;;  %v10331_v36 = vld [vmem:[#allocation48_spill] sm:$0xff] }
 0x148   : > { %1567 = vmatprep.mubr.f32.mxu0 %v10321_v44 }
 0x149   : > { %v1259_v30 = vpop.f32.mrf.mxu1  ;;  %v1036_v43 = vpop.f32.mrf.mxu0  ;;  %1788 = vmatmul.mubr.f32.gmra.mxu1 %v10322_v5 }
 0x14a   : > { %v7863_v61 = vadd.f32 %v1259_v30, %v1034_v62  ;;  %1792 = vmatprep.mubr.f32.mxu1 %v10323_v38  ;;  %v10327_v62 = vld [vmem:[#allocation50_spill] sm:$0xff] }
 0x14b   : > { %v1261_v60 = vpop.f32.mrf.mxu1  ;;  %v1039_v18 = vpop.f32.mrf.mxu0  ;;  %1568 = vmatmul.mubr.f32.gmra.mxu0 %v7443_v45 }
 0x14c   : > { %1572 = vmatprep.mubr.f32.mxu0 %v10324_v35  ;;  %v10328_v60 = vld [vmem:[#allocation41_spill] sm:$0xff] }
 0x14d   : > { %v1264_v1 = vpop.f32.mrf.mxu1  ;;  %v1041_v28 = vpop.f32.mrf.mxu0  ;;  %1793 = vmatmul.mubr.f32.gmra.mxu1 %v10325_v33 }
 0x14e   : > { %v7869_v12 = vadd.f32 %v1264_v1, %v1039_v18  ;;  %1797 = vmatprep.mubr.f32.mxu1 %v10326_v56  ;;  %v10330_v18 = vld [vmem:[#allocation52_spill] sm:$0xff] }
 0x14f   : > { %v1266_v6 = vpop.f32.mrf.mxu1  ;;  %v1044_v43 = vpop.f32.mrf.mxu0  ;;  %1573 = vmatmul.mubr.f32.gmra.mxu0 %v10320_v40 }
 0x150   : > { %1577 = vmatprep.mubr.f32.mxu0 %v10327_v62 }
 0x151   : > { %v1269_v30 = vpop.f32.mrf.mxu1  ;;  %v1046_v5 = vpop.f32.mrf.mxu0  ;;  %1798 = vmatmul.mubr.f32.gmra.mxu1 %v10328_v60 }
 0x152   : > { %v7875_v45 = vadd.f32 %v1269_v30, %v1044_v43  ;;  %1802 = vmatprep.mubr.f32.mxu1 %v10329_v14  ;;  %v10333_v43 = vld [vmem:[#allocation56_spill] sm:$0xff] }
 0x153   : > { %v1271_v28 = vpop.f32.mrf.mxu1  ;;  %v1049_v33 = vpop.f32.mrf.mxu0  ;;  %1578 = vmatmul.mubr.f32.gmra.mxu0 %v10323_v38 }
 0x154   : > { %1582 = vmatprep.mubr.f32.mxu0 %v10330_v18 }
 0x155   : > { %v1274_v1 = vpop.f32.mrf.mxu1  ;;  %v1051_v6 = vpop.f32.mrf.mxu0  ;;  %1803 = vmatmul.mubr.f32.gmra.mxu1 %v10331_v36 }
 0x156   : > { %v7881_v40 = vadd.f32 %v1274_v1, %v1049_v33  ;;  %1807 = vmatprep.mubr.f32.mxu1 %v10332_v51  ;;  %v10335_v33 = vld [vmem:[#allocation58_spill] sm:$0xff] }
 0x157   : > { %v1276_v5 = vpop.f32.mrf.mxu1  ;;  %v1054_v60 = vpop.f32.mrf.mxu0  ;;  %1583 = vmatmul.mubr.f32.gmra.mxu0 %v10326_v56 }
 0x158   : > { %1587 = vmatprep.mubr.f32.mxu0 %v10333_v43 }
 0x159   : > { %v1279_v30 = vpop.f32.mrf.mxu1  ;;  %v1056_v28 = vpop.f32.mrf.mxu0  ;;  %1808 = vmatmul.mubr.f32.gmra.mxu1 %v10334_v10 }
 0x15a   : > { %v7887_v38 = vadd.f32 %v1279_v30, %v1054_v60  ;;  %1812 = vmatprep.mubr.f32.mxu1 %v7584_v34  ;;  %v10338_v60 = vld [vmem:[#allocation62_spill] sm:$0xff] }
 0x15b   : > { %v1281_v6 = vpop.f32.mrf.mxu1  ;;  %v1059_v36 = vpop.f32.mrf.mxu0  ;;  %1588 = vmatmul.mubr.f32.gmra.mxu0 %v10329_v14 }
 0x15c   : > { %1592 = vmatprep.mubr.f32.mxu0 %v10335_v33 }
 0x15d   : > { %v1284_v1 = vpop.f32.mrf.mxu1  ;;  %v1061_v5 = vpop.f32.mrf.mxu0  ;;  %1813 = vmatmul.mubr.f32.gmra.mxu1 %v10336_v16 }
 0x15e   : > { %v7893_v56 = vadd.f32 %v1284_v1, %v1059_v36  ;;  %1817 = vmatprep.mubr.f32.mxu1 %v10337_v32  ;;  %v10341_v36 = vld [vmem:[#allocation64_spill] sm:$0xff] }
 0x15f   : > { %v1286_v28 = vpop.f32.mrf.mxu1  ;;  %v1064_v10 = vpop.f32.mrf.mxu0  ;;  %1593 = vmatmul.mubr.f32.gmra.mxu0 %v10332_v51 }
 0x160   : > { %1597 = vmatprep.mubr.f32.mxu0 %v10338_v60 }
 0x161   : > { %v1289_v30 = vpop.f32.mrf.mxu1  ;;  %v1066_v6 = vpop.f32.mrf.mxu0  ;;  %1818 = vmatmul.mubr.f32.gmra.mxu1 %v10339_v52 }
 0x162   : > { %v7899_v14 = vadd.f32 %v1289_v30, %v1064_v10  ;;  %1822 = vmatprep.mubr.f32.mxu1 %v10340_v3  ;;  %v10343_v30 = vld [vmem:[#allocation66_spill] sm:$0xff] }
 0x163   : > { %v1291_v5 = vpop.f32.mrf.mxu1  ;;  %v1069_v16 = vpop.f32.mrf.mxu0  ;;  %1598 = vmatmul.mubr.f32.gmra.mxu0 %v7584_v34  ;;  %v10344_v34 = vld [vmem:[#allocation59_spill] sm:$0xff] }
 0x164   : > { %1602 = vmatprep.mubr.f32.mxu0 %v10341_v36 }
 0x165   : > { %v1294_v1 = vpop.f32.mrf.mxu1  ;;  %v1071_v28 = vpop.f32.mrf.mxu0  ;;  %1823 = vmatmul.mubr.f32.gmra.mxu1 %v10342_v26 }
 0x166   : > { %v7905_v51 = vadd.f32 %v1294_v1, %v1069_v16  ;;  %1827 = vmatprep.mubr.f32.mxu1 %v7657_v49  ;;  %v788_v1 = vrot.slane %v7692_v23, 1  ;;  %v789_v28 = vrot.slane %v7714_v42, 1 }
 0x167   : > { %v1296_v52 = vpop.f32.mrf.mxu1  ;;  %v1074_v10 = vpop.f32.mrf.mxu0  ;;  %1603 = vmatmul.mubr.f32.gmra.mxu0 %v10337_v32  ;;  %v507_v32 = vld [vmem:[%s6953_s13 + $0x190] sm:$0x3] }
 0x168   : > { %1607 = vmatprep.mubr.f32.mxu0 %v10343_v30  ;;  %v10345_v52 = vld [vmem:[#allocation68_spill] sm:$0xff] }
 0x169   : > { %v1299_v6 = vpop.f32.mrf.mxu1  ;;  %v1076_v5 = vpop.f32.mrf.mxu0  ;;  %1828 = vmatmul.mubr.f32.gmra.mxu1 %v10344_v34 }
 0x16a   : > { %v7911_v39 = vadd.f32 %v1299_v6, %v1074_v10  ;;  %1832 = vmatprep.mubr.f32.mxu1 %v7679_v7 }
 0x16b   : > { %v1301_v26 = vpop.f32.mrf.mxu1  ;;  %v1079_v16 = vpop.f32.mrf.mxu0  ;;  %1608 = vmatmul.mubr.f32.gmra.mxu0 %v10340_v3  ;;  %v791_v3 = vrot.slane %v507_v32, 1 }
 0x16c   : > { %1612 = vmatprep.mubr.f32.mxu0 %v10345_v52  ;;  %v7925_v26 = vsel %vm559_vm0, %v788_v1, %v789_v28 }
 0x16d   : > { %v1304_v5 = vpop.f32.mrf.mxu1  ;;  %v1081_v8 = vpop.f32.mrf.mxu0  ;;  %1833 = vmatmul.mubr.f32.gmra.mxu1 %v7648_v2  ;;  %10346 = vst [vmem:[#allocation34_spill] sm:$0xff] %v7925_v26  ;;  %v7942_v63 = vsel %vm559_vm0, %v789_v28, %v791_v3 }
 0x16e   : > { %v7920_v34 = vadd.f32 %v1304_v5, %v1079_v16  ;;  %1837 = vmatprep.mubr.f32.mxu1 %v7702_v0  ;;  %v7932_v8 = vld [vmem:[%s6953_s13 + $0x1a0] sm:$0xff]  ;;  %v795_v5 = vrot.slane %v7692_v23, 2  ;;  %10347 = vst [vmem:[#allocation31_spill] sm:$0xff] %v7942_v63 }
 0x16f   : > { %v1306_v10 = vpop.f32.mrf.mxu1  ;;  %v1084_v6 = vpop.f32.mrf.mxu0  ;;  %1613 = vmatmul.mubr.f32.gmra.mxu0 %v7657_v49 }
 0x170   : > { %1617 = vmatprep.mubr.f32.mxu0 %v7709_v48  ;;  %v796_v10 = vrot.slane %v7714_v42, 2 }
 0x171   : > { %v1309_v2 = vpop.f32.mrf.mxu1  ;;  %v1086_v16 = vpop.f32.mrf.mxu0  ;;  %1838 = vmatmul.mubr.f32.gmra.mxu1 %v7644_v24  ;;  %v7948_v24 = vld [vmem:[%s6953_s13 + $0x1a8] sm:$0x3]  ;;  %s453_s13 = scalar_lea.vmem %s10089_s1, %s6915_s22  ;;  %s443_s22 = sand.u32 1, %s6563_s18  }
 0x172   : > { %v7937_v49 = vadd.f32 %v1309_v2, %v1084_v6  ;;  %1842 = vmatprep.mubr.f32.mxu1 %v7925_v26  ;;  %v806_v16 = vrot.slane %v7932_v8, 1  ;;  %v7952_v2 = vsel %vm672_vm1, %v795_v5, %v796_v10  ;;  %v808_v29 = vrot.slane %v7948_v24, 1  ;;  %s5559_s25 = sshll.u32 %s443_s22, 8  ;;  %s10048_s21 = scalar_lea.sflag [#allocation5], %s443_s22 }
 0x173   : > { %v1311_v1 = vpop.f32.mrf.mxu1  ;;  %v1089_v54 = vpop.f32.mrf.mxu0  ;;  %1618 = vmatmul.mubr.f32.gmra.mxu0 %v7679_v7  ;;  %s9943_s30 = scalar_lea.vmem [#allocation9], %s5559_s25 }
 0x174   : > { %1622 = vmatprep.mubr.f32.mxu0 %v7728_v53  ;;  %v798_v1 = vrot.slane %v507_v32, 2  ;;  %v807_v21 = vsel %vm559_vm0, %v805_v37, %v806_v16  ;;  %v809_v37 = vsel %vm559_vm0, %v806_v16, %v808_v29 }
 0x175   : > { %v1314_v46 = vpop.f32.mrf.mxu1  ;;  %v1091_v6 = vpop.f32.mrf.mxu0  ;;  %1843 = vmatmul.mubr.f32.gmra.mxu1 %v7692_v23 }
 0x176   : > { %v7954_v7 = vadd.f32 %v1314_v46, %v1089_v54  ;;  %1847 = vmatprep.mubr.f32.mxu1 %v7942_v63  ;;  %v7963_v32 = vsel %vm672_vm1, %v796_v10, %v798_v1 }
 0x177   : > { %v1316_v3 = vpop.f32.mrf.mxu1  ;;  %v1094_v28 = vpop.f32.mrf.mxu0  ;;  %1623 = vmatmul.mubr.f32.gmra.mxu0 %v7702_v0 }
 0x178   : > { %1627 = vmatprep.mubr.f32.mxu0 %v7952_v2 }
 0x179   : > { %v1319_v6 = vpop.f32.mrf.mxu1  ;;  %v1096_v23 = vpop.f32.mrf.mxu0  ;;  %1848 = vmatmul.mubr.f32.gmra.mxu1 %v7714_v42 }
 0x17a   : > { %v7965_v46 = vadd.f32 %v1319_v6, %v1094_v28  ;;  %1852 = vmatprep.mubr.f32.mxu1 %v807_v21 }
 0x17b   : > { %v1321_v54 = vpop.f32.mrf.mxu1  ;;  %v1099_v5 = vpop.f32.mrf.mxu0  ;;  %1628 = vmatmul.mubr.f32.gmra.mxu0 %v7925_v26  ;;  %v3422_v26 = vld [vmem:[#allocation3 + $0x308] sm:$0xff] }
 0x17c   : > { %1632 = vmatprep.mubr.f32.mxu0 %v7963_v32 }
 0x17d   : > { %v1324_v3 = vpop.f32.mrf.mxu1  ;;  %v1101_v0 = vpop.f32.mrf.mxu0  ;;  %1853 = vmatmul.mubr.f32.gmra.mxu1 %v7929_v17 }
 0x17e   : > { %v7971_v23 = vadd.f32 %v1324_v3, %v1099_v5  ;;  %1857 = vmatprep.mubr.f32.mxu1 %v809_v37 }
 0x17f   : > { %v1326_v42 = vpop.f32.mrf.mxu1  ;;  %v1104_v10 = vpop.f32.mrf.mxu0  ;;  %1633 = vmatmul.mubr.f32.gmra.mxu0 %v7942_v63 }
 0x180   : > { %5891 = vmatprep.mubr.f32.mxu0 %v7103_v50 }
 0x181   : > { %v1329_v21 = vpop.f32.mrf.mxu1  ;;  %v1106_v1 = vpop.f32.mrf.mxu0  ;;  %1858 = vmatmul.mubr.f32.gmra.mxu1 %v7932_v8 }
 0x182   : > { %v7976_v29 = vadd.f32 %v1329_v21, %v1104_v10 }
 0x183   : > { %v1331_v16 = vpop.f32.mrf.mxu1  ;;  %v1109_v28 = vpop.f32.mrf.mxu0  ;;  %5892 = vmatmul.mubr.f32.vlgmr.msra.gmra.mxu0 %v7122_v57 }
 0x184   : > { %5894 = vmatprep.mubr.f32.mxu0 %v7150_v4 }
 0x185   : > { %v1334_v0 = vpop.f32.mrf.mxu1  ;;  %v1111_v6 = vpop.f32.mrf.mxu0 }
 0x186   : > { %v7980_v54 = vadd.f32 %v1334_v0, %v1109_v28 }
 0x187   : > { %v1336_v5 = vpop.f32.mrf.mxu1  ;;  %v1114_v37 = vpop.f32.mrf.mxu0  ;;  %5895 = vmatmul.mubr.f32.gmra.mxu0 %v7169_v11 }
 0x188   : > { %5897 = vmatprep.mubr.f32.mxu0 %v7197_v22 }
 0x189   : > { %v1339_v50 = vpop.f32.mrf.mxu1  ;;  %v1116_v3 = vpop.f32.mrf.mxu0 }
 0x18a   : > { %v7984_v42 = vadd.f32 %v1339_v50, %v1114_v37 }
 0x18b   : > { %v1341_v10 = vpop.f32.mrf.mxu1  ;;  %v1119_v21 = vpop.f32.mrf.mxu0  ;;  %5898 = vmatmul.mubr.f32.gmra.mxu0 %v7216_v31 }
 0x18c   : > { %5900 = vmatprep.mubr.f32.mxu0 %v7244_v47 }
 0x18d   : > { %v1344_v57 = vpop.f32.mrf.mxu1  ;;  %v1121_v4 = vpop.f32.mrf.mxu0 }
 0x18e   : > { %v7988_v1 = vadd.f32 %v1344_v57, %v1119_v21 }
 0x18f   : > { %v1346_v16 = vpop.f32.mrf.mxu1  ;;  %v1124_v28 = vpop.f32.mrf.mxu0  ;;  %5901 = vmatmul.mubr.f32.gmra.mxu0 %v7260_v55 }
 0x190   : > { %5903 = vmatprep.mubr.f32.mxu0 %v7291_v9 }
 0x191   : > { %v1349_v11 = vpop.f32.mrf.mxu1  ;;  %v1126_v22 = vpop.f32.mrf.mxu0 }
 0x192   : > { %v7992_v0 = vadd.f32 %v1349_v11, %v1124_v28 }
 0x193   : > { %v1351_v6 = vpop.f32.mrf.mxu1  ;;  %v1129_v5 = vpop.f32.mrf.mxu0  ;;  %5904 = vmatmul.mubr.f32.gmra.mxu0 %v7310_v20 }
 0x194   : > { %5906 = vmatprep.mubr.f32.mxu0 %v7335_v41 }
 0x195   : > { %v1354_v31 = vpop.f32.mrf.mxu1  ;;  %v1131_v47 = vpop.f32.mrf.mxu0 }
 0x196   : > { %v7996_v37 = vadd.f32 %v1354_v31, %v1129_v5 }
 0x197   : > { %v1356_v50 = vpop.f32.mrf.mxu1  ;;  %v1134_v3 = vpop.f32.mrf.mxu0  ;;  %5907 = vmatmul.mubr.f32.gmra.mxu0 %v7357_v58 }
 0x198   : > { %5909 = vmatprep.mubr.f32.mxu0 %v7385_v19 }
 0x199   : > { %v1359_v55 = vpop.f32.mrf.mxu1  ;;  %v1136_v9 = vpop.f32.mrf.mxu0 }
 0x19a   : > { %v8000_v10 = vadd.f32 %v1359_v55, %v1134_v3 }
 0x19b   : > { %v1361_v21 = vpop.f32.mrf.mxu1  ;;  %v1139_v57 = vpop.f32.mrf.mxu0  ;;  %5910 = vmatmul.mubr.f32.gmra.mxu0 %v10313_v15 }
 0x19c   : > { %5912 = vmatprep.mubr.f32.mxu0 %v10316_v59 }
 0x19d   : > { %v1364_v20 = vpop.f32.mrf.mxu1  ;;  %v1141_v41 = vpop.f32.mrf.mxu0 }
 0x19e   : > { %v8004_v4 = vadd.f32 %v1364_v20, %v1139_v57 }
 0x19f   : > { %v1366_v16 = vpop.f32.mrf.mxu1  ;;  %v1144_v28 = vpop.f32.mrf.mxu0  ;;  %5913 = vmatmul.mubr.f32.gmra.mxu0 %v10318_v25 }
 0x1a0   : > { %5915 = vmatprep.mubr.f32.mxu0 %v10321_v44 }
 0x1a1   : > { %v1369_v58 = vpop.f32.mrf.mxu1  ;;  %v1146_v19 = vpop.f32.mrf.mxu0 }
 0x1a2   : > { %v8008_v11 = vadd.f32 %v1369_v58, %v1144_v28  ;;  %v812_v28 = vrot.slane %v7929_v17, 2  ;;  %v813_v58 = vrot.slane %v7932_v8, 2 }
 0x1a3   : > { %v1371_v22 = vpop.f32.mrf.mxu1  ;;  %v1149_v6 = vpop.f32.mrf.mxu0  ;;  %5916 = vmatmul.mubr.f32.gmra.mxu0 %v10324_v35 }
 0x1a4   : > { %5918 = vmatprep.mubr.f32.mxu0 %v10327_v62  ;;  %v815_v22 = vrot.slane %v7948_v24, 2 }
 0x1a5   : > { %v1374_v15 = vpop.f32.mrf.mxu1  ;;  %v1151_v59 = vpop.f32.mrf.mxu0 }
 0x1a6   : > { %v8012_v5 = vadd.f32 %v1374_v15, %v1149_v6  ;;  %v816_v8 = vsel %vm672_vm1, %v813_v58, %v815_v22 }
 0x1a7   : > { %v1376_v31 = vpop.f32.mrf.mxu1  ;;  %v1154_v47 = vpop.f32.mrf.mxu0  ;;  %5919 = vmatmul.mubr.f32.gmra.mxu0 %v10330_v18 }
 0x1a8   : > { %5921 = vmatprep.mubr.f32.mxu0 %v10333_v43 }
 0x1a9   : > { %v1379_v25 = vpop.f32.mrf.mxu1  ;;  %v1156_v44 = vpop.f32.mrf.mxu0 }
 0x1aa   : > { %v8016_v50 = vadd.f32 %v1379_v25, %v1154_v47 }
 0x1ab   : > { %v1381_v3 = vpop.f32.mrf.mxu1  ;;  %v1159_v55 = vpop.f32.mrf.mxu0  ;;  %5922 = vmatmul.mubr.f32.gmra.mxu0 %v10335_v33 }
 0x1ac   : > { %5924 = vmatprep.mubr.f32.mxu0 %v10338_v60 }
 0x1ad   : > { %v1384_v35 = vpop.f32.mrf.mxu1  ;;  %v1161_v62 = vpop.f32.mrf.mxu0 }
 0x1ae   : > { %v8020_v9 = vadd.f32 %v1384_v35, %v1159_v55 }
 0x1af   : > { %v1386_v21 = vpop.f32.mrf.mxu1  ;;  %v1164_v57 = vpop.f32.mrf.mxu0  ;;  %5925 = vmatmul.mubr.f32.gmra.mxu0 %v10341_v36 }
 0x1b0   : > { %5927 = vmatprep.mubr.f32.mxu0 %v10343_v30 }
 0x1b1   : > { %v1389_v18 = vpop.f32.mrf.mxu1  ;;  %v1166_v43 = vpop.f32.mrf.mxu0 }
 0x1b2   : > { %v8024_v20 = vadd.f32 %v1389_v18, %v1164_v57 }
 0x1b3   : > { %v1391_v41 = vpop.f32.mrf.mxu1  ;;  %v1169_v16 = vpop.f32.mrf.mxu0  ;;  %5928 = vmatmul.mubr.f32.gmra.mxu0 %v10345_v52 }
 0x1b4   : > { %5930 = vmatprep.mubr.f32.mxu0 %v7709_v48  ;;  %v814_v48 = vsel %vm672_vm1, %v812_v28, %v813_v58 }
 0x1b5   : > { %v1394_v33 = vpop.f32.mrf.mxu1  ;;  %v1171_v60 = vpop.f32.mrf.mxu0 }
 0x1b6   : > { %v8030_v19 = vadd.f32 %v1394_v33, %v1169_v16 }
 0x1b7   : > { %v1396_v36 = vpop.f32.mrf.mxu1  ;;  %v1174_v30 = vpop.f32.mrf.mxu0  ;;  %5931 = vmatmul.mubr.f32.gmra.mxu0 %v7728_v53 }
 0x1b8   : > { %5933 = vmatprep.mubr.f32.mxu0 %v7952_v2 }
 0x1b9   : > { %v1399_v6 = vpop.f32.mrf.mxu1  ;;  %v1176_v52 = vpop.f32.mrf.mxu0 }
 0x1ba   : > { %v8036_v15 = vadd.f32 %v1399_v6, %v1174_v30 }
 0x1bb   : > { %v1401_v59 = vpop.f32.mrf.mxu1  ;;  %v1179_v17 = vpop.f32.mrf.mxu0  ;;  %5934 = vmatmul.mubr.f32.gmra.mxu0 %v7963_v32 }
 0x1bc   : > { %5936 = vmatprep.mubr.f32.mxu0 %v814_v48 }
 0x1bd   : > { %v1404_v31 = vpop.f32.mrf.mxu1  ;;  %v1181_v47 = vpop.f32.mrf.mxu0 }
 0x1be   : > { %v8040_v53 = vadd.f32 %v1404_v31, %v1179_v17 }
 0x1bf   : > { %v1406_v2 = vpop.f32.mrf.mxu1  ;;  %v1184_v25 = vpop.f32.mrf.mxu0  ;;  %5937 = vmatmul.mubr.f32.gmra.mxu0 %v816_v8 }
 0x1c1   : > { %v1409_v24 = vpop.f32.mrf.mxu1  ;;  %v1186_v44 = vpop.f32.mrf.mxu0 }
 0x1c2   : > { %v8042_v3 = vadd.f32 %v1409_v24, %v1184_v25 }
 0x1c3   : > { %v1411_v55 = vpop.f32.mrf.mxu1  ;;  %v1479_v35 = vpop.f32.mrf.mxu0 }
 0x1c4   : > { %v1480_v62 = vadd.f32 %v1479_v35, %v7857_v27 }
 0x1c5   : > { %v1481_v21 = vpop.f32.mrf.mxu0  ;;  %v1704_v32 = vpop.f32.mrf.mxu1 }
 0x1c6   : > { %v8045_v57 = vadd.f32 %v1704_v32, %v1480_v62 }
 0x1c7   : > { %v1484_v18 = vpop.f32.mrf.mxu0  ;;  %v1706_v43 = vpop.f32.mrf.mxu1 }
 0x1c8   : > { %v1485_v41 = vadd.f32 %v1484_v18, %v7863_v61 }
 0x1c9   : > { %v1486_v16 = vpop.f32.mrf.mxu0  ;;  %v1709_v33 = vpop.f32.mrf.mxu1 }
 0x1ca   : > { %v8048_v60 = vadd.f32 %v1709_v33, %v1485_v41 }
 0x1cb   : > { %v1489_v28 = vpop.f32.mrf.mxu0  ;;  %v1711_v58 = vpop.f32.mrf.mxu1 }
 0x1cc   : > { %v1490_v36 = vadd.f32 %v1489_v28, %v7869_v12 }
 0x1cd   : > { %v1491_v30 = vpop.f32.mrf.mxu0  ;;  %v1714_v22 = vpop.f32.mrf.mxu1 }
 0x1ce   : > { %v8051_v6 = vadd.f32 %v1714_v22, %v1490_v36 }
 0x1cf   : > { %v1494_v27 = vpop.f32.mrf.mxu0  ;;  %v1716_v52 = vpop.f32.mrf.mxu1 }
 0x1d0   : > { %v1495_v48 = vadd.f32 %v1494_v27, %v7875_v45 }
 0x1d1   : > { %v1496_v59 = vpop.f32.mrf.mxu0  ;;  %v1719_v17 = vpop.f32.mrf.mxu1 }
 0x1d2   : > { %v8054_v8 = vadd.f32 %v1719_v17, %v1495_v48 }
 0x1d3   : > { %v1499_v61 = vpop.f32.mrf.mxu0  ;;  %v1721_v31 = vpop.f32.mrf.mxu1 }
 0x1d4   : > { %v1500_v47 = vadd.f32 %v1499_v61, %v7881_v40 }
 0x1d5   : > { %v1501_v2 = vpop.f32.mrf.mxu0  ;;  %v1724_v25 = vpop.f32.mrf.mxu1 }
 0x1d6   : > { %v8057_v24 = vadd.f32 %v1724_v25, %v1500_v47 }
 0x1d7   : > { %v1504_v12 = vpop.f32.mrf.mxu0  ;;  %v1726_v44 = vpop.f32.mrf.mxu1 }
 0x1d8   : > { %v1505_v55 = vadd.f32 %v1504_v12, %v7887_v38 }
 0x1d9   : > { %v1506_v35 = vpop.f32.mrf.mxu0  ;;  %v1729_v62 = vpop.f32.mrf.mxu1 }
 0x1da   : > { %v8060_v21 = vadd.f32 %v1729_v62, %v1505_v55 }
 0x1db   : > { %v1509_v45 = vpop.f32.mrf.mxu0  ;;  %v1731_v32 = vpop.f32.mrf.mxu1 }
 0x1dc   : > { %v1510_v18 = vadd.f32 %v1509_v45, %v7893_v56 }
 0x1dd   : > { %v1511_v43 = vpop.f32.mrf.mxu0  ;;  %v1734_v41 = vpop.f32.mrf.mxu1 }
 0x1de   : > { %v8063_v16 = vadd.f32 %v1734_v41, %v1510_v18 }
 0x1df   : > { %v1514_v40 = vpop.f32.mrf.mxu0  ;;  %v1736_v33 = vpop.f32.mrf.mxu1 }
 0x1e0   : > { %v1515_v28 = vadd.f32 %v1514_v40, %v7899_v14 }
 0x1e1   : > { %v1516_v58 = vpop.f32.mrf.mxu0  ;;  %v1739_v36 = vpop.f32.mrf.mxu1 }
 0x1e2   : > { %v8066_v30 = vadd.f32 %v1739_v36, %v1515_v28 }
 0x1e3   : > { %v1519_v38 = vpop.f32.mrf.mxu0  ;;  %v1741_v22 = vpop.f32.mrf.mxu1 }
 0x1e4   : > { %v1520_v27 = vadd.f32 %v1519_v38, %v7905_v51 }
 0x1e5   : > { %v1521_v52 = vpop.f32.mrf.mxu0  ;;  %v1744_v48 = vpop.f32.mrf.mxu1 }
 0x1e6   : > { %v8069_v59 = vadd.f32 %v1744_v48, %v1520_v27 }
 0x1e7   : > { %v1524_v56 = vpop.f32.mrf.mxu0  ;;  %v1746_v17 = vpop.f32.mrf.mxu1 }
 0x1e8   : > { %v1525_v61 = vadd.f32 %v1524_v56, %v7911_v39 }
 0x1e9   : > { %v1526_v31 = vpop.f32.mrf.mxu0  ;;  %v1749_v47 = vpop.f32.mrf.mxu1 }
 0x1ea   : > { %v8072_v2 = vadd.f32 %v1749_v47, %v1525_v61 }
 0x1eb   : > { %v1529_v14 = vpop.f32.mrf.mxu0  ;;  %v1751_v25 = vpop.f32.mrf.mxu1 }
 0x1ec   : > { %v1530_v12 = vadd.f32 %v1529_v14, %v7920_v34 }
 0x1ed   : > { %v1531_v44 = vpop.f32.mrf.mxu0  ;;  %v1754_v55 = vpop.f32.mrf.mxu1 }
 0x1ee   : > { %v8075_v35 = vadd.f32 %v1754_v55, %v1530_v12 }
 0x1ef   : > { %v1534_v51 = vpop.f32.mrf.mxu0  ;;  %v1756_v62 = vpop.f32.mrf.mxu1 }
 0x1f0   : > { %v1535_v45 = vadd.f32 %v1534_v51, %v7937_v49 }
 0x1f1   : > { %v1536_v32 = vpop.f32.mrf.mxu0  ;;  %v1759_v18 = vpop.f32.mrf.mxu1 }
 0x1f2   : > { %v8078_v43 = vadd.f32 %v1759_v18, %v1535_v45 }
 0x1f3   : > { %v1539_v39 = vpop.f32.mrf.mxu0  ;;  %v1761_v41 = vpop.f32.mrf.mxu1 }
 0x1f4   : > { %v1540_v40 = vadd.f32 %v1539_v39, %v7954_v7  ;;  %v2278_v7 = vld [vmem:[%s10092_s4 + $0x78] sm:$0xff] }
 0x1f5   : > { %v1541_v33 = vpop.f32.mrf.mxu0  ;;  %v1764_v28 = vpop.f32.mrf.mxu1  ;;  %5939 = vmatprep.subr.mxu1 %v2278_v7 }
 0x1f6   : > { %v8081_v58 = vadd.f32 %v1764_v28, %v1540_v40  ;;  %5940 = vmatpush3.msra.mxu1 %v2278_v7 }
 0x1f7   : > { %v1544_v34 = vpop.f32.mrf.mxu0  ;;  %v1766_v36 = vpop.f32.mrf.mxu1 }
 0x1f8   : > { %v1545_v38 = vadd.f32 %v1544_v34, %v7965_v46 }
 0x1f9   : > { %v1546_v22 = vpop.f32.mrf.mxu0  ;;  %v1769_v27 = vpop.f32.mrf.mxu1 }
 0x1fa   : > { %v8084_v52 = vadd.f32 %v1769_v27, %v1545_v38 }
 0x1fb   : > { %v1549_v49 = vpop.f32.mrf.mxu0  ;;  %v1771_v48 = vpop.f32.mrf.mxu1 }
 0x1fc   : > { %v1550_v56 = vadd.f32 %v1549_v49, %v7971_v23 }
 0x1fd   : > { %v1551_v17 = vpop.f32.mrf.mxu0  ;;  %v1774_v61 = vpop.f32.mrf.mxu1 }
 0x1fe   : > { %v8090_v31 = vadd.f32 %v1774_v61, %v1550_v56 }
 0x1ff   : > { %v1554_v47 = vpop.f32.mrf.mxu0  ;;  %v1776_v46 = vpop.f32.mrf.mxu1 }
 0x200   : > { %v1555_v14 = vadd.f32 %v1554_v47, %v7976_v29 }
 0x201   : > { %v1556_v25 = vpop.f32.mrf.mxu0  ;;  %v1779_v12 = vpop.f32.mrf.mxu1 }
 0x202   : > { %v8093_v44 = vadd.f32 %v1779_v12, %v1555_v14 }
 0x203   : > { %v1559_v55 = vpop.f32.mrf.mxu0  ;;  %v1781_v23 = vpop.f32.mrf.mxu1 }
 0x204   : > { %v1560_v51 = vadd.f32 %v1559_v55, %v7980_v54 }
 0x205   : > { %v1561_v62 = vpop.f32.mrf.mxu0  ;;  %v1784_v45 = vpop.f32.mrf.mxu1 }
 0x206   : > { %v8096_v32 = vadd.f32 %v1784_v45, %v1560_v51 }
 0x207   : > { %v1564_v18 = vpop.f32.mrf.mxu0  ;;  %v1786_v39 = vpop.f32.mrf.mxu1 }
 0x208   : > { %v1565_v41 = vadd.f32 %v1564_v18, %v7984_v42 }
 0x209   : > { %v1566_v40 = vpop.f32.mrf.mxu0  ;;  %v1789_v33 = vpop.f32.mrf.mxu1 }
 0x20a   : > { %v8099_v28 = vadd.f32 %v1789_v33, %v1565_v41 }
 0x20b   : > { %v1569_v29 = vpop.f32.mrf.mxu0  ;;  %v1791_v34 = vpop.f32.mrf.mxu1 }
 0x20c   : > { %v1570_v36 = vadd.f32 %v1569_v29, %v7988_v1 }
 0x20d   : > { %v1571_v38 = vpop.f32.mrf.mxu0  ;;  %v1794_v22 = vpop.f32.mrf.mxu1 }
 0x20e   : > { %v8102_v27 = vadd.f32 %v1794_v22, %v1570_v36 }
 0x20f   : > { %v1574_v54 = vpop.f32.mrf.mxu0  ;;  %v1796_v49 = vpop.f32.mrf.mxu1 }
 0x210   : > { %v1575_v48 = vadd.f32 %v1574_v54, %v7992_v0 }
 0x211   : > { %v1576_v56 = vpop.f32.mrf.mxu0  ;;  %v1799_v7 = vpop.f32.mrf.mxu1 }
 0x212   : > { %v8105_v17 = vadd.f32 %v1799_v7, %v1575_v48 }
 0x213   : > { %v1579_v42 = vpop.f32.mrf.mxu0  ;;  %v1801_v61 = vpop.f32.mrf.mxu1 }
 0x214   : > { %v1580_v47 = vadd.f32 %v1579_v42, %v7996_v37 }
 0x215   : > { %v1581_v46 = vpop.f32.mrf.mxu0  ;;  %v1804_v14 = vpop.f32.mrf.mxu1 }
 0x216   : > { %v8108_v25 = vadd.f32 %v1804_v14, %v1580_v47 }
 0x217   : > { %v1584_v1 = vpop.f32.mrf.mxu0  ;;  %v1806_v12 = vpop.f32.mrf.mxu1 }
 0x218   : > { %v1585_v55 = vadd.f32 %v1584_v1, %v8000_v10 }
 0x219   : > { %v1586_v23 = vpop.f32.mrf.mxu0  ;;  %v1809_v51 = vpop.f32.mrf.mxu1 }
 0x21a   : > { %v8111_v62 = vadd.f32 %v1809_v51, %v1585_v55 }
 0x21b   : > { %v1589_v0 = vpop.f32.mrf.mxu0  ;;  %v1811_v45 = vpop.f32.mrf.mxu1 }
 0x21c   : > { %v1590_v18 = vadd.f32 %v1589_v0, %v8004_v4 }
 0x21d   : > { %v1591_v39 = vpop.f32.mrf.mxu0  ;;  %v1814_v41 = vpop.f32.mrf.mxu1 }
 0x21e   : > { %v8114_v40 = vadd.f32 %v1814_v41, %v1590_v18 }
 0x21f   : > { %v1594_v37 = vpop.f32.mrf.mxu0  ;;  %v1816_v33 = vpop.f32.mrf.mxu1 }
 0x220   : > { %v1595_v29 = vadd.f32 %v1594_v37, %v8008_v11 }
 0x221   : > { %v1596_v34 = vpop.f32.mrf.mxu0  ;;  %v1819_v36 = vpop.f32.mrf.mxu1 }
 0x222   : > { %v8117_v38 = vadd.f32 %v1819_v36, %v1595_v29 }
 0x223   : > { %v1599_v10 = vpop.f32.mrf.mxu0  ;;  %v1821_v22 = vpop.f32.mrf.mxu1 }
 0x224   : > { %v1600_v54 = vadd.f32 %v1599_v10, %v8012_v5 }
 0x225   : > { %v1601_v49 = vpop.f32.mrf.mxu0  ;;  %v1824_v48 = vpop.f32.mrf.mxu1 }
 0x226   : > { %v8120_v56 = vadd.f32 %v1824_v48, %v1600_v54 }
 0x227   : > { %v1604_v4 = vpop.f32.mrf.mxu0  ;;  %v1826_v7 = vpop.f32.mrf.mxu1 }
 0x228   : > { %v1605_v42 = vadd.f32 %v1604_v4, %v8016_v50 }
 0x229   : > { %v1606_v61 = vpop.f32.mrf.mxu0  ;;  %v1829_v47 = vpop.f32.mrf.mxu1 }
 0x22a   : > { %v8123_v46 = vadd.f32 %v1829_v47, %v1605_v42 }
 0x22b   : > { %v1609_v11 = vpop.f32.mrf.mxu0  ;;  %v1831_v14 = vpop.f32.mrf.mxu1 }
 0x22c   : > { %v1610_v1 = vadd.f32 %v1609_v11, %v8020_v9 }
 0x22d   : > { %v1611_v12 = vpop.f32.mrf.mxu0  ;;  %v1834_v55 = vpop.f32.mrf.mxu1 }
 0x22e   : > { %v8126_v23 = vadd.f32 %v1834_v55, %v1610_v1 }
 0x22f   : > { %v1614_v5 = vpop.f32.mrf.mxu0  ;;  %v1836_v51 = vpop.f32.mrf.mxu1 }
 0x230   : > { %v1615_v0 = vadd.f32 %v1614_v5, %v8024_v20 }
 0x231   : > { %v1616_v45 = vpop.f32.mrf.mxu0  ;;  %v1839_v18 = vpop.f32.mrf.mxu1 }
 0x232   : > { %v8129_v39 = vadd.f32 %v1839_v18, %v1615_v0 }
 0x233   : > { %v1619_v50 = vpop.f32.mrf.mxu0  ;;  %v1841_v41 = vpop.f32.mrf.mxu1 }
 0x234   : > { %v1620_v37 = vadd.f32 %v1619_v50, %v8030_v19 }
 0x235   : > { %v1621_v33 = vpop.f32.mrf.mxu0  ;;  %v1844_v29 = vpop.f32.mrf.mxu1 }
 0x236   : > { %v8132_v34 = vadd.f32 %v1844_v29, %v1620_v37 }
 0x237   : > { %v1624_v9 = vpop.f32.mrf.mxu0  ;;  %v1846_v36 = vpop.f32.mrf.mxu1 }
 0x238   : > { %v1625_v10 = vadd.f32 %v1624_v9, %v8036_v15 }
 0x239   : > { %v1626_v22 = vpop.f32.mrf.mxu0  ;;  %v1849_v54 = vpop.f32.mrf.mxu1 }
 0x23a   : > { %v8135_v49 = vadd.f32 %v1849_v54, %v1625_v10 }
 0x23b   : > { %v1629_v20 = vpop.f32.mrf.mxu0  ;;  %v1851_v48 = vpop.f32.mrf.mxu1 }
 0x23c   : > { %v1630_v4 = vadd.f32 %v1629_v20, %v8040_v53 }
 0x23d   : > { %v1631_v7 = vpop.f32.mrf.mxu0  ;;  %v1854_v42 = vpop.f32.mrf.mxu1 }
 0x23e   : > { %v8138_v61 = vadd.f32 %v1854_v42, %v1630_v4 }
 0x23f   : > { %v1634_v19 = vpop.f32.mrf.mxu0  ;;  %v1856_v47 = vpop.f32.mrf.mxu1 }
 0x240   : > { %v1635_v11 = vadd.f32 %v1634_v19, %v8042_v3 }
 0x241   : > { %v1636_v14 = vpop.f32.mrf.mxu0  ;;  %v1859_v1 = vpop.f32.mrf.mxu1 }
 0x242   : > { %v8141_v12 = vadd.f32 %v1859_v1, %v1635_v11 }
 0x243   : > { %v5893_v15 = vpop.f32.mrf.mxu0  ;;  %v1861_v55 = vpop.f32.mrf.mxu1 }
 0x244   : > { %v8147_v53 = vadd.f32 %v5893_v15, %v8048_v60 }
 0x245   : > { %v1929_v5 = vpop.f32.mrf.mxu0 }
 0x246   : > { %v8144_v51 = vadd.f32 %v1929_v5, %v8045_v57 }
 0x247   : > { %v5896_v0 = vpop.f32.mrf.mxu0 }
 0x248   : > { %v2088_v18 = vadd.f32 %v8147_v53, %v8144_v51  ;;  %v8155_v41 = vadd.f32 %v5896_v0, %v8054_v8 }
 0x249   : > { %v1939_v45 = vpop.f32.mrf.mxu0 }
 0x24a   : > { %v8152_v3 = vadd.f32 %v1939_v45, %v8051_v6 }
 0x24b   : > { %v5899_v50 = vpop.f32.mrf.mxu0 }
 0x24c   : > { %v2089_v37 = vadd.f32 %v2088_v18, %v8152_v3  ;;  %v8163_v9 = vadd.f32 %v5899_v50, %v8060_v21 }
 0x24d   : > { %v1949_v33 = vpop.f32.mrf.mxu0 }
 0x24e   : > { %v8159_v57 = vadd.f32 %v1949_v33, %v8057_v24  ;;  %v2090_v60 = vadd.f32 %v2089_v37, %v8155_v41 }
 0x24f   : > { %v5902_v29 = vpop.f32.mrf.mxu0 }
 0x250   : > { %v2091_v36 = vadd.f32 %v2090_v60, %v8159_v57  ;;  %v8171_v54 = vadd.f32 %v5902_v29, %v8066_v30 }
 0x251   : > { %v1959_v6 = vpop.f32.mrf.mxu0 }
 0x252   : > { %v8167_v10 = vadd.f32 %v1959_v6, %v8063_v16  ;;  %v2092_v8 = vadd.f32 %v2091_v36, %v8163_v9 }
 0x253   : > { %v5905_v22 = vpop.f32.mrf.mxu0 }
 0x254   : > { %v2093_v24 = vadd.f32 %v2092_v8, %v8167_v10  ;;  %v8179_v7 = vadd.f32 %v5905_v22, %v8072_v2 }
 0x255   : > { %v1969_v20 = vpop.f32.mrf.mxu0 }
 0x256   : > { %v8175_v48 = vadd.f32 %v1969_v20, %v8069_v59  ;;  %v2094_v21 = vadd.f32 %v2093_v24, %v8171_v54 }
 0x257   : > { %v5908_v4 = vpop.f32.mrf.mxu0 }
 0x258   : > { %v2095_v16 = vadd.f32 %v2094_v21, %v8175_v48  ;;  %v8187_v11 = vadd.f32 %v5908_v4, %v8078_v43 }
 0x259   : > { %v1979_v42 = vpop.f32.mrf.mxu0 }
 0x25a   : > { %v8183_v19 = vadd.f32 %v1979_v42, %v8075_v35  ;;  %v2096_v30 = vadd.f32 %v2095_v16, %v8179_v7 }
 0x25b   : > { %v5911_v47 = vpop.f32.mrf.mxu0 }
 0x25c   : > { %v2097_v59 = vadd.f32 %v2096_v30, %v8183_v19  ;;  %v8195_v55 = vadd.f32 %v5911_v47, %v8084_v52 }
 0x25d   : > { %v1989_v14 = vpop.f32.mrf.mxu0 }
 0x25e   : > { %v8191_v1 = vadd.f32 %v1989_v14, %v8081_v58  ;;  %v2098_v2 = vadd.f32 %v2097_v59, %v8187_v11 }
 0x25f   : > { %v5914_v15 = vpop.f32.mrf.mxu0 }
 0x260   : > { %v2099_v35 = vadd.f32 %v2098_v2, %v8191_v1  ;;  %v8203_v18 = vadd.f32 %v5914_v15, %v8093_v44  ;;  %v2277_v44 = vld [vmem:[%s10092_s4 + $0x70] sm:$0xff] }
 0x261   : > { %v1999_v5 = vpop.f32.mrf.mxu0  ;;  %5941 = vmatprep.subr.mxu1 %v2277_v44 }
 0x262   : > { %v8199_v0 = vadd.f32 %v1999_v5, %v8090_v31  ;;  %v2100_v43 = vadd.f32 %v2099_v35, %v8195_v55  ;;  %5942 = vmatpush3.msra.mxu1 %v2277_v44 }
 0x263   : > { %v5917_v45 = vpop.f32.mrf.mxu0 }
 0x264   : > { %v2101_v58 = vadd.f32 %v2100_v43, %v8199_v0  ;;  %v8211_v60 = vadd.f32 %v5917_v45, %v8099_v28  ;;  %v2276_v28 = vld [vmem:[%s10092_s4 + $0x68] sm:$0xff] }
 0x265   : > { %v2009_v50 = vpop.f32.mrf.mxu0  ;;  %5943 = vmatprep.subr.mxu1 %v2276_v28 }
 0x266   : > { %v8207_v37 = vadd.f32 %v2009_v50, %v8096_v32  ;;  %v2102_v52 = vadd.f32 %v2101_v58, %v8203_v18  ;;  %5944 = vmatpush3.msra.mxu1 %v2276_v28 }
 0x267   : > { %v5920_v33 = vpop.f32.mrf.mxu0 }
 0x268   : > { %v2103_v31 = vadd.f32 %v2102_v52, %v8207_v37  ;;  %v8225_v8 = vadd.f32 %v5920_v33, %v8105_v17  ;;  %v2274_v17 = vld [vmem:[%s10092_s4 + $0x58] sm:$0xff] }
 0x269   : > { %v2019_v29 = vpop.f32.mrf.mxu0 }
 0x26a   : > { %v8218_v36 = vadd.f32 %v2019_v29, %v8102_v27  ;;  %v2104_v6 = vadd.f32 %v2103_v31, %v8211_v60  ;;  %v2275_v27 = vld [vmem:[%s10092_s4 + $0x60] sm:$0xff] }
 0x26b   : > { %v5923_v32 = vpop.f32.mrf.mxu0  ;;  %5945 = vmatprep.subr.mxu1 %v2275_v27 }
 0x26c   : > { %v2105_v22 = vadd.f32 %v2104_v6, %v8218_v36  ;;  %5946 = vmatpush3.msra.mxu1 %v2275_v27  ;;  %v8239_v16 = vadd.f32 %v5923_v32, %v8111_v62  ;;  %v2272_v62 = vld [vmem:[%s10092_s4 + $0x48] sm:$0xff]  ;;  %v2266_v27 = vld [vmem:[%s10092_s4 + $0x18] sm:$0xff] }
 0x26d   : > { %v2029_v24 = vpop.f32.mrf.mxu0  ;;  %5947 = vmatprep.subr.mxu1 %v2274_v17 }
 0x26e   : > { %v8232_v20 = vadd.f32 %v2029_v24, %v8108_v25  ;;  %v2106_v21 = vadd.f32 %v2105_v22, %v8225_v8  ;;  %5948 = vmatpush3.msra.mxu1 %v2274_v17  ;;  %v2273_v25 = vld [vmem:[%s10092_s4 + $0x50] sm:$0xff] }
 0x26f   : > { %v5926_v4 = vpop.f32.mrf.mxu0  ;;  %5949 = vmatprep.subr.mxu1 %v2273_v25  ;;  %v2265_v17 = vld [vmem:[%s10092_s4 + $0x10] sm:$0xff] }
 0x270   : > { %v2107_v42 = vadd.f32 %v2106_v21, %v8232_v20  ;;  %5950 = vmatpush3.msra.mxu1 %v2273_v25  ;;  %v8253_v2 = vadd.f32 %v5926_v4, %v8117_v38  ;;  %v2270_v38 = vld [vmem:[%s10092_s4 + $0x38] sm:$0xff] }
 0x271   : > { %v2039_v30 = vpop.f32.mrf.mxu0  ;;  %5951 = vmatprep.subr.mxu1 %v2272_v62 }
 0x272   : > { %v8246_v47 = vadd.f32 %v2039_v30, %v8114_v40  ;;  %v2108_v59 = vadd.f32 %v2107_v42, %v8239_v16  ;;  %5952 = vmatpush3.msra.mxu1 %v2272_v62  ;;  %v2271_v40 = vld [vmem:[%s10092_s4 + $0x40] sm:$0xff]  ;;  %v2264_v30 = vld [vmem:[%s10092_s4 + $0x8] sm:$0xff] }
 0x273   : > { %v5929_v14 = vpop.f32.mrf.mxu0  ;;  %5953 = vmatprep.subr.mxu1 %v2271_v40 }
 0x274   : > { %v2109_v15 = vadd.f32 %v2108_v59, %v8246_v47  ;;  %5954 = vmatpush3.msra.mxu1 %v2271_v40  ;;  %v8267_v58 = vadd.f32 %v5929_v14, %v8123_v46  ;;  %v2268_v46 = vld [vmem:[%s10092_s4 + $0x28] sm:$0xff]  ;;  %v2263_v59 = vld [vmem:[%s10092_s4] sm:$0xff] }
 0x275   : > { %v2049_v35 = vpop.f32.mrf.mxu0  ;;  %5955 = vmatprep.subr.mxu1 %v2270_v38 }
 0x276   : > { %v8260_v5 = vadd.f32 %v2049_v35, %v8120_v56  ;;  %v2110_v43 = vadd.f32 %v2109_v15, %v8253_v2  ;;  %5956 = vmatpush3.msra.mxu1 %v2270_v38  ;;  %v2269_v56 = vld [vmem:[%s10092_s4 + $0x30] sm:$0xff] }
 0x277   : > { %v5932_v45 = vpop.f32.mrf.mxu0  ;;  %5957 = vmatprep.subr.mxu1 %v2269_v56 }
 0x278   : > { %v2111_v50 = vadd.f32 %v2110_v43, %v8260_v5  ;;  %5958 = vmatpush3.msra.mxu1 %v2269_v56  ;;  %v2065_v44 = vadd.f32 %v5932_v45, %v8129_v39 }
 0x279   : > { %v2059_v52 = vpop.f32.mrf.mxu0  ;;  %5959 = vmatprep.subr.mxu1 %v2268_v46 }
 0x27a   : > { %v8274_v33 = vadd.f32 %v2059_v52, %v8126_v23  ;;  %v2112_v31 = vadd.f32 %v2111_v50, %v8267_v58  ;;  %5960 = vmatpush3.msra.mxu1 %v2268_v46  ;;  %v2267_v23 = vld [vmem:[%s10092_s4 + $0x20] sm:$0xff] }
 0x27b   : > { %v5935_v29 = vpop.f32.mrf.mxu0  ;;  %5961 = vmatprep.subr.mxu1 %v2267_v23 }
 0x27c   : > { %v2113_v6 = vadd.f32 %v2112_v31, %v8274_v33  ;;  %5962 = vmatpush3.msra.mxu1 %v2267_v23  ;;  %v2075_v39 = vadd.f32 %v5935_v29, %v8135_v49 }
 0x27d   : > { %v2069_v32 = vpop.f32.mrf.mxu0  ;;  %5963 = vmatprep.subr.mxu1 %v2266_v27 }
 0x27e   : > { %v2070_v28 = vadd.f32 %v2069_v32, %v8132_v34  ;;  %v2114_v22 = vadd.f32 %v2113_v6, %v2065_v44  ;;  %5964 = vmatpush3.msra.mxu1 %v2266_v27 }
 0x27f   : > { %v5938_v24 = vpop.f32.mrf.mxu0  ;;  %5965 = vmatprep.subr.mxu1 %v2265_v17 }
 0x280   : > { %v2115_v21 = vadd.f32 %v2114_v22, %v2070_v28  ;;  %5966 = vmatpush3.msra.mxu1 %v2265_v17  ;;  %v2085_v25 = vadd.f32 %v5938_v24, %v8141_v12 }
 0x281   : > { %v2079_v4 = vpop.f32.mrf.mxu0  ;;  %5967 = vmatprep.subr.mxu1 %v2264_v30 }
 0x282   : > { %v2080_v34 = vadd.f32 %v2079_v4, %v8138_v61  ;;  %v2116_v42 = vadd.f32 %v2115_v21, %v2075_v39  ;;  %5968 = vmatpush3.msra.mxu1 %v2264_v30 }
 0x283   : > { %5969 = vmatprep.subr.mxu1 %v2263_v59 }
 0x284   : > { %v2117_v49 = vadd.f32 %v2116_v42, %v2080_v34  ;;  %5970 = vmatpush3.msra.mxu1 %v2263_v59 }
 0x285   : > { %3469 = vmatprep.subr.mxu1 %v10280_v13 }
 0x286   : > { %v2118_v14 = vadd.f32 %v2117_v49, %v2085_v25 }
 0x288   : > { %v2119_v61 = vrot.slane %v2118_v14, 4 }
 0x28a   : > { %v2120_v62 = vadd.f32 %v2119_v61, %v2118_v14 }
 0x28c   : > { %v2121_v15 = vrot.slane %v2120_v62, 2 }
 0x28e   : > { %v2122_v35 = vadd.f32 %v2121_v15, %v2120_v62 }
 0x290   : > { %v2123_v40 = vrot.slane %v2122_v35, 1 }
 0x292   : > { %v2124_v43 = vadd.f32 %v2123_v40, %v2122_v35 }
 0x294   : > { %v2126_v45 = vmul.f32 0.00390625, %v2124_v43 }
 0x296   : > { %v8303_v12 = vsub.f32 %v8175_v48, %v2126_v45  ;;  %v8306_v38 = vsub.f32 %v8179_v7, %v2126_v45  ;;  %v8309_v50 = vsub.f32 %v8183_v19, %v2126_v45  ;;  %v8312_v52 = vsub.f32 %v8187_v11, %v2126_v45 }
 0x297   : > { %v8315_v56 = vsub.f32 %v8191_v1, %v2126_v45  ;;  %v8318_v31 = vsub.f32 %v8195_v55, %v2126_v45  ;;  %v8321_v29 = vsub.f32 %v8199_v0, %v2126_v45  ;;  %v8324_v48 = vsub.f32 %v8203_v18, %v2126_v45 }
 0x298   : > { %v8327_v7 = vsub.f32 %v8207_v37, %v2126_v45  ;;  %v8330_v19 = vsub.f32 %v8211_v60, %v2126_v45  ;;  %v8333_v11 = vsub.f32 %v8218_v36, %v2126_v45  ;;  %v8336_v1 = vsub.f32 %v8225_v8, %v2126_v45 }
 0x299   : > { %v8339_v55 = vsub.f32 %v8232_v20, %v2126_v45  ;;  %v8342_v0 = vsub.f32 %v8239_v16, %v2126_v45  ;;  %v8345_v18 = vsub.f32 %v8246_v47, %v2126_v45  ;;  %v8348_v37 = vsub.f32 %v8253_v2, %v2126_v45 }
 0x29a   : > { %v8351_v60 = vsub.f32 %v8260_v5, %v2126_v45  ;;  %v8354_v36 = vsub.f32 %v8267_v58, %v2126_v45  ;;  %v8357_v8 = vsub.f32 %v8274_v33, %v2126_v45  ;;  %v8359_v20 = vsub.f32 %v2065_v44, %v2126_v45 }
 0x29b   : > { %v8361_v46 = vsub.f32 %v2070_v28, %v2126_v45  ;;  %v8363_v16 = vsub.f32 %v2075_v39, %v2126_v45  ;;  %v8365_v47 = vsub.f32 %v2080_v34, %v2126_v45  ;;  %v8367_v6 = vsub.f32 %v2085_v25, %v2126_v45 }
 0x29c   : > { %v8370_v2 = vsub.f32 %v8144_v51, %v2126_v45  ;;  %v8373_v5 = vsub.f32 %v8147_v53, %v2126_v45  ;;  %v8376_v58 = vsub.f32 %v8152_v3, %v2126_v45  ;;  %v8383_v32 = vsub.f32 %v8155_v41, %v2126_v45 }
 0x29d   : > { %v8386_v23 = vsub.f32 %v8159_v57, %v2126_v45  ;;  %v8391_v28 = vsub.f32 %v8163_v9, %v2126_v45  ;;  %v8396_v24 = vsub.f32 %v8167_v10, %v2126_v45  ;;  %v8401_v57 = vsub.f32 %v8171_v54, %v2126_v45 }
 0x29e   : > { %v2159_v33 = vmul.f32 %v8370_v2, %v8370_v2  ;;  %v2160_v44 = vmul.f32 %v8373_v5, %v8373_v5  ;;  %v2161_v51 = vmul.f32 %v8376_v58, %v8376_v58  ;;  %v2162_v3 = vmul.f32 %v8383_v32, %v8383_v32 }
 0x29f   : > { %v2163_v41 = vmul.f32 %v8386_v23, %v8386_v23  ;;  %v2164_v39 = vmul.f32 %v8391_v28, %v8391_v28  ;;  %v2165_v9 = vmul.f32 %v8396_v24, %v8396_v24  ;;  %v2166_v17 = vmul.f32 %v8401_v57, %v8401_v57 }
 0x2a0   : > { %v2191_v53 = vadd.f32 %v2160_v44, %v2159_v33  ;;  %v2167_v34 = vmul.f32 %v8303_v12, %v8303_v12  ;;  %v2168_v54 = vmul.f32 %v8306_v38, %v8306_v38  ;;  %v2169_v25 = vmul.f32 %v8309_v50, %v8309_v50 }
 0x2a1   : > { %v2170_v59 = vmul.f32 %v8312_v52, %v8312_v52  ;;  %v2171_v61 = vmul.f32 %v8315_v56, %v8315_v56  ;;  %v2172_v15 = vmul.f32 %v8318_v31, %v8318_v31  ;;  %v2173_v40 = vmul.f32 %v8321_v29, %v8321_v29 }
 0x2a2   : > { %v2192_v22 = vadd.f32 %v2191_v53, %v2161_v51  ;;  %v2174_v45 = vmul.f32 %v8324_v48, %v8324_v48  ;;  %v2175_v44 = vmul.f32 %v8327_v7, %v8327_v7  ;;  %v2176_v53 = vmul.f32 %v8330_v19, %v8330_v19 }
 0x2a4   : > { %v2193_v27 = vadd.f32 %v2192_v22, %v2162_v3  ;;  %v2295_v22 = vld [vmem:[%s10093_s5 + $0x78] sm:$0xff] }
 0x2a5   : > { %6019 = vmatprep.subr.mxu0 %v2295_v22 }
 0x2a6   : > { %v2194_v21 = vadd.f32 %v2193_v27, %v2163_v41  ;;  %v2294_v41 = vld [vmem:[%s10093_s5 + $0x70] sm:$0xff]  ;;  %v2177_v27 = vmul.f32 %v8333_v11, %v8333_v11  ;;  %6020 = vmatpush3.msra.mxu0 %v2295_v22  ;;  %v2186_v22 = vmul.f32 %v8359_v20, %v8359_v20 }
 0x2a7   : > { %6021 = vmatprep.subr.mxu0 %v2294_v41 }
 0x2a8   : > { %v2195_v4 = vadd.f32 %v2194_v21, %v2164_v39  ;;  %v2293_v21 = vld [vmem:[%s10093_s5 + $0x68] sm:$0xff]  ;;  %6022 = vmatpush3.msra.mxu0 %v2294_v41 }
 0x2a9   : > { %6023 = vmatprep.subr.mxu0 %v2293_v21 }
 0x2aa   : > { %v2196_v10 = vadd.f32 %v2195_v4, %v2165_v9  ;;  %v2178_v9 = vmul.f32 %v8336_v1, %v8336_v1  ;;  %6024 = vmatpush3.msra.mxu0 %v2293_v21 }
 0x2ac   : > { %v2197_v42 = vadd.f32 %v2196_v10, %v2166_v17  ;;  %v2292_v17 = vld [vmem:[%s10093_s5 + $0x60] sm:$0xff]  ;;  %v2179_v10 = vmul.f32 %v8339_v55, %v8339_v55 }
 0x2ad   : > { %6025 = vmatprep.subr.mxu0 %v2292_v17 }
 0x2ae   : > { %v2198_v30 = vadd.f32 %v2197_v42, %v2167_v34  ;;  %v2291_v42 = vld [vmem:[%s10093_s5 + $0x58] sm:$0xff]  ;;  %6026 = vmatpush3.msra.mxu0 %v2292_v17 }
 0x2af   : > { %6027 = vmatprep.subr.mxu0 %v2291_v42 }
 0x2b0   : > { %v2199_v49 = vadd.f32 %v2198_v30, %v2168_v54  ;;  %v2180_v54 = vmul.f32 %v8342_v0, %v8342_v0  ;;  %6028 = vmatpush3.msra.mxu0 %v2291_v42 }
 0x2b2   : > { %v2200_v14 = vadd.f32 %v2199_v49, %v2169_v25  ;;  %v2290_v25 = vld [vmem:[%s10093_s5 + $0x50] sm:$0xff]  ;;  %v2181_v49 = vmul.f32 %v8345_v18, %v8345_v18 }
 0x2b3   : > { %6029 = vmatprep.subr.mxu0 %v2290_v25 }
 0x2b4   : > { %v2201_v62 = vadd.f32 %v2200_v14, %v2170_v59  ;;  %v2289_v14 = vld [vmem:[%s10093_s5 + $0x48] sm:$0xff]  ;;  %6030 = vmatpush3.msra.mxu0 %v2290_v25 }
 0x2b5   : > { %6031 = vmatprep.subr.mxu0 %v2289_v14 }
 0x2b6   : > { %v2202_v35 = vadd.f32 %v2201_v62, %v2171_v61  ;;  %v2182_v61 = vmul.f32 %v8348_v37, %v8348_v37  ;;  %6032 = vmatpush3.msra.mxu0 %v2289_v14 }
 0x2b8   : > { %v2203_v43 = vadd.f32 %v2202_v35, %v2172_v15  ;;  %v2288_v15 = vld [vmem:[%s10093_s5 + $0x40] sm:$0xff]  ;;  %v2183_v35 = vmul.f32 %v8351_v60, %v8351_v60 }
 0x2b9   : > { %6033 = vmatprep.subr.mxu0 %v2288_v15 }
 0x2ba   : > { %v2204_v33 = vadd.f32 %v2203_v43, %v2173_v40  ;;  %v2287_v43 = vld [vmem:[%s10093_s5 + $0x38] sm:$0xff]  ;;  %6034 = vmatpush3.msra.mxu0 %v2288_v15 }
 0x2bb   : > { %6035 = vmatprep.subr.mxu0 %v2287_v43 }
 0x2bc   : > { %v2205_v51 = vadd.f32 %v2204_v33, %v2174_v45  ;;  %v2184_v45 = vmul.f32 %v8354_v36, %v8354_v36  ;;  %6036 = vmatpush3.msra.mxu0 %v2287_v43 }
 0x2be   : > { %v2206_v3 = vadd.f32 %v2205_v51, %v2175_v44  ;;  %v2286_v44 = vld [vmem:[%s10093_s5 + $0x30] sm:$0xff]  ;;  %v2185_v51 = vmul.f32 %v8357_v8, %v8357_v8 }
 0x2bf   : > { %6037 = vmatprep.subr.mxu0 %v2286_v44 }
 0x2c0   : > { %v2207_v39 = vadd.f32 %v2206_v3, %v2176_v53  ;;  %v2285_v3 = vld [vmem:[%s10093_s5 + $0x28] sm:$0xff]  ;;  %6038 = vmatpush3.msra.mxu0 %v2286_v44 }
 0x2c1   : > { %6039 = vmatprep.subr.mxu0 %v2285_v3 }
 0x2c2   : > { %v2208_v4 = vadd.f32 %v2207_v39, %v2177_v27  ;;  %v2284_v27 = vld [vmem:[%s10093_s5 + $0x20] sm:$0xff]  ;;  %v2187_v39 = vmul.f32 %v8361_v46, %v8361_v46  ;;  %6040 = vmatpush3.msra.mxu0 %v2285_v3 }
 0x2c3   : > { %6041 = vmatprep.subr.mxu0 %v2284_v27 }
 0x2c4   : > { %v2209_v34 = vadd.f32 %v2208_v4, %v2178_v9  ;;  %v2283_v9 = vld [vmem:[%s10093_s5 + $0x18] sm:$0xff]  ;;  %v2188_v4 = vmul.f32 %v8363_v16, %v8363_v16  ;;  %6042 = vmatpush3.msra.mxu0 %v2284_v27 }
 0x2c5   : > { %6043 = vmatprep.subr.mxu0 %v2283_v9  ;;  %v3334_v27 = vld [vmem:[#allocation3 + $0x48] sm:$0xff] }
 0x2c6   : > { %v2210_v30 = vadd.f32 %v2209_v34, %v2179_v10  ;;  %v2282_v10 = vld [vmem:[%s10093_s5 + $0x10] sm:$0xff]  ;;  %v2189_v34 = vmul.f32 %v8365_v47, %v8365_v47  ;;  %6044 = vmatpush3.msra.mxu0 %v2283_v9  ;;  %v3331_v9 = vld [vmem:[#allocation3 + $0x30] sm:$0xff] }
 0x2c7   : > { %6045 = vmatprep.subr.mxu0 %v2282_v10 }
 0x2c8   : > { %v2211_v59 = vadd.f32 %v2210_v30, %v2180_v54  ;;  %v2190_v54 = vmul.f32 %v8367_v6, %v8367_v6  ;;  %6046 = vmatpush3.msra.mxu0 %v2282_v10  ;;  %v3328_v10 = vld [vmem:[#allocation3 + $0x18] sm:$0xff] }
 0x2ca   : > { %v2212_v62 = vadd.f32 %v2211_v59, %v2181_v49 }
 0x2cc   : > { %v2213_v40 = vadd.f32 %v2212_v62, %v2182_v61 }
 0x2ce   : > { %v2214_v33 = vadd.f32 %v2213_v40, %v2183_v35 }
 0x2d0   : > { %v2215_v53 = vadd.f32 %v2214_v33, %v2184_v45 }
 0x2d2   : > { %v2216_v41 = vadd.f32 %v2215_v53, %v2185_v51 }
 0x2d4   : > { %v2217_v21 = vadd.f32 %v2216_v41, %v2186_v22  ;;  %v3336_v22 = vld [vmem:[#allocation3 + $0x58] sm:$0xff]  ;;  %v3335_v41 = vld [vmem:[#allocation3 + $0x50] sm:$0xff] }
 0x2d6   : > { %v2218_v17 = vadd.f32 %v2217_v21, %v2187_v39  ;;  %v3333_v39 = vld [vmem:[#allocation3 + $0x40] sm:$0xff]  ;;  %v3332_v21 = vld [vmem:[#allocation3 + $0x38] sm:$0xff] }
 0x2d8   : > { %v2219_v42 = vadd.f32 %v2218_v17, %v2188_v4  ;;  %v3330_v4 = vld [vmem:[#allocation3 + $0x28] sm:$0xff]  ;;  %v3329_v17 = vld [vmem:[#allocation3 + $0x20] sm:$0xff] }
 0x2da   : > { %v2220_v30 = vadd.f32 %v2219_v42, %v2189_v34  ;;  %v3327_v34 = vld [vmem:[#allocation3 + $0x10] sm:$0xff]  ;;  %v3326_v42 = vld [vmem:[#allocation3 + $0x8] sm:$0xff] }
 0x2dc   : > { %v2221_v25 = vadd.f32 %v2220_v30, %v2190_v54  ;;  %v3325_v54 = vld [vmem:[#allocation3] sm:$0xff]  ;;  %v8592_v30 = vld [vmem:[%s453_s13] ss:$0 sm:$0xff]  ;;  %s5438_s13 = sshll.u32 %s9943_s30, 4  ;;  %s10041_s13 = int_to_ptr.vmem [resolvable:$true] %s5438_s13 }
 0x2dd   : > { %s6503_s26 = scalar_lea.vmem %s10041_s13, 4096 }
 0x2de   : > { %v2222_v49 = vrot.slane %v2221_v25, 4  ;;  %p6504_p12 = scmp.ne.s32.totalorder %s10041_s13, %s6503_s26 }
 0x2e0   : > { %v2223_v59 = vadd.f32 %v2222_v49, %v2221_v25  ;;  %p6505_p2 = pnand %p6504_p12, %p10444_p3 }
 0x2e2   : > { %v2224_v14 = vrot.slane %v2223_v59, 2  ;;  %p6506_p4 = pneg %p6505_p2 }
 0x2e4   : > { %v2225_v61 = vadd.f32 %v2224_v14, %v2223_v59 }
 0x2e6   : > { %v2226_v62 = vrot.slane %v2225_v61, 1 }
 0x2e8   : > { %v2227_v15 = vadd.f32 %v2226_v62, %v2225_v61 }
 0x2ea   : > { %v2228_v35 = vmul.f32 0.00390625, %v2227_v15 }
 0x2ec   : > { %v2229_v40 = vadd.f32 1e-05, %v2228_v35 }
 0x2ee   : > { %6415 = vrsqrt.f32 %v2229_v40 }
 0x2fb   : > { %v8499_v43 = vpop.eup %6415 }
 0x2fc   : > { %v2232_v45 = vmul.f32 %v8499_v43, %v8373_v5  ;;  %v2231_v33 = vmul.f32 %v8499_v43, %v8370_v2  ;;  %v2233_v44 = vmul.f32 %v8499_v43, %v8376_v58  ;;  %v2234_v51 = vmul.f32 %v8499_v43, %v8383_v32 }
 0x2fd   : > { %v2235_v53 = vmul.f32 %v8499_v43, %v8386_v23  ;;  %v2236_v5 = vmul.f32 %v8499_v43, %v8391_v28  ;;  %v2237_v2 = vmul.f32 %v8499_v43, %v8396_v24  ;;  %v2238_v58 = vmul.f32 %v8499_v43, %v8401_v57 }
 0x2fe   : > { %5971 = vmatprep.mubr.f32.mxu1 %v2231_v33  ;;  %v2239_v3 = vmul.f32 %v8499_v43, %v8303_v12  ;;  %v2240_v32 = vmul.f32 %v8499_v43, %v8306_v38  ;;  %v2241_v23 = vmul.f32 %v8499_v43, %v8309_v50  ;;  %v2242_v28 = vmul.f32 %v8499_v43, %v8312_v52 }
 0x2ff   : > { %5972 = vmatmul.mubr.f32.vlgmr.msra.gmra.mxu1 %v2232_v45  ;;  %v2243_v24 = vmul.f32 %v8499_v43, %v8315_v56  ;;  %v2244_v12 = vmul.f32 %v8499_v43, %v8318_v31  ;;  %v2245_v57 = vmul.f32 %v8499_v43, %v8321_v29  ;;  %v2246_v38 = vmul.f32 %v8499_v43, %v8324_v48 }
 0x300   : > { %5974 = vmatprep.mubr.f32.mxu1 %v2233_v44  ;;  %v2247_v50 = vmul.f32 %v8499_v43, %v8327_v7  ;;  %v2248_v52 = vmul.f32 %v8499_v43, %v8330_v19  ;;  %v2249_v56 = vmul.f32 %v8499_v43, %v8333_v11  ;;  %v2250_v31 = vmul.f32 %v8499_v43, %v8336_v1  ;;  %v3371_v44 = vld [vmem:[#allocation3 + $0x170] sm:$0xff] }
 0x301   : > { %v2251_v29 = vmul.f32 %v8499_v43, %v8339_v55  ;;  %v2252_v48 = vmul.f32 %v8499_v43, %v8342_v0  ;;  %v2253_v7 = vmul.f32 %v8499_v43, %v8345_v18  ;;  %v2254_v19 = vmul.f32 %v8499_v43, %v8348_v37 }
 0x302   : > { %v2255_v11 = vmul.f32 %v8499_v43, %v8351_v60  ;;  %v2256_v1 = vmul.f32 %v8499_v43, %v8354_v36  ;;  %v2257_v55 = vmul.f32 %v8499_v43, %v8357_v8  ;;  %v2258_v0 = vmul.f32 %v8499_v43, %v8359_v20  ;;  %v2281_v8 = vld [vmem:[%s10093_s5 + $0x8] sm:$0xff]  ;;  %v2280_v20 = vld [vmem:[%s10093_s5] sm:$0xff] }
 0x303   : > { %5975 = vmatmul.mubr.f32.gmra.mxu1 %v2234_v51  ;;  %v2259_v18 = vmul.f32 %v8499_v43, %v8361_v46  ;;  %v2260_v37 = vmul.f32 %v8499_v43, %v8363_v16  ;;  %v2261_v60 = vmul.f32 %v8499_v43, %v8365_v47  ;;  %v2262_v36 = vmul.f32 %v8499_v43, %v8367_v6  ;;  %v3340_v46 = vld [vmem:[#allocation3 + $0x78] sm:$0xff]  ;;  %v3339_v16 = vld [vmem:[#allocation3 + $0x70] sm:$0xff]  ;;  %v3338_v47 = vld [vmem:[#allocation3 + $0x68] sm:$0xff] }
 0x304   : > { %5977 = vmatprep.mubr.f32.mxu1 %v2235_v53  ;;  %6047 = vmatprep.subr.mxu0 %v2281_v8  ;;  %v3337_v6 = vld [vmem:[#allocation3 + $0x60] sm:$0xff]  ;;  %v3372_v43 = vld [vmem:[#allocation3 + $0x178] sm:$0xff] }
 0x305   : > { %6048 = vmatpush3.msra.mxu0 %v2281_v8  ;;  %3470 = vmatpush1.msra.mxu1 %v3340_v46  ;;  %v3363_v46 = vld [vmem:[#allocation3 + $0x130] sm:$0xff] }
 0x306   : > { %6049 = vmatprep.subr.mxu0 %v2280_v20  ;;  %3471 = vmatprep.subr.mxu1 %v10280_v13 }
 0x307   : > { %5978 = vmatmul.mubr.f32.gmra.mxu1 %v2236_v5  ;;  %6050 = vmatpush3.msra.mxu0 %v2280_v20 }
 0x308   : > { %5980 = vmatprep.mubr.f32.mxu1 %v2237_v2  ;;  %3694 = vmatprep.subr.mxu0 %v10280_v13 }
 0x309   : > { %3472 = vmatpush1.msra.mxu1 %v3339_v16 }
 0x30a   : > { %3473 = vmatprep.subr.mxu1 %v10280_v13 }
 0x30b   : > { %5981 = vmatmul.mubr.f32.gmra.mxu1 %v2238_v58  ;;  %v3370_v58 = vld [vmem:[#allocation3 + $0x168] sm:$0xff] }
 0x30c   : > { %5983 = vmatprep.mubr.f32.mxu1 %v2239_v3  ;;  %3474 = vmatpush1.msra.mxu1 %v3338_v47 }
 0x30d   : > { %3475 = vmatprep.subr.mxu1 %v10280_v13 }
 0x30e   : > { %3476 = vmatpush1.msra.mxu1 %v3337_v6 }
 0x30f   : > { %5984 = vmatmul.mubr.f32.gmra.mxu1 %v2240_v32  ;;  %3477 = vmatprep.subr.mxu1 %v10280_v13 }
 0x310   : > { %5986 = vmatprep.mubr.f32.mxu1 %v2241_v23  ;;  %3478 = vmatpush1.msra.mxu1 %v3336_v22  ;;  %v3369_v23 = vld [vmem:[#allocation3 + $0x160] sm:$0xff] }
 0x311   : > { %3479 = vmatprep.subr.mxu1 %v10280_v13 }
 0x312   : > { %3480 = vmatpush1.msra.mxu1 %v3335_v41  ;;  %v3362_v41 = vld [vmem:[#allocation3 + $0x128] sm:$0xff] }
 0x313   : > { %5987 = vmatmul.mubr.f32.gmra.mxu1 %v2242_v28  ;;  %3481 = vmatprep.subr.mxu1 %v10280_v13 }
 0x314   : > { %5989 = vmatprep.mubr.f32.mxu1 %v2243_v24  ;;  %3482 = vmatpush1.msra.mxu1 %v3334_v27 }
 0x315   : > { %3483 = vmatprep.subr.mxu1 %v10280_v13 }
 0x316   : > { %3484 = vmatpush1.msra.mxu1 %v3333_v39 }
 0x317   : > { %5990 = vmatmul.mubr.f32.gmra.mxu1 %v2244_v12  ;;  %3485 = vmatprep.subr.mxu1 %v10280_v13 }
 0x318   : > { %5992 = vmatprep.mubr.f32.mxu1 %v2245_v57  ;;  %3486 = vmatpush1.msra.mxu1 %v3332_v21  ;;  %v3361_v21 = vld [vmem:[#allocation3 + $0x120] sm:$0xff] }
 0x319   : > { %3487 = vmatprep.subr.mxu1 %v10280_v13 }
 0x31a   : > { %3488 = vmatpush1.msra.mxu1 %v3331_v9 }
 0x31b   : > { %5993 = vmatmul.mubr.f32.gmra.mxu1 %v2246_v38  ;;  %3489 = vmatprep.subr.mxu1 %v10280_v13  ;;  %v3368_v38 = vld [vmem:[#allocation3 + $0x158] sm:$0xff] }
 0x31c   : > { %5995 = vmatprep.mubr.f32.mxu1 %v2247_v50  ;;  %3490 = vmatpush1.msra.mxu1 %v3330_v4 }
 0x31d   : > { %3491 = vmatprep.subr.mxu1 %v10280_v13 }
 0x31e   : > { %3492 = vmatpush1.msra.mxu1 %v3329_v17 }
 0x31f   : > { %5996 = vmatmul.mubr.f32.gmra.mxu1 %v2248_v52  ;;  %3493 = vmatprep.subr.mxu1 %v10280_v13 }
 0x320   : > { %5998 = vmatprep.mubr.f32.mxu1 %v2249_v56  ;;  %3494 = vmatpush1.msra.mxu1 %v3328_v10  ;;  %v3367_v56 = vld [vmem:[#allocation3 + $0x150] sm:$0xff] }
 0x321   : > { %3495 = vmatprep.subr.mxu1 %v10280_v13 }
 0x322   : > { %3496 = vmatpush1.msra.mxu1 %v3327_v34  ;;  %v3360_v34 = vld [vmem:[#allocation3 + $0x118] sm:$0xff] }
 0x323   : > { %5999 = vmatmul.mubr.f32.gmra.mxu1 %v2250_v31  ;;  %3497 = vmatprep.subr.mxu1 %v10280_v13 }
 0x324   : > { %6001 = vmatprep.mubr.f32.mxu1 %v2251_v29  ;;  %3498 = vmatpush1.msra.mxu1 %v3326_v42 }
 0x325   : > { %3499 = vmatprep.subr.mxu1 %v10280_v13 }
 0x326   : > { %3500 = vmatpush1.msra.mxu1 %v3325_v54 }
 0x327   : > { %6002 = vmatmul.mubr.f32.gmra.mxu1 %v2252_v48  ;;  %3501 = vmatprep.subr.mxu1 %v10280_v13 }
 0x328   : > { %6004 = vmatprep.mubr.f32.mxu1 %v2253_v7 }
 0x32b   : > { %6005 = vmatmul.mubr.f32.gmra.mxu1 %v2254_v19  ;;  %v3366_v19 = vld [vmem:[#allocation3 + $0x148] sm:$0xff] }
 0x32c   : > { %6007 = vmatprep.mubr.f32.mxu1 %v2255_v11 }
 0x32f   : > { %6008 = vmatmul.mubr.f32.gmra.mxu1 %v2256_v1 }
 0x330   : > { %6010 = vmatprep.mubr.f32.mxu1 %v2257_v55  ;;  %v3365_v55 = vld [vmem:[#allocation3 + $0x140] sm:$0xff] }
 0x333   : > { %6011 = vmatmul.mubr.f32.gmra.mxu1 %v2258_v0 }
 0x334   : > { %6013 = vmatprep.mubr.f32.mxu1 %v2259_v18 }
 0x337   : > { %6014 = vmatmul.mubr.f32.gmra.mxu1 %v2260_v37 }
 0x338   : > { %6016 = vmatprep.mubr.f32.mxu1 %v2261_v60 }
 0x33b   : > { %6017 = vmatmul.mubr.f32.gmra.mxu1 %v2262_v36  ;;  %v3364_v36 = vld [vmem:[#allocation3 + $0x138] sm:$0xff] }
 0x3bf   : > { %v5973_v25 = vpop.f32.mrf.mxu1 }
 0x3c0   : > { %v2529_v49 = vadd.f32 %v5973_v25, %v8592_v30  ;;  %v3359_v25 = vld [vmem:[#allocation3 + $0x110] sm:$0xff] }
 0x3c1   : > { %v2363_v59 = vpop.f32.mrf.mxu1 }
 0x3c2   : > { %v2528_v14 = vadd.f32 %v8592_v30, %v2363_v59  ;;  %v2561_v15 = vmax.f32 %v2529_v49, 0.0 }
 0x3c3   : > { %v5976_v61 = vpop.f32.mrf.mxu1 }
 0x3c4   : > { %v2560_v62 = vmax.f32 %v2528_v14, 0.0  ;;  %v2531_v35 = vadd.f32 %v5976_v61, %v8592_v30 }
 0x3c5   : > { %v2373_v40 = vpop.f32.mrf.mxu1 }
 0x3c6   : > { %v2530_v45 = vadd.f32 %v8592_v30, %v2373_v40  ;;  %6051 = vmatprep.mubr.f32.mxu0 %v2560_v62  ;;  %v2563_v53 = vmax.f32 %v2531_v35, 0.0  ;;  %v3358_v62 = vld [vmem:[#allocation3 + $0x108] sm:$0xff]  ;;  %v3357_v40 = vld [vmem:[#allocation3 + $0x100] sm:$0xff] }
 0x3c7   : > { %v5979_v33 = vpop.f32.mrf.mxu1  ;;  %6052 = vmatmul.mubr.f32.vlgmr.msra.gmra.mxu0 %v2561_v15 }
 0x3c8   : > { %v2562_v51 = vmax.f32 %v2530_v45, 0.0  ;;  %3695 = vmatpush1.msra.mxu0 %v3372_v43  ;;  %v2533_v5 = vadd.f32 %v5979_v33, %v8592_v30 }
 0x3c9   : > { %v2383_v2 = vpop.f32.mrf.mxu1  ;;  %3696 = vmatprep.subr.mxu0 %v10280_v13 }
 0x3ca   : > { %v2532_v3 = vadd.f32 %v8592_v30, %v2383_v2  ;;  %6054 = vmatprep.mubr.f32.mxu0 %v2562_v51  ;;  %3697 = vmatpush1.msra.mxu0 %v3371_v44  ;;  %v2565_v24 = vmax.f32 %v2533_v5, 0.0  ;;  %v3388_v51 = vld [vmem:[#allocation3 + $0x1f8] sm:$0xff] }
 0x3cb   : > { %v5982_v32 = vpop.f32.mrf.mxu1  ;;  %6055 = vmatmul.mubr.f32.gmra.mxu0 %v2563_v53  ;;  %3698 = vmatprep.subr.mxu0 %v10280_v13 }
 0x3cc   : > { %v2564_v28 = vmax.f32 %v2532_v3, 0.0  ;;  %3699 = vmatpush1.msra.mxu0 %v3370_v58  ;;  %v2535_v12 = vadd.f32 %v5982_v32, %v8592_v30 }
 0x3cd   : > { %v2393_v57 = vpop.f32.mrf.mxu1  ;;  %3700 = vmatprep.subr.mxu0 %v10280_v13 }
 0x3ce   : > { %v2534_v50 = vadd.f32 %v8592_v30, %v2393_v57  ;;  %6057 = vmatprep.mubr.f32.mxu0 %v2564_v28  ;;  %3701 = vmatpush1.msra.mxu0 %v3369_v23  ;;  %v2567_v29 = vmax.f32 %v2535_v12, 0.0 }
 0x3cf   : > { %v5985_v52 = vpop.f32.mrf.mxu1  ;;  %6058 = vmatmul.mubr.f32.gmra.mxu0 %v2565_v24  ;;  %3702 = vmatprep.subr.mxu0 %v10280_v13 }
 0x3d0   : > { %v2566_v31 = vmax.f32 %v2534_v50, 0.0  ;;  %3703 = vmatpush1.msra.mxu0 %v3368_v38  ;;  %v2537_v48 = vadd.f32 %v5985_v52, %v8592_v30 }
 0x3d1   : > { %v2403_v7 = vpop.f32.mrf.mxu1  ;;  %3704 = vmatprep.subr.mxu0 %v10280_v13 }
 0x3d2   : > { %v2536_v11 = vadd.f32 %v8592_v30, %v2403_v7  ;;  %6060 = vmatprep.mubr.f32.mxu0 %v2566_v31  ;;  %3705 = vmatpush1.msra.mxu0 %v3367_v56  ;;  %v2569_v18 = vmax.f32 %v2537_v48, 0.0 }
 0x3d3   : > { %v5988_v1 = vpop.f32.mrf.mxu1  ;;  %6061 = vmatmul.mubr.f32.gmra.mxu0 %v2567_v29  ;;  %3706 = vmatprep.subr.mxu0 %v10280_v13 }
 0x3d4   : > { %v2568_v0 = vmax.f32 %v2536_v11, 0.0  ;;  %3707 = vmatpush1.msra.mxu0 %v3366_v19  ;;  %v2539_v37 = vadd.f32 %v5988_v1, %v8592_v30 }
 0x3d5   : > { %v2413_v60 = vpop.f32.mrf.mxu1  ;;  %3708 = vmatprep.subr.mxu0 %v10280_v13 }
 0x3d6   : > { %v2538_v8 = vadd.f32 %v8592_v30, %v2413_v60  ;;  %6063 = vmatprep.mubr.f32.mxu0 %v2568_v0  ;;  %3709 = vmatpush1.msra.mxu0 %v3365_v55  ;;  %v2571_v47 = vmax.f32 %v2539_v37, 0.0 }
 0x3d7   : > { %v5991_v20 = vpop.f32.mrf.mxu1  ;;  %6064 = vmatmul.mubr.f32.gmra.mxu0 %v2569_v18  ;;  %3710 = vmatprep.subr.mxu0 %v10280_v13 }
 0x3d8   : > { %v2570_v16 = vmax.f32 %v2538_v8, 0.0  ;;  %3711 = vmatpush1.msra.mxu0 %v3364_v36  ;;  %v2541_v6 = vadd.f32 %v5991_v20, %v8592_v30 }
 0x3d9   : > { %v2423_v22 = vpop.f32.mrf.mxu1  ;;  %3712 = vmatprep.subr.mxu0 %v10280_v13 }
 0x3da   : > { %v2540_v27 = vadd.f32 %v8592_v30, %v2423_v22  ;;  %6066 = vmatprep.mubr.f32.mxu0 %v2570_v16  ;;  %3713 = vmatpush1.msra.mxu0 %v3363_v46  ;;  %v2573_v4 = vmax.f32 %v2541_v6, 0.0 }
 0x3db   : > { %v5994_v39 = vpop.f32.mrf.mxu1  ;;  %6067 = vmatmul.mubr.f32.gmra.mxu0 %v2571_v47  ;;  %3714 = vmatprep.subr.mxu0 %v10280_v13 }
 0x3dc   : > { %v2572_v9 = vmax.f32 %v2540_v27, 0.0  ;;  %3715 = vmatpush1.msra.mxu0 %v3362_v41  ;;  %v2543_v17 = vadd.f32 %v5994_v39, %v8592_v30 }
 0x3dd   : > { %v2433_v10 = vpop.f32.mrf.mxu1  ;;  %3716 = vmatprep.subr.mxu0 %v10280_v13 }
 0x3de   : > { %v2542_v42 = vadd.f32 %v8592_v30, %v2433_v10  ;;  %6069 = vmatprep.mubr.f32.mxu0 %v2572_v9  ;;  %3717 = vmatpush1.msra.mxu0 %v3361_v21  ;;  %v2575_v59 = vmax.f32 %v2543_v17, 0.0  ;;  %v3356_v9 = vld [vmem:[#allocation3 + $0xf8] sm:$0xff]  ;;  %v3355_v17 = vld [vmem:[#allocation3 + $0xf0] sm:$0xff]  ;;  %v3386_v10 = vld [vmem:[#allocation3 + $0x1e8] sm:$0xff] }
 0x3df   : > { %v5997_v54 = vpop.f32.mrf.mxu1  ;;  %6070 = vmatmul.mubr.f32.gmra.mxu0 %v2573_v4  ;;  %3718 = vmatprep.subr.mxu0 %v10280_v13  ;;  %v3387_v4 = vld [vmem:[#allocation3 + $0x1f0] sm:$0xff] }
 0x3e0   : > { %v2574_v49 = vmax.f32 %v2542_v42, 0.0  ;;  %3719 = vmatpush1.msra.mxu0 %v3360_v34  ;;  %v2545_v14 = vadd.f32 %v5997_v54, %v8592_v30  ;;  %3502 = vmatpush2.msra.mxu1 %v3356_v9  ;;  %v3385_v34 = vld [vmem:[#allocation3 + $0x1e0] sm:$0xff]  ;;  %v3384_v54 = vld [vmem:[#allocation3 + $0x1d8] sm:$0xff] }
 0x3e1   : > { %v2443_v61 = vpop.f32.mrf.mxu1  ;;  %3720 = vmatprep.subr.mxu0 %v10280_v13  ;;  %3503 = vmatprep.subr.mxu1 %v10280_v13  ;;  %v3353_v42 = vld [vmem:[#allocation3 + $0xe0] sm:$0xff] }
 0x3e2   : > { %v2544_v15 = vadd.f32 %v8592_v30, %v2443_v61  ;;  %6072 = vmatprep.mubr.f32.mxu0 %v2574_v49  ;;  %3721 = vmatpush1.msra.mxu0 %v3359_v25  ;;  %v2577_v45 = vmax.f32 %v2545_v14, 0.0  ;;  %v3352_v25 = vld [vmem:[#allocation3 + $0xd8] sm:$0xff]  ;;  %v3383_v49 = vld [vmem:[#allocation3 + $0x1d0] sm:$0xff]  ;;  %v3382_v14 = vld [vmem:[#allocation3 + $0x1c8] sm:$0xff] }
 0x3e3   : > { %v6000_v35 = vpop.f32.mrf.mxu1  ;;  %6073 = vmatmul.mubr.f32.gmra.mxu0 %v2575_v59  ;;  %3722 = vmatprep.subr.mxu0 %v10280_v13  ;;  %v3351_v59 = vld [vmem:[#allocation3 + $0xd0] sm:$0xff]  ;;  %v3350_v61 = vld [vmem:[#allocation3 + $0xc8] sm:$0xff] }
 0x3e4   : > { %v2576_v43 = vmax.f32 %v2544_v15, 0.0  ;;  %3723 = vmatpush1.msra.mxu0 %v3358_v62  ;;  %v2547_v33 = vadd.f32 %v6000_v35, %v8592_v30  ;;  %3504 = vmatpush2.msra.mxu1 %v3355_v17  ;;  %v3381_v62 = vld [vmem:[#allocation3 + $0x1c0] sm:$0xff]  ;;  %v3380_v35 = vld [vmem:[#allocation3 + $0x1b8] sm:$0xff] }
 0x3e5   : > { %v2453_v44 = vpop.f32.mrf.mxu1  ;;  %3724 = vmatprep.subr.mxu0 %v10280_v13  ;;  %3505 = vmatprep.subr.mxu1 %v10280_v13  ;;  %v3349_v15 = vld [vmem:[#allocation3 + $0xc0] sm:$0xff] }
 0x3e6   : > { %v2546_v53 = vadd.f32 %v8592_v30, %v2453_v44  ;;  %6075 = vmatprep.mubr.f32.mxu0 %v2576_v43  ;;  %3725 = vmatpush1.msra.mxu0 %v3357_v40  ;;  %v2579_v58 = vmax.f32 %v2547_v33, 0.0  ;;  %v3348_v40 = vld [vmem:[#allocation3 + $0xb8] sm:$0xff]  ;;  %v3379_v43 = vld [vmem:[#allocation3 + $0x1b0] sm:$0xff]  ;;  %v3378_v33 = vld [vmem:[#allocation3 + $0x1a8] sm:$0xff] }
 0x3e7   : > { %v6003_v5 = vpop.f32.mrf.mxu1  ;;  %6076 = vmatmul.mubr.f32.gmra.mxu0 %v2577_v45  ;;  %3726 = vmatprep.subr.mxu0 %v10280_v13  ;;  %v3347_v45 = vld [vmem:[#allocation3 + $0xb0] sm:$0xff]  ;;  %v3346_v44 = vld [vmem:[#allocation3 + $0xa8] sm:$0xff] }
 0x3e8   : > { %v2578_v2 = vmax.f32 %v2546_v53, 0.0  ;;  %3727 = vmatpush2.msra.mxu0 %v3388_v51  ;;  %v2549_v3 = vadd.f32 %v6003_v5, %v8592_v30  ;;  %v3377_v51 = vld [vmem:[#allocation3 + $0x1a0] sm:$0xff]  ;;  %v3376_v5 = vld [vmem:[#allocation3 + $0x198] sm:$0xff] }
 0x3e9   : > { %v2463_v32 = vpop.f32.mrf.mxu1  ;;  %3728 = vmatprep.subr.mxu0 %v10280_v13  ;;  %v3345_v53 = vld [vmem:[#allocation3 + $0xa0] sm:$0xff] }
 0x3ea   : > { %v2548_v23 = vadd.f32 %v8592_v30, %v2463_v32  ;;  %6078 = vmatprep.mubr.f32.mxu0 %v2578_v2  ;;  %v2581_v12 = vmax.f32 %v2549_v3, 0.0  ;;  %3729 = vmatpush2.msra.mxu0 %v3387_v4  ;;  %v3344_v2 = vld [vmem:[#allocation3 + $0x98] sm:$0xff]  ;;  %v3343_v3 = vld [vmem:[#allocation3 + $0x90] sm:$0xff]  ;;  %v3374_v32 = vld [vmem:[#allocation3 + $0x188] sm:$0xff] }
 0x3eb   : > { %v6006_v28 = vpop.f32.mrf.mxu1  ;;  %6079 = vmatmul.mubr.f32.gmra.mxu0 %v2579_v58  ;;  %3730 = vmatprep.subr.mxu0 %v10280_v13  ;;  %v3375_v58 = vld [vmem:[#allocation3 + $0x190] sm:$0xff] }
 0x3ec   : > { %v2580_v24 = vmax.f32 %v2548_v23, 0.0  ;;  %v2551_v57 = vadd.f32 %v6006_v28, %v8592_v30  ;;  %3731 = vmatpush2.msra.mxu0 %v3386_v10  ;;  %v3342_v23 = vld [vmem:[#allocation3 + $0x88] sm:$0xff]  ;;  %v3373_v28 = vld [vmem:[#allocation3 + $0x180] sm:$0xff] }
 0x3ed   : > { %v2473_v38 = vpop.f32.mrf.mxu1  ;;  %3732 = vmatprep.subr.mxu0 %v10280_v13 }
 0x3ee   : > { %v2550_v50 = vadd.f32 %v8592_v30, %v2473_v38  ;;  %6081 = vmatprep.mubr.f32.mxu0 %v2580_v24  ;;  %v2583_v31 = vmax.f32 %v2551_v57, 0.0  ;;  %3733 = vmatpush2.msra.mxu0 %v3385_v34  ;;  %v3341_v24 = vld [vmem:[#allocation3 + $0x80] sm:$0xff] }
 0x3ef   : > { %v6009_v52 = vpop.f32.mrf.mxu1  ;;  %6082 = vmatmul.mubr.f32.gmra.mxu0 %v2581_v12  ;;  %3734 = vmatprep.subr.mxu0 %v10280_v13  ;;  %v8677_v12 = vld [vmem:[%s10094_s6] ss:$0 sm:$0xff] }
 0x3f0   : > { %v2582_v56 = vmax.f32 %v2550_v50, 0.0  ;;  %v2553_v29 = vadd.f32 %v6009_v52, %v8592_v30  ;;  %3735 = vmatpush2.msra.mxu0 %v3384_v54 }
 0x3f1   : > { %v2483_v48 = vpop.f32.mrf.mxu1  ;;  %3736 = vmatprep.subr.mxu0 %v10280_v13 }
 0x3f2   : > { %v2552_v7 = vadd.f32 %v8592_v30, %v2483_v48  ;;  %6084 = vmatprep.mubr.f32.mxu0 %v2582_v56  ;;  %v2585_v1 = vmax.f32 %v2553_v29, 0.0  ;;  %3737 = vmatpush2.msra.mxu0 %v3383_v49 }
 0x3f3   : > { %v6012_v19 = vpop.f32.mrf.mxu1  ;;  %6085 = vmatmul.mubr.f32.gmra.mxu0 %v2583_v31  ;;  %3738 = vmatprep.subr.mxu0 %v10280_v13 }
 0x3f4   : > { %v2584_v11 = vmax.f32 %v2552_v7, 0.0  ;;  %v2555_v55 = vadd.f32 %v6012_v19, %v8592_v30  ;;  %3739 = vmatpush2.msra.mxu0 %v3382_v14 }
 0x3f5   : > { %v2493_v0 = vpop.f32.mrf.mxu1  ;;  %3740 = vmatprep.subr.mxu0 %v10280_v13 }
 0x3f6   : > { %v2554_v18 = vadd.f32 %v8592_v30, %v2493_v0  ;;  %6087 = vmatprep.mubr.f32.mxu0 %v2584_v11  ;;  %v2587_v36 = vmax.f32 %v2555_v55, 0.0  ;;  %3741 = vmatpush2.msra.mxu0 %v3381_v62 }
 0x3f7   : > { %v6015_v37 = vpop.f32.mrf.mxu1  ;;  %6088 = vmatmul.mubr.f32.gmra.mxu0 %v2585_v1  ;;  %3742 = vmatprep.subr.mxu0 %v10280_v13 }
 0x3f8   : > { %v2586_v60 = vmax.f32 %v2554_v18, 0.0  ;;  %v2557_v8 = vadd.f32 %v6015_v37, %v8592_v30  ;;  %3743 = vmatpush2.msra.mxu0 %v3380_v35 }
 0x3f9   : > { %v2503_v20 = vpop.f32.mrf.mxu1  ;;  %3744 = vmatprep.subr.mxu0 %v10280_v13 }
 0x3fa   : > { %v2556_v46 = vadd.f32 %v8592_v30, %v2503_v20  ;;  %6090 = vmatprep.mubr.f32.mxu0 %v2586_v60  ;;  %v2589_v6 = vmax.f32 %v2557_v8, 0.0  ;;  %3745 = vmatpush2.msra.mxu0 %v3379_v43 }
 0x3fb   : > { %v6018_v16 = vpop.f32.mrf.mxu1  ;;  %6091 = vmatmul.mubr.f32.gmra.mxu0 %v2587_v36  ;;  %3746 = vmatprep.subr.mxu0 %v10280_v13 }
 0x3fc   : > { %v2588_v47 = vmax.f32 %v2556_v46, 0.0  ;;  %v2559_v22 = vadd.f32 %v6018_v16, %v8592_v30  ;;  %3747 = vmatpush2.msra.mxu0 %v3378_v33 }
 0x3fd   : > { %v2513_v41 = vpop.f32.mrf.mxu1  ;;  %3748 = vmatprep.subr.mxu0 %v10280_v13 }
 0x3fe   : > { %v2558_v27 = vadd.f32 %v8592_v30, %v2513_v41  ;;  %6093 = vmatprep.mubr.f32.mxu0 %v2588_v47  ;;  %v2591_v21 = vmax.f32 %v2559_v22, 0.0  ;;  %v3354_v30 = vld [vmem:[#allocation3 + $0xe8] sm:$0xff]  ;;  %3749 = vmatpush2.msra.mxu0 %v3377_v51 }
 0x3ff   : > { %6094 = vmatmul.mubr.f32.gmra.mxu0 %v2589_v6  ;;  %3506 = vmatpush2.msra.mxu1 %v3354_v30 }
 0x400   : > { %v2590_v39 = vmax.f32 %v2558_v27, 0.0  ;;  %3507 = vmatprep.subr.mxu1 %v10280_v13  ;;  %3750 = vmatprep.subr.mxu0 %v10280_v13 }
 0x401   : > { %3508 = vmatpush2.msra.mxu1 %v3353_v42  ;;  %3751 = vmatpush2.msra.mxu0 %v3376_v5 }
 0x402   : > { %6096 = vmatprep.mubr.f32.mxu0 %v2590_v39  ;;  %3509 = vmatprep.subr.mxu1 %v10280_v13 }
 0x403   : > { %6097 = vmatmul.mubr.f32.gmra.mxu0 %v2591_v21  ;;  %3510 = vmatpush2.msra.mxu1 %v3352_v25 }
 0x404   : > { %3511 = vmatprep.subr.mxu1 %v10280_v13  ;;  %3752 = vmatprep.subr.mxu0 %v10280_v13 }
 0x405   : > { %3512 = vmatpush2.msra.mxu1 %v3351_v59  ;;  %3753 = vmatpush2.msra.mxu0 %v3375_v58 }
 0x406   : > { %3513 = vmatprep.subr.mxu1 %v10280_v13  ;;  %3754 = vmatprep.subr.mxu0 %v10280_v13 }
 0x407   : > { %3514 = vmatpush2.msra.mxu1 %v3350_v61  ;;  %3755 = vmatpush2.msra.mxu0 %v3374_v32 }
 0x408   : > { %3515 = vmatprep.subr.mxu1 %v10280_v13  ;;  %3756 = vmatprep.subr.mxu0 %v10280_v13 }
 0x409   : > { %3516 = vmatpush2.msra.mxu1 %v3349_v15  ;;  %3757 = vmatpush2.msra.mxu0 %v3373_v28 }
 0x40a   : > { %3517 = vmatprep.subr.mxu1 %v10280_v13  ;;  %4144 = vmatprep.subr.mxu0 %v10280_v13 }
 0x40b   : > { %3518 = vmatpush2.msra.mxu1 %v3348_v40 }
 0x40c   : > { %3519 = vmatprep.subr.mxu1 %v10280_v13 }
 0x40d   : > { %3520 = vmatpush2.msra.mxu1 %v3347_v45 }
 0x40e   : > { %3521 = vmatprep.subr.mxu1 %v10280_v13 }
 0x40f   : > { %3522 = vmatpush2.msra.mxu1 %v3346_v44 }
 0x410   : > { %3523 = vmatprep.subr.mxu1 %v10280_v13 }
 0x411   : > { %3524 = vmatpush2.msra.mxu1 %v3345_v53 }
 0x412   : > { %3525 = vmatprep.subr.mxu1 %v10280_v13 }
 0x413   : > { %3526 = vmatpush2.msra.mxu1 %v3344_v2 }
 0x414   : > { %3527 = vmatprep.subr.mxu1 %v10280_v13 }
 0x415   : > { %3528 = vmatpush2.msra.mxu1 %v3343_v3 }
 0x416   : > { %3529 = vmatprep.subr.mxu1 %v10280_v13 }
 0x417   : > { %3530 = vmatpush2.msra.mxu1 %v3342_v23 }
 0x418   : > { %3531 = vmatprep.subr.mxu1 %v10280_v13 }
 0x419   : > { %3532 = vmatpush2.msra.mxu1 %v3341_v24 }
 0x41a   : > { %3919 = vmatprep.subr.mxu1 %v10280_v13 }
 0x487   : > { %v6053_v57 = vpop.f32.mrf.mxu0 }
 0x488   : > { %v2670_v38 = vadd.f32 %v6053_v57, %v8677_v12 }
 0x489   : > { %v2664_v50 = vpop.f32.mrf.mxu0 }
 0x48a   : > { %v2824_v52 = vmax.f32 %v2670_v38, 0.0  ;;  %v2665_v56 = vadd.f32 %v8677_v12, %v2664_v50 }
 0x48b   : > { %v6056_v31 = vpop.f32.mrf.mxu0 }
 0x48c   : > { %2857 = vst [vmem:[#allocation2 + $0x21] sm:$0xff] %v2824_v52  ;;  %v2823_v29 = vmax.f32 %v2665_v56, 0.0  ;;  %v2680_v48 = vadd.f32 %v6056_v31, %v8677_v12 }
 0x48d   : > { %v2674_v7 = vpop.f32.mrf.mxu0 }
 0x48e   : > { %2856 = vst [vmem:[#allocation2 + $0x19] sm:$0xff] %v2823_v29  ;;  %v2826_v19 = vmax.f32 %v2680_v48, 0.0  ;;  %v2675_v11 = vadd.f32 %v8677_v12, %v2674_v7  ;;  %v3404_v7 = vld [vmem:[#allocation3 + $0x278] sm:$0xff] }
 0x48f   : > { %v6059_v1 = vpop.f32.mrf.mxu0 }
 0x490   : > { %2859 = vst [vmem:[#allocation2 + $0x39] sm:$0xff] %v2826_v19  ;;  %2889 = vst [vmem:[#allocation2 + $0x9] sm:$0xff] %v2826_v19  ;;  %v2825_v55 = vmax.f32 %v2675_v11, 0.0  ;;  %v2690_v0 = vadd.f32 %v6059_v1, %v8677_v12  ;;  %v3436_v1 = vld [vmem:[#allocation3 + $0x378] sm:$0xff] }
 0x491   : > { %v2684_v18 = vpop.f32.mrf.mxu0 }
 0x492   : > { %2858 = vst [vmem:[#allocation2 + $0x31] sm:$0xff] %v2825_v55  ;;  %2888 = vst [vmem:[#allocation2 + $0x1] sm:$0xff] %v2825_v55  ;;  %v2828_v37 = vmax.f32 %v2690_v0, 0.0  ;;  %v2685_v60 = vadd.f32 %v8677_v12, %v2684_v18 }
 0x493   : > { %v2930_v36 = vld [vmem:[#allocation2 + $0x27] sm:$0x1]  ;;  %v6062_v8 = vpop.f32.mrf.mxu0 }
 0x494   : > { %2948 = vst [vmem:[#allocation2 + $0x29] sm:$0x1] %v2930_v36  ;;  %2861 = vst [vmem:[#allocation2 + $0x51] sm:$0xff] %v2828_v37  ;;  %v2827_v20 = vmax.f32 %v2685_v60, 0.0  ;;  %v2700_v46 = vadd.f32 %v6062_v8, %v8677_v12  ;;  %v3403_v60 = vld [vmem:[#allocation3 + $0x270] sm:$0xff] }
 0x495   : > { %v2894_v16 = vld [vmem:[#allocation2 + $0x1a] sm:$0x1]  ;;  %v2694_v47 = vpop.f32.mrf.mxu0  ;;  %v8703_v48 = vld [vmem:[#allocation2 + $0x20] sm:$0xff] }
 0x496   : > { %2912 = vst [vmem:[#allocation2 + $0x18] sm:$0x1] %v2894_v16  ;;  %2860 = vst [vmem:[#allocation2 + $0x49] sm:$0xff] %v2827_v20  ;;  %v2830_v6 = vmax.f32 %v2700_v46, 0.0  ;;  %v2695_v22 = vadd.f32 %v8677_v12, %v2694_v47  ;;  %v3073_v20 = vrot.slane %v8703_v48, 1 }
 0x497   : > { %v2929_v41 = vld [vmem:[#allocation2 + $0xf] sm:$0x1]  ;;  %v2931_v27 = vld [vmem:[#allocation2 + $0x3f] sm:$0x1]  ;;  %v6065_v39 = vpop.f32.mrf.mxu0 }
 0x498   : > { %2947 = vst [vmem:[#allocation2 + $0x11] sm:$0x1] %v2929_v41  ;;  %2949 = vst [vmem:[#allocation2 + $0x41] sm:$0x1] %v2931_v27  ;;  %v2829_v21 = vmax.f32 %v2695_v22, 0.0  ;;  %v2710_v9 = vadd.f32 %v6065_v39, %v8677_v12  ;;  %v3185_v27 = vrot.slane %v8703_v48, 2 }
 0x499   : > { %2863 = vst [vmem:[#allocation2 + $0x69] sm:$0xff] %v2830_v6  ;;  %v2893_v4 = vld [vmem:[#allocation2 + $0x2] sm:$0x1]  ;;  %v2895_v17 = vld [vmem:[#allocation2 + $0x32] sm:$0x1]  ;;  %v2704_v10 = vpop.f32.mrf.mxu0  ;;  %v8694_v35 = vld [vmem:[#allocation2 + $0x8] sm:$0xff] }
 0x49a   : > { %2911 = vst [vmem:[#allocation2] sm:$0x1] %v2893_v4  ;;  %2913 = vst [vmem:[#allocation2 + $0x30] sm:$0x1] %v2895_v17  ;;  %v2832_v30 = vmax.f32 %v2710_v9, 0.0  ;;  %v2705_v34 = vadd.f32 %v8677_v12, %v2704_v10  ;;  %v3068_v2 = vrot.slane %v8694_v35, 1 }
 0x49b   : > { %2862 = vst [vmem:[#allocation2 + $0x61] sm:$0xff] %v2829_v21  ;;  %v2932_v42 = vld [vmem:[#allocation2 + $0x57] sm:$0x1]  ;;  %v6068_v54 = vpop.f32.mrf.mxu0  ;;  %v3180_v58 = vrot.slane %v8694_v35, 2  ;;  %v8710_v46 = vld [vmem:[#allocation2 + $0x28] sm:$0x3] }
 0x49c   : > { %2950 = vst [vmem:[#allocation2 + $0x59] sm:$0x1] %v2932_v42  ;;  %2865 = vst [vmem:[#allocation2 + $0x81] sm:$0xff] %v2832_v30  ;;  %v2831_v25 = vmax.f32 %v2705_v34, 0.0  ;;  %v2720_v49 = vadd.f32 %v6068_v54, %v8677_v12  ;;  %v3402_v9 = vld [vmem:[#allocation3 + $0x268] sm:$0xff]  ;;  %v3075_v30 = vrot.slane %v8710_v46, 1 }
 0x49d   : > { %v2896_v59 = vld [vmem:[#allocation2 + $0x4a] sm:$0x1]  ;;  %v2714_v14 = vpop.f32.mrf.mxu0  ;;  %v8690_v61 = vld [vmem:[#allocation2 + $0x18] sm:$0xff] }
 0x49e   : > { %2914 = vst [vmem:[#allocation2 + $0x48] sm:$0x1] %v2896_v59  ;;  %2864 = vst [vmem:[#allocation2 + $0x79] sm:$0xff] %v2831_v25  ;;  %v2834_v62 = vmax.f32 %v2720_v49, 0.0  ;;  %v2715_v15 = vadd.f32 %v8677_v12, %v2714_v14  ;;  %3758 = vmatprep.mubr.f32.mxu0 %v8690_v61  ;;  %v3072_v37 = vrot.slane %v8690_v61, 1  ;;  %v3184_v16 = vrot.slane %v8690_v61, 2 }
 0x49f   : > { %v6071_v43 = vpop.f32.mrf.mxu0  ;;  %v2967_v45 = vld [vmem:[#allocation2 + $0x10] sm:$0x3]  ;;  %v8732_v59 = vld [vmem:[#allocation2 + $0x38] sm:$0xff]  ;;  %v3187_v14 = vrot.slane %v8710_v46, 2 }
 0x4a0   : > { %v2933_v40 = vld [vmem:[#allocation2 + $0x6f] sm:$0x1]  ;;  %2867 = vst [vmem:[#allocation2 + $0x99] sm:$0xff] %v2834_v62  ;;  %v2833_v33 = vmax.f32 %v2715_v15, 0.0  ;;  %v2730_v44 = vadd.f32 %v6071_v43, %v8677_v12  ;;  %v3070_v3 = vrot.slane %v2967_v45, 1  ;;  %v3182_v50 = vrot.slane %v2967_v45, 2 }
 0x4a1   : > { %2951 = vst [vmem:[#allocation2 + $0x71] sm:$0x1] %v2933_v40  ;;  %v2724_v53 = vpop.f32.mrf.mxu0  ;;  %v2965_v5 = vld [vmem:[#allocation2] sm:$0xff]  ;;  %v8717_v21 = vld [vmem:[#allocation2 + $0x30] sm:$0xff]  ;;  %v8723_v10 = vsel %vm559_vm0, %v3072_v37, %v3073_v20  ;;  %v8730_v49 = vsel %vm672_vm1, %v3184_v16, %v3185_v27 }
 0x4a2   : > { %v2897_v51 = vld [vmem:[#allocation2 + $0x62] sm:$0x1]  ;;  %2866 = vst [vmem:[#allocation2 + $0x91] sm:$0xff] %v2833_v33  ;;  %v2836_v32 = vmax.f32 %v2730_v44, 0.0  ;;  %v2725_v23 = vadd.f32 %v8677_v12, %v2724_v53  ;;  %v3067_v28 = vrot.slane %v2965_v5, 1  ;;  %v3179_v24 = vrot.slane %v2965_v5, 2 }
 0x4a3   : > { %2915 = vst [vmem:[#allocation2 + $0x60] sm:$0x1] %v2897_v51  ;;  %v2934_v57 = vld [vmem:[#allocation2 + $0x87] sm:$0x1]  ;;  %v6074_v38 = vpop.f32.mrf.mxu0  ;;  %v3071_v18 = vsel %vm559_vm0, %v3068_v2, %v3070_v3  ;;  %v3183_v22 = vsel %vm672_vm1, %v3180_v58, %v3182_v50  ;;  %v3401_v62 = vld [vmem:[#allocation3 + $0x260] sm:$0xff]  ;;  %v8742_v33 = vsel %vm559_vm0, %v3073_v20, %v3075_v30  ;;  %v3077_v44 = vrot.slane %v8717_v21, 1 }
 0x4a4   : > { %2952 = vst [vmem:[#allocation2 + $0x89] sm:$0x1] %v2934_v57  ;;  %2869 = vst [vmem:[#allocation2 + $0xb1] sm:$0xff] %v2836_v32  ;;  %v2835_v52 = vmax.f32 %v2725_v23, 0.0  ;;  %v2740_v56 = vadd.f32 %v6074_v38, %v8677_v12  ;;  %v3069_v31 = vsel %vm559_vm0, %v3067_v28, %v3068_v2  ;;  %v3181_v29 = vsel %vm672_vm1, %v3179_v24, %v3180_v58  ;;  %v3435_v40 = vld [vmem:[#allocation3 + $0x370] sm:$0xff]  ;;  %v3400_v51 = vld [vmem:[#allocation3 + $0x258] sm:$0xff] }
 0x4a5   : > { %v2898_v19 = vld [vmem:[#allocation2 + $0x7a] sm:$0x1]  ;;  %v2734_v11 = vpop.f32.mrf.mxu0  ;;  %3533 = vmatprep.mubr.f32.mxu1 %v3069_v31  ;;  %3759 = vmatmul.mubr.f32.vlgmr.msra.gmra.mxu0 %v3181_v29  ;;  %v3078_v2 = vrot.slane %v8732_v59, 1  ;;  %v8747_v58 = vld [vmem:[#allocation2 + $0x40] sm:$0x3]  ;;  %v8751_v32 = vsel %vm672_vm1, %v3185_v27, %v3187_v14  ;;  %v3189_v23 = vrot.slane %v8717_v21, 2 }
 0x4a6   : > { %2916 = vst [vmem:[#allocation2 + $0x78] sm:$0x1] %v2898_v19  ;;  %2868 = vst [vmem:[#allocation2 + $0xa9] sm:$0xff] %v2835_v52  ;;  %v2838_v55 = vmax.f32 %v2740_v56, 0.0  ;;  %v2735_v0 = vadd.f32 %v8677_v12, %v2734_v11  ;;  %3534 = vmatmul.mubr.f32.vlgmr.msra.gmra.mxu1 %v2965_v5  ;;  %3763 = vmatprep.mubr.f32.mxu0 %v8703_v48  ;;  %v8756_v57 = vld [vmem:[#allocation2 + $0x48] sm:$0xff]  ;;  %v3190_v38 = vrot.slane %v8732_v59, 2 }
 0x4a7   : > { %v2935_v36 = vld [vmem:[#allocation2 + $0x9f] sm:$0x1]  ;;  %v6077_v8 = vpop.f32.mrf.mxu0  ;;  %3538 = vmatprep.mubr.f32.mxu1 %v3071_v18  ;;  %3920 = vmatpush1.msra.mxu1 %v3404_v7  ;;  %v3399_v50 = vld [vmem:[#allocation3 + $0x250] sm:$0xff]  ;;  %v8763_v31 = vsel %vm559_vm0, %v3077_v44, %v3078_v2  ;;  %v3080_v29 = vrot.slane %v8747_v58, 1  ;;  %v3082_v16 = vrot.slane %v8756_v57, 1  ;;  %v8812_v44 = vld [vmem:[#allocation2 + $0x68] sm:$0xff] }
 0x4a8   : > { %2953 = vst [vmem:[#allocation2 + $0xa1] sm:$0x1] %v2935_v36  ;;  %2871 = vst [vmem:[#allocation2 + $0xc9] sm:$0xff] %v2838_v55  ;;  %v2837_v47 = vmax.f32 %v2735_v0, 0.0  ;;  %v2750_v6 = vadd.f32 %v6077_v8, %v8677_v12  ;;  %3921 = vmatprep.subr.mxu1 %v10280_v13  ;;  %4145 = vmatpush1.msra.mxu0 %v3436_v1  ;;  %v8772_v55 = vld [vmem:[#allocation2 + $0x50] sm:$0xff]  ;;  %v3192_v0 = vrot.slane %v8747_v58, 2 }
 0x4a9   : > { %v2899_v41 = vld [vmem:[#allocation2 + $0x92] sm:$0x1]  ;;  %v2744_v39 = vpop.f32.mrf.mxu0  ;;  %3764 = vmatmul.mubr.f32.gmra.mxu0 %v3183_v22  ;;  %3922 = vmatpush1.msra.mxu1 %v3403_v60  ;;  %v3398_v18 = vld [vmem:[#allocation3 + $0x248] sm:$0xff]  ;;  %v8782_v46 = vsel %vm559_vm0, %v3078_v2, %v3080_v29 }
 0x4aa   : > { %2917 = vst [vmem:[#allocation2 + $0x90] sm:$0x1] %v2899_v41  ;;  %2870 = vst [vmem:[#allocation2 + $0xc1] sm:$0xff] %v2837_v47  ;;  %v2840_v4 = vmax.f32 %v2750_v6, 0.0  ;;  %v2745_v17 = vadd.f32 %v8677_v12, %v2744_v39  ;;  %3539 = vmatmul.mubr.f32.gmra.mxu1 %v8694_v35  ;;  %3768 = vmatprep.mubr.f32.mxu0 %v8717_v21  ;;  %v3434_v36 = vld [vmem:[#allocation3 + $0x368] sm:$0xff]  ;;  %v3397_v47 = vld [vmem:[#allocation3 + $0x240] sm:$0xff] }
 0x4ab   : > { %v2936_v34 = vld [vmem:[#allocation2 + $0xb7] sm:$0x1]  ;;  %v6080_v42 = vpop.f32.mrf.mxu0  ;;  %3543 = vmatprep.mubr.f32.mxu1 %v8723_v10  ;;  %3923 = vmatprep.subr.mxu1 %v10280_v13  ;;  %v3083_v41 = vrot.slane %v8772_v55, 1  ;;  %v8787_v27 = vld [vmem:[#allocation2 + $0x58] sm:$0x3] }
 0x4ac   : > { %2954 = vst [vmem:[#allocation2 + $0xb9] sm:$0x1] %v2936_v34  ;;  %2873 = vst [vmem:[#allocation2 + $0xe1] sm:$0xff] %v2840_v4  ;;  %v2839_v54 = vmax.f32 %v2745_v17, 0.0  ;;  %v2760_v25 = vadd.f32 %v6080_v42, %v8677_v12  ;;  %3924 = vmatpush1.msra.mxu1 %v3402_v9  ;;  %4146 = vmatprep.subr.mxu0 %v10280_v13  ;;  %v8791_v9 = vsel %vm672_vm1, %v3190_v38, %v3192_v0  ;;  %v8796_v34 = vld [vmem:[#allocation2 + $0x60] sm:$0xff]  ;;  %v3433_v58 = vld [vmem:[#allocation3 + $0x360] sm:$0xff] }
 0x4ad   : > { %v2900_v15 = vld [vmem:[#allocation2 + $0xaa] sm:$0x1]  ;;  %v2754_v35 = vpop.f32.mrf.mxu0  ;;  %3769 = vmatmul.mubr.f32.gmra.mxu0 %v8730_v49  ;;  %3925 = vmatprep.subr.mxu1 %v10280_v13  ;;  %v3194_v4 = vrot.slane %v8756_v57, 2  ;;  %v3195_v42 = vrot.slane %v8772_v55, 2  ;;  %v8836_v0 = vld [vmem:[#allocation2 + $0x78] sm:$0xff] }
 0x4ae   : > { %2918 = vst [vmem:[#allocation2 + $0xa8] sm:$0x1] %v2900_v15  ;;  %2872 = vst [vmem:[#allocation2 + $0xd9] sm:$0xff] %v2839_v54  ;;  %v2842_v43 = vmax.f32 %v2760_v25, 0.0  ;;  %v2755_v45 = vadd.f32 %v8677_v12, %v2754_v35  ;;  %3544 = vmatmul.mubr.f32.gmra.mxu1 %v8690_v61  ;;  %3773 = vmatprep.mubr.f32.mxu0 %v8732_v59  ;;  %v3396_v54 = vld [vmem:[#allocation3 + $0x238] sm:$0xff]  ;;  %v3085_v15 = vrot.slane %v8787_v27, 1 }
 0x4af   : > { %v2937_v53 = vld [vmem:[#allocation2 + $0xcf] sm:$0x1]  ;;  %v6083_v5 = vpop.f32.mrf.mxu0  ;;  %3548 = vmatprep.mubr.f32.mxu1 %v8742_v33  ;;  %3926 = vmatpush1.msra.mxu1 %v3401_v62  ;;  %v8803_v62 = vsel %vm559_vm0, %v3082_v16, %v3083_v41 }
 0x4b0   : > { %2955 = vst [vmem:[#allocation2 + $0xd1] sm:$0x1] %v2937_v53  ;;  %2875 = vst [vmem:[#allocation2 + $0xf9] sm:$0xff] %v2842_v43  ;;  %v2841_v61 = vmax.f32 %v2755_v45, 0.0  ;;  %v2770_v3 = vadd.f32 %v6083_v5, %v8677_v12  ;;  %3927 = vmatprep.subr.mxu1 %v10280_v13  ;;  %4147 = vmatpush1.msra.mxu0 %v3435_v40  ;;  %v3395_v53 = vld [vmem:[#allocation3 + $0x230] sm:$0xff] }
 0x4b1   : > { %v2901_v28 = vld [vmem:[#allocation2 + $0xc2] sm:$0x1]  ;;  %v2764_v24 = vpop.f32.mrf.mxu0  ;;  %3774 = vmatmul.mubr.f32.gmra.mxu0 %v8751_v32  ;;  %3928 = vmatpush1.msra.mxu1 %v3400_v51  ;;  %v3197_v51 = vrot.slane %v8787_v27, 2  ;;  %v3392_v27 = vld [vmem:[#allocation3 + $0x218] sm:$0xff] }
 0x4b2   : > { %2919 = vst [vmem:[#allocation2 + $0xc0] sm:$0x1] %v2901_v28  ;;  %2874 = vst [vmem:[#allocation2 + $0xf1] sm:$0xff] %v2841_v61  ;;  %v2844_v52 = vmax.f32 %v2770_v3, 0.0  ;;  %v2765_v56 = vadd.f32 %v8677_v12, %v2764_v24  ;;  %3549 = vmatmul.mubr.f32.gmra.mxu1 %v8703_v48  ;;  %3778 = vmatprep.mubr.f32.mxu0 %v8756_v57  ;;  %v8770_v48 = vsel %vm672_vm1, %v3189_v23, %v3190_v38  ;;  %v3394_v24 = vld [vmem:[#allocation3 + $0x228] sm:$0xff] }
 0x4b3   : > { %v2938_v7 = vld [vmem:[#allocation2 + $0xe7] sm:$0x1]  ;;  %v6086_v19 = vpop.f32.mrf.mxu0  ;;  %3553 = vmatprep.mubr.f32.mxu1 %v8763_v31  ;;  %3929 = vmatprep.subr.mxu1 %v10280_v13  ;;  %v8822_v23 = vsel %vm559_vm0, %v3083_v41, %v3085_v15  ;;  %v3087_v28 = vrot.slane %v8796_v34, 1 }
 0x4b4   : > { %2956 = vst [vmem:[#allocation2 + $0xe9] sm:$0x1] %v2938_v7  ;;  %2877 = vst [vmem:[#allocation2 + $0x111] sm:$0xff] %v2844_v52  ;;  %v2843_v11 = vmax.f32 %v2765_v56, 0.0  ;;  %v2780_v1 = vadd.f32 %v6086_v19, %v8677_v12  ;;  %3930 = vmatpush1.msra.mxu1 %v3399_v50  ;;  %4148 = vmatprep.subr.mxu0 %v10280_v13  ;;  %v3088_v52 = vrot.slane %v8812_v44, 1  ;;  %v3199_v19 = vrot.slane %v8796_v34, 2 }
 0x4b5   : > { %v2902_v37 = vld [vmem:[#allocation2 + $0xda] sm:$0x1]  ;;  %v2774_v60 = vpop.f32.mrf.mxu0  ;;  %3779 = vmatmul.mubr.f32.gmra.mxu0 %v8770_v48  ;;  %3931 = vmatprep.subr.mxu1 %v10280_v13  ;;  %v8827_v56 = vld [vmem:[#allocation2 + $0x70] sm:$0x3]  ;;  %v8831_v7 = vsel %vm672_vm1, %v3195_v42, %v3197_v51 }
 0x4b6   : > { %2920 = vst [vmem:[#allocation2 + $0xd8] sm:$0x1] %v2902_v37  ;;  %2876 = vst [vmem:[#allocation2 + $0x109] sm:$0xff] %v2843_v11  ;;  %v2846_v8 = vmax.f32 %v2780_v1, 0.0  ;;  %v2775_v20 = vadd.f32 %v8677_v12, %v2774_v60  ;;  %3554 = vmatmul.mubr.f32.gmra.mxu1 %v8717_v21  ;;  %3783 = vmatprep.mubr.f32.mxu0 %v8772_v55  ;;  %v3393_v37 = vld [vmem:[#allocation3 + $0x220] sm:$0xff]  ;;  %v3202_v41 = vrot.slane %v8827_v56, 2 }
 0x4b7   : > { %v2939_v6 = vld [vmem:[#allocation2 + $0xff] sm:$0x1]  ;;  %v6089_v22 = vpop.f32.mrf.mxu0  ;;  %3558 = vmatprep.mubr.f32.mxu1 %v8782_v46  ;;  %3932 = vmatpush1.msra.mxu1 %v3398_v18  ;;  %v3200_v18 = vrot.slane %v8812_v44, 2  ;;  %v8873_v51 = vld [vmem:[#allocation2 + $0x90] sm:$0xff] }
 0x4b8   : > { %2957 = vst [vmem:[#allocation2 + $0x101] sm:$0x1] %v2939_v6  ;;  %2879 = vst [vmem:[#allocation2 + $0x129] sm:$0xff] %v2846_v8  ;;  %v2845_v39 = vmax.f32 %v2775_v20, 0.0  ;;  %v2790_v21 = vadd.f32 %v6089_v22, %v8677_v12  ;;  %3933 = vmatprep.subr.mxu1 %v10280_v13  ;;  %4149 = vmatpush1.msra.mxu0 %v3434_v36  ;;  %v8843_v8 = vsel %vm559_vm0, %v3087_v28, %v3088_v52 }
 0x4b9   : > { %v2903_v17 = vld [vmem:[#allocation2 + $0xf2] sm:$0x1]  ;;  %v2784_v30 = vpop.f32.mrf.mxu0  ;;  %3784 = vmatmul.mubr.f32.gmra.mxu0 %v8791_v9  ;;  %3934 = vmatpush1.msra.mxu1 %v3397_v47  ;;  %v3090_v20 = vrot.slane %v8827_v56, 1 }
 0x4ba   : > { %2921 = vst [vmem:[#allocation2 + $0xf0] sm:$0x1] %v2903_v17  ;;  %2878 = vst [vmem:[#allocation2 + $0x121] sm:$0xff] %v2845_v39  ;;  %v2848_v25 = vmax.f32 %v2790_v21, 0.0  ;;  %v2785_v14 = vadd.f32 %v8677_v12, %v2784_v30  ;;  %3559 = vmatmul.mubr.f32.gmra.mxu1 %v8732_v59  ;;  %3788 = vmatprep.mubr.f32.mxu0 %v8796_v34  ;;  %v8810_v59 = vsel %vm672_vm1, %v3194_v4, %v3195_v42  ;;  %v8855_v4 = vld [vmem:[#allocation2 + $0x80] sm:$0xff]  ;;  %v3432_v17 = vld [vmem:[#allocation3 + $0x358] sm:$0xff] }
 0x4bb   : > { %v2940_v35 = vld [vmem:[#allocation2 + $0x117] sm:$0x1]  ;;  %v6092_v40 = vpop.f32.mrf.mxu0  ;;  %3563 = vmatprep.mubr.f32.mxu1 %v8803_v62  ;;  %3935 = vmatprep.subr.mxu1 %v10280_v13 }
 0x4bc   : > { %2958 = vst [vmem:[#allocation2 + $0x119] sm:$0x1] %v2940_v35  ;;  %2881 = vst [vmem:[#allocation2 + $0x141] sm:$0xff] %v2848_v25  ;;  %v2847_v43 = vmax.f32 %v2785_v14, 0.0  ;;  %v2800_v45 = vadd.f32 %v6092_v40, %v8677_v12  ;;  %3936 = vmatpush1.msra.mxu1 %v3396_v54  ;;  %4150 = vmatprep.subr.mxu0 %v10280_v13  ;;  %v8862_v54 = vsel %vm559_vm0, %v3088_v52, %v3090_v20  ;;  %v3391_v14 = vld [vmem:[#allocation3 + $0x210] sm:$0xff] }
 0x4bd   : > { %v2904_v5 = vld [vmem:[#allocation2 + $0x10a] sm:$0x1]  ;;  %v2794_v2 = vpop.f32.mrf.mxu0  ;;  %3789 = vmatmul.mubr.f32.gmra.mxu0 %v8810_v59  ;;  %3937 = vmatprep.subr.mxu1 %v10280_v13  ;;  %v3092_v25 = vrot.slane %v8836_v0, 1  ;;  %v2982_v35 = vld [vmem:[#allocation2 + $0x88] sm:$0x3]  ;;  %v9048_v63 = vld [vmem:[#allocation2 + $0x110] sm:$0xff] }
 0x4be   : > { %2922 = vst [vmem:[#allocation2 + $0x108] sm:$0x1] %v2904_v5  ;;  %2880 = vst [vmem:[#allocation2 + $0x139] sm:$0xff] %v2847_v43  ;;  %v2850_v61 = vmax.f32 %v2800_v45, 0.0  ;;  %v2795_v3 = vadd.f32 %v8677_v12, %v2794_v2  ;;  %3564 = vmatmul.mubr.f32.gmra.mxu1 %v8756_v57  ;;  %3793 = vmatprep.mubr.f32.mxu0 %v8812_v44  ;;  %v3204_v43 = vrot.slane %v8836_v0, 2  ;;  %v3205_v2 = vrot.slane %v8855_v4, 2 }
 0x4bf   : > { %v2941_v38 = vld [vmem:[#allocation2 + $0x12f] sm:$0x1]  ;;  %v6095_v50 = vpop.f32.mrf.mxu0  ;;  %3568 = vmatprep.mubr.f32.mxu1 %v8822_v23  ;;  %3938 = vmatpush1.msra.mxu1 %v3395_v53  ;;  %v3390_v53 = vld [vmem:[#allocation3 + $0x208] sm:$0xff]  ;;  %10353 = vst [vmem:[#allocation35_spill] sm:$0xff] %v9048_v63 }
 0x4c0   : > { %2959 = vst [vmem:[#allocation2 + $0x131] sm:$0x1] %v2941_v38  ;;  %2883 = vst [vmem:[#allocation2 + $0x159] sm:$0xff] %v2850_v61  ;;  %v2849_v57 = vmax.f32 %v2795_v3, 0.0  ;;  %v2810_v29 = vadd.f32 %v6095_v50, %v8677_v12  ;;  %3939 = vmatprep.subr.mxu1 %v10280_v13  ;;  %4151 = vmatpush1.msra.mxu0 %v3433_v58  ;;  %v3095_v58 = vrot.slane %v2982_v35, 1  ;;  %v3389_v38 = vld [vmem:[#allocation3 + $0x200] sm:$0xff] }
 0x4c1   : > { %v2905_v11 = vld [vmem:[#allocation2 + $0x122] sm:$0x1]  ;;  %v2804_v1 = vpop.f32.mrf.mxu0  ;;  %3794 = vmatmul.mubr.f32.gmra.mxu0 %v8831_v7  ;;  %3940 = vmatpush1.msra.mxu1 %v3394_v24  ;;  %v8884_v28 = vsel %vm672_vm1, %v3204_v43, %v3205_v2  ;;  %v3207_v24 = vrot.slane %v2982_v35, 2 }
 0x4c2   : > { %2923 = vst [vmem:[#allocation2 + $0x120] sm:$0x1] %v2905_v11  ;;  %2882 = vst [vmem:[#allocation2 + $0x151] sm:$0xff] %v2849_v57  ;;  %v2852_v60 = vmax.f32 %v2810_v29, 0.0  ;;  %v2805_v36 = vadd.f32 %v8677_v12, %v2804_v1  ;;  %3569 = vmatmul.mubr.f32.gmra.mxu1 %v8772_v55  ;;  %3798 = vmatprep.mubr.f32.mxu0 %v8836_v0  ;;  %v8850_v55 = vsel %vm672_vm1, %v3199_v19, %v3200_v18  ;;  %v3431_v50 = vld [vmem:[#allocation3 + $0x350] sm:$0xff]  ;;  %v8888_v57 = vld [vmem:[#allocation2 + $0x98] sm:$0xff] }
 0x4c3   : > { %v2942_v16 = vld [vmem:[#allocation2 + $0x147] sm:$0x1]  ;;  %v6098_v47 = vpop.f32.mrf.mxu0  ;;  %3573 = vmatprep.mubr.f32.mxu1 %v8843_v8  ;;  %3941 = vmatprep.subr.mxu1 %v10280_v13  ;;  %v3097_v19 = vrot.slane %v8873_v51, 1  ;;  %v3420_v11 = vld [vmem:[#allocation3 + $0x2f8] sm:$0xff] }
 0x4c4   : > { %2960 = vst [vmem:[#allocation2 + $0x149] sm:$0x1] %v2942_v16  ;;  %2885 = vst [vmem:[#allocation2 + $0x171] sm:$0xff] %v2852_v60  ;;  %v2851_v6 = vmax.f32 %v2805_v36, 0.0  ;;  %v2820_v22 = vadd.f32 %v6098_v47, %v8677_v12  ;;  %3942 = vmatpush1.msra.mxu1 %v3393_v37  ;;  %4152 = vmatprep.subr.mxu0 %v10280_v13  ;;  %v8899_v37 = vsel %vm672_vm1, %v3205_v2, %v3207_v24  ;;  %v8905_v16 = vld [vmem:[#allocation2 + $0xa8] sm:$0xff]  ;;  %v3419_v47 = vld [vmem:[#allocation3 + $0x2f0] sm:$0xff] }
 0x4c5   : > { %2892 = vst [vmem:[#allocation2 + $0x1a1] sm:$0xff] %v2852_v60  ;;  %v2906_v39 = vld [vmem:[#allocation2 + $0x13a] sm:$0x1]  ;;  %v2814_v21 = vpop.f32.mrf.mxu0  ;;  %3799 = vmatmul.mubr.f32.gmra.mxu0 %v8850_v55  ;;  %3943 = vmatprep.subr.mxu1 %v10280_v13  ;;  %v3098_v60 = vrot.slane %v8888_v57, 1  ;;  %v3209_v36 = vrot.slane %v8873_v51, 2  ;;  %v8937_v43 = vld [vmem:[#allocation2 + $0xc0] sm:$0xff] }
 0x4c6   : > { %2924 = vst [vmem:[#allocation2 + $0x138] sm:$0x1] %v2906_v39  ;;  %2884 = vst [vmem:[#allocation2 + $0x169] sm:$0xff] %v2851_v6  ;;  %v2854_v30 = vmax.f32 %v2820_v22, 0.0  ;;  %v2815_v42 = vadd.f32 %v8677_v12, %v2814_v21  ;;  %3574 = vmatmul.mubr.f32.gmra.mxu1 %v8796_v34  ;;  %3803 = vmatprep.mubr.f32.mxu0 %v8855_v4  ;;  %v8867_v12 = vsel %vm672_vm1, %v3200_v18, %v3202_v41  ;;  %v2985_v18 = vld [vmem:[#allocation2 + $0xa0] sm:$0x3] }
 0x4c7   : > { %2891 = vst [vmem:[#allocation2 + $0x199] sm:$0xff] %v2851_v6  ;;  %v2943_v15 = vld [vmem:[#allocation2 + $0x15f] sm:$0x1]  ;;  %3578 = vmatprep.mubr.f32.mxu1 %v8862_v54  ;;  %3944 = vmatpush1.msra.mxu1 %v3392_v27  ;;  %v3093_v34 = vrot.slane %v8855_v4, 1  ;;  %v8910_v6 = vsel %vm559_vm0, %v3097_v19, %v3098_v60  ;;  %v3210_v22 = vrot.slane %v8888_v57, 2  ;;  %v3100_v41 = vrot.slane %v2985_v18, 1 }
 0x4c8   : > { %2961 = vst [vmem:[#allocation2 + $0x161] sm:$0x1] %v2943_v15  ;;  %2887 = vst [vmem:[#allocation2 + $0x189] sm:$0xff] %v2854_v30  ;;  %v2853_v40 = vmax.f32 %v2815_v42, 0.0  ;;  %3945 = vmatprep.subr.mxu1 %v10280_v13  ;;  %4153 = vmatpush1.msra.mxu0 %v3432_v17  ;;  %v3212_v39 = vrot.slane %v2985_v18, 2  ;;  %v3418_v21 = vld [vmem:[#allocation3 + $0x2e8] sm:$0xff] }
 0x4c9   : > { %v2907_v45 = vld [vmem:[#allocation2 + $0x152] sm:$0x1]  ;;  %3804 = vmatmul.mubr.f32.gmra.mxu0 %v8867_v12  ;;  %3946 = vmatpush1.msra.mxu1 %v3391_v14  ;;  %v8878_v5 = vsel %vm559_vm0, %v3092_v25, %v3093_v34  ;;  %v8894_v29 = vsel %vm559_vm0, %v3093_v34, %v3095_v58  ;;  %v8916_v27 = vsel %vm672_vm1, %v3209_v36, %v3210_v22  ;;  %v3430_v30 = vld [vmem:[#allocation3 + $0x348] sm:$0xff]  ;;  %v3102_v25 = vrot.slane %v8905_v16, 1  ;;  %v3428_v24 = vld [vmem:[#allocation3 + $0x338] sm:$0xff] }
 0x4ca   : > { %2925 = vst [vmem:[#allocation2 + $0x150] sm:$0x1] %v2907_v45  ;;  %2886 = vst [vmem:[#allocation2 + $0x181] sm:$0xff] %v2853_v40  ;;  %3579 = vmatmul.mubr.f32.gmra.mxu1 %v8812_v44  ;;  %3808 = vmatprep.mubr.f32.mxu0 %v8873_v51  ;;  %v8920_v17 = vld [vmem:[#allocation2 + $0xb0] sm:$0xff]  ;;  %v8926_v42 = vsel %vm559_vm0, %v3098_v60, %v3100_v41  ;;  %v2988_v15 = vld [vmem:[#allocation2 + $0xb8] sm:$0x3]  ;;  %v8931_v35 = vsel %vm672_vm1, %v3210_v22, %v3212_v39 }
 0x4cb   : > { %v2944_v61 = vld [vmem:[#allocation2 + $0x177] sm:$0x1]  ;;  %3583 = vmatprep.mubr.f32.mxu1 %v8878_v5  ;;  %3947 = vmatprep.subr.mxu1 %v10280_v13  ;;  %v3103_v40 = vrot.slane %v8920_v17, 1  ;;  %v3214_v34 = vrot.slane %v8905_v16, 2  ;;  %v3215_v2 = vrot.slane %v8920_v17, 2  ;;  %v3105_v58 = vrot.slane %v2988_v15, 1 }
 0x4cc   : > { %v2946_v3 = vld [vmem:[#allocation2 + $0x1a7] sm:$0x1]  ;;  %2962 = vst [vmem:[#allocation2 + $0x179] sm:$0x1] %v2944_v61  ;;  %3948 = vmatpush1.msra.mxu1 %v3390_v53  ;;  %4154 = vmatprep.subr.mxu0 %v10280_v13  ;;  %v3417_v14 = vld [vmem:[#allocation3 + $0x2e0] sm:$0xff]  ;;  %v3219_v18 = vrot.slane %v8937_v43, 2 }
 0x4cd   : > { %2964 = vst [vmem:[#allocation2 + $0x1a9] sm:$0x1] %v2946_v3  ;;  %v2908_v52 = vld [vmem:[#allocation2 + $0x16a] sm:$0x1]  ;;  %3809 = vmatmul.mubr.f32.gmra.mxu0 %v8884_v28  ;;  %3949 = vmatprep.subr.mxu1 %v10280_v13  ;;  %v3429_v45 = vld [vmem:[#allocation3 + $0x340] sm:$0xff]  ;;  %v8942_v53 = vsel %vm559_vm0, %v3102_v25, %v3103_v40  ;;  %v8948_v61 = vsel %vm672_vm1, %v3214_v34, %v3215_v2  ;;  %v3217_v3 = vrot.slane %v2988_v15, 2 }
 0x4ce   : > { %v2910_v56 = vld [vmem:[#allocation2 + $0x19a] sm:$0x1]  ;;  %2926 = vst [vmem:[#allocation2 + $0x168] sm:$0x1] %v2908_v52  ;;  %3584 = vmatmul.mubr.f32.gmra.mxu1 %v8836_v0  ;;  %3813 = vmatprep.mubr.f32.mxu0 %v8888_v57  ;;  %v8958_v52 = vsel %vm559_vm0, %v3103_v40, %v3105_v58  ;;  %v2991_v19 = vld [vmem:[#allocation2 + $0xd0] sm:$0x3] }
 0x4cf   : > { %2928 = vst [vmem:[#allocation2 + $0x198] sm:$0x1] %v2910_v56  ;;  %v2945_v1 = vld [vmem:[#allocation2 + $0x18f] sm:$0x1]  ;;  %3588 = vmatprep.mubr.f32.mxu1 %v8894_v29  ;;  %3950 = vmatpush1.msra.mxu1 %v3389_v38  ;;  %v3107_v56 = vrot.slane %v8937_v43, 1  ;;  %v3427_v60 = vld [vmem:[#allocation3 + $0x330] sm:$0xff] }
 0x4d0   : > { %2963 = vst [vmem:[#allocation2 + $0x191] sm:$0x1] %v2945_v1  ;;  %3951 = vmatprep.subr.mxu1 %v10280_v13  ;;  %4155 = vmatpush1.msra.mxu0 %v3431_v50  ;;  %v8952_v38 = vld [vmem:[#allocation2 + $0xc8] sm:$0xff]  ;;  %v8969_v36 = vld [vmem:[#allocation2 + $0xd8] sm:$0xff]  ;;  %v3110_v41 = vrot.slane %v2991_v19, 1  ;;  %v8984_v25 = vld [vmem:[#allocation2 + $0xe0] sm:$0xff] }
 0x4d1   : > { %v2909_v20 = vld [vmem:[#allocation2 + $0x182] sm:$0x1]  ;;  %3814 = vmatmul.mubr.f32.gmra.mxu0 %v8899_v37  ;;  %3952 = vmatpush2.msra.mxu1 %v3420_v11  ;;  %v3416_v50 = vld [vmem:[#allocation3 + $0x2d8] sm:$0xff]  ;;  %v8963_v11 = vsel %vm672_vm1, %v3215_v2, %v3217_v3  ;;  %v3108_v1 = vrot.slane %v8952_v38, 1  ;;  %v3220_v22 = vrot.slane %v8952_v38, 2  ;;  %v3112_v40 = vrot.slane %v8969_v36, 1 }
 0x4d2   : > { %2927 = vst [vmem:[#allocation2 + $0x180] sm:$0x1] %v2909_v20  ;;  %3589 = vmatmul.mubr.f32.gmra.mxu1 %v8855_v4  ;;  %3818 = vmatprep.mubr.f32.mxu0 %v8905_v16  ;;  %v3415_v20 = vld [vmem:[#allocation3 + $0x2d0] sm:$0xff]  ;;  %v2994_v34 = vld [vmem:[#allocation2 + $0xe8] sm:$0x3]  ;;  %v3113_v2 = vrot.slane %v8984_v25, 1 }
 0x4d3   : > { %3593 = vmatprep.mubr.f32.mxu1 %v8910_v6  ;;  %3953 = vmatprep.subr.mxu1 %v10280_v13  ;;  %v8980_v39 = vsel %vm672_vm1, %v3219_v18, %v3220_v22  ;;  %v8990_v15 = vsel %vm559_vm0, %v3108_v1, %v3110_v41  ;;  %v3224_v58 = vrot.slane %v8969_v36, 2  ;;  %v3425_v3 = vld [vmem:[#allocation3 + $0x320] sm:$0xff]  ;;  %v3412_v41 = vld [vmem:[#allocation3 + $0x2b8] sm:$0xff] }
 0x4d4   : > { %3954 = vmatpush2.msra.mxu1 %v3419_v47  ;;  %4156 = vmatprep.subr.mxu0 %v10280_v13  ;;  %v8975_v47 = vsel %vm559_vm0, %v3107_v56, %v3108_v1  ;;  %v9007_v56 = vsel %vm559_vm0, %v3112_v40, %v3113_v2  ;;  %v3115_v1 = vrot.slane %v2994_v34, 1 }
 0x4d5   : > { %3819 = vmatmul.mubr.f32.gmra.mxu0 %v8916_v27  ;;  %3955 = vmatprep.subr.mxu1 %v10280_v13 }
 0x4d6   : > { %3594 = vmatmul.mubr.f32.gmra.mxu1 %v8873_v51  ;;  %3823 = vmatprep.mubr.f32.mxu0 %v8920_v17 }
 0x4d7   : > { %3598 = vmatprep.mubr.f32.mxu1 %v8926_v42  ;;  %3956 = vmatpush2.msra.mxu1 %v3418_v21  ;;  %v3222_v21 = vrot.slane %v2991_v19, 2  ;;  %v3225_v19 = vrot.slane %v8984_v25, 2 }
 0x4d8   : > { %3957 = vmatprep.subr.mxu1 %v10280_v13  ;;  %4157 = vmatpush1.msra.mxu0 %v3430_v30  ;;  %v3426_v30 = vld [vmem:[#allocation3 + $0x328] sm:$0xff] }
 0x4d9   : > { %3824 = vmatmul.mubr.f32.gmra.mxu0 %v8931_v35  ;;  %3958 = vmatpush2.msra.mxu1 %v3417_v14  ;;  %v3414_v14 = vld [vmem:[#allocation3 + $0x2c8] sm:$0xff]  ;;  %v9012_v18 = vsel %vm672_vm1, %v3224_v58, %v3225_v19 }
 0x4da   : > { %3599 = vmatmul.mubr.f32.gmra.mxu1 %v8888_v57  ;;  %3828 = vmatprep.mubr.f32.mxu0 %v8937_v43 }
 0x4db   : > { %3603 = vmatprep.mubr.f32.mxu1 %v8942_v53  ;;  %4158 = vmatprep.subr.mxu0 %v10280_v13 }
 0x4dc   : > { %4159 = vmatpush1.msra.mxu0 %v3429_v45  ;;  %3959 = vmatprep.subr.mxu1 %v10280_v13  ;;  %v8995_v45 = vsel %vm672_vm1, %v3220_v22, %v3222_v21  ;;  %v9016_v22 = vld [vmem:[#allocation2 + $0xf8] sm:$0xff]  ;;  %v9022_v21 = vsel %vm559_vm0, %v3113_v2, %v3115_v1  ;;  %v9033_v2 = vld [vmem:[#allocation2 + $0x108] sm:$0xff] }
 0x4dd   : > { %3829 = vmatmul.mubr.f32.gmra.mxu0 %v8948_v61  ;;  %4160 = vmatprep.subr.mxu0 %v10280_v13  ;;  %10349 = vst [vmem:[#allocation30_spill] sm:$0xff] %v9016_v22  ;;  %10351 = vst [vmem:[#allocation36_spill] sm:$0xff] %v9033_v2  ;;  %v3230_v1 = vrot.slane %v9016_v22, 2 }
 0x4de   : > { %3604 = vmatmul.mubr.f32.gmra.mxu1 %v8905_v16  ;;  %3833 = vmatprep.mubr.f32.mxu0 %v8952_v38 }
 0x4df   : > { %3608 = vmatprep.mubr.f32.mxu1 %v8958_v52  ;;  %4161 = vmatpush1.msra.mxu0 %v3428_v24  ;;  %v9001_v24 = vld [vmem:[#allocation2 + $0xf0] sm:$0xff] }
 0x4e0   : > { %3960 = vmatpush2.msra.mxu1 %v3416_v50  ;;  %4162 = vmatprep.subr.mxu0 %v10280_v13  ;;  %10348 = vst [vmem:[#allocation38_spill] sm:$0xff] %v9001_v24  ;;  %v3413_v50 = vld [vmem:[#allocation3 + $0x2c0] sm:$0xff]  ;;  %v3229_v58 = vrot.slane %v9001_v24, 2 }
 0x4e1   : > { %3834 = vmatmul.mubr.f32.gmra.mxu0 %v8963_v11  ;;  %3961 = vmatprep.subr.mxu1 %v10280_v13 }
 0x4e2   : > { %3609 = vmatmul.mubr.f32.gmra.mxu1 %v8920_v17  ;;  %3838 = vmatprep.mubr.f32.mxu0 %v8969_v36 }
 0x4e3   : > { %3613 = vmatprep.mubr.f32.mxu1 %v8975_v47  ;;  %4163 = vmatpush1.msra.mxu0 %v3427_v60  ;;  %v3227_v60 = vrot.slane %v2994_v34, 2  ;;  %v3118_v34 = vrot.slane %v9016_v22, 1 }
 0x4e4   : > { %4164 = vmatprep.subr.mxu0 %v10280_v13  ;;  %3962 = vmatpush2.msra.mxu1 %v3415_v20  ;;  %v3424_v20 = vld [vmem:[#allocation3 + $0x318] sm:$0xff] }
 0x4e5   : > { %3839 = vmatmul.mubr.f32.gmra.mxu0 %v8980_v39  ;;  %3963 = vmatprep.subr.mxu1 %v10280_v13  ;;  %v9027_v40 = vsel %vm672_vm1, %v3225_v19, %v3227_v60 }
 0x4e6   : > { %3614 = vmatmul.mubr.f32.gmra.mxu1 %v8937_v43  ;;  %3843 = vmatprep.mubr.f32.mxu0 %v8984_v25  ;;  %10350 = vst [vmem:[#allocation40_spill] sm:$0xff] %v9027_v40 }
 0x4e7   : > { %3618 = vmatprep.mubr.f32.mxu1 %v8990_v15  ;;  %4165 = vmatpush1.msra.mxu0 %v3426_v30  ;;  %v3117_v30 = vrot.slane %v9001_v24, 1 }
 0x4e8   : > { %4166 = vmatprep.subr.mxu0 %v10280_v13  ;;  %3964 = vmatpush2.msra.mxu1 %v3414_v14  ;;  %v2997_v14 = vld [vmem:[#allocation2 + $0x100] sm:$0x3] }
 0x4e9   : > { %3844 = vmatmul.mubr.f32.gmra.mxu0 %v8995_v45  ;;  %3965 = vmatprep.subr.mxu1 %v10280_v13  ;;  %v9039_v19 = vsel %vm559_vm0, %v3117_v30, %v3118_v34  ;;  %v3120_v60 = vrot.slane %v2997_v14, 1  ;;  %v3410_v30 = vld [vmem:[#allocation3 + $0x2a8] sm:$0xff] }
 0x4ea   : > { %3619 = vmatmul.mubr.f32.gmra.mxu1 %v8952_v38  ;;  %3848 = vmatprep.mubr.f32.mxu0 %v9001_v24 }
 0x4eb   : > { %3623 = vmatprep.mubr.f32.mxu1 %v9007_v56  ;;  %4167 = vmatpush1.msra.mxu0 %v3425_v3  ;;  %v3423_v3 = vld [vmem:[#allocation3 + $0x310] sm:$0xff] }
 0x4ec   : > { %4168 = vmatprep.subr.mxu0 %v10280_v13  ;;  %3966 = vmatpush2.msra.mxu1 %v3413_v50  ;;  %v3411_v50 = vld [vmem:[#allocation3 + $0x2b0] sm:$0xff] }
 0x4ed   : > { %3849 = vmatmul.mubr.f32.gmra.mxu0 %v9012_v18  ;;  %3967 = vmatprep.subr.mxu1 %v10280_v13 }
 0x4ee   : > { %3624 = vmatmul.mubr.f32.gmra.mxu1 %v8969_v36  ;;  %3853 = vmatprep.mubr.f32.mxu0 %v9016_v22 }
 0x4ef   : > { %3628 = vmatprep.mubr.f32.mxu1 %v9022_v21  ;;  %4169 = vmatpush1.msra.mxu0 %v3424_v20  ;;  %v9044_v20 = vsel %vm672_vm1, %v3229_v58, %v3230_v1  ;;  %v3000_v58 = vld [vmem:[#allocation2 + $0x118] sm:$0x3] }
 0x4f0   : > { %4170 = vmatprep.subr.mxu0 %v10280_v13  ;;  %3968 = vmatpush2.msra.mxu1 %v3412_v41  ;;  %10352 = vst [vmem:[#allocation44_spill] sm:$0xff] %v9044_v20  ;;  %v3232_v41 = vrot.slane %v2997_v14, 2  ;;  %v3122_v14 = vrot.slane %v9033_v2, 1 }
 0x4f1   : > { %3854 = vmatmul.mubr.f32.gmra.mxu0 %v9027_v40  ;;  %3969 = vmatprep.subr.mxu1 %v10280_v13  ;;  %v3234_v40 = vrot.slane %v9033_v2, 2 }
 0x4f2   : > { %3629 = vmatmul.mubr.f32.gmra.mxu1 %v8984_v25  ;;  %3858 = vmatprep.mubr.f32.mxu0 %v9033_v2 }
 0x4f3   : > { %3633 = vmatprep.mubr.f32.mxu1 %v9039_v19  ;;  %4171 = vmatpush1.msra.mxu0 %v3423_v3  ;;  %v9054_v3 = vsel %vm559_vm0, %v3118_v34, %v3120_v60  ;;  %v9065_v34 = vld [vmem:[#allocation2 + $0x120] sm:$0xff]  ;;  %v3409_v60 = vld [vmem:[#allocation3 + $0x2a0] sm:$0xff] }
 0x4f4   : > { %4172 = vmatprep.subr.mxu0 %v10280_v13  ;;  %3970 = vmatpush2.msra.mxu1 %v3411_v50  ;;  %10354 = vst [vmem:[#allocation46_spill] sm:$0xff] %v9054_v3  ;;  %v9059_v50 = vsel %vm672_vm1, %v3230_v1, %v3232_v41  ;;  %10356 = vst [vmem:[#allocation50_spill] sm:$0xff] %v9065_v34  ;;  %v3235_v1 = vrot.slane %v9048_v63, 2  ;;  %v3125_v41 = vrot.slane %v3000_v58, 1 }
 0x4f5   : > { %3859 = vmatmul.mubr.f32.gmra.mxu0 %v9044_v20  ;;  %3971 = vmatprep.subr.mxu1 %v10280_v13  ;;  %10355 = vst [vmem:[#allocation42_spill] sm:$0xff] %v9059_v50  ;;  %v3123_v20 = vrot.slane %v9048_v63, 1 }
 0x4f6   : > { %3634 = vmatmul.mubr.f32.gmra.mxu1 %v9001_v24  ;;  %3863 = vmatprep.mubr.f32.mxu0 %v9048_v63  ;;  %v3421_v24 = vld [vmem:[#allocation3 + $0x300] sm:$0xff] }
 0x4f7   : > { %3638 = vmatprep.mubr.f32.mxu1 %v9054_v3  ;;  %4173 = vmatpush1.msra.mxu0 %v3422_v26  ;;  %v9071_v26 = vsel %vm559_vm0, %v3122_v14, %v3123_v20  ;;  %v3452_v3 = vld [vmem:[#allocation3 + $0x3f8] sm:$0xff] }
 0x4f8   : > { %4174 = vmatprep.subr.mxu0 %v10280_v13  ;;  %3972 = vmatpush2.msra.mxu1 %v3410_v30  ;;  %10357 = vst [vmem:[#allocation41_spill] sm:$0xff] %v9071_v26  ;;  %v9076_v30 = vsel %vm672_vm1, %v3234_v40, %v3235_v1  ;;  %v3408_v14 = vld [vmem:[#allocation3 + $0x298] sm:$0xff]  ;;  %v3127_v40 = vrot.slane %v9065_v34, 1 }
 0x4f9   : > { %3864 = vmatmul.mubr.f32.gmra.mxu0 %v9059_v50  ;;  %3973 = vmatprep.subr.mxu1 %v10280_v13  ;;  %10358 = vst [vmem:[#allocation52_spill] sm:$0xff] %v9076_v30  ;;  %v3237_v50 = vrot.slane %v3000_v58, 2  ;;  %v3003_v58 = vld [vmem:[#allocation2 + $0x130] sm:$0x3] }
 0x4fa   : > { %3639 = vmatmul.mubr.f32.gmra.mxu1 %v9016_v22  ;;  %3868 = vmatprep.mubr.f32.mxu0 %v9065_v34  ;;  %v9080_v22 = vld [vmem:[#allocation2 + $0x128] sm:$0xff] }
 0x4fb   : > { %3643 = vmatprep.mubr.f32.mxu1 %v9071_v26  ;;  %4175 = vmatpush1.msra.mxu0 %v3421_v24  ;;  %10359 = vst [vmem:[#allocation48_spill] sm:$0xff] %v9080_v22  ;;  %v9086_v24 = vsel %vm559_vm0, %v3123_v20, %v3125_v41  ;;  %v3239_v26 = vrot.slane %v9065_v34, 2  ;;  %v9097_v20 = vld [vmem:[#allocation2 + $0x138] sm:$0xff]  ;;  %v3407_v41 = vld [vmem:[#allocation3 + $0x290] sm:$0xff] }
 0x4fc   : > { %4176 = vmatprep.subr.mxu0 %v10280_v13  ;;  %3974 = vmatpush2.msra.mxu1 %v3409_v60  ;;  %10360 = vst [vmem:[#allocation56_spill] sm:$0xff] %v9086_v24  ;;  %v9091_v60 = vsel %vm672_vm1, %v3235_v1, %v3237_v50  ;;  %10362 = vst [vmem:[#allocation58_spill] sm:$0xff] %v9097_v20  ;;  %v3240_v50 = vrot.slane %v9080_v22, 2  ;;  %v3130_v1 = vrot.slane %v3003_v58, 1 }
 0x4fd   : > { %3869 = vmatmul.mubr.f32.gmra.mxu0 %v9076_v30  ;;  %3975 = vmatprep.subr.mxu1 %v10280_v13  ;;  %10361 = vst [vmem:[#allocation47_spill] sm:$0xff] %v9091_v60  ;;  %v3128_v30 = vrot.slane %v9080_v22, 1 }
 0x4fe   : > { %3644 = vmatmul.mubr.f32.gmra.mxu1 %v9033_v2  ;;  %3873 = vmatprep.mubr.f32.mxu0 %v9080_v22  ;;  %v3451_v2 = vld [vmem:[#allocation3 + $0x3f0] sm:$0xff] }
 0x4ff   : > { %3648 = vmatprep.mubr.f32.mxu1 %v9086_v24  ;;  %4177 = vmatpush2.msra.mxu0 %v3452_v3  ;;  %v9103_v3 = vsel %vm559_vm0, %v3127_v40, %v3128_v30  ;;  %v3450_v24 = vld [vmem:[#allocation3 + $0x3e8] sm:$0xff] }
 0x500   : > { %4178 = vmatprep.subr.mxu0 %v10280_v13  ;;  %3976 = vmatpush2.msra.mxu1 %v3408_v14  ;;  %10363 = vst [vmem:[#allocation54_spill] sm:$0xff] %v9103_v3  ;;  %v9108_v14 = vsel %vm672_vm1, %v3239_v26, %v3240_v50  ;;  %v3406_v40 = vld [vmem:[#allocation3 + $0x288] sm:$0xff]  ;;  %v3132_v26 = vrot.slane %v9097_v20, 1 }
 0x501   : > { %3874 = vmatmul.mubr.f32.gmra.mxu0 %v9091_v60  ;;  %3977 = vmatprep.subr.mxu1 %v10280_v13  ;;  %10364 = vst [vmem:[#allocation62_spill] sm:$0xff] %v9108_v14  ;;  %v3242_v60 = vrot.slane %v3003_v58, 2  ;;  %v3006_v58 = vld [vmem:[#allocation2 + $0x148] sm:$0x3] }
 0x502   : > { %3649 = vmatmul.mubr.f32.gmra.mxu1 %v9048_v63  ;;  %3878 = vmatprep.mubr.f32.mxu0 %v9097_v20  ;;  %v9112_v63 = vld [vmem:[#allocation2 + $0x140] sm:$0xff] }
 0x503   : > { %3653 = vmatprep.mubr.f32.mxu1 %v9103_v3  ;;  %4179 = vmatpush2.msra.mxu0 %v3451_v2  ;;  %10365 = vst [vmem:[#allocation53_spill] sm:$0xff] %v9112_v63  ;;  %v9118_v2 = vsel %vm559_vm0, %v3128_v30, %v3130_v1  ;;  %v3449_v3 = vld [vmem:[#allocation3 + $0x3e0] sm:$0xff] }
 0x504   : > { %4180 = vmatprep.subr.mxu0 %v10280_v13  ;;  %3978 = vmatpush2.msra.mxu1 %v3407_v41  ;;  %10366 = vst [vmem:[#allocation64_spill] sm:$0xff] %v9118_v2  ;;  %v9123_v41 = vsel %vm672_vm1, %v3240_v50, %v3242_v60  ;;  %v9129_v30 = vld [vmem:[#allocation2 + $0x150] sm:$0xff]  ;;  %v3245_v60 = vrot.slane %v9112_v63, 2  ;;  %v3135_v50 = vrot.slane %v3006_v58, 1 }
 0x505   : > { %3879 = vmatmul.mubr.f32.gmra.mxu0 %v9108_v14  ;;  %3979 = vmatprep.subr.mxu1 %v10280_v13  ;;  %10367 = vst [vmem:[#allocation60_spill] sm:$0xff] %v9123_v41  ;;  %v3133_v14 = vrot.slane %v9112_v63, 1  ;;  %10368 = vst [vmem:[#allocation66_spill] sm:$0xff] %v9129_v30  ;;  %v3405_v1 = vld [vmem:[#allocation3 + $0x280] sm:$0xff] }
 0x506   : > { %3654 = vmatmul.mubr.f32.gmra.mxu1 %v9065_v34  ;;  %3883 = vmatprep.mubr.f32.mxu0 %v9112_v63  ;;  %v3244_v34 = vrot.slane %v9097_v20, 2 }
 0x507   : > { %3658 = vmatprep.mubr.f32.mxu1 %v9118_v2  ;;  %4181 = vmatpush2.msra.mxu0 %v3450_v24  ;;  %v9135_v24 = vsel %vm559_vm0, %v3132_v26, %v3133_v14  ;;  %v9138_v2 = vld [vmem:[#allocation3 + $0x478] sm:$0xff]  ;;  %v3247_v26 = vrot.slane %v3006_v58, 2 }
 0x508   : > { %4182 = vmatprep.subr.mxu0 %v10280_v13  ;;  %3980 = vmatpush2.msra.mxu1 %v3406_v40  ;;  %10369 = vst [vmem:[#allocation59_spill] sm:$0xff] %v9135_v24  ;;  %v9142_v40 = vsel %vm672_vm1, %v3244_v34, %v3245_v60  ;;  %v3447_v34 = vld [vmem:[#allocation3 + $0x3d0] sm:$0xff] }
 0x509   : > { %3884 = vmatmul.mubr.f32.gmra.mxu0 %v9123_v41  ;;  %3981 = vmatprep.subr.mxu1 %v10280_v13  ;;  %10370 = vst [vmem:[#allocation68_spill] sm:$0xff] %v9142_v40  ;;  %v3448_v41 = vld [vmem:[#allocation3 + $0x3d8] sm:$0xff]  ;;  %v9158_v58 = vsel %vm672_vm1, %v3245_v60, %v3247_v26  ;;  %v3445_v60 = vld [vmem:[#allocation3 + $0x3c0] sm:$0xff] }
 0x50a   : > { %3659 = vmatmul.mubr.f32.gmra.mxu1 %v9080_v22  ;;  %3888 = vmatprep.mubr.f32.mxu0 %v9129_v30  ;;  %v9146_v22 = vld [vmem:[#allocation2 + $0x158] sm:$0xff]  ;;  %10372 = vst [vmem:[#allocation71_spill] sm:$0xff] %v9158_v58 }
 0x50b   : > { %3663 = vmatprep.mubr.f32.mxu1 %v9135_v24  ;;  %4183 = vmatpush2.msra.mxu0 %v3449_v3  ;;  %v9152_v3 = vsel %vm559_vm0, %v3133_v14, %v3135_v50  ;;  %v3009_v24 = vld [vmem:[#allocation2 + $0x160] sm:$0x3]  ;;  %v9163_v14 = vld [vmem:[#allocation2 + $0x168] sm:$0xff]  ;;  %v3250_v26 = vrot.slane %v9146_v22, 2 }
 0x50c   : > { %4184 = vmatprep.subr.mxu0 %v10280_v13  ;;  %3982 = vmatpush2.msra.mxu1 %v3405_v1  ;;  %10371 = vst [vmem:[#allocation70_spill] sm:$0xff] %v9152_v3  ;;  %v3137_v1 = vrot.slane %v9129_v30, 1 }
 0x50d   : > { %3889 = vmatmul.mubr.f32.gmra.mxu0 %v9142_v40  ;;  %6099 = vmatprep.subr.mxu1 %v9138_v2  ;;  %v3446_v40 = vld [vmem:[#allocation3 + $0x3c8] sm:$0xff] }
 0x50e   : > { %3664 = vmatmul.mubr.f32.gmra.mxu1 %v9097_v20  ;;  %3893 = vmatprep.mubr.f32.mxu0 %v9146_v22  ;;  %v3138_v20 = vrot.slane %v9146_v22, 1 }
 0x50f   : > { %4185 = vmatpush2.msra.mxu0 %v3448_v41  ;;  %3668 = vmatprep.mubr.f32.mxu1 %v9152_v3  ;;  %v3249_v41 = vrot.slane %v9129_v30, 2  ;;  %v3444_v3 = vld [vmem:[#allocation3 + $0x3b8] sm:$0xff] }
 0x510   : > { %4186 = vmatprep.subr.mxu0 %v10280_v13  ;;  %v9169_v50 = vsel %vm559_vm0, %v3137_v1, %v3138_v20  ;;  %v9179_v1 = vld [vmem:[#allocation2 + $0x170] sm:$0xff] }
 0x511   : > { %4187 = vmatpush2.msra.mxu0 %v3447_v34  ;;  %10373 = vst [vmem:[#allocation72_spill] sm:$0xff] %v9169_v50  ;;  %v3140_v34 = vrot.slane %v3009_v24, 1 }
 0x512   : > { %3894 = vmatmul.mubr.f32.gmra.mxu0 %v9158_v58  ;;  %4188 = vmatprep.subr.mxu0 %v10280_v13  ;;  %v9175_v58 = vsel %vm672_vm1, %v3249_v41, %v3250_v26  ;;  %v3142_v41 = vrot.slane %v9163_v14, 1 }
 0x513   : > { %3669 = vmatmul.mubr.f32.gmra.mxu1 %v9112_v63  ;;  %3898 = vmatprep.mubr.f32.mxu0 %v9163_v14  ;;  %10374 = vst [vmem:[#allocation73_spill] sm:$0xff] %v9175_v58  ;;  %v3252_v63 = vrot.slane %v3009_v24, 2  ;;  %v3442_v24 = vld [vmem:[#allocation3 + $0x3a8] sm:$0xff] }
 0x514   : > { %4189 = vmatpush2.msra.mxu0 %v3446_v40  ;;  %3673 = vmatprep.mubr.f32.mxu1 %v9169_v50  ;;  %v9184_v40 = vsel %vm559_vm0, %v3138_v20, %v3140_v34  ;;  %v3443_v50 = vld [vmem:[#allocation3 + $0x3b0] sm:$0xff] }
 0x515   : > { %4190 = vmatprep.subr.mxu0 %v10280_v13  ;;  %10375 = vst [vmem:[#allocation74_spill] sm:$0xff] %v9184_v40  ;;  %v9195_v20 = vld [vmem:[#allocation2 + $0x180] sm:$0xff] }
 0x516   : > { %4191 = vmatpush2.msra.mxu0 %v3445_v60  ;;  %v9190_v60 = vsel %vm672_vm1, %v3250_v26, %v3252_v63  ;;  %10377 = vst [vmem:[#allocation76_spill] sm:$0xff] %v9195_v20  ;;  %v3441_v63 = vld [vmem:[#allocation3 + $0x3a0] sm:$0xff]  ;;  %v3255_v26 = vrot.slane %v9179_v1, 2 }
 0x517   : > { %3899 = vmatmul.mubr.f32.gmra.mxu0 %v9175_v58  ;;  %4192 = vmatprep.subr.mxu0 %v10280_v13  ;;  %10376 = vst [vmem:[#allocation75_spill] sm:$0xff] %v9190_v60  ;;  %v3143_v58 = vrot.slane %v9179_v1, 1 }
 0x518   : > { %3674 = vmatmul.mubr.f32.gmra.mxu1 %v9129_v30  ;;  %3903 = vmatprep.mubr.f32.mxu0 %v9179_v1  ;;  %v3012_v30 = vld [vmem:[#allocation2 + $0x178] sm:$0x3] }
 0x519   : > { %4193 = vmatpush2.msra.mxu0 %v3444_v3  ;;  %3678 = vmatprep.mubr.f32.mxu1 %v9184_v40  ;;  %v3254_v3 = vrot.slane %v9163_v14, 2  ;;  %v3145_v34 = vrot.slane %v3012_v30, 1  ;;  %v3440_v40 = vld [vmem:[#allocation3 + $0x398] sm:$0xff] }
 0x51a   : > { %4194 = vmatprep.subr.mxu0 %v10280_v13 }
 0x51b   : > { %4195 = vmatpush2.msra.mxu0 %v3443_v50  ;;  %v9201_v50 = vsel %vm559_vm0, %v3142_v41, %v3143_v58  ;;  %v9211_v41 = vld [vmem:[#allocation2 + $0x188] sm:$0xff] }
 0x51c   : > { %3904 = vmatmul.mubr.f32.gmra.mxu0 %v9190_v60  ;;  %4196 = vmatprep.subr.mxu0 %v10280_v13  ;;  %10378 = vst [vmem:[#allocation77_spill] sm:$0xff] %v9201_v50  ;;  %v9207_v60 = vsel %vm672_vm1, %v3254_v3, %v3255_v26  ;;  %v3438_v3 = vld [vmem:[#allocation3 + $0x388] sm:$0xff] }
 0x51d   : > { %3679 = vmatmul.mubr.f32.gmra.mxu1 %v9146_v22  ;;  %3908 = vmatprep.mubr.f32.mxu0 %v9195_v20  ;;  %v3257_v20 = vrot.slane %v3012_v30, 2  ;;  %v3437_v30 = vld [vmem:[#allocation3 + $0x380] sm:$0xff] }
 0x51e   : > { %4197 = vmatpush2.msra.mxu0 %v3442_v24  ;;  %3683 = vmatprep.mubr.f32.mxu1 %v9201_v50  ;;  %v9216_v24 = vsel %vm559_vm0, %v3143_v58, %v3145_v34  ;;  %v3439_v50 = vld [vmem:[#allocation3 + $0x390] sm:$0xff]  ;;  %v6420_v58 = vld [vmem:[#allocation2 + $0x30] sm:$0xff] }
 0x51f   : > { %4198 = vmatprep.subr.mxu0 %v10280_v13 }
 0x520   : > { %4199 = vmatpush2.msra.mxu0 %v3441_v63  ;;  %v9221_v63 = vsel %vm672_vm1, %v3255_v26, %v3257_v20  ;;  %v6421_v20 = vld [vmem:[#allocation2 + $0x38] sm:$0xff]  ;;  %v10382_v26 = vld [vmem:[#allocation30_spill] sm:$0xff] }
 0x521   : > { %3909 = vmatmul.mubr.f32.gmra.mxu0 %v9207_v60  ;;  %4200 = vmatprep.subr.mxu0 %v10280_v13 }
 0x522   : > { %3684 = vmatmul.mubr.f32.gmra.mxu1 %v9163_v14  ;;  %3913 = vmatprep.mubr.f32.mxu0 %v9211_v41 }
 0x523   : > { %4201 = vmatpush2.msra.mxu0 %v3440_v40  ;;  %3688 = vmatprep.mubr.f32.mxu1 %v9216_v24  ;;  %v3467_v40 = vld [vmem:[#allocation3 + $0x470] sm:$0xff] }
 0x524   : > { %4202 = vmatprep.subr.mxu0 %v10280_v13 }
 0x525   : > { %4203 = vmatpush2.msra.mxu0 %v3439_v50 }
 0x526   : > { %3914 = vmatmul.mubr.f32.gmra.mxu0 %v9221_v63  ;;  %4204 = vmatprep.subr.mxu0 %v10280_v13 }
 0x527   : > { %3689 = vmatmul.mubr.f32.gmra.mxu1 %v9179_v1  ;;  %4205 = vmatpush2.msra.mxu0 %v3438_v3 }
 0x528   : > { %4208 = vmatprep.mubr.f32.mxu0 %v8763_v31  ;;  %3983 = vmatprep.mubr.f32.mxu1 %v8730_v49  ;;  %v3466_v49 = vld [vmem:[#allocation3 + $0x468] sm:$0xff] }
 0x529   : > { %4206 = vmatprep.subr.mxu0 %v10280_v13  ;;  %v6422_v13 = vld [vmem:[#allocation2 + $0x48] sm:$0xff] }
 0x52a   : > { %4207 = vmatpush2.msra.mxu0 %v3437_v30  ;;  %v10383_v30 = vld [vmem:[#allocation41_spill] sm:$0xff] }
 0x52b   : > { %4209 = vmatmul.mubr.f32.vlgmr.msra.gmra.mxu0 %v6420_v58  ;;  %3984 = vmatmul.mubr.f32.vlgmr.msra.gmra.mxu1 %v8723_v10  ;;  %v3465_v10 = vld [vmem:[#allocation3 + $0x460] sm:$0xff] }
 0x52c   : > { %4213 = vmatprep.mubr.f32.mxu0 %v8782_v46  ;;  %3988 = vmatprep.mubr.f32.mxu1 %v8751_v32  ;;  %v6423_v32 = vld [vmem:[#allocation2 + $0x50] sm:$0xff] }
 0x52d   : > { %6100 = vmatpush3.msra.mxu1 %v9138_v2  ;;  %v6424_v2 = vld [vmem:[#allocation2 + $0x60] sm:$0xff] }
 0x52e   : > { %6101 = vmatprep.subr.mxu1 %v3467_v40 }
 0x52f   : > { %4214 = vmatmul.mubr.f32.gmra.mxu0 %v6421_v20  ;;  %3989 = vmatmul.mubr.f32.gmra.mxu1 %v8742_v33  ;;  %v3464_v33 = vld [vmem:[#allocation3 + $0x458] sm:$0xff] }
 0x530   : > { %4218 = vmatprep.mubr.f32.mxu0 %v8803_v62  ;;  %3993 = vmatprep.mubr.f32.mxu1 %v8770_v48 }
 0x531   : > { %6102 = vmatpush3.msra.mxu1 %v3467_v40 }
 0x532   : > { %6103 = vmatprep.subr.mxu1 %v3466_v49 }
 0x533   : > { %4219 = vmatmul.mubr.f32.gmra.mxu0 %v6422_v13  ;;  %3994 = vmatmul.mubr.f32.gmra.mxu1 %v8763_v31  ;;  %v3463_v31 = vld [vmem:[#allocation3 + $0x450] sm:$0xff] }
 0x534   : > { %4223 = vmatprep.mubr.f32.mxu0 %v8822_v23  ;;  %3998 = vmatprep.mubr.f32.mxu1 %v8791_v9 }
 0x535   : > { %6104 = vmatpush3.msra.mxu1 %v3466_v49  ;;  %v10385_v49 = vld [vmem:[#allocation36_spill] sm:$0xff] }
 0x536   : > { %6105 = vmatprep.subr.mxu1 %v3465_v10 }
 0x537   : > { %4224 = vmatmul.mubr.f32.gmra.mxu0 %v6423_v32  ;;  %3999 = vmatmul.mubr.f32.gmra.mxu1 %v8782_v46  ;;  %v3462_v46 = vld [vmem:[#allocation3 + $0x448] sm:$0xff] }
 0x538   : > { %4228 = vmatprep.mubr.f32.mxu0 %v8843_v8  ;;  %4003 = vmatprep.mubr.f32.mxu1 %v8810_v59  ;;  %v10386_v32 = vld [vmem:[#allocation56_spill] sm:$0xff] }
 0x539   : > { %6106 = vmatpush3.msra.mxu1 %v3465_v10 }
 0x53a   : > { %6107 = vmatprep.subr.mxu1 %v3464_v33 }
 0x53b   : > { %4229 = vmatmul.mubr.f32.gmra.mxu0 %v6424_v2  ;;  %4004 = vmatmul.mubr.f32.gmra.mxu1 %v8803_v62  ;;  %v3461_v62 = vld [vmem:[#allocation3 + $0x440] sm:$0xff] }
 0x53c   : > { %4233 = vmatprep.mubr.f32.mxu0 %v8862_v54  ;;  %4008 = vmatprep.mubr.f32.mxu1 %v8831_v7 }
 0x53d   : > { %6108 = vmatpush3.msra.mxu1 %v3464_v33 }
 0x53e   : > { %6109 = vmatprep.subr.mxu1 %v3463_v31 }
 0x53f   : > { %4234 = vmatmul.mubr.f32.gmra.mxu0 %v8812_v44  ;;  %4009 = vmatmul.mubr.f32.gmra.mxu1 %v8822_v23  ;;  %v3460_v44 = vld [vmem:[#allocation3 + $0x438] sm:$0xff]  ;;  %v3459_v23 = vld [vmem:[#allocation3 + $0x430] sm:$0xff] }
 0x540   : > { %4238 = vmatprep.mubr.f32.mxu0 %v8878_v5  ;;  %4013 = vmatprep.mubr.f32.mxu1 %v8850_v55 }
 0x541   : > { %6110 = vmatpush3.msra.mxu1 %v3463_v31 }
 0x542   : > { %6111 = vmatprep.subr.mxu1 %v3462_v46 }
 0x543   : > { %4239 = vmatmul.mubr.f32.gmra.mxu0 %v8836_v0  ;;  %4014 = vmatmul.mubr.f32.gmra.mxu1 %v8843_v8  ;;  %v3458_v0 = vld [vmem:[#allocation3 + $0x428] sm:$0xff]  ;;  %v3457_v8 = vld [vmem:[#allocation3 + $0x420] sm:$0xff] }
 0x544   : > { %4243 = vmatprep.mubr.f32.mxu0 %v8894_v29  ;;  %4018 = vmatprep.mubr.f32.mxu1 %v8867_v12 }
 0x545   : > { %6112 = vmatpush3.msra.mxu1 %v3462_v46  ;;  %v10388_v46 = vld [vmem:[#allocation35_spill] sm:$0xff] }
 0x546   : > { %6113 = vmatprep.subr.mxu1 %v3461_v62 }
 0x547   : > { %4244 = vmatmul.mubr.f32.gmra.mxu0 %v8855_v4  ;;  %4019 = vmatmul.mubr.f32.gmra.mxu1 %v8862_v54  ;;  %v3456_v4 = vld [vmem:[#allocation3 + $0x418] sm:$0xff]  ;;  %v3455_v54 = vld [vmem:[#allocation3 + $0x410] sm:$0xff] }
 0x548   : > { %4248 = vmatprep.mubr.f32.mxu0 %v8910_v6  ;;  %4023 = vmatprep.mubr.f32.mxu1 %v8884_v28 }
 0x549   : > { %6114 = vmatpush3.msra.mxu1 %v3461_v62 }
 0x54a   : > { %6115 = vmatprep.subr.mxu1 %v3460_v44 }
 0x54b   : > { %4249 = vmatmul.mubr.f32.gmra.mxu0 %v8873_v51  ;;  %4024 = vmatmul.mubr.f32.gmra.mxu1 %v8878_v5  ;;  %v3454_v51 = vld [vmem:[#allocation3 + $0x408] sm:$0xff]  ;;  %v3453_v5 = vld [vmem:[#allocation3 + $0x400] sm:$0xff] }
 0x54c   : > { %4253 = vmatprep.mubr.f32.mxu0 %v8926_v42  ;;  %4028 = vmatprep.mubr.f32.mxu1 %v8899_v37 }
 0x54d   : > { %6116 = vmatpush3.msra.mxu1 %v3460_v44 }
 0x54e   : > { %6117 = vmatprep.subr.mxu1 %v3459_v23 }
 0x54f   : > { %4254 = vmatmul.mubr.f32.gmra.mxu0 %v8888_v57  ;;  %4029 = vmatmul.mubr.f32.gmra.mxu1 %v8894_v29 }
 0x550   : > { %4258 = vmatprep.mubr.f32.mxu0 %v8942_v53  ;;  %4033 = vmatprep.mubr.f32.mxu1 %v8916_v27 }
 0x551   : > { %6118 = vmatpush3.msra.mxu1 %v3459_v23  ;;  %v10389_v23 = vld [vmem:[#allocation54_spill] sm:$0xff] }
 0x552   : > { %6119 = vmatprep.subr.mxu1 %v3458_v0 }
 0x553   : > { %4259 = vmatmul.mubr.f32.gmra.mxu0 %v8905_v16  ;;  %4034 = vmatmul.mubr.f32.gmra.mxu1 %v8910_v6 }
 0x554   : > { %4263 = vmatprep.mubr.f32.mxu0 %v8958_v52  ;;  %4038 = vmatprep.mubr.f32.mxu1 %v8931_v35 }
 0x555   : > { %6120 = vmatpush3.msra.mxu1 %v3458_v0 }
 0x556   : > { %6121 = vmatprep.subr.mxu1 %v3457_v8 }
 0x557   : > { %4264 = vmatmul.mubr.f32.gmra.mxu0 %v8920_v17  ;;  %4039 = vmatmul.mubr.f32.gmra.mxu1 %v8926_v42 }
 0x558   : > { %4268 = vmatprep.mubr.f32.mxu0 %v8975_v47  ;;  %4043 = vmatprep.mubr.f32.mxu1 %v8948_v61 }
 0x559   : > { %6122 = vmatpush3.msra.mxu1 %v3457_v8 }
 0x55a   : > { %6123 = vmatprep.subr.mxu1 %v3456_v4 }
 0x55b   : > { %4269 = vmatmul.mubr.f32.gmra.mxu0 %v8937_v43  ;;  %4044 = vmatmul.mubr.f32.gmra.mxu1 %v8942_v53  ;;  %v10379_v53 = vld [vmem:[#allocation38_spill] sm:$0xff] }
 0x55c   : > { %4273 = vmatprep.mubr.f32.mxu0 %v8990_v15  ;;  %4048 = vmatprep.mubr.f32.mxu1 %v8963_v11 }
 0x55d   : > { %6124 = vmatpush3.msra.mxu1 %v3456_v4 }
 0x55e   : > { %6125 = vmatprep.subr.mxu1 %v3455_v54 }
 0x55f   : > { %4274 = vmatmul.mubr.f32.gmra.mxu0 %v8952_v38  ;;  %4049 = vmatmul.mubr.f32.gmra.mxu1 %v8958_v52 }
 0x560   : > { %4278 = vmatprep.mubr.f32.mxu0 %v9007_v56  ;;  %4053 = vmatprep.mubr.f32.mxu1 %v8980_v39 }
 0x561   : > { %6126 = vmatpush3.msra.mxu1 %v3455_v54  ;;  %v10391_v54 = vld [vmem:[#allocation50_spill] sm:$0xff] }
 0x562   : > { %6127 = vmatprep.subr.mxu1 %v3454_v51 }
 0x563   : > { %4279 = vmatmul.mubr.f32.gmra.mxu0 %v8969_v36  ;;  %4054 = vmatmul.mubr.f32.gmra.mxu1 %v8975_v47  ;;  %v10380_v36 = vld [vmem:[#allocation46_spill] sm:$0xff]  ;;  %v10381_v47 = vld [vmem:[#allocation40_spill] sm:$0xff] }
 0x564   : > { %4283 = vmatprep.mubr.f32.mxu0 %v9022_v21  ;;  %4058 = vmatprep.mubr.f32.mxu1 %v8995_v45 }
 0x565   : > { %v3760_v57 = vpop.f32.mrf.mxu0  ;;  %6128 = vmatpush3.msra.mxu1 %v3454_v51 }
 0x566   : > { %v3535_v29 = vpop.f32.mrf.mxu1  ;;  %6129 = vmatprep.subr.mxu1 %v3453_v5 }
 0x567   : > { %4284 = vmatmul.mubr.f32.gmra.mxu0 %v8984_v25  ;;  %4059 = vmatmul.mubr.f32.gmra.mxu1 %v8990_v15  ;;  %v9287_v16 = vadd.f32 %v3760_v57, %v3535_v29  ;;  %v3762_v6 = vpop.f32.mrf.mxu0  ;;  %v10392_v57 = vld [vmem:[#allocation64_spill] sm:$0xff]  ;;  %v10393_v29 = vld [vmem:[#allocation47_spill] sm:$0xff] }
 0x568   : > { %4288 = vmatprep.mubr.f32.mxu0 %v9039_v19  ;;  %4063 = vmatprep.mubr.f32.mxu1 %v9012_v18  ;;  %v3537_v17 = vpop.f32.mrf.mxu1 }
 0x569   : > { %v3765_v42 = vpop.f32.mrf.mxu0  ;;  %6130 = vmatpush3.msra.mxu1 %v3453_v5 }
 0x56a   : > { %v3540_v43 = vpop.f32.mrf.mxu1 }
 0x56b   : > { %4289 = vmatmul.mubr.f32.gmra.mxu0 %v10379_v53  ;;  %4064 = vmatmul.mubr.f32.gmra.mxu1 %v9007_v56  ;;  %v9293_v38 = vadd.f32 %v3765_v42, %v3540_v43  ;;  %v3767_v52 = vpop.f32.mrf.mxu0  ;;  %v10384_v56 = vld [vmem:[#allocation44_spill] sm:$0xff] }
 0x56c   : > { %4293 = vmatprep.mubr.f32.mxu0 %v10380_v36  ;;  %4068 = vmatprep.mubr.f32.mxu1 %v10381_v47  ;;  %v3542_v25 = vpop.f32.mrf.mxu1  ;;  %v10394_v43 = vld [vmem:[#allocation48_spill] sm:$0xff] }
 0x56d   : > { %v3770_v15 = vpop.f32.mrf.mxu0  ;;  %v10396_v25 = vld [vmem:[#allocation62_spill] sm:$0xff] }
 0x56e   : > { %v3545_v50 = vpop.f32.mrf.mxu1 }
 0x56f   : > { %4294 = vmatmul.mubr.f32.gmra.mxu0 %v10382_v26  ;;  %4069 = vmatmul.mubr.f32.gmra.mxu1 %v9022_v21  ;;  %v9299_v34 = vadd.f32 %v3770_v15, %v3545_v50  ;;  %v3772_v3 = vpop.f32.mrf.mxu0  ;;  %v10387_v21 = vld [vmem:[#allocation42_spill] sm:$0xff] }
 0x570   : > { %4298 = vmatprep.mubr.f32.mxu0 %v10383_v30  ;;  %4073 = vmatprep.mubr.f32.mxu1 %v10384_v56  ;;  %v3547_v58 = vpop.f32.mrf.mxu1  ;;  %v10397_v3 = vld [vmem:[#allocation58_spill] sm:$0xff] }
 0x571   : > { %v3775_v40 = vpop.f32.mrf.mxu0 }
 0x572   : > { %v3550_v20 = vpop.f32.mrf.mxu1 }
 0x573   : > { %4299 = vmatmul.mubr.f32.gmra.mxu0 %v10385_v49  ;;  %4074 = vmatmul.mubr.f32.gmra.mxu1 %v9039_v19  ;;  %v9305_v13 = vadd.f32 %v3775_v40, %v3550_v20  ;;  %v3777_v10 = vpop.f32.mrf.mxu0  ;;  %v10390_v19 = vld [vmem:[#allocation52_spill] sm:$0xff]  ;;  %v10398_v40 = vld [vmem:[#allocation70_spill] sm:$0xff] }
 0x574   : > { %4303 = vmatprep.mubr.f32.mxu0 %v10386_v32  ;;  %4078 = vmatprep.mubr.f32.mxu1 %v10387_v21  ;;  %v3552_v33 = vpop.f32.mrf.mxu1  ;;  %v10399_v20 = vld [vmem:[#allocation60_spill] sm:$0xff] }
 0x575   : > { %v3780_v2 = vpop.f32.mrf.mxu0  ;;  %v10400_v33 = vld [vmem:[#allocation53_spill] sm:$0xff] }
 0x576   : > { %v3555_v31 = vpop.f32.mrf.mxu1 }
 0x577   : > { %4304 = vmatmul.mubr.f32.gmra.mxu0 %v10388_v46  ;;  %4079 = vmatmul.mubr.f32.gmra.mxu1 %v10380_v36  ;;  %v9311_v62 = vadd.f32 %v3780_v2, %v3555_v31  ;;  %v3782_v44 = vpop.f32.mrf.mxu0  ;;  %v10395_v36 = vld [vmem:[#allocation59_spill] sm:$0xff]  ;;  %v10401_v46 = vld [vmem:[#allocation72_spill] sm:$0xff] }
 0x578   : > { %4308 = vmatprep.mubr.f32.mxu0 %v10389_v23  ;;  %4083 = vmatprep.mubr.f32.mxu1 %v10390_v19  ;;  %v3557_v0 = vpop.f32.mrf.mxu1  ;;  %v10402_v44 = vld [vmem:[#allocation68_spill] sm:$0xff] }
 0x579   : > { %v3785_v8 = vpop.f32.mrf.mxu0 }
 0x57a   : > { %v3560_v4 = vpop.f32.mrf.mxu1 }
 0x57b   : > { %4309 = vmatmul.mubr.f32.gmra.mxu0 %v10391_v54  ;;  %4084 = vmatmul.mubr.f32.gmra.mxu1 %v10383_v30  ;;  %v9317_v51 = vadd.f32 %v3785_v8, %v3560_v4  ;;  %v3787_v5 = vpop.f32.mrf.mxu0  ;;  %v10403_v4 = vld [vmem:[#allocation66_spill] sm:$0xff] }
 0x57c   : > { %4313 = vmatprep.mubr.f32.mxu0 %v10392_v57  ;;  %4088 = vmatprep.mubr.f32.mxu1 %v10393_v29  ;;  %v3562_v6 = vpop.f32.mrf.mxu1 }
 0x57d   : > { %v3790_v17 = vpop.f32.mrf.mxu0  ;;  %v10404_v6 = vld [vmem:[#allocation74_spill] sm:$0xff] }
 0x57e   : > { %v3565_v42 = vpop.f32.mrf.mxu1 }
 0x57f   : > { %4314 = vmatmul.mubr.f32.gmra.mxu0 %v10394_v43  ;;  %4089 = vmatmul.mubr.f32.gmra.mxu1 %v10386_v32  ;;  %v9323_v53 = vadd.f32 %v3790_v17, %v3565_v42  ;;  %v3792_v52 = vpop.f32.mrf.mxu0 }
 0x580   : > { %4318 = vmatprep.mubr.f32.mxu0 %v10395_v36  ;;  %4093 = vmatprep.mubr.f32.mxu1 %v10396_v25  ;;  %v3567_v15 = vpop.f32.mrf.mxu1 }
 0x581   : > { %v3795_v50 = vpop.f32.mrf.mxu0 }
 0x582   : > { %v3570_v26 = vpop.f32.mrf.mxu1 }
 0x583   : > { %4319 = vmatmul.mubr.f32.gmra.mxu0 %v10397_v3  ;;  %4094 = vmatmul.mubr.f32.gmra.mxu1 %v10389_v23  ;;  %v9329_v30 = vadd.f32 %v3795_v50, %v3570_v26  ;;  %v3797_v58 = vpop.f32.mrf.mxu0  ;;  %v10406_v50 = vld [vmem:[#allocation77_spill] sm:$0xff] }
 0x584   : > { %4323 = vmatprep.mubr.f32.mxu0 %v10398_v40  ;;  %4098 = vmatprep.mubr.f32.mxu1 %v10399_v20  ;;  %v3572_v49 = vpop.f32.mrf.mxu1 }
 0x585   : > { %v3800_v10 = vpop.f32.mrf.mxu0 }
 0x586   : > { %v3575_v32 = vpop.f32.mrf.mxu1 }
 0x587   : > { %4324 = vmatmul.mubr.f32.gmra.mxu0 %v10400_v33  ;;  %4099 = vmatmul.mubr.f32.gmra.mxu1 %v10392_v57  ;;  %v9335_v2 = vadd.f32 %v3800_v10, %v3575_v32  ;;  %v3802_v31 = vpop.f32.mrf.mxu0  ;;  %v10405_v57 = vld [vmem:[#allocation71_spill] sm:$0xff]  ;;  %v10408_v10 = vld [vmem:[#allocation76_spill] sm:$0xff] }
 0x588   : > { %4328 = vmatprep.mubr.f32.mxu0 %v10401_v46  ;;  %4103 = vmatprep.mubr.f32.mxu1 %v10402_v44  ;;  %v3577_v23 = vpop.f32.mrf.mxu1  ;;  %v3015_v31 = vld [vmem:[#allocation2 + $0x190] sm:$0x3] }
 0x589   : > { %v3805_v0 = vpop.f32.mrf.mxu0  ;;  %v3295_v23 = vrot.slane %v9211_v41, 1 }
 0x58a   : > { %v3580_v8 = vpop.f32.mrf.mxu1 }
 0x58b   : > { %4329 = vmatmul.mubr.f32.gmra.mxu0 %v10403_v4  ;;  %4104 = vmatmul.mubr.f32.gmra.mxu1 %v10395_v36  ;;  %v9341_v54 = vadd.f32 %v3805_v0, %v3580_v8  ;;  %v3807_v5 = vpop.f32.mrf.mxu0  ;;  %v10407_v36 = vld [vmem:[#allocation73_spill] sm:$0xff]  ;;  %v3297_v4 = vrot.slane %v3015_v31, 1 }
 0x58c   : > { %4333 = vmatprep.mubr.f32.mxu0 %v10404_v6  ;;  %4108 = vmatprep.mubr.f32.mxu1 %v10405_v57  ;;  %v3582_v17 = vpop.f32.mrf.mxu1 }
 0x58d   : > { %v3810_v42 = vpop.f32.mrf.mxu0 }
 0x58e   : > { %v3585_v43 = vpop.f32.mrf.mxu1 }
 0x58f   : > { %4334 = vmatmul.mubr.f32.gmra.mxu0 %v9146_v22  ;;  %4109 = vmatmul.mubr.f32.gmra.mxu1 %v10398_v40  ;;  %v9347_v52 = vadd.f32 %v3810_v42, %v3585_v43  ;;  %v3812_v15 = vpop.f32.mrf.mxu0  ;;  %v3294_v22 = vrot.slane %v10408_v10, 1  ;;  %v10409_v40 = vld [vmem:[#allocation75_spill] sm:$0xff]  ;;  %v9365_v42 = vld [vmem:[#allocation2 + $0x198] sm:$0xff] }
 0x590   : > { %4338 = vmatprep.mubr.f32.mxu0 %v10406_v50  ;;  %4113 = vmatprep.mubr.f32.mxu1 %v10407_v36  ;;  %v3587_v26 = vpop.f32.mrf.mxu1 }
 0x591   : > { %v3815_v3 = vpop.f32.mrf.mxu0  ;;  %v9367_v26 = vld [vmem:[#allocation2 + $0x1a0] sm:$0xff] }
 0x592   : > { %v3590_v58 = vpop.f32.mrf.mxu1 }
 0x593   : > { %4339 = vmatmul.mubr.f32.gmra.mxu0 %v9163_v14  ;;  %4114 = vmatmul.mubr.f32.gmra.mxu1 %v10401_v46  ;;  %v9353_v49 = vadd.f32 %v3815_v3, %v3590_v58  ;;  %v3817_v32 = vpop.f32.mrf.mxu0  ;;  %v3296_v14 = vsel %vm559_vm0, %v3294_v22, %v3295_v23  ;;  %v3311_v3 = vrot.slane %v9365_v42, 1  ;;  %v3301_v22 = vrot.slane %v10408_v10, 2 }
 0x594   : > { %4343 = vmatprep.mubr.f32.mxu0 %v9216_v24  ;;  %4118 = vmatprep.mubr.f32.mxu1 %v10409_v40  ;;  %v3592_v33 = vpop.f32.mrf.mxu1  ;;  %v9376_v32 = vld [vmem:[#allocation2 + $0x1a8] sm:$0x3] }
 0x595   : > { %v3820_v0 = vpop.f32.mrf.mxu0 }
 0x596   : > { %v3595_v8 = vpop.f32.mrf.mxu1 }
 0x597   : > { %4344 = vmatmul.mubr.f32.gmra.mxu0 %v9179_v1  ;;  %4119 = vmatmul.mubr.f32.gmra.mxu1 %v10404_v6  ;;  %v9362_v46 = vadd.f32 %v3820_v0, %v3595_v8  ;;  %v3822_v5 = vpop.f32.mrf.mxu0  ;;  %v3298_v1 = vsel %vm559_vm0, %v3295_v23, %v3297_v4  ;;  %v3312_v0 = vrot.slane %v9367_v26, 1  ;;  %v3302_v8 = vrot.slane %v9211_v41, 2 }
 0x598   : > { %4348 = vmatprep.mubr.f32.mxu0 %v3296_v14  ;;  %4123 = vmatprep.mubr.f32.mxu1 %v9207_v60  ;;  %v3597_v17 = vpop.f32.mrf.mxu1  ;;  %v3314_v23 = vrot.slane %v9376_v32, 1 }
 0x599   : > { %v3825_v43 = vpop.f32.mrf.mxu0  ;;  %v9386_v4 = vsel %vm672_vm1, %v3301_v22, %v3302_v8 }
 0x59a   : > { %v3600_v15 = vpop.f32.mrf.mxu1 }
 0x59b   : > { %4349 = vmatmul.mubr.f32.gmra.mxu0 %v10408_v10  ;;  %4124 = vmatmul.mubr.f32.gmra.mxu1 %v10406_v50  ;;  %v9372_v6 = vadd.f32 %v3825_v43, %v3600_v15  ;;  %v3827_v58 = vpop.f32.mrf.mxu0  ;;  %v3313_v10 = vsel %vm559_vm0, %v3311_v3, %v3312_v0  ;;  %v3304_v15 = vrot.slane %v3015_v31, 2 }
 0x59c   : > { %4353 = vmatprep.mubr.f32.mxu0 %v3298_v1  ;;  %4128 = vmatprep.mubr.f32.mxu1 %v9221_v63  ;;  %v3602_v33 = vpop.f32.mrf.mxu1 }
 0x59d   : > { %10410 = vst [vmem:[#allocation38_spill] sm:$0xff] %v9372_v6  ;;  %v3830_v50 = vpop.f32.mrf.mxu0 }
 0x59e   : > { %v3605_v5 = vpop.f32.mrf.mxu1 }
 0x59f   : > { %4354 = vmatmul.mubr.f32.gmra.mxu0 %v9211_v41  ;;  %4129 = vmatmul.mubr.f32.gmra.mxu1 %v9216_v24  ;;  %v9388_v17 = vadd.f32 %v3830_v50, %v3605_v5  ;;  %v3832_v43 = vpop.f32.mrf.mxu0  ;;  %v3315_v41 = vsel %vm559_vm0, %v3312_v0, %v3314_v23  ;;  %v9394_v24 = vsel %vm672_vm1, %v3302_v8, %v3304_v15 }
 0x5a0   : > { %4358 = vmatprep.mubr.f32.mxu0 %v3313_v10  ;;  %4133 = vmatprep.mubr.f32.mxu1 %v9386_v4  ;;  %v3607_v58 = vpop.f32.mrf.mxu1 }
 0x5a1   : > { %v3835_v33 = vpop.f32.mrf.mxu0 }
 0x5a2   : > { %v3610_v6 = vpop.f32.mrf.mxu1 }
 0x5a3   : > { %4359 = vmatmul.mubr.f32.gmra.mxu0 %v9365_v42  ;;  %4134 = vmatmul.mubr.f32.gmra.mxu1 %v3296_v14  ;;  %v9396_v3 = vadd.f32 %v3835_v33, %v3610_v6  ;;  %v3837_v22 = vpop.f32.mrf.mxu0 }
 0x5a4   : > { %4363 = vmatprep.mubr.f32.mxu0 %v3315_v41  ;;  %4138 = vmatprep.mubr.f32.mxu1 %v9394_v24  ;;  %v3612_v31 = vpop.f32.mrf.mxu1 }
 0x5a5   : > { %v3840_v50 = vpop.f32.mrf.mxu0 }
 0x5a6   : > { %v3615_v5 = vpop.f32.mrf.mxu1 }
 0x5a7   : > { %4364 = vmatmul.mubr.f32.gmra.mxu0 %v9367_v26  ;;  %4139 = vmatmul.mubr.f32.gmra.mxu1 %v3298_v1  ;;  %v9400_v10 = vadd.f32 %v3840_v50, %v3615_v5  ;;  %v3842_v14 = vpop.f32.mrf.mxu0 }
 0x5a8   : > { %6131 = vmatprep.mubr.f32.mxu1 %v8770_v48  ;;  %v3617_v0 = vpop.f32.mrf.mxu1 }
 0x5a9   : > { %v3845_v8 = vpop.f32.mrf.mxu0 }
 0x5aa   : > { %v3620_v23 = vpop.f32.mrf.mxu1 }
 0x5ab   : > { %6132 = vmatmul.mubr.f32.vlgmr.msra.gmra.mxu1 %v8791_v9  ;;  %v9404_v6 = vadd.f32 %v3845_v8, %v3620_v23  ;;  %v3847_v43 = vpop.f32.mrf.mxu0 }
 0x5ac   : > { %6134 = vmatprep.mubr.f32.mxu1 %v8810_v59  ;;  %v3622_v15 = vpop.f32.mrf.mxu1 }
 0x5ad   : > { %v3850_v58 = vpop.f32.mrf.mxu0 }
 0x5ae   : > { %v3625_v33 = vpop.f32.mrf.mxu1 }
 0x5af   : > { %6135 = vmatmul.mubr.f32.gmra.mxu1 %v8831_v7  ;;  %v9408_v1 = vadd.f32 %v3850_v58, %v3625_v33  ;;  %v3852_v41 = vpop.f32.mrf.mxu0 }
 0x5b0   : > { %6137 = vmatprep.mubr.f32.mxu1 %v8850_v55  ;;  %v3627_v48 = vpop.f32.mrf.mxu1 }
 0x5b1   : > { %v3855_v22 = vpop.f32.mrf.mxu0 }
 0x5b2   : > { %v3630_v31 = vpop.f32.mrf.mxu1 }
 0x5b3   : > { %6138 = vmatmul.mubr.f32.gmra.mxu1 %v8867_v12  ;;  %v9412_v9 = vadd.f32 %v3855_v22, %v3630_v31  ;;  %v3857_v50 = vpop.f32.mrf.mxu0 }
 0x5b4   : > { %6140 = vmatprep.mubr.f32.mxu1 %v8884_v28  ;;  %v3632_v59 = vpop.f32.mrf.mxu1 }
 0x5b5   : > { %v3860_v5 = vpop.f32.mrf.mxu0 }
 0x5b6   : > { %v3635_v14 = vpop.f32.mrf.mxu1 }
 0x5b7   : > { %6141 = vmatmul.mubr.f32.gmra.mxu1 %v8899_v37  ;;  %v9416_v7 = vadd.f32 %v3860_v5, %v3635_v14  ;;  %v3862_v0 = vpop.f32.mrf.mxu0 }
 0x5b8   : > { %6143 = vmatprep.mubr.f32.mxu1 %v8916_v27  ;;  %v3637_v55 = vpop.f32.mrf.mxu1 }
 0x5b9   : > { %v3865_v8 = vpop.f32.mrf.mxu0 }
 0x5ba   : > { %v3640_v23 = vpop.f32.mrf.mxu1 }
 0x5bb   : > { %6144 = vmatmul.mubr.f32.gmra.mxu1 %v8931_v35  ;;  %v9420_v12 = vadd.f32 %v3865_v8, %v3640_v23  ;;  %v3867_v43 = vpop.f32.mrf.mxu0 }
 0x5bc   : > { %6146 = vmatprep.mubr.f32.mxu1 %v8948_v61  ;;  %v3642_v28 = vpop.f32.mrf.mxu1 }
 0x5bd   : > { %v3870_v15 = vpop.f32.mrf.mxu0 }
 0x5be   : > { %v3645_v58 = vpop.f32.mrf.mxu1 }
 0x5bf   : > { %6147 = vmatmul.mubr.f32.gmra.mxu1 %v8963_v11  ;;  %v9424_v37 = vadd.f32 %v3870_v15, %v3645_v58  ;;  %v3872_v33 = vpop.f32.mrf.mxu0 }
 0x5c0   : > { %6149 = vmatprep.mubr.f32.mxu1 %v8980_v39  ;;  %v3647_v27 = vpop.f32.mrf.mxu1 }
 0x5c1   : > { %v3875_v41 = vpop.f32.mrf.mxu0 }
 0x5c2   : > { %v3650_v48 = vpop.f32.mrf.mxu1 }
 0x5c3   : > { %6150 = vmatmul.mubr.f32.gmra.mxu1 %v8995_v45  ;;  %v9428_v35 = vadd.f32 %v3875_v41, %v3650_v48  ;;  %v3877_v22 = vpop.f32.mrf.mxu0 }
 0x5c4   : > { %6152 = vmatprep.mubr.f32.mxu1 %v9012_v18  ;;  %v3652_v61 = vpop.f32.mrf.mxu1  ;;  %v3318_v22 = vrot.slane %v9365_v42, 2 }
 0x5c5   : > { %v3880_v31 = vpop.f32.mrf.mxu0  ;;  %v3319_v61 = vrot.slane %v9367_v26, 2 }
 0x5c6   : > { %v3655_v50 = vpop.f32.mrf.mxu1 }
 0x5c7   : > { %6153 = vmatmul.mubr.f32.gmra.mxu1 %v10381_v47  ;;  %v9432_v11 = vadd.f32 %v3880_v31, %v3655_v50  ;;  %v3882_v59 = vpop.f32.mrf.mxu0 }
 0x5c8   : > { %6155 = vmatprep.mubr.f32.mxu1 %v10384_v56  ;;  %v3657_v39 = vpop.f32.mrf.mxu1  ;;  %v3320_v59 = vsel %vm672_vm1, %v3318_v22, %v3319_v61 }
 0x5c9   : > { %v3885_v5 = vpop.f32.mrf.mxu0 }
 0x5ca   : > { %v3660_v14 = vpop.f32.mrf.mxu1 }
 0x5cb   : > { %6156 = vmatmul.mubr.f32.gmra.mxu1 %v10387_v21  ;;  %v9436_v45 = vadd.f32 %v3885_v5, %v3660_v14  ;;  %v3887_v0 = vpop.f32.mrf.mxu0 }
 0x5cc   : > { %6158 = vmatprep.mubr.f32.mxu1 %v10390_v19  ;;  %v3662_v18 = vpop.f32.mrf.mxu1 }
 0x5cd   : > { %v3890_v55 = vpop.f32.mrf.mxu0 }
 0x5ce   : > { %v3665_v8 = vpop.f32.mrf.mxu1 }
 0x5cf   : > { %6159 = vmatmul.mubr.f32.gmra.mxu1 %v10393_v29  ;;  %v9440_v47 = vadd.f32 %v3890_v55, %v3665_v8  ;;  %v3892_v23 = vpop.f32.mrf.mxu0 }
 0x5d0   : > { %6161 = vmatprep.mubr.f32.mxu1 %v10396_v25  ;;  %v3667_v56 = vpop.f32.mrf.mxu1 }
 0x5d2   : > { %v3895_v43 = vpop.f32.mrf.mxu0 }
 0x5d3   : > { %6162 = vmatmul.mubr.f32.gmra.mxu1 %v10399_v20  ;;  %v3670_v21 = vpop.f32.mrf.mxu1 }
 0x5d4   : > { %6164 = vmatprep.mubr.f32.mxu1 %v10402_v44  ;;  %v9445_v28 = vadd.f32 %v3895_v43, %v3670_v21  ;;  %v3897_v19 = vpop.f32.mrf.mxu0 }
 0x5d5   : > { %v3672_v15 = vpop.f32.mrf.mxu1 }
 0x5d7   : > { %6165 = vmatmul.mubr.f32.gmra.mxu1 %v10405_v57  ;;  %v3900_v58 = vpop.f32.mrf.mxu0 }
 0x5d8   : > { %6167 = vmatprep.mubr.f32.mxu1 %v10407_v36  ;;  %v3675_v29 = vpop.f32.mrf.mxu1 }
 0x5d9   : > { %v9449_v33 = vadd.f32 %v3900_v58, %v3675_v29  ;;  %v3902_v25 = vpop.f32.mrf.mxu0 }
 0x5da   : > { %v3677_v27 = vpop.f32.mrf.mxu1 }
 0x5db   : > { %6168 = vmatmul.mubr.f32.gmra.mxu1 %v10409_v40  ;;  %v3321_v40 = vrot.slane %v9376_v32, 2 }
 0x5dc   : > { %6170 = vmatprep.mubr.f32.mxu1 %v9207_v60  ;;  %v3905_v20 = vpop.f32.mrf.mxu0 }
 0x5dd   : > { %v3680_v44 = vpop.f32.mrf.mxu1  ;;  %v3322_v42 = vsel %vm672_vm1, %v3319_v61, %v3321_v40 }
 0x5de   : > { %v9453_v41 = vadd.f32 %v3905_v20, %v3680_v44  ;;  %v3907_v48 = vpop.f32.mrf.mxu0 }
 0x5df   : > { %6171 = vmatmul.mubr.f32.gmra.mxu1 %v9221_v63  ;;  %v3682_v57 = vpop.f32.mrf.mxu1 }
 0x5e0   : > { %6173 = vmatprep.mubr.f32.mxu1 %v9386_v4 }
 0x5e1   : > { %v3910_v36 = vpop.f32.mrf.mxu0 }
 0x5e2   : > { %v3685_v31 = vpop.f32.mrf.mxu1 }
 0x5e3   : > { %v9460_v50 = vadd.f32 %v3910_v36, %v3685_v31  ;;  %6174 = vmatmul.mubr.f32.gmra.mxu1 %v9394_v24  ;;  %v3912_v60 = vpop.f32.mrf.mxu0 }
 0x5e4   : > { %6176 = vmatprep.mubr.f32.mxu1 %v3320_v59  ;;  %v3687_v63 = vpop.f32.mrf.mxu1 }
 0x5e6   : > { %v3915_v39 = vpop.f32.mrf.mxu0 }
 0x5e7   : > { %v3690_v5 = vpop.f32.mrf.mxu1  ;;  %6177 = vmatmul.mubr.f32.gmra.mxu1 %v3322_v42 }
 0x5e8   : > { %v9465_v4 = vadd.f32 %v3915_v39, %v3690_v5  ;;  %v3917_v26 = vpop.f32.mrf.mxu0 }
 0x5e9   : > { %v3692_v14 = vpop.f32.mrf.mxu1 }
 0x5eb   : > { %v4210_v0 = vpop.f32.mrf.mxu0  ;;  %v3985_v32 = vpop.f32.mrf.mxu1 }
 0x5ec   : > { %v3986_v18 = vadd.f32 %v3985_v32, %v9287_v16 }
 0x5ed   : > { %v4212_v55 = vpop.f32.mrf.mxu0  ;;  %v3987_v24 = vpop.f32.mrf.mxu1 }
 0x5ee   : > { %v9468_v8 = vadd.f32 %v4210_v0, %v3986_v18 }
 0x5ef   : > { %v4215_v23 = vpop.f32.mrf.mxu0  ;;  %v3990_v56 = vpop.f32.mrf.mxu1 }
 0x5f0   : > { %v3991_v43 = vadd.f32 %v3990_v56, %v9293_v38 }
 0x5f1   : > { %v4217_v21 = vpop.f32.mrf.mxu0  ;;  %v3992_v19 = vpop.f32.mrf.mxu1 }
 0x5f2   : > { %v9471_v15 = vadd.f32 %v4215_v23, %v3991_v43 }
 0x5f3   : > { %v4220_v58 = vpop.f32.mrf.mxu0  ;;  %v3995_v29 = vpop.f32.mrf.mxu1 }
 0x5f4   : > { %v3996_v25 = vadd.f32 %v3995_v29, %v9299_v34 }
 0x5f5   : > { %v4222_v27 = vpop.f32.mrf.mxu0  ;;  %v3997_v20 = vpop.f32.mrf.mxu1 }
 0x5f6   : > { %v9474_v44 = vadd.f32 %v4220_v58, %v3996_v25 }
 0x5f7   : > { %v4225_v16 = vpop.f32.mrf.mxu0  ;;  %v4000_v48 = vpop.f32.mrf.mxu1 }
 0x5f8   : > { %v4001_v57 = vadd.f32 %v4000_v48, %v9305_v13 }
 0x5f9   : > { %v4227_v22 = vpop.f32.mrf.mxu0  ;;  %v4002_v36 = vpop.f32.mrf.mxu1 }
 0x5fa   : > { %v9477_v61 = vadd.f32 %v4225_v16, %v4001_v57 }
 0x5fb   : > { %v4230_v38 = vpop.f32.mrf.mxu0  ;;  %v4005_v31 = vpop.f32.mrf.mxu1 }
 0x5fc   : > { %v4006_v40 = vadd.f32 %v4005_v31, %v9311_v62 }
 0x5fd   : > { %v4232_v60 = vpop.f32.mrf.mxu0  ;;  %v4007_v59 = vpop.f32.mrf.mxu1 }
 0x5fe   : > { %v9480_v63 = vadd.f32 %v4230_v38, %v4006_v40 }
 0x5ff   : > { %v4235_v34 = vpop.f32.mrf.mxu0  ;;  %v4010_v39 = vpop.f32.mrf.mxu1 }
 0x600   : > { %v4011_v42 = vadd.f32 %v4010_v39, %v9317_v51 }
 0x601   : > { %v4237_v5 = vpop.f32.mrf.mxu0  ;;  %v4012_v26 = vpop.f32.mrf.mxu1 }
 0x602   : > { %v9483_v14 = vadd.f32 %v4235_v34, %v4011_v42 }
 0x603   : > { %v4240_v13 = vpop.f32.mrf.mxu0  ;;  %v4015_v0 = vpop.f32.mrf.mxu1 }
 0x604   : > { %v4016_v32 = vadd.f32 %v4015_v0, %v9323_v53 }
 0x605   : > { %v4242_v18 = vpop.f32.mrf.mxu0  ;;  %v4017_v55 = vpop.f32.mrf.mxu1 }
 0x606   : > { %v9486_v24 = vadd.f32 %v4240_v13, %v4016_v32 }
 0x607   : > { %v4245_v62 = vpop.f32.mrf.mxu0  ;;  %v4020_v23 = vpop.f32.mrf.mxu1 }
 0x608   : > { %v4021_v56 = vadd.f32 %v4020_v23, %v9329_v30  ;;  %v10411_v23 = vld [vmem:[#allocation38_spill] sm:$0xff] }
 0x609   : > { %v4247_v43 = vpop.f32.mrf.mxu0  ;;  %v4022_v21 = vpop.f32.mrf.mxu1 }
 0x60a   : > { %v9489_v19 = vadd.f32 %v4245_v62, %v4021_v56 }
 0x60b   : > { %v4250_v51 = vpop.f32.mrf.mxu0  ;;  %v4025_v58 = vpop.f32.mrf.mxu1 }
 0x60c   : > { %v4026_v29 = vadd.f32 %v4025_v58, %v9335_v2 }
 0x60d   : > { %v4252_v25 = vpop.f32.mrf.mxu0  ;;  %v4027_v27 = vpop.f32.mrf.mxu1 }
 0x60e   : > { %v9492_v20 = vadd.f32 %v4250_v51, %v4026_v29  ;;  %v4783_v25 = vld [vmem:[#allocation6 + $0x78] sm:$0xff] }
 0x60f   : > { %v4255_v53 = vpop.f32.mrf.mxu0  ;;  %v4030_v16 = vpop.f32.mrf.mxu1  ;;  %6179 = vmatprep.subr.mxu0 %v4783_v25 }
 0x610   : > { %v4031_v48 = vadd.f32 %v4030_v16, %v9341_v54  ;;  %6180 = vmatpush3.msra.mxu0 %v4783_v25 }
 0x611   : > { %v4257_v57 = vpop.f32.mrf.mxu0  ;;  %v4032_v22 = vpop.f32.mrf.mxu1 }
 0x612   : > { %v9495_v36 = vadd.f32 %v4255_v53, %v4031_v48 }
 0x613   : > { %v4260_v30 = vpop.f32.mrf.mxu0  ;;  %v4035_v38 = vpop.f32.mrf.mxu1 }
 0x614   : > { %v4036_v31 = vadd.f32 %v4035_v38, %v9347_v52 }
 0x615   : > { %v4262_v40 = vpop.f32.mrf.mxu0  ;;  %v4037_v60 = vpop.f32.mrf.mxu1 }
 0x616   : > { %v9498_v59 = vadd.f32 %v4260_v30, %v4036_v31 }
 0x617   : > { %v4265_v2 = vpop.f32.mrf.mxu0  ;;  %v4040_v34 = vpop.f32.mrf.mxu1 }
 0x618   : > { %v4041_v39 = vadd.f32 %v4040_v34, %v9353_v49 }
 0x619   : > { %v4267_v42 = vpop.f32.mrf.mxu0  ;;  %v4042_v5 = vpop.f32.mrf.mxu1 }
 0x61a   : > { %v9501_v26 = vadd.f32 %v4265_v2, %v4041_v39 }
 0x61b   : > { %v4270_v54 = vpop.f32.mrf.mxu0  ;;  %v4045_v13 = vpop.f32.mrf.mxu1 }
 0x61c   : > { %v4046_v0 = vadd.f32 %v4045_v13, %v9362_v46 }
 0x61d   : > { %v4272_v32 = vpop.f32.mrf.mxu0  ;;  %v4047_v18 = vpop.f32.mrf.mxu1 }
 0x61e   : > { %v9504_v55 = vadd.f32 %v4270_v54, %v4046_v0 }
 0x61f   : > { %v4275_v52 = vpop.f32.mrf.mxu0  ;;  %v4050_v62 = vpop.f32.mrf.mxu1 }
 0x620   : > { %v4051_v56 = vadd.f32 %v4050_v62, %v10411_v23 }
 0x621   : > { %v4277_v43 = vpop.f32.mrf.mxu0  ;;  %v4052_v21 = vpop.f32.mrf.mxu1 }
 0x622   : > { %v9507_v51 = vadd.f32 %v4275_v52, %v4051_v56 }
 0x623   : > { %v4280_v49 = vpop.f32.mrf.mxu0  ;;  %v4055_v58 = vpop.f32.mrf.mxu1 }
 0x624   : > { %v4056_v29 = vadd.f32 %v4055_v58, %v9388_v17 }
 0x625   : > { %v4282_v27 = vpop.f32.mrf.mxu0  ;;  %v4057_v53 = vpop.f32.mrf.mxu1 }
 0x626   : > { %v9510_v46 = vadd.f32 %v4280_v49, %v4056_v29 }
 0x627   : > { %v4285_v16 = vpop.f32.mrf.mxu0  ;;  %v4060_v48 = vpop.f32.mrf.mxu1 }
 0x628   : > { %v4061_v57 = vadd.f32 %v4060_v48, %v9396_v3 }
 0x629   : > { %v4287_v22 = vpop.f32.mrf.mxu0  ;;  %v4062_v30 = vpop.f32.mrf.mxu1 }
 0x62a   : > { %v9513_v38 = vadd.f32 %v4285_v16, %v4061_v57 }
 0x62b   : > { %v4290_v31 = vpop.f32.mrf.mxu0  ;;  %v4065_v40 = vpop.f32.mrf.mxu1 }
 0x62c   : > { %v4066_v60 = vadd.f32 %v4065_v40, %v9400_v10 }
 0x62d   : > { %v4292_v17 = vpop.f32.mrf.mxu0  ;;  %v4067_v2 = vpop.f32.mrf.mxu1 }
 0x62e   : > { %v9516_v34 = vadd.f32 %v4290_v31, %v4066_v60 }
 0x62f   : > { %v4295_v39 = vpop.f32.mrf.mxu0  ;;  %v4070_v42 = vpop.f32.mrf.mxu1 }
 0x630   : > { %v4071_v5 = vadd.f32 %v4070_v42, %v9404_v6 }
 0x631   : > { %v4297_v54 = vpop.f32.mrf.mxu0  ;;  %v4072_v13 = vpop.f32.mrf.mxu1 }
 0x632   : > { %v9519_v0 = vadd.f32 %v4295_v39, %v4071_v5 }
 0x633   : > { %v4300_v3 = vpop.f32.mrf.mxu0  ;;  %v4075_v32 = vpop.f32.mrf.mxu1 }
 0x634   : > { %v4076_v18 = vadd.f32 %v4075_v32, %v9408_v1 }
 0x635   : > { %v4302_v52 = vpop.f32.mrf.mxu0  ;;  %v4077_v62 = vpop.f32.mrf.mxu1 }
 0x636   : > { %v9522_v23 = vadd.f32 %v4300_v3, %v4076_v18 }
 0x637   : > { %v4305_v10 = vpop.f32.mrf.mxu0  ;;  %v4080_v56 = vpop.f32.mrf.mxu1 }
 0x638   : > { %v4081_v43 = vadd.f32 %v4080_v56, %v9412_v9 }
 0x639   : > { %v4307_v21 = vpop.f32.mrf.mxu0  ;;  %v4082_v49 = vpop.f32.mrf.mxu1 }
 0x63a   : > { %v9525_v58 = vadd.f32 %v4305_v10, %v4081_v43 }
 0x63b   : > { %v4310_v6 = vpop.f32.mrf.mxu0  ;;  %v4085_v29 = vpop.f32.mrf.mxu1 }
 0x63c   : > { %v4086_v25 = vadd.f32 %v4085_v29, %v9416_v7 }
 0x63d   : > { %v4312_v27 = vpop.f32.mrf.mxu0  ;;  %v4087_v53 = vpop.f32.mrf.mxu1 }
 0x63e   : > { %v9528_v16 = vadd.f32 %v4310_v6, %v4086_v25 }
 0x63f   : > { %v4315_v1 = vpop.f32.mrf.mxu0  ;;  %v4090_v48 = vpop.f32.mrf.mxu1 }
 0x640   : > { %v4091_v57 = vadd.f32 %v4090_v48, %v9420_v12 }
 0x641   : > { %v4317_v22 = vpop.f32.mrf.mxu0  ;;  %v4092_v30 = vpop.f32.mrf.mxu1 }
 0x642   : > { %v9531_v31 = vadd.f32 %v4315_v1, %v4091_v57 }
 0x643   : > { %v4320_v9 = vpop.f32.mrf.mxu0  ;;  %v4095_v40 = vpop.f32.mrf.mxu1 }
 0x644   : > { %v4096_v60 = vadd.f32 %v4095_v40, %v9424_v37 }
 0x645   : > { %v4322_v17 = vpop.f32.mrf.mxu0  ;;  %v4097_v2 = vpop.f32.mrf.mxu1 }
 0x646   : > { %v9534_v39 = vadd.f32 %v4320_v9, %v4096_v60 }
 0x647   : > { %v4325_v7 = vpop.f32.mrf.mxu0  ;;  %v4100_v42 = vpop.f32.mrf.mxu1 }
 0x648   : > { %v4101_v5 = vadd.f32 %v4100_v42, %v9428_v35 }
 0x649   : > { %v4327_v54 = vpop.f32.mrf.mxu0  ;;  %v4102_v13 = vpop.f32.mrf.mxu1 }
 0x64a   : > { %v9537_v3 = vadd.f32 %v4325_v7, %v4101_v5 }
 0x64b   : > { %v4330_v12 = vpop.f32.mrf.mxu0  ;;  %v4105_v32 = vpop.f32.mrf.mxu1 }
 0x64c   : > { %v4106_v18 = vadd.f32 %v4105_v32, %v9432_v11 }
 0x64d   : > { %v4332_v52 = vpop.f32.mrf.mxu0  ;;  %v4107_v62 = vpop.f32.mrf.mxu1 }
 0x64e   : > { %v9540_v10 = vadd.f32 %v4330_v12, %v4106_v18 }
 0x64f   : > { %v4335_v37 = vpop.f32.mrf.mxu0  ;;  %v4110_v56 = vpop.f32.mrf.mxu1 }
 0x650   : > { %v4111_v43 = vadd.f32 %v4110_v56, %v9436_v45 }
 0x651   : > { %v4337_v21 = vpop.f32.mrf.mxu0  ;;  %v4112_v49 = vpop.f32.mrf.mxu1 }
 0x652   : > { %v9543_v6 = vadd.f32 %v4335_v37, %v4111_v43 }
 0x653   : > { %v4340_v35 = vpop.f32.mrf.mxu0  ;;  %v4115_v29 = vpop.f32.mrf.mxu1 }
 0x654   : > { %v4116_v25 = vadd.f32 %v4115_v29, %v9440_v47 }
 0x655   : > { %v4342_v27 = vpop.f32.mrf.mxu0  ;;  %v4117_v53 = vpop.f32.mrf.mxu1 }
 0x656   : > { %v9546_v1 = vadd.f32 %v4340_v35, %v4116_v25 }
 0x657   : > { %v4345_v11 = vpop.f32.mrf.mxu0  ;;  %v4120_v48 = vpop.f32.mrf.mxu1 }
 0x658   : > { %v4121_v57 = vadd.f32 %v4120_v48, %v9445_v28 }
 0x659   : > { %v4347_v22 = vpop.f32.mrf.mxu0  ;;  %v4122_v30 = vpop.f32.mrf.mxu1 }
 0x65a   : > { %v9549_v9 = vadd.f32 %v4345_v11, %v4121_v57 }
 0x65b   : > { %v4350_v45 = vpop.f32.mrf.mxu0  ;;  %v4125_v40 = vpop.f32.mrf.mxu1 }
 0x65c   : > { %v4126_v60 = vadd.f32 %v4125_v40, %v9449_v33 }
 0x65d   : > { %v4352_v17 = vpop.f32.mrf.mxu0  ;;  %v4127_v2 = vpop.f32.mrf.mxu1 }
 0x65e   : > { %v9552_v7 = vadd.f32 %v4350_v45, %v4126_v60 }
 0x65f   : > { %v4355_v47 = vpop.f32.mrf.mxu0  ;;  %v4130_v42 = vpop.f32.mrf.mxu1 }
 0x660   : > { %v4131_v5 = vadd.f32 %v4130_v42, %v9453_v41 }
 0x661   : > { %v4357_v54 = vpop.f32.mrf.mxu0  ;;  %v4132_v13 = vpop.f32.mrf.mxu1 }
 0x662   : > { %v9555_v12 = vadd.f32 %v4355_v47, %v4131_v5 }
 0x663   : > { %v4360_v28 = vpop.f32.mrf.mxu0  ;;  %v4135_v32 = vpop.f32.mrf.mxu1 }
 0x664   : > { %v4136_v18 = vadd.f32 %v4135_v32, %v9460_v50 }
 0x665   : > { %v4362_v52 = vpop.f32.mrf.mxu0  ;;  %v4137_v62 = vpop.f32.mrf.mxu1 }
 0x666   : > { %v9558_v37 = vadd.f32 %v4360_v28, %v4136_v18 }
 0x667   : > { %v4365_v33 = vpop.f32.mrf.mxu0  ;;  %v4140_v56 = vpop.f32.mrf.mxu1 }
 0x668   : > { %v4141_v43 = vadd.f32 %v4140_v56, %v9465_v4 }
 0x669   : > { %v4367_v21 = vpop.f32.mrf.mxu0  ;;  %v4142_v49 = vpop.f32.mrf.mxu1 }
 0x66a   : > { %v9561_v35 = vadd.f32 %v4365_v33, %v4141_v43 }
 0x66b   : > { %v6133_v41 = vpop.f32.mrf.mxu1 }
 0x66c   : > { %v9567_v50 = vadd.f32 %v6133_v41, %v9471_v15 }
 0x66d   : > { %v4435_v29 = vpop.f32.mrf.mxu1 }
 0x66e   : > { %v9564_v25 = vadd.f32 %v4435_v29, %v9468_v8 }
 0x66f   : > { %v6136_v27 = vpop.f32.mrf.mxu1 }
 0x670   : > { %v4594_v11 = vadd.f32 %v9567_v50, %v9564_v25  ;;  %v9575_v57 = vadd.f32 %v6136_v27, %v9477_v61 }
 0x671   : > { %v4445_v53 = vpop.f32.mrf.mxu1 }
 0x672   : > { %v9572_v48 = vadd.f32 %v4445_v53, %v9474_v44 }
 0x673   : > { %v6139_v4 = vpop.f32.mrf.mxu1 }
 0x674   : > { %v4595_v22 = vadd.f32 %v4594_v11, %v9572_v48  ;;  %v9583_v40 = vadd.f32 %v6139_v4, %v9483_v14 }
 0x675   : > { %v4455_v30 = vpop.f32.mrf.mxu1 }
 0x676   : > { %v9579_v8 = vadd.f32 %v4455_v30, %v9480_v63  ;;  %v4596_v15 = vadd.f32 %v4595_v22, %v9575_v57  ;;  %v4782_v30 = vld [vmem:[#allocation6 + $0x70] sm:$0xff] }
 0x677   : > { %v6142_v45 = vpop.f32.mrf.mxu1  ;;  %6181 = vmatprep.subr.mxu0 %v4782_v30 }
 0x678   : > { %v4597_v60 = vadd.f32 %v4596_v15, %v9579_v8  ;;  %v9591_v47 = vadd.f32 %v6142_v45, %v9489_v19  ;;  %6182 = vmatpush3.msra.mxu0 %v4782_v30  ;;  %v4772_v30 = vld [vmem:[#allocation6 + $0x20] sm:$0xff] }
 0x679   : > { %v4465_v44 = vpop.f32.mrf.mxu1 }
 0x67a   : > { %v9587_v17 = vadd.f32 %v4465_v44, %v9486_v24  ;;  %v4598_v61 = vadd.f32 %v4597_v60, %v9583_v40 }
 0x67b   : > { %v6145_v2 = vpop.f32.mrf.mxu1 }
 0x67c   : > { %v4599_v63 = vadd.f32 %v4598_v61, %v9587_v17  ;;  %v9599_v13 = vadd.f32 %v6145_v2, %v9495_v36  ;;  %v4780_v61 = vld [vmem:[#allocation6 + $0x60] sm:$0xff] }
 0x67d   : > { %v4475_v42 = vpop.f32.mrf.mxu1 }
 0x67e   : > { %v9595_v5 = vadd.f32 %v4475_v42, %v9492_v20  ;;  %v4600_v14 = vadd.f32 %v4599_v63, %v9591_v47  ;;  %v4779_v42 = vld [vmem:[#allocation6 + $0x58] sm:$0xff] }
 0x67f   : > { %v6148_v54 = vpop.f32.mrf.mxu1 }
 0x680   : > { %v4601_v24 = vadd.f32 %v4600_v14, %v9595_v5  ;;  %v9607_v52 = vadd.f32 %v6148_v54, %v9501_v26 }
 0x681   : > { %v4485_v28 = vpop.f32.mrf.mxu1 }
 0x682   : > { %v9603_v32 = vadd.f32 %v4485_v28, %v9498_v59  ;;  %v4602_v19 = vadd.f32 %v4601_v24, %v9599_v13  ;;  %v4778_v24 = vld [vmem:[#allocation6 + $0x50] sm:$0xff] }
 0x683   : > { %v6151_v18 = vpop.f32.mrf.mxu1 }
 0x684   : > { %v4603_v20 = vadd.f32 %v4602_v19, %v9603_v32  ;;  %v9615_v43 = vadd.f32 %v6151_v18, %v9507_v51  ;;  %v4777_v18 = vld [vmem:[#allocation6 + $0x48] sm:$0xff] }
 0x685   : > { %v4495_v62 = vpop.f32.mrf.mxu1 }
 0x686   : > { %v9611_v33 = vadd.f32 %v4495_v62, %v9504_v55  ;;  %v4604_v36 = vadd.f32 %v4603_v20, %v9607_v52 }
 0x687   : > { %v6154_v56 = vpop.f32.mrf.mxu1 }
 0x688   : > { %v4605_v59 = vadd.f32 %v4604_v36, %v9611_v33  ;;  %v9623_v29 = vadd.f32 %v6154_v56, %v9513_v38  ;;  %v4776_v36 = vld [vmem:[#allocation6 + $0x40] sm:$0xff] }
 0x689   : > { %v4505_v21 = vpop.f32.mrf.mxu1 }
 0x68a   : > { %v9619_v49 = vadd.f32 %v4505_v21, %v9510_v46  ;;  %v4606_v26 = vadd.f32 %v4605_v59, %v9615_v43  ;;  %v4775_v21 = vld [vmem:[#allocation6 + $0x38] sm:$0xff] }
 0x68b   : > { %v6157_v41 = vpop.f32.mrf.mxu1 }
 0x68c   : > { %v4607_v55 = vadd.f32 %v4606_v26, %v9619_v49  ;;  %v9631_v4 = vadd.f32 %v6157_v41, %v9519_v0 }
 0x68d   : > { %v4515_v27 = vpop.f32.mrf.mxu1 }
 0x68e   : > { %v9627_v53 = vadd.f32 %v4515_v27, %v9516_v34  ;;  %v4608_v51 = vadd.f32 %v4607_v55, %v9623_v29  ;;  %v4781_v34 = vld [vmem:[#allocation6 + $0x68] sm:$0xff]  ;;  %v4774_v55 = vld [vmem:[#allocation6 + $0x30] sm:$0xff] }
 0x68f   : > { %v6160_v11 = vpop.f32.mrf.mxu1  ;;  %6183 = vmatprep.subr.mxu0 %v4781_v34 }
 0x690   : > { %v4609_v46 = vadd.f32 %v4608_v51, %v9627_v53  ;;  %v9639_v60 = vadd.f32 %v6160_v11, %v9525_v58  ;;  %6184 = vmatpush3.msra.mxu0 %v4781_v34  ;;  %v4773_v11 = vld [vmem:[#allocation6 + $0x28] sm:$0xff] }
 0x691   : > { %v4525_v22 = vpop.f32.mrf.mxu1  ;;  %6185 = vmatprep.subr.mxu0 %v4780_v61 }
 0x692   : > { %v9635_v15 = vadd.f32 %v4525_v22, %v9522_v23  ;;  %v4610_v38 = vadd.f32 %v4609_v46, %v9631_v4  ;;  %6186 = vmatpush3.msra.mxu0 %v4780_v61 }
 0x693   : > { %v6163_v45 = vpop.f32.mrf.mxu1  ;;  %6187 = vmatprep.subr.mxu0 %v4779_v42 }
 0x694   : > { %v4611_v44 = vadd.f32 %v4610_v38, %v9635_v15  ;;  %v9647_v14 = vadd.f32 %v6163_v45, %v9531_v31  ;;  %6188 = vmatpush3.msra.mxu0 %v4779_v42  ;;  %v4769_v42 = vld [vmem:[#allocation6 + $0x8] sm:$0xff] }
 0x695   : > { %v4535_v0 = vpop.f32.mrf.mxu1  ;;  %6189 = vmatprep.subr.mxu0 %v4778_v24 }
 0x696   : > { %v9643_v2 = vadd.f32 %v4535_v0, %v9528_v16  ;;  %v4612_v23 = vadd.f32 %v4611_v44, %v9639_v60  ;;  %6190 = vmatpush3.msra.mxu0 %v4778_v24 }
 0x697   : > { %v6166_v63 = vpop.f32.mrf.mxu1  ;;  %6191 = vmatprep.subr.mxu0 %v4777_v18 }
 0x698   : > { %v4613_v58 = vadd.f32 %v4612_v23, %v9643_v2  ;;  %v9655_v20 = vadd.f32 %v6166_v63, %v9537_v3  ;;  %6192 = vmatpush3.msra.mxu0 %v4777_v18  ;;  %v4770_v23 = vld [vmem:[#allocation6 + $0x10] sm:$0xff] }
 0x699   : > { %v4545_v54 = vpop.f32.mrf.mxu1  ;;  %6193 = vmatprep.subr.mxu0 %v4776_v36 }
 0x69a   : > { %v9651_v28 = vadd.f32 %v4545_v54, %v9534_v39  ;;  %v4614_v16 = vadd.f32 %v4613_v58, %v9647_v14  ;;  %6194 = vmatpush3.msra.mxu0 %v4776_v36  ;;  %v4768_v54 = vld [vmem:[#allocation6] sm:$0xff] }
 0x69b   : > { %v6169_v19 = vpop.f32.mrf.mxu1  ;;  %6195 = vmatprep.subr.mxu0 %v4775_v21 }
 0x69c   : > { %v4615_v31 = vadd.f32 %v4614_v16, %v9651_v28  ;;  %v9663_v26 = vadd.f32 %v6169_v19, %v9543_v6  ;;  %6196 = vmatpush3.msra.mxu0 %v4775_v21 }
 0x69d   : > { %v4555_v62 = vpop.f32.mrf.mxu1  ;;  %6197 = vmatprep.subr.mxu0 %v4774_v55 }
 0x69e   : > { %v9659_v56 = vadd.f32 %v4555_v62, %v9540_v10  ;;  %v4616_v39 = vadd.f32 %v4615_v31, %v9655_v20  ;;  %6198 = vmatpush3.msra.mxu0 %v4774_v55 }
 0x69f   : > { %v6172_v59 = vpop.f32.mrf.mxu1  ;;  %6199 = vmatprep.subr.mxu0 %v4773_v11 }
 0x6a0   : > { %v4617_v3 = vadd.f32 %v4616_v39, %v9659_v56  ;;  %v4571_v46 = vadd.f32 %v6172_v59, %v9549_v9  ;;  %6200 = vmatpush3.msra.mxu0 %v4773_v11 }
 0x6a1   : > { %v4565_v41 = vpop.f32.mrf.mxu1  ;;  %6201 = vmatprep.subr.mxu0 %v4772_v30 }
 0x6a2   : > { %v4566_v27 = vadd.f32 %v4565_v41, %v9546_v1  ;;  %v4618_v10 = vadd.f32 %v4617_v3, %v9663_v26  ;;  %6202 = vmatpush3.msra.mxu0 %v4772_v30  ;;  %v4771_v1 = vld [vmem:[#allocation6 + $0x18] sm:$0xff] }
 0x6a3   : > { %v6175_v51 = vpop.f32.mrf.mxu1  ;;  %6203 = vmatprep.subr.mxu0 %v4771_v1 }
 0x6a4   : > { %v4619_v22 = vadd.f32 %v4618_v10, %v4566_v27  ;;  %v4581_v44 = vadd.f32 %v6175_v51, %v9555_v12  ;;  %6204 = vmatpush3.msra.mxu0 %v4771_v1 }
 0x6a5   : > { %v4575_v6 = vpop.f32.mrf.mxu1  ;;  %6205 = vmatprep.subr.mxu0 %v4770_v23 }
 0x6a6   : > { %v4576_v38 = vadd.f32 %v4575_v6, %v9552_v7  ;;  %v4620_v45 = vadd.f32 %v4619_v22, %v4571_v46  ;;  %6206 = vmatpush3.msra.mxu0 %v4770_v23 }
 0x6a7   : > { %v6178_v34 = vpop.f32.mrf.mxu1  ;;  %6207 = vmatprep.subr.mxu0 %v4769_v42 }
 0x6a8   : > { %v4621_v0 = vadd.f32 %v4620_v45, %v4576_v38  ;;  %v4591_v7 = vadd.f32 %v6178_v34, %v9561_v35  ;;  %6208 = vmatpush3.msra.mxu0 %v4769_v42 }
 0x6a9   : > { %v4585_v61 = vpop.f32.mrf.mxu1  ;;  %6209 = vmatprep.subr.mxu0 %v4768_v54 }
 0x6aa   : > { %v4586_v9 = vadd.f32 %v4585_v61, %v9558_v37  ;;  %v4622_v63 = vadd.f32 %v4621_v0, %v4581_v44  ;;  %6210 = vmatpush3.msra.mxu0 %v4768_v54 }
 0x6ac   : > { %v4623_v58 = vadd.f32 %v4622_v63, %v4586_v9 }
 0x6ae   : > { %v4624_v24 = vadd.f32 %v4623_v58, %v4591_v7 }
 0x6b0   : > { %v4625_v12 = vrot.slane %v4624_v24, 4 }
 0x6b2   : > { %v4626_v16 = vadd.f32 %v4625_v12, %v4624_v24 }
 0x6b4   : > { %v4627_v19 = vrot.slane %v4626_v16, 2 }
 0x6b6   : > { %v4628_v18 = vadd.f32 %v4627_v19, %v4626_v16 }
 0x6b8   : > { %v4629_v31 = vrot.slane %v4628_v18, 1 }
 0x6ba   : > { %v4630_v62 = vadd.f32 %v4629_v31, %v4628_v18 }
 0x6bc   : > { %v4631_v37 = vmul.f32 0.00390625, %v4630_v62 }
 0x6be   : > { %v9674_v36 = vsub.f32 %v9595_v5, %v4631_v37  ;;  %v9677_v39 = vsub.f32 %v9599_v13, %v4631_v37  ;;  %v9680_v35 = vsub.f32 %v9603_v32, %v4631_v37  ;;  %v9683_v59 = vsub.f32 %v9607_v52, %v4631_v37 }
 0x6bf   : > { %v9686_v21 = vsub.f32 %v9611_v33, %v4631_v37  ;;  %v9689_v3 = vsub.f32 %v9615_v43, %v4631_v37  ;;  %v9692_v41 = vsub.f32 %v9619_v49, %v4631_v37  ;;  %v9695_v5 = vsub.f32 %v9623_v29, %v4631_v37 }
 0x6c0   : > { %v9698_v13 = vsub.f32 %v9627_v53, %v4631_v37  ;;  %v9701_v32 = vsub.f32 %v9631_v4, %v4631_v37  ;;  %v9704_v52 = vsub.f32 %v9635_v15, %v4631_v37  ;;  %v9707_v33 = vsub.f32 %v9639_v60, %v4631_v37 }
 0x6c1   : > { %v9710_v43 = vsub.f32 %v9643_v2, %v4631_v37  ;;  %v9713_v49 = vsub.f32 %v9647_v14, %v4631_v37  ;;  %v9716_v29 = vsub.f32 %v9651_v28, %v4631_v37  ;;  %v9719_v53 = vsub.f32 %v9655_v20, %v4631_v37 }
 0x6c2   : > { %v9722_v4 = vsub.f32 %v9659_v56, %v4631_v37  ;;  %v9725_v15 = vsub.f32 %v9663_v26, %v4631_v37  ;;  %v9727_v60 = vsub.f32 %v4566_v27, %v4631_v37  ;;  %v9729_v55 = vsub.f32 %v4571_v46, %v4631_v37 }
 0x6c3   : > { %v9731_v2 = vsub.f32 %v4576_v38, %v4631_v37  ;;  %v9733_v14 = vsub.f32 %v4581_v44, %v4631_v37  ;;  %v9735_v10 = vsub.f32 %v4586_v9, %v4631_v37  ;;  %v9737_v28 = vsub.f32 %v4591_v7, %v4631_v37 }
 0x6c4   : > { %v9740_v20 = vsub.f32 %v9564_v25, %v4631_v37  ;;  %v9743_v56 = vsub.f32 %v9567_v50, %v4631_v37  ;;  %v9746_v26 = vsub.f32 %v9572_v48, %v4631_v37  ;;  %v9753_v11 = vsub.f32 %v9575_v57, %v4631_v37 }
 0x6c5   : > { %v9756_v46 = vsub.f32 %v9579_v8, %v4631_v37  ;;  %v9761_v22 = vsub.f32 %v9583_v40, %v4631_v37  ;;  %v9766_v30 = vsub.f32 %v9587_v17, %v4631_v37  ;;  %v9771_v8 = vsub.f32 %v9591_v47, %v4631_v37 }
 0x6c6   : > { %v4664_v27 = vmul.f32 %v9740_v20, %v9740_v20  ;;  %v4665_v51 = vmul.f32 %v9743_v56, %v9743_v56  ;;  %v4666_v25 = vmul.f32 %v9746_v26, %v9746_v26  ;;  %v4667_v48 = vmul.f32 %v9753_v11, %v9753_v11 }
 0x6c7   : > { %v4668_v57 = vmul.f32 %v9756_v46, %v9756_v46  ;;  %v4669_v45 = vmul.f32 %v9761_v22, %v9761_v22  ;;  %v4670_v40 = vmul.f32 %v9766_v30, %v9766_v30  ;;  %v4671_v44 = vmul.f32 %v9771_v8, %v9771_v8 }
 0x6c8   : > { %v4696_v50 = vadd.f32 %v4665_v51, %v4664_v27  ;;  %v4672_v0 = vmul.f32 %v9674_v36, %v9674_v36  ;;  %v4673_v47 = vmul.f32 %v9677_v39, %v9677_v39  ;;  %v4674_v9 = vmul.f32 %v9680_v35, %v9680_v35 }
 0x6c9   : > { %v4675_v42 = vmul.f32 %v9683_v59, %v9683_v59  ;;  %v4676_v58 = vmul.f32 %v9686_v21, %v9686_v21  ;;  %v4677_v24 = vmul.f32 %v9689_v3, %v9689_v3  ;;  %v4678_v16 = vmul.f32 %v9692_v41, %v9692_v41 }
 0x6ca   : > { %v4697_v6 = vadd.f32 %v4696_v50, %v4666_v25  ;;  %v4679_v18 = vmul.f32 %v9695_v5, %v9695_v5  ;;  %v4680_v62 = vmul.f32 %v9698_v13, %v9698_v13  ;;  %v4681_v27 = vmul.f32 %v9701_v32, %v9701_v32  ;;  %v4800_v25 = vld [vmem:[#allocation8 + $0x78] sm:$0xff]  ;;  %v4799_v50 = vld [vmem:[#allocation8 + $0x70] sm:$0xff] }
 0x6cb   : > { %6259 = vmatprep.subr.mxu1 %v4800_v25 }
 0x6cc   : > { %v4698_v38 = vadd.f32 %v4697_v6, %v4667_v48  ;;  %v4682_v48 = vmul.f32 %v9704_v52, %v9704_v52  ;;  %6260 = vmatpush3.msra.mxu1 %v4800_v25  ;;  %v4692_v25 = vmul.f32 %v9731_v2, %v9731_v2 }
 0x6cd   : > { %6261 = vmatprep.subr.mxu1 %v4799_v50 }
 0x6ce   : > { %v4699_v34 = vadd.f32 %v4698_v38, %v4668_v57  ;;  %v4798_v57 = vld [vmem:[#allocation8 + $0x68] sm:$0xff]  ;;  %v4683_v38 = vmul.f32 %v9707_v33, %v9707_v33  ;;  %6262 = vmatpush3.msra.mxu1 %v4799_v50 }
 0x6cf   : > { %6263 = vmatprep.subr.mxu1 %v4798_v57 }
 0x6d0   : > { %v4700_v1 = vadd.f32 %v4699_v34, %v4669_v45  ;;  %v4797_v34 = vld [vmem:[#allocation8 + $0x60] sm:$0xff]  ;;  %6264 = vmatpush3.msra.mxu1 %v4798_v57 }
 0x6d1   : > { %6265 = vmatprep.subr.mxu1 %v4797_v34 }
 0x6d2   : > { %v4701_v17 = vadd.f32 %v4700_v1, %v4670_v40  ;;  %v4684_v40 = vmul.f32 %v9710_v43, %v9710_v43  ;;  %6266 = vmatpush3.msra.mxu1 %v4797_v34 }
 0x6d4   : > { %v4702_v61 = vadd.f32 %v4701_v17, %v4671_v44  ;;  %v4796_v44 = vld [vmem:[#allocation8 + $0x58] sm:$0xff]  ;;  %v4685_v17 = vmul.f32 %v9713_v49, %v9713_v49 }
 0x6d5   : > { %6267 = vmatprep.subr.mxu1 %v4796_v44 }
 0x6d6   : > { %v4703_v23 = vadd.f32 %v4702_v61, %v4672_v0  ;;  %v4795_v61 = vld [vmem:[#allocation8 + $0x50] sm:$0xff]  ;;  %6268 = vmatpush3.msra.mxu1 %v4796_v44 }
 0x6d7   : > { %6269 = vmatprep.subr.mxu1 %v4795_v61 }
 0x6d8   : > { %v4704_v63 = vadd.f32 %v4703_v23, %v4673_v47  ;;  %v4686_v47 = vmul.f32 %v9716_v29, %v9716_v29  ;;  %6270 = vmatpush3.msra.mxu1 %v4795_v61 }
 0x6da   : > { %v4705_v7 = vadd.f32 %v4704_v63, %v4674_v9  ;;  %v4794_v9 = vld [vmem:[#allocation8 + $0x48] sm:$0xff]  ;;  %v4687_v63 = vmul.f32 %v9719_v53, %v9719_v53 }
 0x6db   : > { %6271 = vmatprep.subr.mxu1 %v4794_v9 }
 0x6dc   : > { %v4706_v54 = vadd.f32 %v4705_v7, %v4675_v42  ;;  %v4793_v7 = vld [vmem:[#allocation8 + $0x40] sm:$0xff]  ;;  %6272 = vmatpush3.msra.mxu1 %v4794_v9 }
 0x6dd   : > { %6273 = vmatprep.subr.mxu1 %v4793_v7 }
 0x6de   : > { %v4707_v12 = vadd.f32 %v4706_v54, %v4676_v58  ;;  %v4688_v58 = vmul.f32 %v9722_v4, %v9722_v4  ;;  %6274 = vmatpush3.msra.mxu1 %v4793_v7 }
 0x6e0   : > { %v4708_v19 = vadd.f32 %v4707_v12, %v4677_v24  ;;  %v4792_v24 = vld [vmem:[#allocation8 + $0x38] sm:$0xff]  ;;  %v4689_v12 = vmul.f32 %v9725_v15, %v9725_v15 }
 0x6e1   : > { %6275 = vmatprep.subr.mxu1 %v4792_v24 }
 0x6e2   : > { %v4709_v31 = vadd.f32 %v4708_v19, %v4678_v16  ;;  %v4791_v19 = vld [vmem:[#allocation8 + $0x30] sm:$0xff]  ;;  %6276 = vmatpush3.msra.mxu1 %v4792_v24 }
 0x6e3   : > { %6277 = vmatprep.subr.mxu1 %v4791_v19 }
 0x6e4   : > { %v4710_v37 = vadd.f32 %v4709_v31, %v4679_v18  ;;  %v4690_v18 = vmul.f32 %v9727_v60, %v9727_v60  ;;  %6278 = vmatpush3.msra.mxu1 %v4791_v19 }
 0x6e6   : > { %v4711_v51 = vadd.f32 %v4710_v37, %v4680_v62  ;;  %v4790_v62 = vld [vmem:[#allocation8 + $0x28] sm:$0xff]  ;;  %v4691_v37 = vmul.f32 %v9729_v55, %v9729_v55 }
 0x6e7   : > { %6279 = vmatprep.subr.mxu1 %v4790_v62 }
 0x6e8   : > { %v4712_v6 = vadd.f32 %v4711_v51, %v4681_v27  ;;  %v4789_v51 = vld [vmem:[#allocation8 + $0x20] sm:$0xff]  ;;  %6280 = vmatpush3.msra.mxu1 %v4790_v62 }
 0x6e9   : > { %6281 = vmatprep.subr.mxu1 %v4789_v51 }
 0x6ea   : > { %v4713_v45 = vadd.f32 %v4712_v6, %v4682_v48  ;;  %v4788_v48 = vld [vmem:[#allocation8 + $0x18] sm:$0xff]  ;;  %v4693_v6 = vmul.f32 %v9733_v14, %v9733_v14  ;;  %6282 = vmatpush3.msra.mxu1 %v4789_v51 }
 0x6eb   : > { %6283 = vmatprep.subr.mxu1 %v4788_v48 }
 0x6ec   : > { %v4714_v1 = vadd.f32 %v4713_v45, %v4683_v38  ;;  %v4787_v38 = vld [vmem:[#allocation8 + $0x10] sm:$0xff]  ;;  %v4694_v45 = vmul.f32 %v9735_v10, %v9735_v10  ;;  %6284 = vmatpush3.msra.mxu1 %v4788_v48 }
 0x6ed   : > { %6285 = vmatprep.subr.mxu1 %v4787_v38 }
 0x6ee   : > { %v4715_v0 = vadd.f32 %v4714_v1, %v4684_v40  ;;  %v4695_v40 = vmul.f32 %v9737_v28, %v9737_v28  ;;  %6286 = vmatpush3.msra.mxu1 %v4787_v38 }
 0x6f0   : > { %v4716_v23 = vadd.f32 %v4715_v0, %v4685_v17 }
 0x6f2   : > { %v4717_v42 = vadd.f32 %v4716_v23, %v4686_v47 }
 0x6f4   : > { %v4718_v54 = vadd.f32 %v4717_v42, %v4687_v63 }
 0x6f6   : > { %v4719_v16 = vadd.f32 %v4718_v54, %v4688_v58 }
 0x6f8   : > { %v4720_v31 = vadd.f32 %v4719_v16, %v4689_v12 }
 0x6fa   : > { %v4721_v27 = vadd.f32 %v4720_v31, %v4690_v18 }
 0x6fc   : > { %v4722_v50 = vadd.f32 %v4721_v27, %v4691_v37 }
 0x6fe   : > { %v4723_v57 = vadd.f32 %v4722_v50, %v4692_v25 }
 0x700   : > { %v4724_v34 = vadd.f32 %v4723_v57, %v4693_v6 }
 0x702   : > { %v4725_v1 = vadd.f32 %v4724_v34, %v4694_v45 }
 0x704   : > { %v4726_v44 = vadd.f32 %v4725_v1, %v4695_v40 }
 0x706   : > { %v4727_v17 = vrot.slane %v4726_v44, 4 }
 0x708   : > { %v4728_v0 = vadd.f32 %v4727_v17, %v4726_v44 }
 0x70a   : > { %v4729_v61 = vrot.slane %v4728_v0, 2 }
 0x70c   : > { %v4730_v47 = vadd.f32 %v4729_v61, %v4728_v0 }
 0x70e   : > { %v4731_v23 = vrot.slane %v4730_v47, 1 }
 0x710   : > { %v4732_v9 = vadd.f32 %v4731_v23, %v4730_v47 }
 0x712   : > { %v4733_v63 = vmul.f32 0.00390625, %v4732_v9 }
 0x714   : > { %v4734_v42 = vadd.f32 1e-05, %v4733_v63 }
 0x716   : > { %6417 = vrsqrt.f32 %v4734_v42 }
 0x723   : > { %v9827_v7 = vpop.eup %6417 }
 0x724   : > { %v4737_v58 = vmul.f32 %v9827_v7, %v9743_v56  ;;  %v4736_v54 = vmul.f32 %v9827_v7, %v9740_v20  ;;  %v4738_v24 = vmul.f32 %v9827_v7, %v9746_v26  ;;  %v4739_v12 = vmul.f32 %v9827_v7, %v9753_v11 }
 0x725   : > { %v4740_v16 = vmul.f32 %v9827_v7, %v9756_v46  ;;  %v4741_v56 = vmul.f32 %v9827_v7, %v9761_v22  ;;  %v4742_v20 = vmul.f32 %v9827_v7, %v9766_v30  ;;  %v4743_v26 = vmul.f32 %v9827_v7, %v9771_v8 }
 0x726   : > { %6211 = vmatprep.mubr.f32.mxu0 %v4736_v54  ;;  %v4744_v19 = vmul.f32 %v9827_v7, %v9674_v36  ;;  %v4745_v11 = vmul.f32 %v9827_v7, %v9677_v39  ;;  %v4746_v46 = vmul.f32 %v9827_v7, %v9680_v35  ;;  %v4747_v22 = vmul.f32 %v9827_v7, %v9683_v59 }
 0x727   : > { %6212 = vmatmul.mubr.f32.vlgmr.msra.gmra.mxu0 %v4737_v58  ;;  %v4748_v30 = vmul.f32 %v9827_v7, %v9686_v21  ;;  %v4749_v36 = vmul.f32 %v9827_v7, %v9689_v3  ;;  %v4750_v8 = vmul.f32 %v9827_v7, %v9692_v41  ;;  %v4751_v39 = vmul.f32 %v9827_v7, %v9695_v5 }
 0x728   : > { %6214 = vmatprep.mubr.f32.mxu0 %v4738_v24  ;;  %v4752_v35 = vmul.f32 %v9827_v7, %v9698_v13  ;;  %v4753_v59 = vmul.f32 %v9827_v7, %v9701_v32  ;;  %v4754_v21 = vmul.f32 %v9827_v7, %v9704_v52  ;;  %v4755_v3 = vmul.f32 %v9827_v7, %v9707_v33 }
 0x729   : > { %v4756_v41 = vmul.f32 %v9827_v7, %v9710_v43  ;;  %v4757_v5 = vmul.f32 %v9827_v7, %v9713_v49  ;;  %v4758_v13 = vmul.f32 %v9827_v7, %v9716_v29  ;;  %v4759_v32 = vmul.f32 %v9827_v7, %v9719_v53 }
 0x72a   : > { %v4760_v52 = vmul.f32 %v9827_v7, %v9722_v4  ;;  %v4761_v33 = vmul.f32 %v9827_v7, %v9725_v15  ;;  %v4762_v43 = vmul.f32 %v9827_v7, %v9727_v60  ;;  %v4763_v49 = vmul.f32 %v9827_v7, %v9729_v55  ;;  %v4786_v60 = vld [vmem:[#allocation8 + $0x8] sm:$0xff]  ;;  %v4785_v55 = vld [vmem:[#allocation8] sm:$0xff] }
 0x72b   : > { %6215 = vmatmul.mubr.f32.gmra.mxu0 %v4739_v12  ;;  %v4764_v29 = vmul.f32 %v9827_v7, %v9731_v2  ;;  %v4765_v53 = vmul.f32 %v9827_v7, %v9733_v14  ;;  %v4766_v4 = vmul.f32 %v9827_v7, %v9735_v10  ;;  %v4767_v15 = vmul.f32 %v9827_v7, %v9737_v28  ;;  %v9897_v2 = vld [vmem:[%s456_s14] ss:$0 sm:$0xff]  ;;  %s6579_s14 = smov [#allocation9]  }
 0x72c   : > { %6217 = vmatprep.mubr.f32.mxu0 %v4740_v16  ;;  %6287 = vmatprep.subr.mxu1 %v4786_v60  ;;  %s6507_s19 = sshll.u32 %s6579_s14, 4  ;;  %s6508_s19 = int_to_ptr.vmem [resolvable:$false] %s6507_s19 }
 0x72d   : > { %6288 = vmatpush3.msra.mxu1 %v4786_v60  ;;  %s6509_s15 = scalar_lea.vmem %s6508_s19, 8192  ;;  %p6510_p7 = scmp.lt.s32.totalorder %s10041_s13, %s6508_s19 }
 0x72e   : > { %6289 = vmatprep.subr.mxu1 %v4785_v55  ;;  %p6511_p8 = scmp.lt.s32.totalorder %s6509_s15, %s6503_s26 }
 0x72f   : > { %6218 = vmatmul.mubr.f32.gmra.mxu0 %v4741_v56  ;;  %6290 = vmatpush3.msra.mxu1 %v4785_v55 }
 0x730   : > { %6220 = vmatprep.mubr.f32.mxu0 %v4742_v20  ;;  %p6512_p11 = por %p6511_p8, %p6510_p7 }
 0x732   : > { %p6513_p0 = pnand %p6512_p11, %p6506_p4 }
 0x733   : > { %6221 = vmatmul.mubr.f32.gmra.mxu0 %v4743_v26 }
 0x734   : > { %6223 = vmatprep.mubr.f32.mxu0 %v4744_v19 }
 0x737   : > { %6224 = vmatmul.mubr.f32.gmra.mxu0 %v4745_v11 }
 0x738   : > { %6226 = vmatprep.mubr.f32.mxu0 %v4746_v46 }
 0x73b   : > { %6227 = vmatmul.mubr.f32.gmra.mxu0 %v4747_v22 }
 0x73c   : > { %6229 = vmatprep.mubr.f32.mxu0 %v4748_v30 }
 0x73f   : > { %6230 = vmatmul.mubr.f32.gmra.mxu0 %v4749_v36 }
 0x740   : > { %6232 = vmatprep.mubr.f32.mxu0 %v4750_v8 }
 0x743   : > { %6233 = vmatmul.mubr.f32.gmra.mxu0 %v4751_v39 }
 0x744   : > { %6235 = vmatprep.mubr.f32.mxu0 %v4752_v35 }
 0x747   : > { %6236 = vmatmul.mubr.f32.gmra.mxu0 %v4753_v59 }
 0x748   : > { %6238 = vmatprep.mubr.f32.mxu0 %v4754_v21 }
 0x74b   : > { %6239 = vmatmul.mubr.f32.gmra.mxu0 %v4755_v3 }
 0x74c   : > { %6241 = vmatprep.mubr.f32.mxu0 %v4756_v41 }
 0x74f   : > { %6242 = vmatmul.mubr.f32.gmra.mxu0 %v4757_v5 }
 0x750   : > { %6244 = vmatprep.mubr.f32.mxu0 %v4758_v13 }
 0x753   : > { %6245 = vmatmul.mubr.f32.gmra.mxu0 %v4759_v32 }
 0x754   : > { %6247 = vmatprep.mubr.f32.mxu0 %v4760_v52 }
 0x757   : > { %6248 = vmatmul.mubr.f32.gmra.mxu0 %v4761_v33 }
 0x758   : > { %6250 = vmatprep.mubr.f32.mxu0 %v4762_v43 }
 0x75b   : > { %6251 = vmatmul.mubr.f32.gmra.mxu0 %v4763_v49 }
 0x75c   : > { %6253 = vmatprep.mubr.f32.mxu0 %v4764_v29 }
 0x75f   : > { %6254 = vmatmul.mubr.f32.gmra.mxu0 %v4765_v53 }
 0x760   : > { %6256 = vmatprep.mubr.f32.mxu0 %v4766_v4 }
 0x763   : > { %6257 = vmatmul.mubr.f32.gmra.mxu0 %v4767_v15 }
 0x7e7   : > { %v6213_v14 = vpop.f32.mrf.mxu0 }
 0x7e8   : > { %v5034_v10 = vadd.f32 %v6213_v14, %v9897_v2 }
 0x7e9   : > { %v4868_v18 = vpop.f32.mrf.mxu0 }
 0x7ea   : > { %v5033_v31 = vadd.f32 %v9897_v2, %v4868_v18  ;;  %v5066_v37 = vmax.f32 %v5034_v10, 0.0 }
 0x7eb   : > { %v6216_v28 = vpop.f32.mrf.mxu0 }
 0x7ec   : > { %v5065_v62 = vmax.f32 %v5033_v31, 0.0  ;;  %v5036_v27 = vadd.f32 %v6216_v28, %v9897_v2 }
 0x7ed   : > { %v4878_v51 = vpop.f32.mrf.mxu0 }
 0x7ee   : > { %v5035_v25 = vadd.f32 %v9897_v2, %v4878_v51  ;;  %6291 = vmatprep.mubr.f32.mxu1 %v5065_v62  ;;  %v5068_v6 = vmax.f32 %v5036_v27, 0.0 }
 0x7ef   : > { %v6219_v50 = vpop.f32.mrf.mxu0  ;;  %6292 = vmatmul.mubr.f32.vlgmr.msra.gmra.mxu1 %v5066_v37 }
 0x7f0   : > { %v5067_v48 = vmax.f32 %v5035_v25, 0.0  ;;  %v5038_v57 = vadd.f32 %v6219_v50, %v9897_v2 }
 0x7f1   : > { %v4888_v38 = vpop.f32.mrf.mxu0 }
 0x7f2   : > { %v5037_v45 = vadd.f32 %v9897_v2, %v4888_v38  ;;  %6294 = vmatprep.mubr.f32.mxu1 %v5067_v48  ;;  %v5070_v1 = vmax.f32 %v5038_v57, 0.0 }
 0x7f3   : > { %v6222_v34 = vpop.f32.mrf.mxu0  ;;  %6295 = vmatmul.mubr.f32.gmra.mxu1 %v5068_v6 }
 0x7f4   : > { %v5069_v40 = vmax.f32 %v5037_v45, 0.0  ;;  %v5040_v44 = vadd.f32 %v6222_v34, %v9897_v2 }
 0x7f5   : > { %v4898_v17 = vpop.f32.mrf.mxu0 }
 0x7f6   : > { %v5039_v0 = vadd.f32 %v9897_v2, %v4898_v17  ;;  %6297 = vmatprep.mubr.f32.mxu1 %v5069_v40  ;;  %v5072_v23 = vmax.f32 %v5040_v44, 0.0 }
 0x7f7   : > { %v6225_v61 = vpop.f32.mrf.mxu0  ;;  %6298 = vmatmul.mubr.f32.gmra.mxu1 %v5070_v1 }
 0x7f8   : > { %v5071_v47 = vmax.f32 %v5039_v0, 0.0  ;;  %v5042_v9 = vadd.f32 %v6225_v61, %v9897_v2 }
 0x7f9   : > { %v4908_v63 = vpop.f32.mrf.mxu0 }
 0x7fa   : > { %v5041_v42 = vadd.f32 %v9897_v2, %v4908_v63  ;;  %6300 = vmatprep.mubr.f32.mxu1 %v5071_v47  ;;  %v5074_v54 = vmax.f32 %v5042_v9, 0.0 }
 0x7fb   : > { %v6228_v7 = vpop.f32.mrf.mxu0  ;;  %6301 = vmatmul.mubr.f32.gmra.mxu1 %v5072_v23 }
 0x7fc   : > { %v5073_v58 = vmax.f32 %v5041_v42, 0.0  ;;  %v5044_v24 = vadd.f32 %v6228_v7, %v9897_v2 }
 0x7fd   : > { %v4918_v12 = vpop.f32.mrf.mxu0 }
 0x7fe   : > { %v5043_v16 = vadd.f32 %v9897_v2, %v4918_v12  ;;  %6303 = vmatprep.mubr.f32.mxu1 %v5073_v58  ;;  %v5076_v26 = vmax.f32 %v5044_v24, 0.0 }
 0x7ff   : > { %v6231_v56 = vpop.f32.mrf.mxu0  ;;  %6304 = vmatmul.mubr.f32.gmra.mxu1 %v5074_v54 }
 0x800   : > { %v5075_v20 = vmax.f32 %v5043_v16, 0.0  ;;  %v5046_v19 = vadd.f32 %v6231_v56, %v9897_v2  ;;  %v9935_v16 = vld [vmem:[%s10098_s10] ss:$0 sm:$0xff] }
 0x801   : > { %v4928_v11 = vpop.f32.mrf.mxu0 }
 0x802   : > { %v5045_v46 = vadd.f32 %v9897_v2, %v4928_v11  ;;  %6306 = vmatprep.mubr.f32.mxu1 %v5075_v20  ;;  %v5078_v36 = vmax.f32 %v5046_v19, 0.0 }
 0x803   : > { %v6234_v22 = vpop.f32.mrf.mxu0  ;;  %6307 = vmatmul.mubr.f32.gmra.mxu1 %v5076_v26 }
 0x804   : > { %v5077_v30 = vmax.f32 %v5045_v46, 0.0  ;;  %v5048_v8 = vadd.f32 %v6234_v22, %v9897_v2  ;;  %v10412_v46 = vld [vmem:[#allocation16_spill] sm:$0xff] }
 0x805   : > { %v4938_v39 = vpop.f32.mrf.mxu0 }
 0x806   : > { %v5047_v35 = vadd.f32 %v9897_v2, %v4938_v39  ;;  %6309 = vmatprep.mubr.f32.mxu1 %v5077_v30  ;;  %v5080_v3 = vmax.f32 %v5048_v8, 0.0  ;;  %v10413_v39 = vld [vmem:[#allocation15_spill] sm:$0xff] }
 0x807   : > { %v6237_v59 = vpop.f32.mrf.mxu0  ;;  %6310 = vmatmul.mubr.f32.gmra.mxu1 %v5078_v36 }
 0x808   : > { %v5079_v21 = vmax.f32 %v5047_v35, 0.0  ;;  %v5050_v41 = vadd.f32 %v6237_v59, %v9897_v2 }
 0x809   : > { %v4948_v5 = vpop.f32.mrf.mxu0 }
 0x80a   : > { %v5049_v13 = vadd.f32 %v9897_v2, %v4948_v5  ;;  %6312 = vmatprep.mubr.f32.mxu1 %v5079_v21  ;;  %v5082_v33 = vmax.f32 %v5050_v41, 0.0  ;;  %v10414_v41 = vld [vmem:[#allocation18_spill] sm:$0xff] }
 0x80b   : > { %v6240_v32 = vpop.f32.mrf.mxu0  ;;  %6313 = vmatmul.mubr.f32.gmra.mxu1 %v5080_v3 }
 0x80c   : > { %v5081_v52 = vmax.f32 %v5049_v13, 0.0  ;;  %v5052_v43 = vadd.f32 %v6240_v32, %v9897_v2 }
 0x80d   : > { %v4958_v49 = vpop.f32.mrf.mxu0 }
 0x80e   : > { %v5051_v29 = vadd.f32 %v9897_v2, %v4958_v49  ;;  %6315 = vmatprep.mubr.f32.mxu1 %v5081_v52  ;;  %v5084_v15 = vmax.f32 %v5052_v43, 0.0 }
 0x80f   : > { %v6243_v53 = vpop.f32.mrf.mxu0  ;;  %6316 = vmatmul.mubr.f32.gmra.mxu1 %v5082_v33  ;;  %v10415_v33 = vld [vmem:[#allocation17_spill] sm:$0xff] }
 0x810   : > { %v5083_v4 = vmax.f32 %v5051_v29, 0.0  ;;  %v5054_v60 = vadd.f32 %v6243_v53, %v9897_v2 }
 0x811   : > { %v4968_v55 = vpop.f32.mrf.mxu0 }
 0x812   : > { %v5053_v14 = vadd.f32 %v9897_v2, %v4968_v55  ;;  %6318 = vmatprep.mubr.f32.mxu1 %v5083_v4  ;;  %v5086_v31 = vmax.f32 %v5054_v60, 0.0  ;;  %v10416_v4 = vld [vmem:[#allocation20_spill] sm:$0xff] }
 0x813   : > { %v6246_v10 = vpop.f32.mrf.mxu0  ;;  %6319 = vmatmul.mubr.f32.gmra.mxu1 %v5084_v15 }
 0x814   : > { %v5085_v18 = vmax.f32 %v5053_v14, 0.0  ;;  %v5056_v28 = vadd.f32 %v6246_v10, %v9897_v2  ;;  %v10417_v10 = vld [vmem:[#allocation19_spill] sm:$0xff] }
 0x815   : > { %v4978_v62 = vpop.f32.mrf.mxu0 }
 0x816   : > { %v5055_v37 = vadd.f32 %v9897_v2, %v4978_v62  ;;  %6321 = vmatprep.mubr.f32.mxu1 %v5085_v18  ;;  %v5088_v25 = vmax.f32 %v5056_v28, 0.0 }
 0x817   : > { %v6249_v27 = vpop.f32.mrf.mxu0  ;;  %6322 = vmatmul.mubr.f32.gmra.mxu1 %v5086_v31 }
 0x818   : > { %v5087_v51 = vmax.f32 %v5055_v37, 0.0  ;;  %v5058_v50 = vadd.f32 %v6249_v27, %v9897_v2  ;;  %v10418_v37 = vld [vmem:[#allocation22_spill] sm:$0xff] }
 0x819   : > { %v4988_v48 = vpop.f32.mrf.mxu0 }
 0x81a   : > { %v5057_v6 = vadd.f32 %v9897_v2, %v4988_v48  ;;  %6324 = vmatprep.mubr.f32.mxu1 %v5087_v51  ;;  %v5090_v45 = vmax.f32 %v5058_v50, 0.0  ;;  %v10419_v48 = vld [vmem:[#allocation21_spill] sm:$0xff] }
 0x81b   : > { %v6252_v57 = vpop.f32.mrf.mxu0  ;;  %6325 = vmatmul.mubr.f32.gmra.mxu1 %v5088_v25 }
 0x81c   : > { %v5089_v38 = vmax.f32 %v5057_v6, 0.0  ;;  %v5060_v34 = vadd.f32 %v6252_v57, %v9897_v2 }
 0x81d   : > { %v4998_v40 = vpop.f32.mrf.mxu0 }
 0x81e   : > { %v5059_v1 = vadd.f32 %v9897_v2, %v4998_v40  ;;  %6327 = vmatprep.mubr.f32.mxu1 %v5089_v38  ;;  %v5092_v0 = vmax.f32 %v5060_v34, 0.0  ;;  %v10420_v34 = vld [vmem:[#allocation24_spill] sm:$0xff] }
 0x81f   : > { %v6255_v44 = vpop.f32.mrf.mxu0  ;;  %6328 = vmatmul.mubr.f32.gmra.mxu1 %v5090_v45 }
 0x820   : > { %v5091_v17 = vmax.f32 %v5059_v1, 0.0  ;;  %v5062_v61 = vadd.f32 %v6255_v44, %v9897_v2 }
 0x821   : > { %v5008_v47 = vpop.f32.mrf.mxu0 }
 0x822   : > { %v5061_v23 = vadd.f32 %v9897_v2, %v5008_v47  ;;  %6330 = vmatprep.mubr.f32.mxu1 %v5091_v17  ;;  %v5094_v42 = vmax.f32 %v5062_v61, 0.0 }
 0x823   : > { %v6258_v9 = vpop.f32.mrf.mxu0  ;;  %6331 = vmatmul.mubr.f32.gmra.mxu1 %v5092_v0  ;;  %v10421_v0 = vld [vmem:[#allocation23_spill] sm:$0xff] }
 0x824   : > { %v5093_v63 = vmax.f32 %v5061_v23, 0.0  ;;  %v5064_v7 = vadd.f32 %v6258_v9, %v9897_v2 }
 0x825   : > { %v5018_v58 = vpop.f32.mrf.mxu0 }
 0x826   : > { %v5063_v54 = vadd.f32 %v9897_v2, %v5018_v58  ;;  %6333 = vmatprep.mubr.f32.mxu1 %v5093_v63  ;;  %v5096_v12 = vmax.f32 %v5064_v7, 0.0  ;;  %v10422_v63 = vld [vmem:[#allocation26_spill] sm:$0xff] }
 0x827   : > { %6334 = vmatmul.mubr.f32.gmra.mxu1 %v5094_v42 }
 0x828   : > { %v5095_v24 = vmax.f32 %v5063_v54, 0.0 }
 0x82a   : > { %6336 = vmatprep.mubr.f32.mxu1 %v5095_v24  ;;  %v10423_v24 = vld [vmem:[#allocation25_spill] sm:$0xff] }
 0x82b   : > { %6337 = vmatmul.mubr.f32.gmra.mxu1 %v5096_v12 }
 0x8af   : > { %v6293_v56 = vpop.f32.mrf.mxu1 }
 0x8b0   : > { %v5175_v20 = vadd.f32 %v6293_v56, %v9935_v16 }
 0x8b1   : > { %v5169_v26 = vpop.f32.mrf.mxu1 }
 0x8b2   : > { %v5329_v19 = vmax.f32 %v5175_v20, 0.0  ;;  %v5170_v2 = vadd.f32 %v9935_v16, %v5169_v26 }
 0x8b3   : > { %v6296_v11 = vpop.f32.mrf.mxu1 }
 0x8b4   : > { %v5361_v22 = vadd.f32 %v5329_v19, %v10412_v46  ;;  %v5328_v30 = vmax.f32 %v5170_v2, 0.0  ;;  %v5185_v36 = vadd.f32 %v6296_v11, %v9935_v16  ;;  %v10424_v19 = vld [vmem:[#allocation28_spill] sm:$0xff] }
 0x8b5   : > { %v5179_v8 = vpop.f32.mrf.mxu1 }
 0x8b6   : > { %5393 = vst [vmem:[%s9943_s30 + $0x8] sm:$0xff] %v5361_v22  ;;  %v5360_v35 = vadd.f32 %v5328_v30, %v10413_v39  ;;  %v5331_v59 = vmax.f32 %v5185_v36, 0.0  ;;  %v5180_v21 = vadd.f32 %v9935_v16, %v5179_v8  ;;  %v10425_v30 = vld [vmem:[#allocation27_spill] sm:$0xff] }
 0x8b7   : > { %v6299_v3 = vpop.f32.mrf.mxu1 }
 0x8b8   : > { %5392 = vst [vmem:[%s9943_s30] sm:$0xff] %v5360_v35  ;;  %v5363_v5 = vadd.f32 %v5331_v59, %v10414_v41  ;;  %v5330_v13 = vmax.f32 %v5180_v21, 0.0  ;;  %v5195_v32 = vadd.f32 %v6299_v3, %v9935_v16  ;;  %v10426_v59 = vld [vmem:[#allocation32_spill] sm:$0xff] }
 0x8b9   : > { %v5189_v52 = vpop.f32.mrf.mxu1 }
 0x8ba   : > { %5395 = vst [vmem:[%s9943_s30 + $0x18] sm:$0xff] %v5363_v5  ;;  %v5362_v43 = vadd.f32 %v5330_v13, %v10415_v33  ;;  %v5333_v49 = vmax.f32 %v5195_v32, 0.0  ;;  %v5190_v29 = vadd.f32 %v9935_v16, %v5189_v52  ;;  %v10427_v13 = vld [vmem:[#allocation29_spill] sm:$0xff] }
 0x8bb   : > { %v6302_v53 = vpop.f32.mrf.mxu1 }
 0x8bc   : > { %5394 = vst [vmem:[%s9943_s30 + $0x10] sm:$0xff] %v5362_v43  ;;  %v5365_v15 = vadd.f32 %v5333_v49, %v10416_v4  ;;  %v5332_v60 = vmax.f32 %v5190_v29, 0.0  ;;  %v5205_v55 = vadd.f32 %v6302_v53, %v9935_v16  ;;  %v10428_v49 = vld [vmem:[#allocation37_spill] sm:$0xff] }
 0x8bd   : > { %v5199_v14 = vpop.f32.mrf.mxu1 }
 0x8be   : > { %5397 = vst [vmem:[%s9943_s30 + $0x28] sm:$0xff] %v5365_v15  ;;  %v5364_v18 = vadd.f32 %v5332_v60, %v10417_v10  ;;  %v5335_v31 = vmax.f32 %v5205_v55, 0.0  ;;  %v5200_v28 = vadd.f32 %v9935_v16, %v5199_v14  ;;  %v10429_v60 = vld [vmem:[#allocation33_spill] sm:$0xff] }
 0x8bf   : > { %v6305_v62 = vpop.f32.mrf.mxu1 }
 0x8c0   : > { %5396 = vst [vmem:[%s9943_s30 + $0x20] sm:$0xff] %v5364_v18  ;;  %v5367_v27 = vadd.f32 %v5335_v31, %v10418_v37  ;;  %v5334_v51 = vmax.f32 %v5200_v28, 0.0  ;;  %v5215_v25 = vadd.f32 %v6305_v62, %v9935_v16  ;;  %v10430_v31 = vld [vmem:[#allocation43_spill] sm:$0xff] }
 0x8c1   : > { %v5209_v50 = vpop.f32.mrf.mxu1 }
 0x8c2   : > { %5399 = vst [vmem:[%s9943_s30 + $0x38] sm:$0xff] %v5367_v27  ;;  %v5366_v6 = vadd.f32 %v5334_v51, %v10419_v48  ;;  %v5337_v57 = vmax.f32 %v5215_v25, 0.0  ;;  %v5210_v38 = vadd.f32 %v9935_v16, %v5209_v50  ;;  %v10431_v51 = vld [vmem:[#allocation39_spill] sm:$0xff] }
 0x8c3   : > { %v6308_v45 = vpop.f32.mrf.mxu1 }
 0x8c4   : > { %5398 = vst [vmem:[%s9943_s30 + $0x30] sm:$0xff] %v5366_v6  ;;  %v5369_v40 = vadd.f32 %v5337_v57, %v10420_v34  ;;  %v5336_v1 = vmax.f32 %v5210_v38, 0.0  ;;  %v5225_v44 = vadd.f32 %v6308_v45, %v9935_v16  ;;  %v10432_v57 = vld [vmem:[#allocation49_spill] sm:$0xff] }
 0x8c5   : > { %v5219_v17 = vpop.f32.mrf.mxu1 }
 0x8c6   : > { %5401 = vst [vmem:[%s9943_s30 + $0x48] sm:$0xff] %v5369_v40  ;;  %v5368_v61 = vadd.f32 %v5336_v1, %v10421_v0  ;;  %v5339_v47 = vmax.f32 %v5225_v44, 0.0  ;;  %v5220_v23 = vadd.f32 %v9935_v16, %v5219_v17  ;;  %v10433_v1 = vld [vmem:[#allocation45_spill] sm:$0xff] }
 0x8c7   : > { %v6311_v9 = vpop.f32.mrf.mxu1 }
 0x8c8   : > { %5400 = vst [vmem:[%s9943_s30 + $0x40] sm:$0xff] %v5368_v61  ;;  %v5371_v42 = vadd.f32 %v5339_v47, %v10422_v63  ;;  %v5338_v7 = vmax.f32 %v5220_v23, 0.0  ;;  %v5235_v58 = vadd.f32 %v6311_v9, %v9935_v16  ;;  %v10434_v47 = vld [vmem:[#allocation55_spill] sm:$0xff] }
 0x8c9   : > { %v5229_v54 = vpop.f32.mrf.mxu1 }
 0x8ca   : > { %5403 = vst [vmem:[%s9943_s30 + $0x58] sm:$0xff] %v5371_v42  ;;  %v5370_v12 = vadd.f32 %v5338_v7, %v10423_v24  ;;  %v5341_v56 = vmax.f32 %v5235_v58, 0.0  ;;  %v5230_v20 = vadd.f32 %v9935_v16, %v5229_v54  ;;  %v10435_v7 = vld [vmem:[#allocation51_spill] sm:$0xff] }
 0x8cb   : > { %v6314_v26 = vpop.f32.mrf.mxu1 }
 0x8cc   : > { %5402 = vst [vmem:[%s9943_s30 + $0x50] sm:$0xff] %v5370_v12  ;;  %v5373_v2 = vadd.f32 %v5341_v56, %v10424_v19  ;;  %v5340_v11 = vmax.f32 %v5230_v20, 0.0  ;;  %v5245_v46 = vadd.f32 %v6314_v26, %v9935_v16  ;;  %v10436_v56 = vld [vmem:[#allocation61_spill] sm:$0xff] }
 0x8cd   : > { %v5239_v22 = vpop.f32.mrf.mxu1 }
 0x8ce   : > { %5405 = vst [vmem:[%s9943_s30 + $0x68] sm:$0xff] %v5373_v2  ;;  %v5372_v36 = vadd.f32 %v5340_v11, %v10425_v30  ;;  %v5343_v8 = vmax.f32 %v5245_v46, 0.0  ;;  %v5240_v39 = vadd.f32 %v9935_v16, %v5239_v22  ;;  %v10437_v11 = vld [vmem:[#allocation57_spill] sm:$0xff] }
 0x8cf   : > { %v6317_v35 = vpop.f32.mrf.mxu1 }
 0x8d0   : > { %5404 = vst [vmem:[%s9943_s30 + $0x60] sm:$0xff] %v5372_v36  ;;  %v5375_v21 = vadd.f32 %v5343_v8, %v10426_v59  ;;  %v5342_v3 = vmax.f32 %v5240_v39, 0.0  ;;  %v5255_v41 = vadd.f32 %v6317_v35, %v9935_v16  ;;  %v10438_v8 = vld [vmem:[#allocation65_spill] sm:$0xff] }
 0x8d1   : > { %v5249_v5 = vpop.f32.mrf.mxu1 }
 0x8d2   : > { %5407 = vst [vmem:[%s9943_s30 + $0x78] sm:$0xff] %v5375_v21  ;;  %v5374_v32 = vadd.f32 %v5342_v3, %v10427_v13  ;;  %v5345_v52 = vmax.f32 %v5255_v41, 0.0  ;;  %v5250_v33 = vadd.f32 %v9935_v16, %v5249_v5  ;;  %v10439_v3 = vld [vmem:[#allocation63_spill] sm:$0xff] }
 0x8d3   : > { %v6320_v43 = vpop.f32.mrf.mxu1 }
 0x8d4   : > { %5406 = vst [vmem:[%s9943_s30 + $0x70] sm:$0xff] %v5374_v32  ;;  %v5377_v29 = vadd.f32 %v5345_v52, %v10428_v49  ;;  %v5344_v53 = vmax.f32 %v5250_v33, 0.0  ;;  %v5265_v4 = vadd.f32 %v6320_v43, %v9935_v16  ;;  %v10440_v52 = vld [vmem:[#allocation69_spill] sm:$0xff] }
 0x8d5   : > { %v5259_v15 = vpop.f32.mrf.mxu1 }
 0x8d6   : > { %5409 = vst [vmem:[%s9943_s30 + $0x88] sm:$0xff] %v5377_v29  ;;  %v5376_v55 = vadd.f32 %v5344_v53, %v10429_v60  ;;  %v5347_v14 = vmax.f32 %v5265_v4, 0.0  ;;  %v5260_v10 = vadd.f32 %v9935_v16, %v5259_v15  ;;  %v10441_v53 = vld [vmem:[#allocation67_spill] sm:$0xff] }
 0x8d7   : > { %v6323_v18 = vpop.f32.mrf.mxu1 }
 0x8d8   : > { %5408 = vst [vmem:[%s9943_s30 + $0x80] sm:$0xff] %v5376_v55  ;;  %v5379_v28 = vadd.f32 %v5347_v14, %v10430_v31  ;;  %v5346_v62 = vmax.f32 %v5260_v10, 0.0  ;;  %v5275_v37 = vadd.f32 %v6323_v18, %v9935_v16  ;;  %v10442_v55 = vld [vmem:[#allocation31_spill] sm:$0xff]  ;;  %v10443_v18 = vld [vmem:[#allocation34_spill] sm:$0xff] }
 0x8d9   : > { %v5269_v27 = vpop.f32.mrf.mxu1 }
 0x8da   : > { %5411 = vst [vmem:[%s9943_s30 + $0x98] sm:$0xff] %v5379_v28  ;;  %v5378_v25 = vadd.f32 %v5346_v62, %v10431_v51  ;;  %v5349_v50 = vmax.f32 %v5275_v37, 0.0  ;;  %v5270_v48 = vadd.f32 %v9935_v16, %v5269_v27 }
 0x8db   : > { %v6326_v6 = vpop.f32.mrf.mxu1 }
 0x8dc   : > { %5410 = vst [vmem:[%s9943_s30 + $0x90] sm:$0xff] %v5378_v25  ;;  %v5381_v38 = vadd.f32 %v5349_v50, %v10432_v57  ;;  %v5348_v45 = vmax.f32 %v5270_v48, 0.0  ;;  %v5285_v34 = vadd.f32 %v6326_v6, %v9935_v16 }
 0x8dd   : > { %v5279_v40 = vpop.f32.mrf.mxu1 }
 0x8de   : > { %5413 = vst [vmem:[%s9943_s30 + $0xa8] sm:$0xff] %v5381_v38  ;;  %v5380_v44 = vadd.f32 %v5348_v45, %v10433_v1  ;;  %v5351_v17 = vmax.f32 %v5285_v34, 0.0  ;;  %v5280_v0 = vadd.f32 %v9935_v16, %v5279_v40 }
 0x8df   : > { %v6329_v61 = vpop.f32.mrf.mxu1 }
 0x8e0   : > { %5412 = vst [vmem:[%s9943_s30 + $0xa0] sm:$0xff] %v5380_v44  ;;  %v5383_v23 = vadd.f32 %v5351_v17, %v10434_v47  ;;  %v5350_v9 = vmax.f32 %v5280_v0, 0.0  ;;  %v5295_v63 = vadd.f32 %v6329_v61, %v9935_v16 }
 0x8e1   : > { %v5289_v42 = vpop.f32.mrf.mxu1 }
 0x8e2   : > { %5415 = vst [vmem:[%s9943_s30 + $0xb8] sm:$0xff] %v5383_v23  ;;  %v5382_v58 = vadd.f32 %v5350_v9, %v10435_v7  ;;  %v5353_v54 = vmax.f32 %v5295_v63, 0.0  ;;  %v5290_v24 = vadd.f32 %v9935_v16, %v5289_v42 }
 0x8e3   : > { %v6332_v12 = vpop.f32.mrf.mxu1 }
 0x8e4   : > { %5414 = vst [vmem:[%s9943_s30 + $0xb0] sm:$0xff] %v5382_v58  ;;  %v5385_v20 = vadd.f32 %v5353_v54, %v10436_v56  ;;  %v5352_v26 = vmax.f32 %v5290_v24, 0.0  ;;  %v5305_v19 = vadd.f32 %v6332_v12, %v9935_v16 }
 0x8e5   : > { %v5299_v2 = vpop.f32.mrf.mxu1 }
 0x8e6   : > { %5417 = vst [vmem:[%s9943_s30 + $0xc8] sm:$0xff] %v5385_v20  ;;  %v5384_v46 = vadd.f32 %v5352_v26, %v10437_v11  ;;  %v5355_v22 = vmax.f32 %v5305_v19, 0.0  ;;  %v5300_v30 = vadd.f32 %v9935_v16, %v5299_v2 }
 0x8e7   : > { %v6335_v36 = vpop.f32.mrf.mxu1 }
 0x8e8   : > { %5416 = vst [vmem:[%s9943_s30 + $0xc0] sm:$0xff] %v5384_v46  ;;  %v5387_v39 = vadd.f32 %v5355_v22, %v10438_v8  ;;  %v5354_v35 = vmax.f32 %v5300_v30, 0.0  ;;  %v5315_v59 = vadd.f32 %v6335_v36, %v9935_v16 }
 0x8e9   : > { %v5309_v21 = vpop.f32.mrf.mxu1 }
 0x8ea   : > { %5419 = vst [vmem:[%s9943_s30 + $0xd8] sm:$0xff] %v5387_v39  ;;  %v5386_v41 = vadd.f32 %v5354_v35, %v10439_v3  ;;  %v5357_v5 = vmax.f32 %v5315_v59, 0.0  ;;  %v5310_v13 = vadd.f32 %v9935_v16, %v5309_v21 }
 0x8eb   : > { %v6338_v32 = vpop.f32.mrf.mxu1 }
 0x8ec   : > { %5418 = vst [vmem:[%s9943_s30 + $0xd0] sm:$0xff] %v5386_v41  ;;  %v5389_v33 = vadd.f32 %v5357_v5, %v10440_v52  ;;  %v5356_v43 = vmax.f32 %v5310_v13, 0.0  ;;  %v5325_v49 = vadd.f32 %v6338_v32, %v9935_v16 }
 0x8ed   : > { %v5319_v29 = vpop.f32.mrf.mxu1 }
 0x8ee   : > { %5421 = vst [vmem:[%s9943_s30 + $0xe8] sm:$0xff] %v5389_v33  ;;  %v5388_v4 = vadd.f32 %v5356_v43, %v10441_v53  ;;  %v5359_v15 = vmax.f32 %v5325_v49, 0.0  ;;  %v5320_v60 = vadd.f32 %v9935_v16, %v5319_v29 }
 0x8f0   : > { %5420 = vst [vmem:[%s9943_s30 + $0xe0] sm:$0xff] %v5388_v4  ;;  %v5391_v14 = vadd.f32 %v5359_v15, %v10442_v55  ;;  %v5358_v10 = vmax.f32 %v5320_v60, 0.0 }
 0x8f2   : > { %5423 = vst [vmem:[%s9943_s30 + $0xf8] sm:$0xff] %v5391_v14  ;;  %v5390_v31 = vadd.f32 %v5358_v10, %v10443_v18 }
 0x8f4   : > { %5422 = vst [vmem:[%s9943_s30 + $0xf0] sm:$0xff] %v5390_v31 }
 0x8f5   : > { %6516 = shalt.err (!%p6513_p0)
}
 0x8f6   : > { %s6517_s22 = scalar_lea.hbm %s10039_s29, 4096  ;;  %s6521_s16 = scalar_lea.hbm %s10099_s11, 8192 }
 0x8f7   : > { %p6518_p6 = scmp.ne.s32.totalorder %s10039_s29, %s6517_s22  ;;  %p6522_p1 = scmp.lt.s32.totalorder %s10039_s29, %s10099_s11 }
 0x8f8   : > { %p6523_p5 = scmp.lt.s32.totalorder %s6521_s16, %s6517_s22 }
 0x8f9   : > { %p6519_p9 = pnand %p6518_p6, %p10444_p3 }
 0x8fa   : > { %p6524_p10 = por %p6523_p5, %p6522_p1 }
 0x8fb   : > { %p6520_p13 = pneg %p6519_p9 }
 0x8fd   : > { %p6525_p12 = pnand %p6524_p10, %p6520_p13 }
 0x8ff   : > { %6528 = shalt.err (!%p6525_p12)
}
 0x900   : > { %s6580_s26 = smov 128   ;;  %s6581_s14 = smov 8  }
 0x901   : > { %6352 = dma.vmem_to_hbm [thread:$0]  (%p10444_p3), %s10041_s13, 4096, %s10039_s29, %s10048_s21, %s6580_s26, %s6580_s26, %s6581_s14  }
 0x902 PF: > { %p6374_p2 = scmp.ge.s32.totalorder %s6571_s20, 2  ;;  %s5453_s19 = sand.u32 1, %s6559_s17  }
 0x903   : > { %p10445_p4 = scmp.ne.s32.totalorder %s10249_s28, 0  ;;  %s5454_s15 = scalar_lea.sflag [#allocation5], %s5453_s19 }
 0x905   : > { %p6365_p7 = pnand %p6374_p2, %p10445_p4 }
 0x907   : > { %p6366_p8 = pneg %p6365_p7 }
 0x909   : > { %6554 = dma.done.wait (%p6366_p8), %s5454_s15, 4096  }
 0x90a   : > { %6556 = vsyncadd (%p6366_p8), %s5454_s15, 4294963200  ;;  %s10446_s22 = sld [smem:[#allocation13_spill]]  ;;  %p23_p11 = scmp.ge.s32.totalorder %s6667_s23, 4  }
 0x90b   : > { %s10447_s19 = sld [smem:[#allocation14_spill]]  ;;  %s10448_s17 = smov %s6563_s18 }
 0x90c   : > { %s10450_s20 = smov %s6667_s23  ;;  %25 = sbr.rel (!%p23_p11) target bundleno = 5 (0x5), region = 120 }
 0x910   : > { %s10449_s18 = smov %s10446_s22 }
 0x911   :  { %5459 = vsyncpa [#allocation4], 1 }
 0x912   :  { %5461 = vsyncpa [#allocation4 + $0x1], 1 }
 0x913   :  { %5462 = vsyncpa [#allocation7], 1 }
 0x914   :  { %5463 = vsyncpa [#allocation5], 1 }
 0x915   :  { %5465 = vsyncpa [#allocation5 + $0x1], 1 }

</bundles_post_ra>
